<compile_context>
chip_gen: v7x
topology: tpu7x:2x2x1
jax: 0.10.0
libtpu: 0.0.40
codegen_flags: <defaults>
</compile_context>

<pallas_src>
import jax
import jax.numpy as jnp
from jax import lax
from jax.experimental import pallas as pl
from jax.experimental.pallas import tpu as pltpu

H = W = 8
S = H * W          # 64 board squares
CIN = 13           # input planes
C = 64             # trunk channels
NB = 2             # number of ResBlocks
NCLS = 3           # output classes
EPS = 1e-5         # BatchNorm eps
PAD = 16           # zero rows above/below the block so shifted slices stay in-bounds
SHIFTS = tuple(8 * dy + dx for dy in (-1, 0, 1) for dx in (-1, 0, 1))  # tap row offsets


# ----------------------------- Pallas kernel --------------------------------
def chessnet_kernel(x_ref, mask_ref, seg_ref, wfc_ref, bfc_ref,
                    w1_ref, s1_ref, t1_ref,
                    wa_ref, sa_ref, ta_ref,
                    wb_ref, sb_ref, tb_ref,
                    out_ref):
    rows = x_ref.shape[0]                       # block_batch * 64
    mask = mask_ref[...]                        # (rows, 9*C) exact 0/1, f32
    zpad = jnp.zeros((PAD, C), jnp.float32)

    def conv3x3(h, w_stacked_bf16):
        # h: (rows, C) f32.  w_stacked_bf16: (9*C, C) bf16 (taps stacked on K).
        hp = jnp.concatenate([zpad, h, zpad], axis=0)          # (rows + 2*PAD, C)
        cols = [hp[PAD + sh: PAD + sh + rows, :] for sh in SHIFTS]
        im2col = jnp.concatenate(cols, axis=1) * mask          # (rows, 9*C) f32
        return jnp.dot(im2col.astype(jnp.bfloat16), w_stacked_bf16,
                       preferred_element_type=jnp.float32)     # (rows, C) f32

    # ---- ConvBlock: 1x1 conv (+bias) -> BN -> ReLU (bias & BN folded) ----
    h = jnp.dot(x_ref[...].astype(jnp.bfloat16), w1_ref[...],
                preferred_element_type=jnp.float32)
    h = jnp.maximum(h * s1_ref[...] + t1_ref[...], 0.0)

    # ---- ResBlocks ----
    for i in range(NB):
        residual = h
        o = conv3x3(h, wa_ref[i])
        o = jnp.maximum(o * sa_ref[i] + ta_ref[i], 0.0)
        o = conv3x3(o, wb_ref[i])
        o = o * sb_ref[i] + tb_ref[i]
        h = jnp.maximum(o + residual, 0.0)

    # ---- OutBlock: Linear(64*8*8 -> 3) + log_softmax ----
    # per-row, per-class contribution, then per-image segment sum (tiny matmul)
    r_cols = [jnp.sum(h * wfc_ref[k], axis=1, keepdims=True) for k in range(NCLS)]
    R = jnp.concatenate(r_cols, axis=1)                        # (rows, NCLS)
    logits = jnp.dot(seg_ref[...], R,
                     preferred_element_type=jnp.float32) + bfc_ref[...]
    m = jnp.max(logits, axis=1, keepdims=True)
    e = jnp.exp(logits - m)
    lse = m + jnp.log(jnp.sum(e, axis=1, keepdims=True))
    out_ref[...] = logits - lse


# --------------------------- parameter handling ------------------------------
def init_params(key):
    keys = iter(jax.random.split(key, 40))

    def nrm(shape, scale):
        return scale * jax.random.normal(next(keys), shape, jnp.float32)

    def bn_init():
        g = 1.0 + nrm((C,), 0.1)
        b = nrm((C,), 0.1)
        rm = nrm((C,), 0.1)
        rv = 1.0 + 0.5 * jax.random.uniform(next(keys), (C,), jnp.float32)
        return (g, b, rm, rv)

    params = {
        'conv1_w': nrm((C, CIN, 1, 1), 0.1),
        'conv1_b': nrm((C,), 0.1),
        'bn1': bn_init(),
        'fc_w': nrm((NCLS, C * S), 0.01),
        'fc_b': nrm((NCLS,), 0.1),
        'blocks': [],
    }
    for _ in range(NB):
        params['blocks'].append({
            'w1': nrm((C, C, 3, 3), 0.05),
            'bn1': bn_init(),
            'w2': nrm((C, C, 3, 3), 0.05),
            'bn2': bn_init(),
        })
    return params


def pack_params(p, bt):
    """Fold BN (inference), stack conv taps on K, build hoisted mask/seg constants."""
    rows = bt * S

    def bn_fold(bn, conv_bias=None):
        g, b, rm, rv = bn
        scale = g / jnp.sqrt(rv + EPS)
        shift = b - rm * scale
        if conv_bias is not None:
            shift = shift + conv_bias * scale
        return scale.reshape(1, C).astype(jnp.float32), shift.reshape(1, C).astype(jnp.float32)

    w1 = p['conv1_w'].reshape(C, CIN).T.astype(jnp.bfloat16)              # (13, 64) bf16
    s1, t1 = bn_fold(p['bn1'], p['conv1_b'])

    def conv3_to_stacked(w):        # (O,I,3,3) -> (9*I, O), tap j = ky*3+kx major
        return jnp.transpose(w, (2, 3, 1, 0)).reshape(9 * C, C).astype(jnp.bfloat16)

    wa = jnp.stack([conv3_to_stacked(blk['w1']) for blk in p['blocks']])   # (NB, 9C, C)
    wb = jnp.stack([conv3_to_stacked(blk['w2']) for blk in p['blocks']])
    sa, ta = map(jnp.stack, zip(*[bn_fold(blk['bn1']) for blk in p['blocks']]))
    sb, tb = map(jnp.stack, zip(*[bn_fold(blk['bn2']) for blk in p['blocks']]))

    # torch flatten order is (c, y, x): flat = c*64 + p  ->  base[k, p, c]
    wfc = p['fc_w'].reshape(NCLS, C, S).transpose(0, 2, 1)                 # (3, 64, 64)
    wfc = jnp.tile(wfc, (1, bt, 1)).astype(jnp.float32)                    # (3, rows, 64)
    bfc = p['fc_b'].reshape(1, NCLS).astype(jnp.float32)

    # 0/1 border-validity mask, broadcast across channels to match im2col lanes
    pidx = jnp.arange(rows) % S
    py, px = pidx // W, pidx % W
    mcols = []
    for dy in (-1, 0, 1):
        for dx in (-1, 0, 1):
            valid = ((py + dy) >= 0) & ((py + dy) < H) & \
                    ((px + dx) >= 0) & ((px + dx) < W)
            mcols.append(jnp.repeat(valid.astype(jnp.float32)[:, None], C, axis=1))
    mask = jnp.concatenate(mcols, axis=1)                                  # (rows, 9*C)

    # per-image segment-sum selector
    seg = (jnp.arange(rows)[None, :] // S ==
           jnp.arange(bt)[:, None]).astype(jnp.float32)                    # (bt, rows)

    return (mask, seg, wfc, bfc, w1, s1, t1, wa, sa, ta, wb, sb, tb)


def chessnet_forward(x, params, block_batch=8):
    B = x.shape[0]
    assert x.shape == (B, CIN, H, W)
    if B <= block_batch:
        bt = B
    else:
        assert B % block_batch == 0, "batch must be a multiple of block_batch"
        bt = block_batch
    rows_b = bt * S

    # NCHW -> (B*64, 13): board squares on sublanes, channels on lanes
    xk = jnp.transpose(x, (0, 2, 3, 1)).reshape(B * S, CIN).astype(jnp.float32)
    consts = pack_params(params, bt)
    inputs = (xk,) + consts

    def zero_map(nd):
        return lambda i, _nd=nd: (0,) * _nd

    in_specs = [pl.BlockSpec((rows_b, CIN), lambda i: (i, 0))]
    in_specs += [pl.BlockSpec(a.shape, zero_map(a.ndim)) for a in consts]
    out_spec = pl.BlockSpec((bt, NCLS), lambda i: (i, 0))

    return pl.pallas_call(
        chessnet_kernel,
        grid=(B // bt,),
        in_specs=in_specs,
        out_specs=out_spec,
        out_shape=jax.ShapeDtypeStruct((B, NCLS), jnp.float32),
        compiler_params=pltpu.CompilerParams(
            dimension_semantics=("parallel",)),
    )(*inputs)


# ---------------------------- pure-JAX reference -----------------------------
def ref_forward(x, p):
    B = x.shape[0]
    s = x.reshape(B, CIN, H, W).astype(jnp.float32)
    prec = lax.Precision.HIGHEST

    def conv(inp, w, pad):
        return lax.conv_general_dilated(
            inp, w, (1, 1), pad,
            dimension_numbers=('NCHW', 'OIHW', 'NCHW'), precision=prec)

    def bn(z, bnp):
        g, b, rm, rv = bnp
        sc = (g / jnp.sqrt(rv + EPS))[None, :, None, None]
        return (z - rm[None, :, None, None]) * sc + b[None, :, None, None]

    h = conv(s, p['conv1_w'], [(0, 0), (0, 0)]) + p['conv1_b'][None, :, None, None]
    h = jax.nn.relu(bn(h, p['bn1']))
    for blk in p['blocks']:
        o = jax.nn.relu(bn(conv(h, blk['w1'], [(1, 1), (1, 1)]), blk['bn1']))
        o = bn(conv(o, blk['w2'], [(1, 1), (1, 1)]), blk['bn2'])
        h = jax.nn.relu(o + h)
    feat = h.reshape(B, -1)
    logits = jnp.dot(feat, p['fc_w'].T, precision=prec) + p['fc_b']
    return jax.nn.log_softmax(logits, axis=1)


# ----------------------------------- main ------------------------------------
if __name__ == "__main__":
    key = jax.random.PRNGKey(0)
    pkey, xkey = jax.random.split(key)
    params = init_params(pkey)

    B = 2
    x = jax.random.normal(xkey, (B, CIN, H, W), jnp.float32)

    out = chessnet_forward(x, params)
    out = jax.block_until_ready(out)
    assert out.shape == (B, NCLS)

    ref = jax.block_until_ready(ref_forward(x, params))
    max_err = float(jnp.max(jnp.abs(out - ref)))
    # bf16 MXU operands (f32 accumulation) vs f32-highest reference: allow 2e-2.
    if max_err > 2e-2:
        raise AssertionError(f"kernel/reference mismatch, max abs err = {max_err}")

    print("KERNEL_OK")
</pallas_src>

<mosaic_0001>
module attributes {stable_mosaic.version = 11 : i64} {
  func.func @chessnet_kernel(%arg0: i32, %arg1: memref<128x13xf32, #tpu.memory_space<vmem>>, %arg2: memref<128x576xf32, #tpu.memory_space<vmem>>, %arg3: memref<2x128xf32, #tpu.memory_space<vmem>>, %arg4: memref<3x128x64xf32, #tpu.memory_space<vmem>>, %arg5: memref<1x3xf32, #tpu.memory_space<vmem>>, %arg6: memref<13x64xbf16, #tpu.memory_space<vmem>>, %arg7: memref<1x64xf32, #tpu.memory_space<vmem>>, %arg8: memref<1x64xf32, #tpu.memory_space<vmem>>, %arg9: memref<2x576x64xbf16, #tpu.memory_space<vmem>>, %arg10: memref<2x1x64xf32, #tpu.memory_space<vmem>>, %arg11: memref<2x1x64xf32, #tpu.memory_space<vmem>>, %arg12: memref<2x576x64xbf16, #tpu.memory_space<vmem>>, %arg13: memref<2x1x64xf32, #tpu.memory_space<vmem>>, %arg14: memref<2x1x64xf32, #tpu.memory_space<vmem>>, %arg15: memref<2x3xf32, #tpu.memory_space<vmem>>) attributes {dimension_semantics = [#tpu.dimension_semantics<parallel>], iteration_bounds = array<i64: 1>, scalar_prefetch = 0 : i64, scratch_operands = 0 : i64, tpu.core_type = #tpu.core_type<tc>, window_params = [{transform_indices = @transform_0, window_bounds = array<i64: 128, 13>}, {pipeline_mode = #tpu.pipeline_mode<synchronous>, transform_indices = @transform_1, window_bounds = array<i64: 128, 576>}, {pipeline_mode = #tpu.pipeline_mode<synchronous>, transform_indices = @transform_2, window_bounds = array<i64: 2, 128>}, {pipeline_mode = #tpu.pipeline_mode<synchronous>, transform_indices = @transform_3, window_bounds = array<i64: 3, 128, 64>}, {pipeline_mode = #tpu.pipeline_mode<synchronous>, transform_indices = @transform_4, window_bounds = array<i64: 1, 3>}, {pipeline_mode = #tpu.pipeline_mode<synchronous>, transform_indices = @transform_5, window_bounds = array<i64: 13, 64>}, {pipeline_mode = #tpu.pipeline_mode<synchronous>, transform_indices = @transform_6, window_bounds = array<i64: 1, 64>}, {pipeline_mode = #tpu.pipeline_mode<synchronous>, transform_indices = @transform_7, window_bounds = array<i64: 1, 64>}, {pipeline_mode = #tpu.pipeline_mode<synchronous>, transform_indices = @transform_8, window_bounds = array<i64: 2, 576, 64>}, {pipeline_mode = #tpu.pipeline_mode<synchronous>, transform_indices = @transform_9, window_bounds = array<i64: 2, 1, 64>}, {pipeline_mode = #tpu.pipeline_mode<synchronous>, transform_indices = @transform_10, window_bounds = array<i64: 2, 1, 64>}, {pipeline_mode = #tpu.pipeline_mode<synchronous>, transform_indices = @transform_11, window_bounds = array<i64: 2, 576, 64>}, {pipeline_mode = #tpu.pipeline_mode<synchronous>, transform_indices = @transform_12, window_bounds = array<i64: 2, 1, 64>}, {pipeline_mode = #tpu.pipeline_mode<synchronous>, transform_indices = @transform_13, window_bounds = array<i64: 2, 1, 64>}, {transform_indices = @transform_14, window_bounds = array<i64: 2, 3>}]} {
    %c0 = arith.constant 0 : index
    %c0_0 = arith.constant 0 : index
    %0 = vector.load %arg2[%c0, %c0_0] : memref<128x576xf32, #tpu.memory_space<vmem>>, vector<128x576xf32>
    %cst = arith.constant 0.000000e+00 : f32
    %1 = vector.broadcast %cst : f32 to vector<16x64xf32>
    %c0_1 = arith.constant 0 : index
    %c0_2 = arith.constant 0 : index
    %2 = vector.load %arg1[%c0_1, %c0_2] : memref<128x13xf32, #tpu.memory_space<vmem>>, vector<128x13xf32>
    %3 = arith.truncf %2 : vector<128x13xf32> to vector<128x13xbf16>
    %c0_3 = arith.constant 0 : index
    %c0_4 = arith.constant 0 : index
    %4 = vector.load %arg6[%c0_3, %c0_4] : memref<13x64xbf16, #tpu.memory_space<vmem>>, vector<13x64xbf16>
    %cst_5 = arith.constant dense<0.000000e+00> : vector<128x64xf32>
    %5 = tpu.matmul %3, %4, %cst_5 {dimension_numbers = #tpu.dot_dimension_numbers<[1], [0], [0], [1], [0, 0, 1, 1], [], []>} : vector<128x13xbf16>, vector<13x64xbf16>, vector<128x64xf32> -> vector<128x64xf32>
    %c0_6 = arith.constant 0 : index
    %c0_7 = arith.constant 0 : index
    %6 = vector.load %arg7[%c0_6, %c0_7] : memref<1x64xf32, #tpu.memory_space<vmem>>, vector<1x64xf32>
    %7 = vector.broadcast %6 : vector<1x64xf32> to vector<128x64xf32>
    %8 = arith.mulf %5, %7 : vector<128x64xf32>
    %c0_8 = arith.constant 0 : index
    %c0_9 = arith.constant 0 : index
    %9 = vector.load %arg8[%c0_8, %c0_9] : memref<1x64xf32, #tpu.memory_space<vmem>>, vector<1x64xf32>
    %10 = vector.broadcast %9 : vector<1x64xf32> to vector<128x64xf32>
    %11 = arith.addf %8, %10 : vector<128x64xf32>
    %cst_10 = arith.constant 0.000000e+00 : f32
    %12 = vector.broadcast %cst_10 : f32 to vector<128x64xf32>
    %13 = arith.maximumf %11, %12 : vector<128x64xf32>
    %c0_11 = arith.constant 0 : index
    %c0_12 = arith.constant 0 : index
    %c0_13 = arith.constant 0 : index
    %14 = vector.load %arg9[%c0_11, %c0_12, %c0_13] : memref<2x576x64xbf16, #tpu.memory_space<vmem>>, vector<1x576x64xbf16>
    %15 = vector.shape_cast %14 : vector<1x576x64xbf16> to vector<576x64xbf16>
    %16 = tpu.concatenate %1, %13, %1 in 0 : vector<16x64xf32>, vector<128x64xf32>, vector<16x64xf32> -> vector<160x64xf32>
    %17 = vector.extract_strided_slice %16 {offsets = [7, 0], sizes = [128, 64], strides = [1, 1]} : vector<160x64xf32> to vector<128x64xf32>
    %18 = vector.extract_strided_slice %16 {offsets = [8, 0], sizes = [128, 64], strides = [1, 1]} : vector<160x64xf32> to vector<128x64xf32>
    %19 = vector.extract_strided_slice %16 {offsets = [9, 0], sizes = [128, 64], strides = [1, 1]} : vector<160x64xf32> to vector<128x64xf32>
    %20 = vector.extract_strided_slice %16 {offsets = [15, 0], sizes = [128, 64], strides = [1, 1]} : vector<160x64xf32> to vector<128x64xf32>
    %21 = vector.extract_strided_slice %16 {offsets = [16, 0], sizes = [128, 64], strides = [1, 1]} : vector<160x64xf32> to vector<128x64xf32>
    %22 = vector.extract_strided_slice %16 {offsets = [17, 0], sizes = [128, 64], strides = [1, 1]} : vector<160x64xf32> to vector<128x64xf32>
    %23 = vector.extract_strided_slice %16 {offsets = [23, 0], sizes = [128, 64], strides = [1, 1]} : vector<160x64xf32> to vector<128x64xf32>
    %24 = vector.extract_strided_slice %16 {offsets = [24, 0], sizes = [128, 64], strides = [1, 1]} : vector<160x64xf32> to vector<128x64xf32>
    %25 = vector.extract_strided_slice %16 {offsets = [25, 0], sizes = [128, 64], strides = [1, 1]} : vector<160x64xf32> to vector<128x64xf32>
    %26 = tpu.concatenate %17, %18, %19, %20, %21, %22, %23, %24, %25 in 1 : vector<128x64xf32>, vector<128x64xf32>, vector<128x64xf32>, vector<128x64xf32>, vector<128x64xf32>, vector<128x64xf32>, vector<128x64xf32>, vector<128x64xf32>, vector<128x64xf32> -> vector<128x576xf32>
    %27 = arith.mulf %26, %0 : vector<128x576xf32>
    %28 = arith.truncf %27 : vector<128x576xf32> to vector<128x576xbf16>
    %cst_14 = arith.constant dense<0.000000e+00> : vector<128x64xf32>
    %29 = tpu.matmul %28, %15, %cst_14 {dimension_numbers = #tpu.dot_dimension_numbers<[1], [0], [0], [1], [0, 0, 1, 1], [], []>} : vector<128x576xbf16>, vector<576x64xbf16>, vector<128x64xf32> -> vector<128x64xf32>
    %c0_15 = arith.constant 0 : index
    %c0_16 = arith.constant 0 : index
    %c0_17 = arith.constant 0 : index
    %30 = vector.load %arg10[%c0_15, %c0_16, %c0_17] : memref<2x1x64xf32, #tpu.memory_space<vmem>>, vector<1x1x64xf32>
    %31 = vector.shape_cast %30 : vector<1x1x64xf32> to vector<1x64xf32>
    %32 = vector.broadcast %31 : vector<1x64xf32> to vector<128x64xf32>
    %33 = arith.mulf %29, %32 : vector<128x64xf32>
    %c0_18 = arith.constant 0 : index
    %c0_19 = arith.constant 0 : index
    %c0_20 = arith.constant 0 : index
    %34 = vector.load %arg11[%c0_18, %c0_19, %c0_20] : memref<2x1x64xf32, #tpu.memory_space<vmem>>, vector<1x1x64xf32>
    %35 = vector.shape_cast %34 : vector<1x1x64xf32> to vector<1x64xf32>
    %36 = vector.broadcast %35 : vector<1x64xf32> to vector<128x64xf32>
    %37 = arith.addf %33, %36 : vector<128x64xf32>
    %cst_21 = arith.constant 0.000000e+00 : f32
    %38 = vector.broadcast %cst_21 : f32 to vector<128x64xf32>
    %39 = arith.maximumf %37, %38 : vector<128x64xf32>
    %c0_22 = arith.constant 0 : index
    %c0_23 = arith.constant 0 : index
    %c0_24 = arith.constant 0 : index
    %40 = vector.load %arg12[%c0_22, %c0_23, %c0_24] : memref<2x576x64xbf16, #tpu.memory_space<vmem>>, vector<1x576x64xbf16>
    %41 = vector.shape_cast %40 : vector<1x576x64xbf16> to vector<576x64xbf16>
    %42 = tpu.concatenate %1, %39, %1 in 0 : vector<16x64xf32>, vector<128x64xf32>, vector<16x64xf32> -> vector<160x64xf32>
    %43 = vector.extract_strided_slice %42 {offsets = [7, 0], sizes = [128, 64], strides = [1, 1]} : vector<160x64xf32> to vector<128x64xf32>
    %44 = vector.extract_strided_slice %42 {offsets = [8, 0], sizes = [128, 64], strides = [1, 1]} : vector<160x64xf32> to vector<128x64xf32>
    %45 = vector.extract_strided_slice %42 {offsets = [9, 0], sizes = [128, 64], strides = [1, 1]} : vector<160x64xf32> to vector<128x64xf32>
    %46 = vector.extract_strided_slice %42 {offsets = [15, 0], sizes = [128, 64], strides = [1, 1]} : vector<160x64xf32> to vector<128x64xf32>
    %47 = vector.extract_strided_slice %42 {offsets = [16, 0], sizes = [128, 64], strides = [1, 1]} : vector<160x64xf32> to vector<128x64xf32>
    %48 = vector.extract_strided_slice %42 {offsets = [17, 0], sizes = [128, 64], strides = [1, 1]} : vector<160x64xf32> to vector<128x64xf32>
    %49 = vector.extract_strided_slice %42 {offsets = [23, 0], sizes = [128, 64], strides = [1, 1]} : vector<160x64xf32> to vector<128x64xf32>
    %50 = vector.extract_strided_slice %42 {offsets = [24, 0], sizes = [128, 64], strides = [1, 1]} : vector<160x64xf32> to vector<128x64xf32>
    %51 = vector.extract_strided_slice %42 {offsets = [25, 0], sizes = [128, 64], strides = [1, 1]} : vector<160x64xf32> to vector<128x64xf32>
    %52 = tpu.concatenate %43, %44, %45, %46, %47, %48, %49, %50, %51 in 1 : vector<128x64xf32>, vector<128x64xf32>, vector<128x64xf32>, vector<128x64xf32>, vector<128x64xf32>, vector<128x64xf32>, vector<128x64xf32>, vector<128x64xf32>, vector<128x64xf32> -> vector<128x576xf32>
    %53 = arith.mulf %52, %0 : vector<128x576xf32>
    %54 = arith.truncf %53 : vector<128x576xf32> to vector<128x576xbf16>
    %cst_25 = arith.constant dense<0.000000e+00> : vector<128x64xf32>
    %55 = tpu.matmul %54, %41, %cst_25 {dimension_numbers = #tpu.dot_dimension_numbers<[1], [0], [0], [1], [0, 0, 1, 1], [], []>} : vector<128x576xbf16>, vector<576x64xbf16>, vector<128x64xf32> -> vector<128x64xf32>
    %c0_26 = arith.constant 0 : index
    %c0_27 = arith.constant 0 : index
    %c0_28 = arith.constant 0 : index
    %56 = vector.load %arg13[%c0_26, %c0_27, %c0_28] : memref<2x1x64xf32, #tpu.memory_space<vmem>>, vector<1x1x64xf32>
    %57 = vector.shape_cast %56 : vector<1x1x64xf32> to vector<1x64xf32>
    %58 = vector.broadcast %57 : vector<1x64xf32> to vector<128x64xf32>
    %59 = arith.mulf %55, %58 : vector<128x64xf32>
    %c0_29 = arith.constant 0 : index
    %c0_30 = arith.constant 0 : index
    %c0_31 = arith.constant 0 : index
    %60 = vector.load %arg14[%c0_29, %c0_30, %c0_31] : memref<2x1x64xf32, #tpu.memory_space<vmem>>, vector<1x1x64xf32>
    %61 = vector.shape_cast %60 : vector<1x1x64xf32> to vector<1x64xf32>
    %62 = vector.broadcast %61 : vector<1x64xf32> to vector<128x64xf32>
    %63 = arith.addf %59, %62 : vector<128x64xf32>
    %64 = arith.addf %63, %13 : vector<128x64xf32>
    %cst_32 = arith.constant 0.000000e+00 : f32
    %65 = vector.broadcast %cst_32 : f32 to vector<128x64xf32>
    %66 = arith.maximumf %64, %65 : vector<128x64xf32>
    %c1 = arith.constant 1 : index
    %c0_33 = arith.constant 0 : index
    %c0_34 = arith.constant 0 : index
    %67 = vector.load %arg9[%c1, %c0_33, %c0_34] : memref<2x576x64xbf16, #tpu.memory_space<vmem>>, vector<1x576x64xbf16>
    %68 = vector.shape_cast %67 : vector<1x576x64xbf16> to vector<576x64xbf16>
    %69 = tpu.concatenate %1, %66, %1 in 0 : vector<16x64xf32>, vector<128x64xf32>, vector<16x64xf32> -> vector<160x64xf32>
    %70 = vector.extract_strided_slice %69 {offsets = [7, 0], sizes = [128, 64], strides = [1, 1]} : vector<160x64xf32> to vector<128x64xf32>
    %71 = vector.extract_strided_slice %69 {offsets = [8, 0], sizes = [128, 64], strides = [1, 1]} : vector<160x64xf32> to vector<128x64xf32>
    %72 = vector.extract_strided_slice %69 {offsets = [9, 0], sizes = [128, 64], strides = [1, 1]} : vector<160x64xf32> to vector<128x64xf32>
    %73 = vector.extract_strided_slice %69 {offsets = [15, 0], sizes = [128, 64], strides = [1, 1]} : vector<160x64xf32> to vector<128x64xf32>
    %74 = vector.extract_strided_slice %69 {offsets = [16, 0], sizes = [128, 64], strides = [1, 1]} : vector<160x64xf32> to vector<128x64xf32>
    %75 = vector.extract_strided_slice %69 {offsets = [17, 0], sizes = [128, 64], strides = [1, 1]} : vector<160x64xf32> to vector<128x64xf32>
    %76 = vector.extract_strided_slice %69 {offsets = [23, 0], sizes = [128, 64], strides = [1, 1]} : vector<160x64xf32> to vector<128x64xf32>
    %77 = vector.extract_strided_slice %69 {offsets = [24, 0], sizes = [128, 64], strides = [1, 1]} : vector<160x64xf32> to vector<128x64xf32>
    %78 = vector.extract_strided_slice %69 {offsets = [25, 0], sizes = [128, 64], strides = [1, 1]} : vector<160x64xf32> to vector<128x64xf32>
    %79 = tpu.concatenate %70, %71, %72, %73, %74, %75, %76, %77, %78 in 1 : vector<128x64xf32>, vector<128x64xf32>, vector<128x64xf32>, vector<128x64xf32>, vector<128x64xf32>, vector<128x64xf32>, vector<128x64xf32>, vector<128x64xf32>, vector<128x64xf32> -> vector<128x576xf32>
    %80 = arith.mulf %79, %0 : vector<128x576xf32>
    %81 = arith.truncf %80 : vector<128x576xf32> to vector<128x576xbf16>
    %cst_35 = arith.constant dense<0.000000e+00> : vector<128x64xf32>
    %82 = tpu.matmul %81, %68, %cst_35 {dimension_numbers = #tpu.dot_dimension_numbers<[1], [0], [0], [1], [0, 0, 1, 1], [], []>} : vector<128x576xbf16>, vector<576x64xbf16>, vector<128x64xf32> -> vector<128x64xf32>
    %c1_36 = arith.constant 1 : index
    %c0_37 = arith.constant 0 : index
    %c0_38 = arith.constant 0 : index
    %83 = vector.load %arg10[%c1_36, %c0_37, %c0_38] : memref<2x1x64xf32, #tpu.memory_space<vmem>>, vector<1x1x64xf32>
    %84 = vector.shape_cast %83 : vector<1x1x64xf32> to vector<1x64xf32>
    %85 = vector.broadcast %84 : vector<1x64xf32> to vector<128x64xf32>
    %86 = arith.mulf %82, %85 : vector<128x64xf32>
    %c1_39 = arith.constant 1 : index
    %c0_40 = arith.constant 0 : index
    %c0_41 = arith.constant 0 : index
    %87 = vector.load %arg11[%c1_39, %c0_40, %c0_41] : memref<2x1x64xf32, #tpu.memory_space<vmem>>, vector<1x1x64xf32>
    %88 = vector.shape_cast %87 : vector<1x1x64xf32> to vector<1x64xf32>
    %89 = vector.broadcast %88 : vector<1x64xf32> to vector<128x64xf32>
    %90 = arith.addf %86, %89 : vector<128x64xf32>
    %cst_42 = arith.constant 0.000000e+00 : f32
    %91 = vector.broadcast %cst_42 : f32 to vector<128x64xf32>
    %92 = arith.maximumf %90, %91 : vector<128x64xf32>
    %c1_43 = arith.constant 1 : index
    %c0_44 = arith.constant 0 : index
    %c0_45 = arith.constant 0 : index
    %93 = vector.load %arg12[%c1_43, %c0_44, %c0_45] : memref<2x576x64xbf16, #tpu.memory_space<vmem>>, vector<1x576x64xbf16>
    %94 = vector.shape_cast %93 : vector<1x576x64xbf16> to vector<576x64xbf16>
    %95 = tpu.concatenate %1, %92, %1 in 0 : vector<16x64xf32>, vector<128x64xf32>, vector<16x64xf32> -> vector<160x64xf32>
    %96 = vector.extract_strided_slice %95 {offsets = [7, 0], sizes = [128, 64], strides = [1, 1]} : vector<160x64xf32> to vector<128x64xf32>
    %97 = vector.extract_strided_slice %95 {offsets = [8, 0], sizes = [128, 64], strides = [1, 1]} : vector<160x64xf32> to vector<128x64xf32>
    %98 = vector.extract_strided_slice %95 {offsets = [9, 0], sizes = [128, 64], strides = [1, 1]} : vector<160x64xf32> to vector<128x64xf32>
    %99 = vector.extract_strided_slice %95 {offsets = [15, 0], sizes = [128, 64], strides = [1, 1]} : vector<160x64xf32> to vector<128x64xf32>
    %100 = vector.extract_strided_slice %95 {offsets = [16, 0], sizes = [128, 64], strides = [1, 1]} : vector<160x64xf32> to vector<128x64xf32>
    %101 = vector.extract_strided_slice %95 {offsets = [17, 0], sizes = [128, 64], strides = [1, 1]} : vector<160x64xf32> to vector<128x64xf32>
    %102 = vector.extract_strided_slice %95 {offsets = [23, 0], sizes = [128, 64], strides = [1, 1]} : vector<160x64xf32> to vector<128x64xf32>
    %103 = vector.extract_strided_slice %95 {offsets = [24, 0], sizes = [128, 64], strides = [1, 1]} : vector<160x64xf32> to vector<128x64xf32>
    %104 = vector.extract_strided_slice %95 {offsets = [25, 0], sizes = [128, 64], strides = [1, 1]} : vector<160x64xf32> to vector<128x64xf32>
    %105 = tpu.concatenate %96, %97, %98, %99, %100, %101, %102, %103, %104 in 1 : vector<128x64xf32>, vector<128x64xf32>, vector<128x64xf32>, vector<128x64xf32>, vector<128x64xf32>, vector<128x64xf32>, vector<128x64xf32>, vector<128x64xf32>, vector<128x64xf32> -> vector<128x576xf32>
    %106 = arith.mulf %105, %0 : vector<128x576xf32>
    %107 = arith.truncf %106 : vector<128x576xf32> to vector<128x576xbf16>
    %cst_46 = arith.constant dense<0.000000e+00> : vector<128x64xf32>
    %108 = tpu.matmul %107, %94, %cst_46 {dimension_numbers = #tpu.dot_dimension_numbers<[1], [0], [0], [1], [0, 0, 1, 1], [], []>} : vector<128x576xbf16>, vector<576x64xbf16>, vector<128x64xf32> -> vector<128x64xf32>
    %c1_47 = arith.constant 1 : index
    %c0_48 = arith.constant 0 : index
    %c0_49 = arith.constant 0 : index
    %109 = vector.load %arg13[%c1_47, %c0_48, %c0_49] : memref<2x1x64xf32, #tpu.memory_space<vmem>>, vector<1x1x64xf32>
    %110 = vector.shape_cast %109 : vector<1x1x64xf32> to vector<1x64xf32>
    %111 = vector.broadcast %110 : vector<1x64xf32> to vector<128x64xf32>
    %112 = arith.mulf %108, %111 : vector<128x64xf32>
    %c1_50 = arith.constant 1 : index
    %c0_51 = arith.constant 0 : index
    %c0_52 = arith.constant 0 : index
    %113 = vector.load %arg14[%c1_50, %c0_51, %c0_52] : memref<2x1x64xf32, #tpu.memory_space<vmem>>, vector<1x1x64xf32>
    %114 = vector.shape_cast %113 : vector<1x1x64xf32> to vector<1x64xf32>
    %115 = vector.broadcast %114 : vector<1x64xf32> to vector<128x64xf32>
    %116 = arith.addf %112, %115 : vector<128x64xf32>
    %117 = arith.addf %116, %66 : vector<128x64xf32>
    %cst_53 = arith.constant 0.000000e+00 : f32
    %118 = vector.broadcast %cst_53 : f32 to vector<128x64xf32>
    %119 = arith.maximumf %117, %118 : vector<128x64xf32>
    %c0_54 = arith.constant 0 : index
    %c0_55 = arith.constant 0 : index
    %c0_56 = arith.constant 0 : index
    %120 = vector.load %arg4[%c0_54, %c0_55, %c0_56] : memref<3x128x64xf32, #tpu.memory_space<vmem>>, vector<1x128x64xf32>
    %121 = vector.shape_cast %120 : vector<1x128x64xf32> to vector<128x64xf32>
    %122 = arith.mulf %119, %121 : vector<128x64xf32>
    %cst_57 = arith.constant dense<0.000000e+00> : vector<128xf32>
    %123 = vector.multi_reduction <add>, %122, %cst_57 [1] : vector<128x64xf32> to vector<128xf32>
    %124 = vector.shape_cast %123 : vector<128xf32> to vector<128x1xf32>
    %c1_58 = arith.constant 1 : index
    %c0_59 = arith.constant 0 : index
    %c0_60 = arith.constant 0 : index
    %125 = vector.load %arg4[%c1_58, %c0_59, %c0_60] : memref<3x128x64xf32, #tpu.memory_space<vmem>>, vector<1x128x64xf32>
    %126 = vector.shape_cast %125 : vector<1x128x64xf32> to vector<128x64xf32>
    %127 = arith.mulf %119, %126 : vector<128x64xf32>
    %cst_61 = arith.constant dense<0.000000e+00> : vector<128xf32>
    %128 = vector.multi_reduction <add>, %127, %cst_61 [1] : vector<128x64xf32> to vector<128xf32>
    %129 = vector.shape_cast %128 : vector<128xf32> to vector<128x1xf32>
    %c2 = arith.constant 2 : index
    %c0_62 = arith.constant 0 : index
    %c0_63 = arith.constant 0 : index
    %130 = vector.load %arg4[%c2, %c0_62, %c0_63] : memref<3x128x64xf32, #tpu.memory_space<vmem>>, vector<1x128x64xf32>
    %131 = vector.shape_cast %130 : vector<1x128x64xf32> to vector<128x64xf32>
    %132 = arith.mulf %119, %131 : vector<128x64xf32>
    %cst_64 = arith.constant dense<0.000000e+00> : vector<128xf32>
    %133 = vector.multi_reduction <add>, %132, %cst_64 [1] : vector<128x64xf32> to vector<128xf32>
    %134 = vector.shape_cast %133 : vector<128xf32> to vector<128x1xf32>
    %135 = tpu.concatenate %124, %129, %134 in 1 : vector<128x1xf32>, vector<128x1xf32>, vector<128x1xf32> -> vector<128x3xf32>
    %c0_65 = arith.constant 0 : index
    %c0_66 = arith.constant 0 : index
    %136 = vector.load %arg3[%c0_65, %c0_66] : memref<2x128xf32, #tpu.memory_space<vmem>>, vector<2x128xf32>
    %cst_67 = arith.constant dense<0.000000e+00> : vector<2x3xf32>
    %137 = tpu.matmul %136, %135, %cst_67 {dimension_numbers = #tpu.dot_dimension_numbers<[1], [0], [0], [1], [0, 0, 1, 1], [], []>} : vector<2x128xf32>, vector<128x3xf32>, vector<2x3xf32> -> vector<2x3xf32>
    %c0_68 = arith.constant 0 : index
    %c0_69 = arith.constant 0 : index
    %138 = vector.load %arg5[%c0_68, %c0_69] : memref<1x3xf32, #tpu.memory_space<vmem>>, vector<1x3xf32>
    %139 = vector.broadcast %138 : vector<1x3xf32> to vector<2x3xf32>
    %140 = arith.addf %137, %139 : vector<2x3xf32>
    %cst_70 = arith.constant dense<0xFF800000> : vector<2xf32>
    %141 = vector.multi_reduction <maximumf>, %140, %cst_70 [1] : vector<2x3xf32> to vector<2xf32>
    %142 = vector.shape_cast %141 : vector<2xf32> to vector<2x1xf32>
    %143 = vector.broadcast %142 : vector<2x1xf32> to vector<2x3xf32>
    %144 = arith.subf %140, %143 : vector<2x3xf32>
    %145 = math.exp %144 : vector<2x3xf32>
    %cst_71 = arith.constant dense<0.000000e+00> : vector<2xf32>
    %146 = vector.multi_reduction <add>, %145, %cst_71 [1] : vector<2x3xf32> to vector<2xf32>
    %147 = vector.shape_cast %146 : vector<2xf32> to vector<2x1xf32>
    %148 = math.log %147 : vector<2x1xf32>
    %149 = arith.addf %142, %148 : vector<2x1xf32>
    %150 = vector.broadcast %149 : vector<2x1xf32> to vector<2x3xf32>
    %151 = arith.subf %140, %150 : vector<2x3xf32>
    %c0_72 = arith.constant 0 : index
    %c0_73 = arith.constant 0 : index
    %152 = vector.load %arg15[%c0_72, %c0_73] : memref<2x3xf32, #tpu.memory_space<vmem>>, vector<2x3xf32>
    tpu.vector_store %arg15[%c0_72, %c0_73], %151 {strides = array<i32>} : memref<2x3xf32, #tpu.memory_space<vmem>>, vector<2x3xf32>,
    return
  }
  func.func @transform_0(%arg0: i32) -> (i32, i32) {
    %c0_i32 = arith.constant 0 : i32
    %c0_i32_0 = arith.constant 0 : i32
    return %arg0, %c0_i32 : i32, i32
  }
  func.func @transform_1(%arg0: i32) -> (i32, i32) {
    %c0_i32 = arith.constant 0 : i32
    %c0_i32_0 = arith.constant 0 : i32
    %c0_i32_1 = arith.constant 0 : i32
    return %c0_i32, %c0_i32_0 : i32, i32
  }
  func.func @transform_2(%arg0: i32) -> (i32, i32) {
    %c0_i32 = arith.constant 0 : i32
    %c0_i32_0 = arith.constant 0 : i32
    %c0_i32_1 = arith.constant 0 : i32
    return %c0_i32, %c0_i32_0 : i32, i32
  }
  func.func @transform_3(%arg0: i32) -> (i32, i32, i32) {
    %c0_i32 = arith.constant 0 : i32
    %c0_i32_0 = arith.constant 0 : i32
    %c0_i32_1 = arith.constant 0 : i32
    %c0_i32_2 = arith.constant 0 : i32
    return %c0_i32, %c0_i32_0, %c0_i32_1 : i32, i32, i32
  }
  func.func @transform_4(%arg0: i32) -> (i32, i32) {
    %c0_i32 = arith.constant 0 : i32
    %c0_i32_0 = arith.constant 0 : i32
    %c0_i32_1 = arith.constant 0 : i32
    return %c0_i32, %c0_i32_0 : i32, i32
  }
  func.func @transform_5(%arg0: i32) -> (i32, i32) {
    %c0_i32 = arith.constant 0 : i32
    %c0_i32_0 = arith.constant 0 : i32
    %c0_i32_1 = arith.constant 0 : i32
    return %c0_i32, %c0_i32_0 : i32, i32
  }
  func.func @transform_6(%arg0: i32) -> (i32, i32) {
    %c0_i32 = arith.constant 0 : i32
    %c0_i32_0 = arith.constant 0 : i32
    %c0_i32_1 = arith.constant 0 : i32
    return %c0_i32, %c0_i32_0 : i32, i32
  }
  func.func @transform_7(%arg0: i32) -> (i32, i32) {
    %c0_i32 = arith.constant 0 : i32
    %c0_i32_0 = arith.constant 0 : i32
    %c0_i32_1 = arith.constant 0 : i32
    return %c0_i32, %c0_i32_0 : i32, i32
  }
  func.func @transform_8(%arg0: i32) -> (i32, i32, i32) {
    %c0_i32 = arith.constant 0 : i32
    %c0_i32_0 = arith.constant 0 : i32
    %c0_i32_1 = arith.constant 0 : i32
    %c0_i32_2 = arith.constant 0 : i32
    return %c0_i32, %c0_i32_0, %c0_i32_1 : i32, i32, i32
  }
  func.func @transform_9(%arg0: i32) -> (i32, i32, i32) {
    %c0_i32 = arith.constant 0 : i32
    %c0_i32_0 = arith.constant 0 : i32
    %c0_i32_1 = arith.constant 0 : i32
    %c0_i32_2 = arith.constant 0 : i32
    return %c0_i32, %c0_i32_0, %c0_i32_1 : i32, i32, i32
  }
  func.func @transform_10(%arg0: i32) -> (i32, i32, i32) {
    %c0_i32 = arith.constant 0 : i32
    %c0_i32_0 = arith.constant 0 : i32
    %c0_i32_1 = arith.constant 0 : i32
    %c0_i32_2 = arith.constant 0 : i32
    return %c0_i32, %c0_i32_0, %c0_i32_1 : i32, i32, i32
  }
  func.func @transform_11(%arg0: i32) -> (i32, i32, i32) {
    %c0_i32 = arith.constant 0 : i32
    %c0_i32_0 = arith.constant 0 : i32
    %c0_i32_1 = arith.constant 0 : i32
    %c0_i32_2 = arith.constant 0 : i32
    return %c0_i32, %c0_i32_0, %c0_i32_1 : i32, i32, i32
  }
  func.func @transform_12(%arg0: i32) -> (i32, i32, i32) {
    %c0_i32 = arith.constant 0 : i32
    %c0_i32_0 = arith.constant 0 : i32
    %c0_i32_1 = arith.constant 0 : i32
    %c0_i32_2 = arith.constant 0 : i32
    return %c0_i32, %c0_i32_0, %c0_i32_1 : i32, i32, i32
  }
  func.func @transform_13(%arg0: i32) -> (i32, i32, i32) {
    %c0_i32 = arith.constant 0 : i32
    %c0_i32_0 = arith.constant 0 : i32
    %c0_i32_1 = arith.constant 0 : i32
    %c0_i32_2 = arith.constant 0 : i32
    return %c0_i32, %c0_i32_0, %c0_i32_1 : i32, i32, i32
  }
  func.func @transform_14(%arg0: i32) -> (i32, i32) {
    %c0_i32 = arith.constant 0 : i32
    %c0_i32_0 = arith.constant 0 : i32
    return %arg0, %c0_i32 : i32, i32
  }
}

</mosaic_0001>

<bundles_post_ra>
// kernel: tpu_custom_call.1
= control target key start
LH: loop header
LB: loop body
LE: loop exit
PB: predicated region body
PF: predicated region fallthrough
CT: control target
= control target key end

     0   :  { %vm185_vm0 = vcmask 1045504   ;;  %vm186_vm1 = vcmask 1046528   ;;  %vm160_vm2 = vcmask 105472   ;;  %v8569_v3 = vmov 65535   ;;  %s8571_s29 = smov 64   ;;  %s13253_s0 = inlined_call_operand.vmem [shape: f32[128,13], index: 0, kind: input, shape index: {}]   ;;  %s13254_s1 = inlined_call_operand.vmem [shape: f32[128,576], index: 1, kind: input, shape index: {}]   ;;  %s13255_s2 = inlined_call_operand.vmem [shape: f32[2,128], index: 2, kind: input, shape index: {}]   ;;  %s13256_s3 = inlined_call_operand.vmem [shape: f32[3,128,64], index: 3, kind: input, shape index: {}]   ;;  %s13257_s4 = inlined_call_operand.vmem [shape: f32[1,3], index: 4, kind: input, shape index: {}]   ;;  %s13258_s5 = inlined_call_operand.vmem [shape: bf16[13,64], index: 5, kind: input, shape index: {}]   ;;  %s13259_s6 = inlined_call_operand.vmem [shape: f32[1,64], index: 6, kind: input, shape index: {}]   ;;  %s13260_s7 = inlined_call_operand.vmem [shape: f32[1,64], index: 7, kind: input, shape index: {}]   ;;  %s13261_s8 = inlined_call_operand.vmem [shape: bf16[2,576,64], index: 8, kind: input, shape index: {}]   ;;  %s13262_s9 = inlined_call_operand.vmem [shape: f32[2,1,64], index: 9, kind: input, shape index: {}]   ;;  %s13263_s10 = inlined_call_operand.vmem [shape: f32[2,1,64], index: 10, kind: input, shape index: {}]   ;;  %s13264_s11 = inlined_call_operand.vmem [shape: bf16[2,576,64], index: 11, kind: input, shape index: {}]   ;;  %s13265_s12 = inlined_call_operand.vmem [shape: f32[2,1,64], index: 12, kind: input, shape index: {}]   ;;  %s13266_s13 = inlined_call_operand.vmem [shape: f32[2,1,64], index: 13, kind: input, shape index: {}]   ;;  %s13267_s14 = inlined_call_operand.hbm [shape: f32[2,3], index: 14, kind: output, shape index: {}]  }
   0x1   :  { %v8396_v0 = vld [vmem:[%s13258_s5] sm:$0x7f]   ;;  %v130_v2 = vld [vmem:[%s13253_s0 + $0x8] sm:$0xff]  ;;  %v187_v4 = vsel %vm185_vm0, 4294967295, %v8569_v3  ;;  %v131_v7 = vld [vmem:[%s13253_s0 + $0x10] sm:$0xff]  ;;  %v13268_v29 = vmov 0.0  }
   0x2   :  { %v129_v1 = vld [vmem:[%s13253_s0] sm:$0xff]  ;;  %v188_v6 = vsel %vm186_vm1, %v187_v4, 0  ;;  %v132_v8 = vld [vmem:[%s13253_s0 + $0x18] sm:$0xff]  ;;  %v134_v11 = vld [vmem:[%s13253_s0 + $0x28] sm:$0xff]  ;;  %v8712_v30 = vrot.slane %v13268_v29, 1 }
   0x3   :  { %v145_v5 = vpack.c.bf16 %v130_v2, %v129_v1  ;;  %v190_v9 = vand.u32 %v8396_v0, %v188_v6  ;;  %v133_v10 = vld [vmem:[%s13253_s0 + $0x20] sm:$0xff]  ;;  %v146_v12 = vpack.c.bf16 %v132_v8, %v131_v7  ;;  %v135_v14 = vld [vmem:[%s13253_s0 + $0x30] sm:$0xff]  ;;  %v136_v15 = vld [vmem:[%s13253_s0 + $0x38] sm:$0xff] }
   0x4   :  { %v147_v13 = vpack.c.bf16 %v134_v11, %v133_v10  ;;  %v137_v16 = vld [vmem:[%s13253_s0 + $0x40] sm:$0xff]  ;;  %v138_v17 = vld [vmem:[%s13253_s0 + $0x48] sm:$0xff]  ;;  %v148_v18 = vpack.c.bf16 %v136_v15, %v135_v14  ;;  %v139_v20 = vld [vmem:[%s13253_s0 + $0x50] sm:$0xff]  ;;  %13595 = vst [vmem:[#allocation5_spill] sm:$0xff] %v8712_v30  ;;  %v8391_v31 = vpack.i.bf16 %v8712_v30, %v13268_v29 }
   0x5   :  { %8214 = vmatprep.mubr.msk.bf16.mxu0 %vm160_vm2, %v145_v5  ;;  %8212 = vmatprep.subr.bf16.mxu0 %v190_v9  ;;  %v149_v19 = vpack.c.bf16 %v138_v17, %v137_v16  ;;  %v140_v21 = vld [vmem:[%s13253_s0 + $0x58] sm:$0xff]  ;;  %v141_v22 = vld [vmem:[%s13253_s0 + $0x60] sm:$0xff]  ;;  %v142_v23 = vld [vmem:[%s13253_s0 + $0x68] sm:$0xff] }
   0x6   :  { %8213 = vmatpush3.bf16.msra.mxu0 %v190_v9  ;;  %v150_v24 = vpack.c.bf16 %v140_v21, %v139_v20  ;;  %v151_v25 = vpack.c.bf16 %v142_v23, %v141_v22  ;;  %v143_v26 = vld [vmem:[%s13253_s0 + $0x70] sm:$0xff]  ;;  %v144_v27 = vld [vmem:[%s13253_s0 + $0x78] sm:$0xff]  ;;  %8392 = vrot.lane.b32.xlu0 %v8391_v31, %s8571_s29 }
   0x7   :  { %v152_v28 = vpack.c.bf16 %v144_v27, %v143_v26 }
   0x9   :  { %8215 = vmatmul.mubr.msk.bf16.vlgmr.msra.gmra.mrb[0].mxu0 %vm160_vm2, %v146_v12 }
   0xa   :  { %8218 = vmatprep.mubr.msk.bf16.mxu0 %vm160_vm2, %v147_v13 }
  0x11   :  { %8219 = vmatmul.mubr.msk.bf16.gmra.mrb[4].mxu0 %vm160_vm2, %v148_v18 }
  0x12   :  { %8222 = vmatprep.mubr.msk.bf16.mxu0 %vm160_vm2, %v149_v19 }
  0x19   :  { %8223 = vmatmul.mubr.msk.bf16.gmra.mrb[8].mxu0 %vm160_vm2, %v150_v24 }
  0x1a   :  { %8226 = vmatprep.mubr.msk.bf16.mxu0 %vm160_vm2, %v151_v25 }
  0x21   :  { %8227 = vmatmul.mubr.msk.bf16.gmra.mrb[12].mxu0 %vm160_vm2, %v152_v28 }
  0x22   :  { %19 = vsyncpa [#allocation3], 0  ;;  %v8397_v32 = vld [vmem:[%s13261_s8 + $0x40] sm:$0xff]   ;;  %v8399_v34 = vld [vmem:[%s13261_s8 + $0x48] sm:$0xff]   ;;  %vm708_vm3 = vcmask 523264   ;;  %vm8573_vm5 = vmmov 0  }
  0x23   :  { %v8398_v33 = vld [vmem:[%s13261_s8] sm:$0xff]   ;;  %7635 = vmatprep.subr.bf16.mxu1 %v8397_v32  ;;  %v8400_v36 = vld [vmem:[%s13261_s8 + $0x8] sm:$0xff]   ;;  %v8401_v37 = vld [vmem:[%s13261_s8 + $0x50] sm:$0xff]   ;;  %vm1213_vm4 = vsmask.f32 4352  ;;  %vm7109_vm6 = vcmask 7168  }
  0x24   :  { %7636 = vmatpush3.bf16.msra.mxu1 %v8398_v33  ;;  %v8729_v35 = vld [vmem:[%s13259_s6] ss:$0 sm:$0xff]  ;;  %v8402_v51 = vld [vmem:[%s13261_s8 + $0x10] sm:$0xff]   ;;  %v8403_v54 = vld [vmem:[%s13261_s8 + $0x58] sm:$0xff]   ;;  %vm7126_vm7 = vcmask 15360   ;;  %vm7221_vm8 = vcmask 17408  }
  0x25   :  { %7637 = vmatprep.subr.bf16.mxu1 %v8399_v34  ;;  %v8740_v39 = vld [vmem:[%s13260_s7] ss:$0 sm:$0xff]  ;;  %v8404_v60 = vld [vmem:[%s13261_s8 + $0x18] sm:$0xff]   ;;  %v8407_v11 = vld [vmem:[%s13261_s8 + $0x68] sm:$0xff]  }
  0x26   :  { %v8405_v0 = vld [vmem:[%s13261_s8 + $0x60] sm:$0xff]   ;;  %v8408_v15 = vld [vmem:[%s13261_s8 + $0x28] sm:$0xff]   ;;  %v8409_v19 = vld [vmem:[%s13261_s8 + $0x70] sm:$0xff]  }
  0x27   :  { %v8406_v5 = vld [vmem:[%s13261_s8 + $0x20] sm:$0xff]   ;;  %v8410_v24 = vld [vmem:[%s13261_s8 + $0x30] sm:$0xff]   ;;  %v8411_v28 = vld [vmem:[%s13261_s8 + $0x78] sm:$0xff]  }
  0x28   :  { %7638 = vmatpush3.bf16.msra.mxu1 %v8400_v36  ;;  %v8412_v34 = vld [vmem:[%s13261_s8 + $0x38] sm:$0xff]  }
  0x29   :  { %7639 = vmatprep.subr.bf16.mxu1 %v8401_v37 }
  0x2c   :  { %7640 = vmatpush3.bf16.msra.mxu1 %v8402_v51 }
  0x2d   :  { %7641 = vmatprep.subr.bf16.mxu1 %v8403_v54 }
  0x30   :  { %7642 = vmatpush3.bf16.msra.mxu1 %v8404_v60 }
  0x31   :  { %7643 = vmatprep.subr.bf16.mxu1 %v8405_v0  ;;  %v8901_v0 = vld [vmem:[%s13261_s8 + $0x100] sm:$0xff]  }
  0x34   :  { %7644 = vmatpush3.bf16.msra.mxu1 %v8406_v5 }
  0x35   :  { %7645 = vmatprep.subr.bf16.mxu1 %v8407_v11 }
  0x38   :  { %7646 = vmatpush3.bf16.msra.mxu1 %v8408_v15  ;;  %v8415_v15 = vld [vmem:[%s13261_s8 + $0x80] sm:$0xff]  }
  0x39   :  { %7647 = vmatprep.subr.bf16.mxu1 %v8409_v19 }
  0x3c   :  { %7648 = vmatpush3.bf16.msra.mxu1 %v8410_v24  ;;  %v8417_v24 = vld [vmem:[%s13261_s8 + $0x88] sm:$0xff]  }
  0x3d   :  { %7649 = vmatprep.subr.bf16.mxu1 %v8411_v28 }
  0x40   :  { %7650 = vmatpush3.bf16.msra.mxu1 %v8412_v34 }
  0x41   :  { %8230 = vmatprep.subr.bf16.mxu1 %v8901_v0 }
  0xdc   :  { %v8216_v38 = vpop.f32.mrb[0].mxu0 }
  0xdd   :  { %v298_v40 = vmul.f32 %v8216_v38, %v8729_v35  ;;  %v226_v41 = vpop.f32.mrb[1].mxu0 }
  0xde   :  { %v296_v42 = vmul.f32 %v8729_v35, %v226_v41  ;;  %v8217_v43 = vpop.f32.mrb[2].mxu0 }
  0xdf   :  { %v321_v44 = vadd.f32 %v8740_v39, %v298_v40  ;;  %v299_v45 = vmul.f32 %v8217_v43, %v8729_v35  ;;  %v229_v46 = vpop.f32.mrb[3].mxu0 }
  0xe0   :  { %v319_v47 = vadd.f32 %v8740_v39, %v296_v42  ;;  %v297_v48 = vmul.f32 %v8729_v35, %v229_v46 }
  0xe1   :  { %v8748_v49 = vmax.f32 %v321_v44, 0.0  ;;  %v322_v50 = vadd.f32 %v8740_v39, %v299_v45 }
  0xe2   :  { %v8754_v52 = vmax.f32 %v319_v47, 0.0  ;;  %v320_v53 = vadd.f32 %v8740_v39, %v297_v48 }
  0xe3   :  { %13596 = vst [vmem:[#allocation6_spill] sm:$0xff] %v8748_v49  ;;  %578 = vrot.lane.b32.xlu1 %v8748_v49, %s8571_s29  ;;  %v8769_v58 = vmax.f32 %v322_v50, 0.0  ;;  %v444_v4 = vrot.slane %v8748_v49, 1 }
  0xe4   :  { %13597 = vst [vmem:[#allocation7_spill] sm:$0xff] %v8754_v52  ;;  %v8762_v55 = vmax.f32 %v320_v53, 0.0  ;;  %574 = vrot.lane.b32.xlu0 %v8754_v52, %s8571_s29  ;;  %v8220_v56 = vpop.f32.mrb[4].mxu0  ;;  %v8767_v57 = vrot.slane %v8754_v52, 1 }
  0xe5   :  { %13600 = vst [vmem:[#allocation10_spill] sm:$0xff] %v8769_v58  ;;  %v242_v59 = vpop.f32.mrb[5].mxu0  ;;  %v302_v61 = vmul.f32 %v8220_v56, %v8729_v35  ;;  %v446_v7 = vrot.slane %v8769_v58, 1 }
  0xe6   :  { %13598 = vst [vmem:[#allocation8_spill] sm:$0xff] %v8762_v55  ;;  %13599 = vst [vmem:[#allocation9_spill] sm:$0xff] %v8767_v57  ;;  %v8221_v62 = vpop.f32.mrb[6].mxu0  ;;  %v441_v63 = vsel %vm186_vm1, %v8712_v30, %v8767_v57  ;;  %v300_v1 = vmul.f32 %v8729_v35, %v242_v59  ;;  %v8785_v3 = vrot.slane %v8762_v55, 1 }
  0xe7   :  { %580 = vrot.lane.b32.xlu1 %v8769_v58, %s8571_s29  ;;  %v245_v2 = vpop.f32.mrb[7].mxu0  ;;  %v325_v6 = vadd.f32 %v8740_v39, %v302_v61  ;;  %v303_v12 = vmul.f32 %v8221_v62, %v8729_v35  ;;  %v8814_v18 = vsel %vm186_vm1, %v444_v4, %v446_v7 }
  0xe8   :  { %472 = vrot.lane.b32.xlu0 %v441_v63, %s8571_s29  ;;  %v323_v8 = vadd.f32 %v8740_v39, %v300_v1  ;;  %v8799_v9 = vsel %vm186_vm1, %v8785_v3, %v444_v4  ;;  %v301_v13 = vmul.f32 %v8729_v35, %v245_v2  ;;  %13603 = vst [vmem:[#allocation13_spill] sm:$0xff] %v8814_v18 }
  0xe9   :  { %13601 = vst [vmem:[#allocation11_spill] sm:$0xff] %v8799_v9  ;;  %v8811_v16 = vmax.f32 %v325_v6, 0.0  ;;  %v326_v22 = vadd.f32 %v8740_v39, %v303_v12  ;;  %v8833_v25 = vsel %vm186_vm1, %v8767_v57, %v8785_v3  ;;  %v9239_v57 = vld [vmem:[%s13254_s1 + $0x58] sm:$0xff] }
  0xea   :  { %v8819_v20 = vmax.f32 %v323_v8, 0.0  ;;  %v324_v23 = vadd.f32 %v8740_v39, %v301_v13  ;;  %13605 = vst [vmem:[#allocation15_spill] sm:$0xff] %v8833_v25 }
  0xeb   :  { %576 = vrot.lane.b32.xlu1 %v8762_v55, %s8571_s29  ;;  %13602 = vst [vmem:[#allocation12_spill] sm:$0xff] %v8811_v16  ;;  %v8843_v31 = vmax.f32 %v326_v22, 0.0  ;;  %v452_v38 = vrot.slane %v8811_v16, 1  ;;  %v8416_v22 = vld [vmem:[%s13261_s8 + $0xc8] sm:$0xff]  }
  0xec   :  { %476 = vrot.lane.b32.xlu0 %v8799_v9, %s8571_s29  ;;  %v8224_v10 = vpop.f32.mrb[8].mxu0  ;;  %13604 = vst [vmem:[#allocation14_spill] sm:$0xff] %v8819_v20  ;;  %v448_v26 = vrot.slane %v8819_v20, 1  ;;  %v8845_v32 = vmax.f32 %v324_v23, 0.0 }
  0xed   :  { %v258_v14 = vpop.f32.mrb[9].mxu0  ;;  %13606 = vst [vmem:[#allocation16_spill] sm:$0xff] %v8843_v31  ;;  %v306_v36 = vmul.f32 %v8224_v10, %v8729_v35  ;;  %v454_v47 = vrot.slane %v8843_v31, 1 }
  0xee   :  { %v8225_v17 = vpop.f32.mrb[10].mxu0  ;;  %13607 = vst [vmem:[#allocation17_spill] sm:$0xff] %v8845_v32  ;;  %v304_v40 = vmul.f32 %v8729_v35, %v258_v14  ;;  %v8856_v41 = vsel %vm186_vm1, %v446_v7, %v448_v26  ;;  %v450_v43 = vrot.slane %v8845_v32, 1  ;;  %v8414_v14 = vld [vmem:[%s13261_s8 + $0xc0] sm:$0xff]  }
  0xef   :  { %478 = vrot.lane.b32.xlu1 %v8814_v18, %s8571_s29  ;;  %v261_v21 = vpop.f32.mrb[11].mxu0  ;;  %13608 = vst [vmem:[#allocation18_spill] sm:$0xff] %v8856_v41  ;;  %v329_v46 = vadd.f32 %v8740_v39, %v306_v36  ;;  %v307_v51 = vmul.f32 %v8225_v17, %v8729_v35  ;;  %v8880_v56 = vsel %vm186_vm1, %v452_v38, %v454_v47  ;;  %v8421_v36 = vld [vmem:[%s13261_s8 + $0xd8] sm:$0xff]  }
  0xf0   :  { %586 = vrot.lane.b32.xlu0 %v8811_v16, %s8571_s29  ;;  %v327_v48 = vadd.f32 %v8740_v39, %v304_v40  ;;  %v8871_v50 = vsel %vm186_vm1, %v450_v43, %v452_v38  ;;  %v305_v53 = vmul.f32 %v8729_v35, %v261_v21  ;;  %13611 = vst [vmem:[#allocation21_spill] sm:$0xff] %v8880_v56  ;;  %v8984_v38 = vrot.slane %v8754_v52, 2 }
  0xf1   :  { %13609 = vst [vmem:[#allocation19_spill] sm:$0xff] %v8871_v50  ;;  %v8877_v54 = vmax.f32 %v329_v46, 0.0  ;;  %v330_v60 = vadd.f32 %v8740_v39, %v307_v51  ;;  %v8891_v62 = vsel %vm186_vm1, %v448_v26, %v450_v43  ;;  %7699 = vmatprep.subr.bf16.mxu0 %v8414_v14  ;;  %v8423_v43 = vld [vmem:[%s13261_s8 + $0xe0] sm:$0xff]   ;;  %v527_v51 = vrot.slane %v8748_v49, 2  ;;  %v58_v14 = vld [vmem:[%s13254_s1 + $0x48] sm:$0xff] }
  0xf2   :  { %v8882_v59 = vmax.f32 %v327_v48, 0.0  ;;  %v328_v61 = vadd.f32 %v8740_v39, %v305_v53  ;;  %13613 = vst [vmem:[#allocation23_spill] sm:$0xff] %v8891_v62  ;;  %7700 = vmatpush3.bf16.msra.mxu0 %v8415_v15  ;;  %v8425_v48 = vld [vmem:[%s13261_s8 + $0xe8] sm:$0xff]   ;;  %v533_v15 = vrot.slane %v8845_v32, 2 }
  0xf3   :  { %474 = vrot.lane.b32.xlu1 %v8833_v25, %s8571_s29  ;;  %13610 = vst [vmem:[#allocation20_spill] sm:$0xff] %v8877_v54  ;;  %v8903_v1 = vmax.f32 %v330_v60, 0.0  ;;  %v460_v8 = vrot.slane %v8877_v54, 1  ;;  %7701 = vmatprep.subr.bf16.mxu0 %v8416_v22  ;;  %v8426_v53 = vld [vmem:[%s13261_s8 + $0xa8] sm:$0xff]   ;;  %v63_v22 = vld [vmem:[%s13254_s1 + $0x70] sm:$0xff] }
  0xf4   :  { %582 = vrot.lane.b32.xlu0 %v8819_v20, %s8571_s29  ;;  %v8228_v27 = vpop.f32.mrb[12].mxu0  ;;  %13612 = vst [vmem:[#allocation22_spill] sm:$0xff] %v8882_v59  ;;  %v456_v63 = vrot.slane %v8882_v59, 1  ;;  %v8905_v2 = vmax.f32 %v328_v61, 0.0  ;;  %v529_v61 = vrot.slane %v8769_v58, 2 }
  0xf5   :  { %v274_v33 = vpop.f32.mrb[13].mxu0  ;;  %13614 = vst [vmem:[#allocation24_spill] sm:$0xff] %v8903_v1  ;;  %v310_v4 = vmul.f32 %v8228_v27, %v8729_v35  ;;  %v462_v11 = vrot.slane %v8903_v1, 1 }
  0xf6   :  { %v8229_v37 = vpop.f32.mrb[14].mxu0  ;;  %13615 = vst [vmem:[#allocation25_spill] sm:$0xff] %v8905_v2  ;;  %v308_v5 = vmul.f32 %v8729_v35, %v274_v33  ;;  %v8913_v6 = vsel %vm186_vm1, %v454_v47, %v456_v63  ;;  %v458_v7 = vrot.slane %v8905_v2, 1  ;;  %7702 = vmatpush3.bf16.msra.mxu0 %v8417_v24  ;;  %v8420_v33 = vld [vmem:[%s13261_s8 + $0x90] sm:$0xff]   ;;  %v535_v24 = vrot.slane %v8811_v16, 2 }
  0xf7   :  { %588 = vrot.lane.b32.xlu1 %v8843_v31, %s8571_s29  ;;  %v311_v42 = vmul.f32 %v8229_v37, %v8729_v35  ;;  %v277_v44 = vpop.f32.mrb[15].mxu0  ;;  %13616 = vst [vmem:[#allocation26_spill] sm:$0xff] %v8913_v6  ;;  %v333_v10 = vadd.f32 %v8740_v39, %v310_v4  ;;  %v8938_v19 = vsel %vm186_vm1, %v460_v8, %v462_v11  ;;  %v8422_v37 = vld [vmem:[%s13261_s8 + $0x98] sm:$0xff]   ;;  %v8428_v4 = vld [vmem:[%s13261_s8 + $0xf0] sm:$0xff]  }
  0xf8   :  { %480 = vrot.lane.b32.xlu0 %v8856_v41, %s8571_s29  ;;  %v331_v12 = vadd.f32 %v8740_v39, %v308_v5  ;;  %v8925_v13 = vsel %vm186_vm1, %v458_v7, %v460_v8  ;;  %13619 = vst [vmem:[#allocation29_spill] sm:$0xff] %v8938_v19  ;;  %v309_v23 = vmul.f32 %v8729_v35, %v277_v44  ;;  %v8419_v35 = vld [vmem:[%s13261_s8 + $0xd0] sm:$0xff]   ;;  %v8424_v44 = vld [vmem:[%s13261_s8 + $0xa0] sm:$0xff]  }
  0xf9   :  { %v8863_v45 = vadd.f32 %v8740_v39, %v311_v42  ;;  %13617 = vst [vmem:[#allocation27_spill] sm:$0xff] %v8925_v13  ;;  %v8935_v17 = vmax.f32 %v333_v10, 0.0  ;;  %v8954_v26 = vsel %vm186_vm1, %v456_v63, %v458_v7  ;;  %7703 = vmatprep.subr.bf16.mxu0 %v8419_v35  ;;  %v8429_v5 = vld [vmem:[%s13261_s8 + $0xb0] sm:$0xff]   ;;  %v9045_v8 = vsel %vm185_vm0, %v527_v51, %v529_v61 }
  0xfa   :  { %v8940_v21 = vmax.f32 %v331_v12, 0.0  ;;  %13621 = vst [vmem:[#allocation31_spill] sm:$0xff] %v8954_v26  ;;  %v332_v28 = vadd.f32 %v8740_v39, %v309_v23  ;;  %7704 = vmatpush3.bf16.msra.mxu0 %v8420_v33  ;;  %v531_v10 = vrot.slane %v8819_v20, 2  ;;  %v53_v12 = vld [vmem:[%s13254_s1 + $0x20] sm:$0xff]  ;;  %v856_v35 = vrot.slane %v58_v14, 1 }
  0xfb   :  { %584 = vrot.lane.b32.xlu1 %v8845_v32, %s8571_s29  ;;  %13618 = vst [vmem:[#allocation28_spill] sm:$0xff] %v8935_v17  ;;  %7705 = vmatprep.subr.bf16.mxu0 %v8421_v36  ;;  %v8993_v42 = vrot.slane %v8935_v17, 1  ;;  %v9042_v7 = vmax.f32 %v8863_v45, 0.0  ;;  %v8431_v45 = vld [vmem:[%s13261_s8 + $0xb8] sm:$0xff]   ;;  %v73_v33 = vld [vmem:[%s13254_s1 + $0xc0] sm:$0xff]  ;;  %v866_v36 = vrot.slane %v63_v22, 1 }
  0xfc   :  { %484 = vrot.lane.b32.xlu0 %v8871_v50, %s8571_s29  ;;  %13620 = vst [vmem:[#allocation30_spill] sm:$0xff] %v8940_v21  ;;  %v464_v27 = vrot.slane %v8940_v21, 1  ;;  %v8978_v39 = vmax.f32 %v332_v28, 0.0  ;;  %v9071_v23 = vsel %vm185_vm0, %v529_v61, %v531_v10  ;;  %v68_v28 = vld [vmem:[%s13254_s1 + $0x98] sm:$0xff]  ;;  %v83_v61 = vld [vmem:[%s13254_s1 + $0x110] sm:$0xff] }
  0xfd   :  { %13626 = vst [vmem:[#allocation36_spill] sm:$0xff] %v9042_v7  ;;  %v9122_v14 = vsel %vm186_vm1, %v856_v35, %v866_v36  ;;  %v123_v50 = vld [vmem:[%s13254_s1 + $0x250] sm:$0xff] }
  0xfe   :  { %v8971_v34 = vsel %vm186_vm1, %v462_v11, %v464_v27  ;;  %13623 = vst [vmem:[#allocation33_spill] sm:$0xff] %v8978_v39  ;;  %v466_v40 = vrot.slane %v8978_v39, 1  ;;  %7706 = vmatpush3.bf16.msra.mxu0 %v8422_v37  ;;  %v8430_v11 = vld [vmem:[%s13261_s8 + $0xf8] sm:$0xff]   ;;  %v9085_v37 = vsel %vm185_vm0, %v531_v10, %v533_v15  ;;  %13630 = vst [vmem:[#allocation40_spill] sm:$0xff] %v9122_v14  ;;  %v549_v9 = vrot.slane %v8978_v39, 2 }
  0xff   :  { %486 = vrot.lane.b32.xlu1 %v8880_v56, %s8571_s29  ;;  %13622 = vst [vmem:[#allocation32_spill] sm:$0xff] %v8971_v34  ;;  %7707 = vmatprep.subr.bf16.mxu0 %v8423_v43  ;;  %v9091_v43 = vsel %vm185_vm0, %v533_v15, %v535_v24 }
 0x100   :  { %594 = vrot.lane.b32.xlu0 %v8877_v54, %s8571_s29  ;;  %v9012_v47 = vsel %vm186_vm1, %v466_v40, %v8993_v42  ;;  %v9024_v60 = vsel %vm186_vm1, %v464_v27, %v466_v40  ;;  %v9076_v27 = vrot.slane %v53_v12, 1  ;;  %v537_v40 = vrot.slane %v8843_v31, 2  ;;  %v128_v12 = vld [vmem:[%s13254_s1 + $0x278] sm:$0xff] }
 0x101   :  { %13624 = vst [vmem:[#allocation34_spill] sm:$0xff] %v9012_v47  ;;  %13625 = vst [vmem:[#allocation35_spill] sm:$0xff] %v9024_v60 }
 0x102   :  { %7708 = vmatpush3.bf16.msra.mxu0 %v8424_v44  ;;  %13627 = vst [vmem:[#allocation37_spill] sm:$0xff] %v9076_v27  ;;  %v78_v44 = vld [vmem:[%s13254_s1 + $0xe8] sm:$0xff]  ;;  %v9110_v10 = vsel %vm186_vm1, %v9076_v27, %v856_v35  ;;  %v9125_v22 = vsel %vm185_vm0, %v535_v24, %v537_v40  ;;  %v906_v35 = vrot.slane %v83_v61, 1 }
 0x103   :  { %482 = vrot.lane.b32.xlu1 %v8891_v62, %s8571_s29  ;;  %7709 = vmatprep.subr.bf16.mxu0 %v8425_v48  ;;  %v539_v48 = vrot.slane %v8882_v59, 2  ;;  %13629 = vst [vmem:[#allocation39_spill] sm:$0xff] %v9110_v10  ;;  %v896_v15 = vrot.slane %v78_v44, 1 }
 0x104   :  { %590 = vrot.lane.b32.xlu0 %v8882_v59, %s8571_s29 }
 0x105   :  { %v9140_v24 = vsel %vm185_vm0, %v537_v40, %v539_v48 }
 0x106   :  { %7710 = vmatpush3.bf16.msra.mxu0 %v8426_v53  ;;  %v886_v53 = vrot.slane %v73_v33, 1  ;;  %v103_v33 = vld [vmem:[%s13254_s1 + $0x1b0] sm:$0xff] }
 0x107   :  { %596 = vrot.lane.b32.xlu1 %v8903_v1, %s8571_s29  ;;  %7711 = vmatprep.subr.bf16.mxu0 %v8428_v4  ;;  %v88_v4 = vld [vmem:[%s13254_s1 + $0x138] sm:$0xff] }
 0x108   :  { %488 = vrot.lane.b32.xlu0 %v8913_v6, %s8571_s29  ;;  %v916_v44 = vrot.slane %v88_v4, 1  ;;  %v946_v6 = vrot.slane %v103_v33, 1  ;;  %v9158_v62 = vsel %vm186_vm1, %v886_v53, %v896_v15  ;;  %v9185_v33 = vld [vmem:[%s13254_s1] sm:$0xff] }
 0x109   :  { %13633 = vst [vmem:[#allocation43_spill] sm:$0xff] %v9158_v62 }
 0x10a   :  { %7712 = vmatpush3.bf16.msra.mxu0 %v8429_v5  ;;  %v9106_v5 = vrot.slane %v13268_v29, 2  ;;  %v108_v29 = vld [vmem:[%s13254_s1 + $0x1d8] sm:$0xff] }
 0x10b   :  { %592 = vrot.lane.b32.xlu1 %v8905_v2, %s8571_s29  ;;  %7713 = vmatprep.subr.bf16.mxu0 %v8430_v11  ;;  %v93_v11 = vld [vmem:[%s13254_s1 + $0x160] sm:$0xff]  ;;  %v956_v4 = vrot.slane %v108_v29, 1 }
 0x10c   :  { %492 = vrot.lane.b32.xlu0 %v8925_v13, %s8571_s29  ;;  %13628 = vst [vmem:[#allocation38_spill] sm:$0xff] %v9106_v5  ;;  %v926_v61 = vrot.slane %v93_v11, 1  ;;  %v9165_v11 = vsel %vm186_vm1, %v896_v15, %v906_v35 }
 0x10d   :  { %13635 = vst [vmem:[#allocation45_spill] sm:$0xff] %v9165_v11 }
 0x10e   :  { %7714 = vmatpush3.bf16.msra.mxu0 %v8431_v45  ;;  %v98_v45 = vld [vmem:[%s13254_s1 + $0x188] sm:$0xff] }
 0x10f   :  { %494 = vrot.lane.b32.xlu1 %v8938_v19, %s8571_s29  ;;  %v936_v40 = vrot.slane %v98_v45, 1  ;;  %v9168_v45 = vsel %vm186_vm1, %v906_v35, %v916_v44 }
 0x110   :  { %602 = vrot.lane.b32.xlu0 %v8935_v17, %s8571_s29  ;;  %13636 = vst [vmem:[#allocation46_spill] sm:$0xff] %v9168_v45 }
 0x111   :  { %v9191_v35 = vsel %vm186_vm1, %v936_v40, %v946_v6 }
 0x112   :  { %13640 = vst [vmem:[#allocation50_spill] sm:$0xff] %v9191_v35 }
 0x113   :  { %490 = vrot.lane.b32.xlu1 %v8954_v26, %s8571_s29  ;;  %v996_v26 = vrot.slane %v128_v12, 1 }
 0x114   :  { %598 = vrot.lane.b32.xlu0 %v8940_v21, %s8571_s29 }
 0x115   :  { %v1167_v12 = vmul.f32 %v996_v26, %v9106_v5 }
 0x117   :  { %695 = vrot.lane.b32.xlu1 %v8785_v3, %s8571_s29  ;;  %v8987_v3 = vrot.slane %v8762_v55, 2 }
 0x118   :  { %496 = vrot.lane.b32.xlu0 %v8971_v34, %s8571_s29  ;;  %v543_v34 = vrot.slane %v8877_v54, 2 }
 0x119   :  { %v9006_v46 = vsel %vm185_vm0, %v8984_v38, %v8987_v3  ;;  %v9031_v63 = vsel %vm185_vm0, %v8987_v3, %v527_v51  ;;  %v876_v51 = vrot.slane %v68_v28, 1  ;;  %v541_v28 = vrot.slane %v8905_v2, 2 }
 0x11b   :  { %600 = vrot.lane.b32.xlu1 %v8978_v39, %s8571_s29  ;;  %v9147_v13 = vsel %vm186_vm1, %v866_v36, %v876_v51  ;;  %v9150_v19 = vsel %vm186_vm1, %v876_v51, %v886_v53  ;;  %v9161_v36 = vsel %vm185_vm0, %v539_v48, %v541_v28  ;;  %v545_v51 = vrot.slane %v8903_v1, 2  ;;  %v8393_v53 = vpop.permute.xlu0 %8392 }
 0x11c   :  { %643 = vrot.lane.b32.xlu0 %v8984_v38, %s8571_s29  ;;  %13631 = vst [vmem:[#allocation41_spill] sm:$0xff] %v9147_v13  ;;  %13632 = vst [vmem:[#allocation42_spill] sm:$0xff] %v9150_v19  ;;  %v9173_v29 = vsel %vm185_vm0, %v541_v28, %v543_v34  ;;  %v9177_v48 = vsel %vm186_vm1, %v916_v44, %v926_v61  ;;  %v8395_v15 = vunpack.i.h.bf16 %v8393_v53  ;;  %v8394_v25 = vunpack.i.l.bf16 %v8393_v53 }
 0x11d   :  { %13634 = vst [vmem:[#allocation44_spill] sm:$0xff] %v9161_v36  ;;  %13637 = vst [vmem:[#allocation47_spill] sm:$0xff] %v9173_v29  ;;  %v9188_v28 = vsel %vm186_vm1, %v926_v61, %v936_v40  ;;  %v9194_v44 = vsel %vm186_vm1, %v946_v6, %v956_v4  ;;  %v9212_v6 = vrot.slane %v9042_v7, 1  ;;  %v843_v40 = vrot.slane %v9185_v33, 1 }
 0x11e   :  { %13638 = vst [vmem:[#allocation48_spill] sm:$0xff] %v9177_v48  ;;  %13639 = vst [vmem:[#allocation49_spill] sm:$0xff] %v9188_v28  ;;  %v9231_v53 = vpack.c.bf16 %v1167_v12, %v1167_v12  ;;  %v9234_v39 = vsel %vm708_vm3, 0.0, %v8395_v15  ;;  %v1087_v33 = vmul.f32 %v9076_v27, %v8987_v3  ;;  %v65_v12 = vld [vmem:[%s13254_s1 + $0x80] sm:$0xff]  ;;  %v55_v15 = vld [vmem:[%s13254_s1 + $0x30] sm:$0xff]  ;;  %v1102_v27 = vmul.f32 %v9147_v13, %v9071_v23 }
 0x11f   :  { %645 = vrot.lane.b32.xlu1 %v9006_v46, %s8571_s29  ;;  %13641 = vst [vmem:[#allocation51_spill] sm:$0xff] %v9194_v44  ;;  %13646 = vst [vmem:[#allocation56_spill] sm:$0xff] %v9212_v6  ;;  %v9258_v3 = vld [vmem:[%s13254_s1 + $0xa8] sm:$0xff]  ;;  %v9276_v1 = vsel %vm186_vm1, %v8993_v42, %v9212_v6  ;;  %v850_v54 = vrot.slane %v55_v15, 1  ;;  %v1122_v13 = vmul.f32 %v9168_v45, %v9140_v24  ;;  %v553_v15 = vrot.slane %v9042_v7, 2 }
 0x120   :  { %500 = vrot.lane.b32.xlu0 %v9012_v47, %s8571_s29  ;;  %v113_v47 = vld [vmem:[%s13254_s1 + $0x200] sm:$0xff]  ;;  %13650 = vst [vmem:[#allocation60_spill] sm:$0xff] %v9231_v53  ;;  %13651 = vst [vmem:[#allocation61_spill] sm:$0xff] %v9234_v39  ;;  %v9269_v53 = vld [vmem:[%s13254_s1 + $0x28] sm:$0xff] }
 0x121   :  { %v966_v56 = vrot.slane %v113_v47, 1  ;;  %v547_v47 = vrot.slane %v8940_v21, 2  ;;  %13653 = vst [vmem:[#allocation63_spill] sm:$0xff] %v9276_v1  ;;  %v13662_v45 = vrot.slane %v9269_v53, 1 }
 0x123   :  { %498 = vrot.lane.b32.xlu1 %v9024_v60, %s8571_s29  ;;  %v118_v60 = vld [vmem:[%s13254_s1 + $0x228] sm:$0xff]  ;;  %v9197_v18 = vsel %vm186_vm1, %v956_v4, %v966_v56  ;;  %v9209_v61 = vsel %vm185_vm0, %v545_v51, %v547_v47 }
 0x124   :  { %647 = vrot.lane.b32.xlu0 %v9031_v63, %s8571_s29  ;;  %v976_v41 = vrot.slane %v118_v60, 1  ;;  %v986_v60 = vrot.slane %v123_v50, 1  ;;  %13642 = vst [vmem:[#allocation52_spill] sm:$0xff] %v9197_v18  ;;  %v9200_v50 = vsel %vm185_vm0, %v543_v34, %v545_v51  ;;  %13645 = vst [vmem:[#allocation55_spill] sm:$0xff] %v9209_v61  ;;  %v50_v34 = vld [vmem:[%s13254_s1 + $0x8] sm:$0xff] }
 0x125   :  { %13643 = vst [vmem:[#allocation53_spill] sm:$0xff] %v9200_v50  ;;  %v1137_v59 = vmul.f32 %v9191_v35, %v9200_v50 }
 0x126   :  { %v9204_v21 = vsel %vm186_vm1, %v966_v56, %v976_v41  ;;  %v9220_v56 = vld [vmem:[%s13254_s1 + $0x270] sm:$0xff]  ;;  %v9226_v4 = vsel %vm186_vm1, %v976_v41, %v986_v60  ;;  %v9229_v51 = vsel %vm186_vm1, %v986_v60, %v996_v26  ;;  %v1092_v41 = vmul.f32 %v9110_v10, %v9031_v63 }
 0x127   :  { %649 = vrot.lane.b32.xlu1 %v9045_v8, %s8571_s29  ;;  %13644 = vst [vmem:[#allocation54_spill] sm:$0xff] %v9204_v21  ;;  %13647 = vst [vmem:[#allocation57_spill] sm:$0xff] %v9220_v56  ;;  %v1107_v26 = vmul.f32 %v9150_v19, %v9085_v37  ;;  %v1112_v60 = vmul.f32 %v9158_v62, %v9091_v43  ;;  %v9261_v10 = vsel %vm185_vm0, %v547_v47, %v549_v9 }
 0x128   :  { %604 = vrot.lane.b32.xlu0 %v9042_v7, %s8571_s29  ;;  %13648 = vst [vmem:[#allocation58_spill] sm:$0xff] %v9226_v4  ;;  %13649 = vst [vmem:[#allocation59_spill] sm:$0xff] %v9229_v51  ;;  %v726_v19 = vsel %vm708_vm3, %v9106_v5, %v8394_v25  ;;  %v844_v62 = vrot.slane %v50_v34, 1  ;;  %v551_v47 = vrot.slane %v8935_v17, 2  ;;  %v9280_v25 = vmul.f32 %v843_v40, %v9234_v39 }
 0x129   :  { %13652 = vst [vmem:[#allocation62_spill] sm:$0xff] %v9261_v10  ;;  %v860_v34 = vrot.slane %v9239_v57, 1  ;;  %v870_v56 = vrot.slane %v65_v12, 1  ;;  %v1172_v2 = vpack.c.bf16 %v1092_v41, %v1087_v33  ;;  %v1182_v17 = vpack.c.bf16 %v1112_v60, %v1107_v26 }
 0x12a   :  { %13654 = vst [vmem:[#allocation64_spill] sm:$0xff] %v9280_v25  ;;  %v1117_v57 = vmul.f32 %v9165_v11, %v9125_v22  ;;  %v694_v12 = vsel %vm186_vm1, %v9212_v6, %v8712_v30  ;;  %v1127_v33 = vmul.f32 %v9177_v48, %v9161_v36  ;;  %v1132_v41 = vmul.f32 %v9188_v28, %v9173_v29 }
 0x12b   :  { %502 = vrot.lane.b32.xlu1 %v8993_v42, %s8571_s29  ;;  %v1097_v42 = vmul.f32 %v9122_v14, %v9045_v8  ;;  %v9305_v26 = vsel %vm185_vm0, %v549_v9, %v551_v47  ;;  %v9307_v60 = vmul.f32 %v844_v62, %v726_v19  ;;  %v1142_v11 = vmul.f32 %v9194_v44, %v9209_v61 }
 0x12c   :  { %651 = vrot.lane.b32.xlu0 %v9071_v23, %s8571_s29  ;;  %13655 = vst [vmem:[#allocation65_spill] sm:$0xff] %v9305_v26  ;;  %v9316_v48 = vsel %vm186_vm1, %v860_v34, %v870_v56  ;;  %v1336_v28 = vshrl.u32 %v1182_v17, 16  ;;  %v9319_v9 = vsel %vm186_vm1, %v844_v62, %v850_v54  ;;  %v13659_v19 = vrot.slane %v9258_v3, 1  ;;  %v52_v62 = vld [vmem:[%s13254_s1 + $0x18] sm:$0xff] }
 0x12d   :  { %13656 = vst [vmem:[#allocation66_spill] sm:$0xff] %v9307_v60  ;;  %v1177_v39 = vpack.c.bf16 %v1102_v27, %v1097_v42  ;;  %13657 = vst [vmem:[#allocation67_spill] sm:$0xff] %v9316_v48  ;;  %v1283_v42 = vshrl.u32 %v1172_v2, 16  ;;  %v1187_v35 = vpack.c.bf16 %v1122_v13, %v1117_v57  ;;  %v9327_v44 = vsel %vm185_vm0, %v551_v47, %v553_v15 }
 0x12e   :  { %13658 = vst [vmem:[#allocation68_spill] sm:$0xff] %v9319_v9  ;;  %v9324_v27 = vsel %vm186_vm1, %v870_v56, %v13659_v19  ;;  %13661 = vst [vmem:[#allocation70_spill] sm:$0xff] %v9327_v44  ;;  %v9332_v14 = vsel %vm186_vm1, %v843_v40, %v13662_v45  ;;  %v1147_v30 = vmul.f32 %v9197_v18, %v9261_v10  ;;  %v57_v45 = vld [vmem:[%s13254_s1 + $0x40] sm:$0xff]  ;;  %v9351_v40 = vld [vmem:[%s13254_s1 + $0x50] sm:$0xff]  ;;  %v1286_v47 = vshll.u32 %v1172_v2, 16 }
 0x12f   :  { %653 = vrot.lane.b32.xlu1 %v9085_v37, %s8571_s29  ;;  %13660 = vst [vmem:[#allocation69_spill] sm:$0xff] %v9324_v27  ;;  %13663 = vst [vmem:[#allocation71_spill] sm:$0xff] %v9332_v14  ;;  %v1152_v56 = vmul.f32 %v9204_v21, %v9305_v26  ;;  %v642_v13 = vsel %vm185_vm0, %v553_v15, %v9106_v5  ;;  %v1291_v57 = vshrl.u32 %v1177_v39, 16  ;;  %v1294_v19 = vshll.u32 %v1177_v39, 16  ;;  %v64_v39 = vld [vmem:[%s13254_s1 + $0x78] sm:$0xff] }
 0x130   :  { %655 = vrot.lane.b32.xlu0 %v9091_v43, %s8571_s29  ;;  %v1338_v21 = vrot.slane %v1336_v28, 3  ;;  %v9357_v18 = vrot.slane %v52_v62, 1  ;;  %v9359_v6 = vrot.slane %v1283_v42, 3  ;;  %v854_v2 = vrot.slane %v57_v45, 1  ;;  %v9373_v28 = vld [vmem:[%s13254_s1 + $0x68] sm:$0xff] }
 0x131   :  { %v1384_v7 = vshll.u32 %v1187_v35, 16  ;;  %v9384_v42 = vrot.slane %v1294_v19, 4  ;;  %v1157_v45 = vmul.f32 %v9226_v4, %v9327_v44  ;;  %v9419_v4 = vld [vmem:[%s13254_s1 + $0x148] sm:$0xff] }
 0x132   :  { %13665 = vst [vmem:[#allocation73_spill] sm:$0xff] %v9357_v18 }
 0x133   :  { %657 = vrot.lane.b32.xlu1 %v9125_v22, %s8571_s29 }
 0x134   :  { %659 = vrot.lane.b32.xlu0 %v9140_v24, %s8571_s29 }
 0x137   :  { %661 = vrot.lane.b32.xlu1 %v9161_v36, %s8571_s29  ;;  %v9494_v36 = vld [vmem:[%s13254_s1 + $0x1e8] sm:$0xff] }
 0x138   :  { %663 = vrot.lane.b32.xlu0 %v9173_v29, %s8571_s29  ;;  %v13698_v31 = vrot.slane %v9494_v36, 1 }
 0x13b   :  { %665 = vrot.lane.b32.xlu1 %v9200_v50, %s8571_s29 }
 0x13c   :  { %667 = vrot.lane.b32.xlu0 %v9209_v61, %s8571_s29 }
 0x13f   :  { %669 = vrot.lane.b32.xlu1 %v9261_v10, %s8571_s29 }
 0x140   :  { %697 = vrot.lane.b32.xlu0 %v9276_v1, %s8571_s29  ;;  %v9364_v1 = vsel %vm185_vm0, %v9106_v5, %v8984_v38  ;;  %v9378_v38 = vld [vmem:[%s13254_s1 + $0xa0] sm:$0xff]  ;;  %v868_v5 = vrot.slane %v64_v39, 1 }
 0x143   :  { %699 = vrot.lane.b32.xlu1 %v694_v12, %s8571_s29  ;;  %v1339_v12 = vshll.u32 %v1182_v17, 16  ;;  %v1192_v17 = vpack.c.bf16 %v1132_v41, %v1127_v33  ;;  %v1197_v33 = vpack.c.bf16 %v1142_v11, %v1137_v59  ;;  %v9355_v41 = vsel %vm186_vm1, %v850_v54, %v860_v34 }
 0x144   :  { %671 = vrot.lane.b32.xlu0 %v9305_v26, %s8571_s29  ;;  %13664 = vst [vmem:[#allocation72_spill] sm:$0xff] %v9355_v41  ;;  %v858_v59 = vrot.slane %v9351_v40, 1  ;;  %v1381_v11 = vshrl.u32 %v1187_v35, 16  ;;  %v1202_v54 = vpack.c.bf16 %v1152_v56, %v1147_v30  ;;  %v9380_v34 = vrot.slane %v1286_v47, 4 }
 0x145   :  { %v1341_v15 = vrot.slane %v1339_v12, 4  ;;  %v1426_v10 = vshrl.u32 %v1192_v17, 16  ;;  %v9382_v12 = vrot.slane %v1291_v57, 3  ;;  %v1429_v35 = vshll.u32 %v1192_v17, 16  ;;  %v80_v17 = vld [vmem:[%s13254_s1 + $0xf8] sm:$0xff]  ;;  %v75_v57 = vld [vmem:[%s13254_s1 + $0xd0] sm:$0xff] }
 0x146   :  { %v1471_v30 = vshrl.u32 %v1197_v33, 16  ;;  %v1474_v56 = vshll.u32 %v1197_v33, 16  ;;  %v1162_v40 = vmul.f32 %v9229_v51, %v642_v13  ;;  %v864_v26 = vrot.slane %v9373_v28, 1 }
 0x147   :  { %673 = vrot.lane.b32.xlu1 %v9327_v44, %s8571_s29  ;;  %v9386_v62 = vor.u32 %v1341_v15, %v1338_v21  ;;  %v878_v47 = vrot.slane %v9378_v38, 1  ;;  %v85_v21 = vld [vmem:[%s13254_s1 + $0x120] sm:$0xff]  ;;  %v9402_v33 = vrot.slane %v1381_v11, 3  ;;  %v9406_v19 = vrot.slane %v1426_v10, 3  ;;  %v74_v10 = vld [vmem:[%s13254_s1 + $0xc8] sm:$0xff] }
 0x148   :  { %675 = vrot.lane.b32.xlu0 %v642_v13, %s8571_s29  ;;  %v9404_v13 = vrot.slane %v1384_v7, 4  ;;  %v1516_v15 = vshrl.u32 %v1202_v54, 16  ;;  %v9408_v39 = vrot.slane %v1429_v35, 4  ;;  %v9410_v28 = vrot.slane %v1471_v30, 3  ;;  %v67_v7 = vld [vmem:[%s13254_s1 + $0x90] sm:$0xff] }
 0x149   :  { %13666 = vst [vmem:[#allocation74_spill] sm:$0xff] %v9386_v62  ;;  %13667 = vst [vmem:[#allocation75_spill] sm:$0xff] %v9402_v33  ;;  %v1519_v38 = vshll.u32 %v1202_v54, 16  ;;  %v9414_v51 = vsel %vm186_vm1, %v9357_v18, %v854_v2  ;;  %v9427_v11 = vrot.slane %v1474_v56, 4  ;;  %v900_v54 = vrot.slane %v80_v17, 1  ;;  %v79_v17 = vld [vmem:[%s13254_s1 + $0xf0] sm:$0xff] }
 0x14a   :  { %13668 = vst [vmem:[#allocation76_spill] sm:$0xff] %v9404_v13  ;;  %13669 = vst [vmem:[#allocation77_spill] sm:$0xff] %v9406_v19  ;;  %v910_v35 = vrot.slane %v85_v21, 1  ;;  %v890_v30 = vrot.slane %v75_v57, 1  ;;  %v9435_v19 = vpack.c.bf16 %v1162_v40, %v1157_v45  ;;  %v9438_v62 = vsel %vm186_vm1, %v858_v59, %v868_v5  ;;  %v84_v21 = vld [vmem:[%s13254_s1 + $0x118] sm:$0xff]  ;;  %v9455_v45 = vld [vmem:[%s13254_s1 + $0x108] sm:$0xff] }
 0x14b   :  { %13670 = vst [vmem:[#allocation78_spill] sm:$0xff] %v9408_v39  ;;  %13671 = vst [vmem:[#allocation79_spill] sm:$0xff] %v9410_v28  ;;  %v72_v28 = vld [vmem:[%s13254_s1 + $0xb8] sm:$0xff]  ;;  %v77_v39 = vld [vmem:[%s13254_s1 + $0xe0] sm:$0xff]  ;;  %v9441_v13 = vsel %vm186_vm1, %v854_v2, %v864_v26  ;;  %v9444_v56 = vsel %vm186_vm1, %v868_v5, %v878_v47  ;;  %v9457_v40 = vrot.slane %v1516_v15, 3  ;;  %v13679_v2 = vrot.slane %v9269_v53, 1 }
 0x14c   :  { %13672 = vst [vmem:[#allocation80_spill] sm:$0xff] %v9414_v51  ;;  %13673 = vst [vmem:[#allocation81_spill] sm:$0xff] %v9427_v11  ;;  %v920_v57 = vrot.slane %v9419_v4, 1  ;;  %v874_v11 = vrot.slane %v67_v7, 1  ;;  %v9468_v33 = vld [vmem:[%s13254_s1 + $0x140] sm:$0xff]  ;;  %v9476_v53 = vrot.slane %v1519_v38, 4  ;;  %v9482_v44 = vsel %vm186_vm1, %v900_v54, %v910_v35 }
 0x14d   :  { %13674 = vst [vmem:[#allocation82_spill] sm:$0xff] %v9435_v19  ;;  %13675 = vst [vmem:[#allocation83_spill] sm:$0xff] %v9438_v62  ;;  %v9462_v5 = vsel %vm186_vm1, %v13679_v2, %v858_v59  ;;  %v100_v19 = vld [vmem:[%s13254_s1 + $0x198] sm:$0xff]  ;;  %v105_v15 = vld [vmem:[%s13254_s1 + $0x1c0] sm:$0xff]  ;;  %v888_v59 = vrot.slane %v74_v10, 1  ;;  %v884_v2 = vrot.slane %v72_v28, 1 }
 0x14e   :  { %13676 = vst [vmem:[#allocation84_spill] sm:$0xff] %v9441_v13  ;;  %13677 = vst [vmem:[#allocation85_spill] sm:$0xff] %v9444_v56  ;;  %v95_v4 = vld [vmem:[%s13254_s1 + $0x170] sm:$0xff]  ;;  %v13683_v18 = vrot.slane %v9258_v3, 1  ;;  %v898_v51 = vrot.slane %v79_v17, 1  ;;  %v908_v50 = vrot.slane %v84_v21, 1  ;;  %v9504_v17 = vsel %vm186_vm1, %v910_v35, %v920_v57 }
 0x14f   :  { %13678 = vst [vmem:[#allocation86_spill] sm:$0xff] %v9457_v40  ;;  %13680 = vst [vmem:[#allocation87_spill] sm:$0xff] %v9462_v5  ;;  %v894_v40 = vrot.slane %v77_v39, 1  ;;  %v904_v10 = vrot.slane %v9455_v45, 1  ;;  %v918_v39 = vrot.slane %v9468_v33, 1  ;;  %v940_v28 = vrot.slane %v100_v19, 1 }
 0x150   :  { %13681 = vst [vmem:[#allocation88_spill] sm:$0xff] %v9476_v53  ;;  %13682 = vst [vmem:[#allocation89_spill] sm:$0xff] %v9482_v44  ;;  %v9487_v61 = vsel %vm186_vm1, %v13683_v18, %v890_v30  ;;  %v950_v53 = vrot.slane %v105_v15, 1  ;;  %v9499_v3 = vld [vmem:[%s13254_s1 + $0x130] sm:$0xff]  ;;  %v9507_v33 = vsel %vm186_vm1, %v864_v26, %v874_v11  ;;  %v930_v19 = vrot.slane %v95_v4, 1  ;;  %v92_v26 = vld [vmem:[%s13254_s1 + $0x158] sm:$0xff] }
 0x151   :  { %13684 = vst [vmem:[#allocation90_spill] sm:$0xff] %v9487_v61  ;;  %13685 = vst [vmem:[#allocation91_spill] sm:$0xff] %v9504_v17  ;;  %v9511_v45 = vsel %vm186_vm1, %v878_v47, %v888_v59  ;;  %v9514_v15 = vsel %vm186_vm1, %v890_v30, %v900_v54  ;;  %v9517_v29 = vsel %vm186_vm1, %v884_v2, %v894_v40  ;;  %v914_v30 = vrot.slane %v9499_v3, 1  ;;  %v104_v3 = vld [vmem:[%s13254_s1 + $0x1b8] sm:$0xff] }
 0x152   :  { %13686 = vst [vmem:[#allocation92_spill] sm:$0xff] %v9507_v33  ;;  %13687 = vst [vmem:[#allocation93_spill] sm:$0xff] %v9511_v45  ;;  %v9528_v4 = vsel %vm186_vm1, %v898_v51, %v908_v50  ;;  %v9531_v47 = vsel %vm186_vm1, %v874_v11, %v884_v2  ;;  %v9545_v13 = vsel %vm186_vm1, %v940_v28, %v950_v53  ;;  %v99_v2 = vld [vmem:[%s13254_s1 + $0x190] sm:$0xff] }
 0x153   :  { %13688 = vst [vmem:[#allocation94_spill] sm:$0xff] %v9514_v15  ;;  %13689 = vst [vmem:[#allocation95_spill] sm:$0xff] %v9517_v29  ;;  %v9542_v29 = vsel %vm186_vm1, %v908_v50, %v918_v39  ;;  %v9548_v11 = vsel %vm186_vm1, %v888_v59, %v898_v51  ;;  %v9558_v54 = vsel %vm186_vm1, %v920_v57, %v930_v19  ;;  %v9563_v51 = vld [vmem:[%s13254_s1 + $0x1a8] sm:$0xff]  ;;  %v9568_v59 = vld [vmem:[%s13254_s1 + $0x1e0] sm:$0xff] }
 0x154   :  { %13690 = vst [vmem:[#allocation96_spill] sm:$0xff] %v9528_v4  ;;  %13691 = vst [vmem:[#allocation97_spill] sm:$0xff] %v9531_v47  ;;  %v9574_v57 = vsel %vm186_vm1, %v930_v19, %v940_v28  ;;  %v938_v28 = vrot.slane %v99_v2, 1  ;;  %v948_v19 = vrot.slane %v104_v3, 1  ;;  %v115_v2 = vld [vmem:[%s13254_s1 + $0x210] sm:$0xff] }
 0x155   :  { %v579_v7 = vpop.permute.xlu1 %578  ;;  %13693 = vst [vmem:[#allocation99_spill] sm:$0xff] %v9542_v29  ;;  %13694 = vst [vmem:[#allocation100_spill] sm:$0xff] %v9545_v13  ;;  %v125_v13 = vld [vmem:[%s13254_s1 + $0x260] sm:$0xff] }
 0x156   :  { %v575_v38 = vpop.permute.xlu0 %574  ;;  %13695 = vst [vmem:[#allocation101_spill] sm:$0xff] %v9548_v11  ;;  %13696 = vst [vmem:[#allocation102_spill] sm:$0xff] %v9558_v54  ;;  %v729_v47 = vsel %vm708_vm3, %v9031_v63, %v579_v7  ;;  %v9587_v63 = vsel %vm186_vm1, %v950_v53, %v13698_v31  ;;  %v9590_v7 = vsel %vm186_vm1, %v904_v10, %v914_v30 }
 0x157   :  { %v727_v18 = vsel %vm708_vm3, %v9364_v1, %v575_v38  ;;  %v94_v1 = vld [vmem:[%s13254_s1 + $0x168] sm:$0xff]  ;;  %v97_v38 = vld [vmem:[%s13254_s1 + $0x180] sm:$0xff]  ;;  %13697 = vst [vmem:[#allocation103_spill] sm:$0xff] %v9574_v57  ;;  %13699 = vst [vmem:[#allocation104_spill] sm:$0xff] %v9587_v63  ;;  %v944_v57 = vrot.slane %v9563_v51, 1  ;;  %v1099_v16 = vmul.f32 %v9316_v48, %v729_v47  ;;  %v13708_v48 = vrot.slane %v9568_v59, 1 }
 0x158   :  { %v1089_v21 = vmul.f32 %v9319_v9, %v727_v18  ;;  %v9539_v9 = vsel %vm186_vm1, %v894_v40, %v904_v10  ;;  %v928_v50 = vrot.slane %v94_v1, 1  ;;  %v934_v1 = vrot.slane %v97_v38, 1  ;;  %13700 = vst [vmem:[#allocation105_spill] sm:$0xff] %v9590_v7  ;;  %v9614_v47 = vld [vmem:[%s13254_s1 + $0x1d0] sm:$0xff] }
 0x159   :  { %v9525_v35 = vpop.permute.xlu1 %580  ;;  %13692 = vst [vmem:[#allocation98_spill] sm:$0xff] %v9539_v9  ;;  %v924_v9 = vrot.slane %v92_v26, 1  ;;  %v9579_v26 = vld [vmem:[%s13254_s1 + $0x238] sm:$0xff]  ;;  %v9600_v10 = vrot.slane %v125_v13, 1  ;;  %v9619_v13 = vld [vmem:[%s13254_s1 + $0x208] sm:$0xff] }
 0x15a   :  { %v473_v18 = vpop.permute.xlu0 %472  ;;  %v980_v53 = vrot.slane %v9579_v26, 1 }
 0x15b   :  { %v710_v40 = vsel %vm708_vm3, 0.0, %v473_v18  ;;  %v1169_v18 = vpack.c.bf16 %v1089_v21, %v9307_v60  ;;  %13701 = vst [vmem:[#allocation106_spill] sm:$0xff] %v9600_v10 }
 0x15c   :  { %v1088_v21 = vmul.f32 %v9332_v14, %v710_v40 }
 0x15d   :  { %v577_v29 = vpop.permute.xlu1 %576  ;;  %v1232_v3 = vshrl.u32 %v1169_v18, 16  ;;  %v1235_v40 = vshll.u32 %v1169_v18, 16  ;;  %v9622_v18 = vsel %vm186_vm1, %v938_v28, %v948_v19 }
 0x15e   :  { %v728_v38 = vsel %vm708_vm3, %v9006_v46, %v577_v29  ;;  %v477_v60 = vpop.permute.xlu0 %476  ;;  %v9606_v46 = vsel %vm186_vm1, %v918_v39, %v928_v50  ;;  %v9609_v29 = vsel %vm186_vm1, %v924_v9, %v934_v1  ;;  %13704 = vst [vmem:[#allocation109_spill] sm:$0xff] %v9622_v18  ;;  %v9625_v39 = vsel %vm186_vm1, %v914_v30, %v924_v9  ;;  %v51_v9 = vld [vmem:[%s13254_s1 + $0x10] sm:$0xff]  ;;  %v9645_v30 = vld [vmem:[%s13254_s1 + $0x38] sm:$0xff] }
 0x15f   :  { %v1094_v31 = vmul.f32 %v9355_v41, %v728_v38  ;;  %13702 = vst [vmem:[#allocation107_spill] sm:$0xff] %v9606_v46  ;;  %13703 = vst [vmem:[#allocation108_spill] sm:$0xff] %v9609_v29  ;;  %v9628_v38 = vsel %vm186_vm1, %v928_v50, %v938_v28  ;;  %v1168_v33 = vpack.c.bf16 %v1088_v21, %v9280_v25  ;;  %v1234_v21 = vrot.slane %v1232_v3, 3 }
 0x160   :  { %13705 = vst [vmem:[#allocation110_spill] sm:$0xff] %v9625_v39  ;;  %13706 = vst [vmem:[#allocation111_spill] sm:$0xff] %v9628_v38  ;;  %v9632_v41 = vsel %vm186_vm1, %v934_v1, %v944_v57  ;;  %v9649_v1 = vsel %vm186_vm1, %v980_v53, %v9600_v10  ;;  %v730_v39 = vsel %vm708_vm3, %v9045_v8, %v9525_v35  ;;  %v13712_v35 = vrot.slane %v9494_v36, 1 }
 0x161   :  { %v1174_v51 = vpack.c.bf16 %v1099_v16, %v1094_v31  ;;  %v479_v26 = vpop.permute.xlu1 %478  ;;  %13707 = vst [vmem:[#allocation112_spill] sm:$0xff] %v9632_v41  ;;  %v9637_v16 = vsel %vm186_vm1, %v948_v19, %v13708_v48  ;;  %v970_v31 = vrot.slane %v115_v2, 1  ;;  %13710 = vst [vmem:[#allocation114_spill] sm:$0xff] %v9649_v1  ;;  %v9655_v19 = vsel %vm708_vm3, %v8762_v55, %v477_v60 }
 0x162   :  { %v587_v14 = vpop.permute.xlu0 %586  ;;  %13709 = vst [vmem:[#allocation113_spill] sm:$0xff] %v9637_v16  ;;  %v1237_v2 = vrot.slane %v1235_v40, 4  ;;  %v9660_v16 = vrot.slane %v51_v9, 1  ;;  %v1215_v28 = vshrl.u32 %v1168_v33, 16  ;;  %v1218_v1 = vshll.u32 %v1168_v33, 16 }
 0x163   :  { %v1240_v50 = vshrl.u32 %v1174_v51, 16  ;;  %v1243_v25 = vshll.u32 %v1174_v51, 16  ;;  %v1098_v3 = vmul.f32 %v9438_v62, %v9655_v19  ;;  %v9673_v51 = vsel %vm186_vm1, %v13712_v35, %v970_v31 }
 0x164   :  { %13711 = vst [vmem:[#allocation115_spill] sm:$0xff] %v9660_v16  ;;  %13713 = vst [vmem:[#allocation116_spill] sm:$0xff] %v9673_v51  ;;  %v1104_v33 = vmul.f32 %v9324_v27, %v730_v39 }
 0x165   :  { %v475_v41 = vpop.permute.xlu1 %474  ;;  %v1242_v29 = vrot.slane %v1240_v50, 3  ;;  %v1245_v55 = vrot.slane %v1243_v25, 4  ;;  %v9682_v25 = vld [vmem:[%s13254_s1 + $0x1f8] sm:$0xff] }
 0x166   :  { %v711_v48 = vsel %vm708_vm3, %v8754_v52, %v475_v41  ;;  %v583_v60 = vpop.permute.xlu0 %582  ;;  %v1238_v41 = vor.u32 %v1237_v2, %v1234_v21  ;;  %v1220_v21 = vrot.slane %v1218_v1, 4 }
 0x167   :  { %v1093_v40 = vmul.f32 %v9462_v5, %v711_v48  ;;  %v731_v8 = vsel %vm708_vm3, %v9071_v23, %v583_v60  ;;  %v9677_v50 = vor.u32 %v1245_v55, %v1242_v29  ;;  %v9686_v23 = vsel %vm708_vm3, %v8748_v49, %v479_v26  ;;  %v119_v26 = vld [vmem:[%s13254_s1 + $0x230] sm:$0xff] }
 0x168   :  { %v1109_v9 = vmul.f32 %v9487_v61, %v731_v8  ;;  %v13714_v60 = vrot.slane %v9614_v47, 1  ;;  %v9696_v55 = vsel %vm186_vm1, %v970_v31, %v980_v53  ;;  %v1217_v29 = vrot.slane %v1215_v28, 3  ;;  %v124_v53 = vld [vmem:[%s13254_s1 + $0x258] sm:$0xff]  ;;  %v9725_v31 = vld [vmem:[%s13254_s1 + $0x220] sm:$0xff] }
 0x169   :  { %v1173_v36 = vpack.c.bf16 %v1098_v3, %v1093_v40  ;;  %v9688_v48 = vpop.permute.xlu1 %588  ;;  %13716 = vst [vmem:[#allocation118_spill] sm:$0xff] %v9696_v55  ;;  %v1247_v35 = vsel %vm1213_vm4, %v1238_v41, %v9677_v50  ;;  %v1103_v1 = vmul.f32 %v9444_v56, %v9686_v23 }
 0x16a   :  { %v9693_v39 = vsel %vm186_vm1, %v944_v57, %v13714_v60  ;;  %v1179_v2 = vpack.c.bf16 %v1109_v9, %v1104_v33  ;;  %v481_v8 = vpop.permute.xlu0 %480  ;;  %1918 = vmatprep.mubr.bf16.mxu1 %v1247_v35  ;;  %v13718_v35 = vrot.slane %v9568_v59, 1  ;;  %v61_v59 = vld [vmem:[%s13254_s1 + $0x60] sm:$0xff] }
 0x16b   :  { %13715 = vst [vmem:[#allocation117_spill] sm:$0xff] %v9693_v39  ;;  %v1223_v3 = vshrl.u32 %v1173_v36, 16  ;;  %v1226_v40 = vshll.u32 %v1173_v36, 16  ;;  %v9705_v57 = vsel %vm708_vm3, %v8769_v58, %v481_v8  ;;  %v13717_v8 = vrot.slane %v9619_v13, 1 }
 0x16c   :  { %v1309_v28 = vshrl.u32 %v1179_v2, 16  ;;  %v1312_v33 = vshll.u32 %v1179_v2, 16  ;;  %v1108_v9 = vmul.f32 %v9511_v45, %v9705_v57  ;;  %v978_v58 = vrot.slane %v119_v26, 1 }
 0x16d   :  { %v1225_v41 = vrot.slane %v1223_v3, 3  ;;  %v1228_v36 = vrot.slane %v1226_v40, 4  ;;  %v585_v60 = vpop.permute.xlu1 %584  ;;  %v9720_v10 = vsel %vm186_vm1, %v13718_v35, %v13717_v8  ;;  %v733_v2 = vsel %vm708_vm3, %v9091_v43, %v587_v14  ;;  %v8418_v43 = vld [vmem:[%s13261_s8 + $0x108] sm:$0xff]  }
 0x16e   :  { %13719 = vst [vmem:[#allocation119_spill] sm:$0xff] %v9720_v10  ;;  %v1178_v49 = vpack.c.bf16 %v1108_v9, %v1103_v1  ;;  %v485_v3 = vpop.permute.xlu0 %484  ;;  %v1221_v40 = vor.u32 %v1220_v21, %v1217_v29  ;;  %v9729_v45 = vrot.slane %v124_v53, 1  ;;  %v1311_v8 = vrot.slane %v1309_v28, 3  ;;  %v71_v9 = vld [vmem:[%s13254_s1 + $0xb0] sm:$0xff] }
 0x16f   :  { %v1314_v35 = vrot.slane %v1312_v33, 4  ;;  %v732_v56 = vsel %vm708_vm3, %v9085_v37, %v585_v60  ;;  %v1229_v61 = vor.u32 %v1228_v36, %v1225_v41  ;;  %v13721_v14 = vrot.slane %v9645_v30, 1  ;;  %v66_v33 = vld [vmem:[%s13254_s1 + $0x88] sm:$0xff]  ;;  %v76_v41 = vld [vmem:[%s13254_s1 + $0xd8] sm:$0xff] }
 0x170   :  { %13720 = vst [vmem:[#allocation120_spill] sm:$0xff] %v9729_v45  ;;  %v1300_v27 = vshrl.u32 %v1178_v49, 16  ;;  %v1303_v26 = vshll.u32 %v1178_v49, 16  ;;  %v1119_v53 = vmul.f32 %v9482_v44, %v733_v2  ;;  %v1114_v1 = vmul.f32 %v9514_v15, %v732_v56 }
 0x171   :  { %v9743_v29 = vsel %vm186_vm1, %v9660_v16, %v13721_v14  ;;  %v487_v37 = vpop.permute.xlu1 %486  ;;  %v1230_v28 = vsel %vm1213_vm4, %v1221_v40, %v1229_v61  ;;  %v862_v49 = vrot.slane %v61_v59, 1  ;;  %v13723_v56 = vrot.slane %v9619_v13, 1 }
 0x172   :  { %13722 = vst [vmem:[#allocation121_spill] sm:$0xff] %v9743_v29  ;;  %v1302_v36 = vrot.slane %v1300_v27, 3  ;;  %v1305_v60 = vrot.slane %v1303_v26, 4  ;;  %v9758_v2 = vpop.permute.xlu0 %594  ;;  %1919 = vmatmul.mubr.bf16.vlgmr.msra.gmra.mrb[0].mxu1 %v1230_v28  ;;  %v1184_v14 = vpack.c.bf16 %v1119_v53, %v1114_v1  ;;  %v1315_v21 = vor.u32 %v1314_v35, %v1311_v8  ;;  %v9775_v27 = vld [vmem:[%s13254_s1 + $0x100] sm:$0xff] }
 0x173   :  { %v9763_v40 = vsel %vm186_vm1, %v13723_v56, %v978_v58  ;;  %8231 = vmatpush3.bf16.msra.mxu1 %v8901_v0  ;;  %v9770_v15 = vsel %vm186_vm1, %v978_v58, %v9729_v45  ;;  %v9779_v13 = vor.u32 %v9384_v42, %v9382_v12  ;;  %v9783_v26 = vsel %vm708_vm3, %v8845_v32, %v485_v3  ;;  %v8427_v58 = vld [vmem:[%s13261_s8 + $0x110] sm:$0xff]  }
 0x174   :  { %13724 = vst [vmem:[#allocation122_spill] sm:$0xff] %v9763_v40  ;;  %13725 = vst [vmem:[#allocation123_spill] sm:$0xff] %v9770_v15  ;;  %8232 = vmatprep.subr.bf16.mxu1 %v8418_v43  ;;  %v872_v8 = vrot.slane %v66_v33, 1  ;;  %v882_v0 = vrot.slane %v71_v9, 1  ;;  %v892_v35 = vrot.slane %v76_v41, 1  ;;  %v1354_v53 = vshrl.u32 %v1184_v14, 16 }
 0x175   :  { %v1357_v1 = vshll.u32 %v1184_v14, 16  ;;  %v1316_v28 = vsel %vm1213_vm4, %v9677_v50, %v1315_v21  ;;  %v483_v56 = vpop.permute.xlu1 %482  ;;  %v9790_v12 = vor.u32 %v1305_v60, %v1302_v36  ;;  %v734_v42 = vsel %vm708_vm3, %v9125_v22, %v9688_v48  ;;  %v86_v22 = vld [vmem:[%s13254_s1 + $0x128] sm:$0xff] }
 0x176   :  { %1926 = vmatprep.mubr.bf16.mxu1 %v1316_v28  ;;  %v715_v3 = vsel %vm708_vm3, %v8819_v20, %v483_v56  ;;  %v591_v33 = vpop.permute.xlu0 %590  ;;  %v13726_v9 = vrot.slane %v9645_v30, 1  ;;  %v902_v14 = vrot.slane %v9775_v27, 1  ;;  %v1356_v50 = vrot.slane %v1354_v53, 3  ;;  %v91_v30 = vld [vmem:[%s13254_s1 + $0x150] sm:$0xff]  ;;  %v8432_v28 = vld [vmem:[%s13261_s8 + $0x118] sm:$0xff]  }
 0x177   :  { %v1359_v59 = vrot.slane %v1357_v1, 4  ;;  %v1118_v36 = vmul.f32 %v9528_v4, %v9783_v26  ;;  %v1113_v60 = vmul.f32 %v9548_v11, %v715_v3  ;;  %8233 = vmatpush3.bf16.msra.mxu1 %v8418_v43  ;;  %v735_v48 = vsel %vm708_vm3, %v9140_v24, %v591_v33  ;;  %v9826_v1 = vld [vmem:[%s13254_s1 + $0x178] sm:$0xff] }
 0x178   :  { %v9800_v41 = vsel %vm186_vm1, %v13726_v9, %v862_v49  ;;  %v9815_v27 = vsel %vm186_vm1, %v862_v49, %v872_v8  ;;  %8234 = vmatprep.subr.bf16.mxu1 %v8427_v58  ;;  %v9818_v53 = vsel %vm186_vm1, %v872_v8, %v882_v0  ;;  %v9821_v43 = vsel %vm186_vm1, %v882_v0, %v892_v35  ;;  %v13733_v4 = vld [vmem:[#allocation12_spill] sm:$0xff] }
 0x179   :  { %13727 = vst [vmem:[#allocation124_spill] sm:$0xff] %v9800_v41  ;;  %13728 = vst [vmem:[#allocation125_spill] sm:$0xff] %v9815_v27  ;;  %v1183_v24 = vpack.c.bf16 %v1118_v36, %v1113_v60  ;;  %v1129_v49 = vmul.f32 %v9558_v54, %v735_v48  ;;  %v9832_v56 = vpop.permute.xlu1 %596  ;;  %v1307_v8 = vsel %vm1213_vm4, %v1229_v61, %v9790_v12  ;;  %v912_v20 = vrot.slane %v86_v22, 1  ;;  %v13735_v54 = vld [vmem:[#allocation16_spill] sm:$0xff] }
 0x17a   :  { %13729 = vst [vmem:[#allocation126_spill] sm:$0xff] %v9818_v53  ;;  %13730 = vst [vmem:[#allocation127_spill] sm:$0xff] %v9821_v43  ;;  %v9836_v33 = vor.u32 %v1359_v59, %v1356_v50  ;;  %v1124_v0 = vmul.f32 %v9504_v17, %v734_v42  ;;  %v489_v9 = vpop.permute.xlu0 %488  ;;  %1927 = vmatmul.mubr.bf16.gmra.mrb[4].mxu1 %v1307_v8  ;;  %v9840_v32 = vsel %vm186_vm1, %v892_v35, %v902_v14  ;;  %v13734_v59 = vld [vmem:[#allocation92_spill] sm:$0xff] }
 0x17b   :  { %13731 = vst [vmem:[#allocation128_spill] sm:$0xff] %v9826_v1  ;;  %13732 = vst [vmem:[#allocation129_spill] sm:$0xff] %v9840_v32  ;;  %v922_v11 = vrot.slane %v91_v30, 1  ;;  %v9844_v36 = vsel %vm708_vm3, %v13733_v4, %v487_v37  ;;  %v1345_v60 = vshrl.u32 %v1183_v24, 16  ;;  %v1348_v48 = vshll.u32 %v1183_v24, 16  ;;  %8235 = vmatpush3.bf16.msra.mxu1 %v8427_v58  ;;  %v13736_v22 = vld [vmem:[#allocation84_spill] sm:$0xff] }
 0x17c   :  { %v1101_v50 = vmul.f32 %v13734_v59, %v9705_v57  ;;  %v1189_v42 = vpack.c.bf16 %v1129_v49, %v1124_v0  ;;  %v718_v8 = vsel %vm708_vm3, %v13735_v54, %v489_v9  ;;  %v1361_v35 = vsel %vm1213_vm4, %v1315_v21, %v9836_v33  ;;  %8236 = vmatprep.subr.bf16.mxu1 %v8432_v28  ;;  %v13737_v30 = vld [vmem:[#allocation47_spill] sm:$0xff]  ;;  %v13739_v59 = vld [vmem:[#allocation44_spill] sm:$0xff] }
 0x17d   :  { %v1096_v37 = vmul.f32 %v13736_v22, %v9686_v23  ;;  %v737_v58 = vsel %vm708_vm3, %v13737_v30, %v9758_v2  ;;  %v1347_v24 = vrot.slane %v1345_v60, 3  ;;  %v1350_v61 = vrot.slane %v1348_v48, 4  ;;  %1934 = vmatprep.mubr.bf16.mxu1 %v1361_v35  ;;  %v593_v4 = vpop.permute.xlu1 %592  ;;  %v13738_v57 = vld [vmem:[#allocation99_spill] sm:$0xff]  ;;  %v9872_v60 = vld [vmem:[%s13254_s1 + $0x1a0] sm:$0xff] }
 0x17e   :  { %v1123_v49 = vmul.f32 %v13738_v57, %v9844_v36  ;;  %v1399_v0 = vshrl.u32 %v1189_v42, 16  ;;  %v1402_v9 = vshll.u32 %v1189_v42, 16  ;;  %v1128_v54 = vmul.f32 %v9606_v46, %v718_v8  ;;  %v493_v21 = vpop.permute.xlu0 %492 }
 0x17f   :  { %v736_v17 = vsel %vm708_vm3, %v13739_v59, %v593_v4  ;;  %v1351_v23 = vor.u32 %v1350_v61, %v1347_v24  ;;  %v9864_v22 = vsel %vm186_vm1, %v902_v14, %v912_v20  ;;  %v9867_v2 = vsel %vm186_vm1, %v912_v20, %v922_v11  ;;  %8237 = vmatpush3.bf16.msra.mxu1 %v8432_v28  ;;  %v9877_v4 = vld [vmem:[%s13254_s1 + $0x1c8] sm:$0xff]  ;;  %v13742_v14 = vld [vmem:[#allocation100_spill] sm:$0xff]  ;;  %v13744_v24 = vld [vmem:[#allocation103_spill] sm:$0xff] }
 0x180   :  { %13740 = vst [vmem:[#allocation47_spill] sm:$0xff] %v9864_v22  ;;  %13741 = vst [vmem:[#allocation44_spill] sm:$0xff] %v9867_v2  ;;  %v1176_v48 = vpack.c.bf16 %v1101_v50, %v1096_v37  ;;  %v1401_v42 = vrot.slane %v1399_v0, 3  ;;  %v1404_v35 = vrot.slane %v1402_v9, 4  ;;  %v1188_v30 = vpack.c.bf16 %v1128_v54, %v1123_v49  ;;  %v13743_v59 = vld [vmem:[#allocation97_spill] sm:$0xff] }
 0x181   :  { %v1139_v61 = vmul.f32 %v13742_v14, %v737_v58  ;;  %v1106_v20 = vmul.f32 %v13743_v59, %v715_v3  ;;  %v1134_v46 = vmul.f32 %v13744_v24, %v736_v17  ;;  %v495_v57 = vpop.permute.xlu1 %494  ;;  %v1352_v44 = vsel %vm1213_vm4, %v9790_v12, %v1351_v23  ;;  %v13747_v58 = vld [vmem:[#allocation95_spill] sm:$0xff] }
 0x182   :  { %v1390_v28 = vshrl.u32 %v1188_v30, 16  ;;  %v1393_v50 = vshll.u32 %v1188_v30, 16  ;;  %v603_v37 = vpop.permute.xlu0 %602  ;;  %1935 = vmatmul.mubr.bf16.gmra.mrb[8].mxu1 %v1352_v44  ;;  %v13745_v54 = vrot.slane %v9826_v1, 1  ;;  %v1111_v3 = vmul.f32 %v13747_v58, %v9783_v26  ;;  %v13748_v30 = vld [vmem:[#allocation25_spill] sm:$0xff] }
 0x183   :  { %v1194_v9 = vpack.c.bf16 %v1139_v61, %v1134_v46  ;;  %v1405_v17 = vor.u32 %v1404_v35, %v1401_v42  ;;  %v1274_v24 = vshrl.u32 %v1176_v48, 16  ;;  %v9895_v44 = vsel %vm708_vm3, %v13748_v30, %v493_v21  ;;  %v13749_v1 = vld [vmem:[#allocation53_spill] sm:$0xff]  ;;  %v13750_v42 = vld [vmem:[#allocation22_spill] sm:$0xff] }
 0x184   :  { %v9887_v49 = vsel %vm186_vm1, %v922_v11, %v13745_v54  ;;  %v1392_v12 = vrot.slane %v1390_v28, 3  ;;  %v1395_v14 = vrot.slane %v1393_v50, 4  ;;  %v1277_v5 = vshll.u32 %v1176_v48, 16  ;;  %v13753_v30 = vld [vmem:[#allocation98_spill] sm:$0xff] }
 0x185   :  { %13746 = vst [vmem:[#allocation130_spill] sm:$0xff] %v9887_v49  ;;  %v9897_v62 = vpack.c.bf16 %v1111_v3, %v1106_v20  ;;  %v1444_v11 = vshrl.u32 %v1194_v9, 16  ;;  %v1447_v54 = vshll.u32 %v1194_v9, 16  ;;  %v491_v0 = vpop.permute.xlu1 %490  ;;  %v738_v46 = vsel %vm708_vm3, %v13749_v1, %v9832_v56  ;;  %v13751_v1 = vld [vmem:[#allocation80_spill] sm:$0xff]  ;;  %v13752_v9 = vld [vmem:[#allocation55_spill] sm:$0xff] }
 0x186   :  { %v1406_v26 = vsel %vm1213_vm4, %v9836_v33, %v1405_v17  ;;  %v9906_v35 = vsel %vm708_vm3, %v13750_v42, %v491_v0  ;;  %v599_v61 = vpop.permute.xlu0 %598  ;;  %v1396_v21 = vor.u32 %v1395_v14, %v1392_v12  ;;  %v1138_v20 = vmul.f32 %v9622_v18, %v9895_v44 }
 0x187   :  { %v1446_v28 = vrot.slane %v1444_v11, 3  ;;  %v1449_v48 = vrot.slane %v1447_v54, 4  ;;  %1942 = vmatprep.mubr.bf16.mxu1 %v1406_v26  ;;  %v1133_v50 = vmul.f32 %v9628_v38, %v9906_v35  ;;  %v1091_v56 = vmul.f32 %v13751_v1, %v9655_v19  ;;  %v13762_v1 = vld [vmem:[#allocation15_spill] sm:$0xff] }
 0x188   :  { %v1276_v3 = vrot.slane %v1274_v24, 3  ;;  %v1121_v33 = vmul.f32 %v9590_v7, %v718_v8  ;;  %v739_v0 = vsel %vm708_vm3, %v13752_v9, %v599_v61  ;;  %v1397_v11 = vsel %vm1213_vm4, %v1351_v23, %v1396_v21 }
 0x189   :  { %v1193_v59 = vpack.c.bf16 %v1138_v20, %v1133_v50  ;;  %v1149_v14 = vmul.f32 %v9673_v51, %v739_v0  ;;  %v696_v12 = vpop.permute.xlu1 %695  ;;  %v9919_v54 = vor.u32 %v1449_v48, %v1446_v28  ;;  %v1279_v26 = vrot.slane %v1277_v5, 4  ;;  %v13754_v20 = vld [vmem:[#allocation20_spill] sm:$0xff]  ;;  %v13755_v5 = vld [vmem:[#allocation73_spill] sm:$0xff] }
 0x18a   :  { %v1116_v42 = vmul.f32 %v13753_v30, %v9844_v36  ;;  %v1144_v19 = vmul.f32 %v9587_v63, %v738_v46  ;;  %v760_v8 = vsel %vm708_vm3, %v8754_v52, %v696_v12  ;;  %v497_v24 = vpop.permute.xlu0 %496  ;;  %1943 = vmatmul.mubr.bf16.gmra.mrb[12].mxu1 %v1397_v11  ;;  %v1327_v61 = vshrl.u32 %v9897_v62, 16  ;;  %v13756_v0 = vld [vmem:[#allocation24_spill] sm:$0xff]  ;;  %v13761_v63 = vld [vmem:[#allocation114_spill] sm:$0xff] }
 0x18b   :  { %v9929_v50 = vsel %vm708_vm3, %v13754_v20, %v495_v57  ;;  %v1435_v23 = vshrl.u32 %v1193_v59, 16  ;;  %v1438_v28 = vshll.u32 %v1193_v59, 16  ;;  %v1086_v9 = vmul.f32 %v13755_v5, %v760_v8  ;;  %v13757_v20 = vld [vmem:[#allocation65_spill] sm:$0xff] }
 0x18c   :  { %v1199_v48 = vpack.c.bf16 %v1149_v14, %v1144_v19  ;;  %v9934_v36 = vsel %vm708_vm3, %v13756_v0, %v497_v24  ;;  %v1451_v46 = vsel %vm1213_vm4, %v1405_v17, %v9919_v54  ;;  %v1330_v12 = vshll.u32 %v9897_v62, 16  ;;  %v13758_v24 = vld [vmem:[#allocation113_spill] sm:$0xff]  ;;  %v13759_v62 = vld [vmem:[#allocation62_spill] sm:$0xff] }
 0x18d   :  { %v9939_v11 = vpack.c.bf16 %v1121_v33, %v1116_v42  ;;  %v1437_v52 = vrot.slane %v1435_v23, 3  ;;  %v1440_v30 = vrot.slane %v1438_v28, 4  ;;  %1950 = vmatprep.mubr.bf16.mxu1 %v1451_v46  ;;  %v601_v57 = vpop.permute.xlu1 %600  ;;  %v741_v59 = vsel %vm708_vm3, %v13757_v20, %v603_v37  ;;  %v13760_v46 = vld [vmem:[#allocation9_spill] sm:$0xff] }
 0x18e   :  { %v1489_v14 = vshrl.u32 %v1199_v48, 16  ;;  %v1492_v19 = vshll.u32 %v1199_v48, 16  ;;  %v1171_v8 = vpack.c.bf16 %v1091_v56, %v1086_v9  ;;  %v644_v7 = vpop.permute.xlu0 %643  ;;  %v1143_v0 = vmul.f32 %v13758_v24, %v9929_v50 }
 0x18f   :  { %v1148_v17 = vmul.f32 %v9720_v10, %v9934_v36  ;;  %v740_v42 = vsel %vm708_vm3, %v13759_v62, %v601_v57  ;;  %v1441_v33 = vor.u32 %v1440_v30, %v1437_v52  ;;  %v743_v5 = vsel %vm708_vm3, %v13760_v46, %v644_v7 }
 0x190   :  { %v1491_v23 = vrot.slane %v1489_v14, 3  ;;  %v1494_v28 = vrot.slane %v1492_v19, 4  ;;  %v9951_v37 = vor.u32 %v1279_v26, %v1276_v3  ;;  %v1266_v20 = vshrl.u32 %v1171_v8, 16 }
 0x191   :  { %v1269_v56 = vshll.u32 %v1171_v8, 16  ;;  %v1198_v48 = vpack.c.bf16 %v1148_v17, %v1143_v0  ;;  %v1154_v9 = vmul.f32 %v9696_v55, %v740_v42  ;;  %v646_v24 = vpop.permute.xlu1 %645  ;;  %v1329_v51 = vrot.slane %v1327_v61, 3  ;;  %v13763_v42 = vld [vmem:[#allocation33_spill] sm:$0xff] }
 0x192   :  { %v1159_v10 = vmul.f32 %v13761_v63, %v741_v59  ;;  %v744_v57 = vsel %vm708_vm3, %v13762_v1, %v646_v24  ;;  %v501_v52 = vpop.permute.xlu0 %500  ;;  %v1442_v30 = vsel %vm1213_vm4, %v1396_v21, %v1441_v33  ;;  %v1332_v14 = vrot.slane %v1330_v12, 4 }
 0x193   :  { %v1372_v7 = vshrl.u32 %v9939_v11, 16  ;;  %v1480_v3 = vshrl.u32 %v1198_v48, 16  ;;  %v1483_v26 = vshll.u32 %v1198_v48, 16  ;;  %1951 = vmatmul.mubr.bf16.gmra.mrb[16].mxu1 %v1442_v30  ;;  %v1085_v0 = vmul.f32 %v9660_v16, %v743_v5 }
 0x194   :  { %v1204_v19 = vpack.c.bf16 %v1159_v10, %v1154_v9  ;;  %v1090_v8 = vmul.f32 %v9743_v29, %v744_v57  ;;  %v1495_v61 = vor.u32 %v1494_v28, %v1491_v23  ;;  %v1268_v17 = vrot.slane %v1266_v20, 3  ;;  %v13764_v9 = vld [vmem:[#allocation30_spill] sm:$0xff] }
 0x195   :  { %v1271_v59 = vrot.slane %v1269_v56, 4  ;;  %v1482_v62 = vrot.slane %v1480_v3, 3  ;;  %v9963_v1 = vsel %vm708_vm3, %v13763_v42, %v501_v52  ;;  %v499_v21 = vpop.permute.xlu1 %498  ;;  %v1485_v12 = vrot.slane %v1483_v26, 4  ;;  %v13765_v52 = vld [vmem:[#allocation11_spill] sm:$0xff] }
 0x196   :  { %v1534_v24 = vshrl.u32 %v1204_v19, 16  ;;  %v1537_v46 = vshll.u32 %v1204_v19, 16  ;;  %v1170_v55 = vpack.c.bf16 %v1090_v8, %v1085_v0  ;;  %v648_v48 = vpop.permute.xlu0 %647  ;;  %v1375_v10 = vshll.u32 %v9939_v11, 16  ;;  %v13767_v8 = vld [vmem:[#allocation13_spill] sm:$0xff] }
 0x197   :  { %v1496_v5 = vsel %vm1213_vm4, %v9919_v54, %v1495_v61  ;;  %v9970_v23 = vsel %vm708_vm3, %v13764_v9, %v499_v21  ;;  %v9972_v28 = vor.u32 %v1332_v14, %v1329_v51  ;;  %v1158_v57 = vmul.f32 %v9770_v15, %v9963_v1  ;;  %v13766_v51 = vld [vmem:[#allocation108_spill] sm:$0xff] }
 0x198   :  { %v1536_v20 = vrot.slane %v1534_v24, 3  ;;  %v1539_v56 = vrot.slane %v1537_v46, 4  ;;  %1958 = vmatprep.mubr.bf16.mxu1 %v1496_v5  ;;  %v745_v30 = vsel %vm708_vm3, %v13765_v52, %v648_v48  ;;  %v1249_v3 = vshrl.u32 %v1170_v55, 16  ;;  %v13770_v9 = vld [vmem:[#allocation28_spill] sm:$0xff] }
 0x199   :  { %v1252_v11 = vshll.u32 %v1170_v55, 16  ;;  %v1153_v54 = vmul.f32 %v9763_v40, %v9970_v23  ;;  %v1272_v26 = vor.u32 %v1271_v59, %v1268_v17  ;;  %v650_v19 = vpop.permute.xlu1 %649  ;;  %v9980_v0 = vrot.slane %v1372_v7, 3  ;;  %v13768_v7 = vld [vmem:[#allocation70_spill] sm:$0xff] }
 0x19a   :  { %v1131_v14 = vmul.f32 %v13766_v51, %v9895_v44  ;;  %v746_v21 = vsel %vm708_vm3, %v13767_v8, %v650_v19  ;;  %v605_v24 = vpop.permute.xlu0 %604  ;;  %v1486_v46 = vor.u32 %v1485_v12, %v1482_v62  ;;  %v9986_v5 = vrot.slane %v1375_v10, 4 }
 0x19b   :  { %v1203_v48 = vpack.c.bf16 %v1158_v57, %v1153_v54  ;;  %v1281_v55 = vsel %vm1213_vm4, %v1272_v26, %v9951_v37  ;;  %v1100_v52 = vmul.f32 %v9815_v27, %v746_v21  ;;  %v1095_v17 = vmul.f32 %v9800_v41, %v745_v30  ;;  %v13769_v54 = vld [vmem:[#allocation106_spill] sm:$0xff] }
 0x19c   :  { %2015 = vmatprep.mubr.bf16.mxu0 %v1281_v55  ;;  %v742_v59 = vsel %vm708_vm3, %v13768_v7, %v605_v24  ;;  %v1487_v44 = vsel %vm1213_vm4, %v1441_v33, %v1486_v46  ;;  %v1540_v42 = vor.u32 %v1539_v56, %v1536_v20  ;;  %v1251_v19 = vrot.slane %v1249_v3, 3  ;;  %v13771_v24 = vld [vmem:[#allocation112_spill] sm:$0xff]  ;;  %v13772_v33 = vld [vmem:[#allocation110_spill] sm:$0xff] }
 0x19d   :  { %v1254_v8 = vrot.slane %v1252_v11, 4  ;;  %v1525_v62 = vshrl.u32 %v1203_v48, 16  ;;  %v1528_v12 = vshll.u32 %v1203_v48, 16  ;;  %1959 = vmatmul.mubr.bf16.gmra.mrb[20].mxu1 %v1487_v44  ;;  %v503_v10 = vpop.permute.xlu1 %502  ;;  %v1175_v57 = vpack.c.bf16 %v1100_v52, %v1095_v17 }
 0x19e   :  { %v1164_v26 = vmul.f32 %v13769_v54, %v742_v59  ;;  %v1541_v21 = vsel %vm1213_vm4, %v1495_v61, %v1540_v42  ;;  %v725_v30 = vsel %vm708_vm3, %v13770_v9, %v503_v10  ;;  %v652_v55 = vpop.permute.xlu0 %651  ;;  %v10001_v7 = vmul.f32 %v13771_v24, %v9929_v50  ;;  %v13773_v59 = vld [vmem:[#allocation18_spill] sm:$0xff] }
 0x19f   :  { %v1126_v20 = vmul.f32 %v13772_v33, %v9906_v35  ;;  %v1527_v56 = vrot.slane %v1525_v62, 3  ;;  %v1530_v3 = vrot.slane %v1528_v12, 4  ;;  %1966 = vmatprep.mubr.bf16.mxu1 %v1541_v21  ;;  %v1257_v11 = vshrl.u32 %v1175_v57, 16 }
 0x1a0   :  { %v1260_v48 = vshll.u32 %v1175_v57, 16  ;;  %v1209_v52 = vpack.c.bf16 %v1164_v26, %v1164_v26  ;;  %v1163_v17 = vmul.f32 %v9729_v45, %v725_v30  ;;  %v1255_v61 = vor.u32 %v1254_v8, %v1251_v19  ;;  %v13774_v26 = vld [vmem:[#allocation23_spill] sm:$0xff] }
 0x1a1   :  { %v747_v44 = vsel %vm708_vm3, %v13773_v59, %v652_v55  ;;  %v654_v10 = vpop.permute.xlu1 %653  ;;  %v1531_v54 = vor.u32 %v1530_v3, %v1527_v56  ;;  %v1334_v50 = vsel %vm1213_vm4, %v9951_v37, %v9972_v28  ;;  %v1259_v24 = vrot.slane %v1257_v11, 3  ;;  %v13775_v8 = vld [vmem:[#allocation19_spill] sm:$0xff] }
 0x1a2   :  { %v1262_v35 = vrot.slane %v1260_v48, 4  ;;  %v1579_v62 = vshrl.u32 %v1209_v52, 16  ;;  %v1582_v12 = vshll.u32 %v1209_v52, 16  ;;  %v656_v21 = vpop.permute.xlu0 %655  ;;  %v1208_v51 = vpack.c.bf16 %v1163_v17, %v1163_v17 }
 0x1a3   :  { %v1105_v57 = vmul.f32 %v9818_v53, %v747_v44  ;;  %v748_v19 = vsel %vm708_vm3, %v13774_v26, %v654_v10  ;;  %v749_v30 = vsel %vm708_vm3, %v13775_v8, %v656_v21  ;;  %v1191_v37 = vpack.c.bf16 %v1131_v14, %v1126_v20  ;;  %v13776_v44 = vld [vmem:[#allocation21_spill] sm:$0xff] }
 0x1a4   :  { %v1263_v55 = vor.u32 %v1262_v35, %v1259_v24  ;;  %v1581_v56 = vrot.slane %v1579_v62, 3  ;;  %v1584_v3 = vrot.slane %v1582_v12, 4  ;;  %v1110_v59 = vmul.f32 %v9821_v43, %v748_v19 }
 0x1a5   :  { %v1570_v11 = vshrl.u32 %v1208_v51, 16  ;;  %v1573_v48 = vshll.u32 %v1208_v51, 16  ;;  %v1532_v52 = vsel %vm1213_vm4, %v1486_v46, %v1531_v54  ;;  %v658_v45 = vpop.permute.xlu1 %657  ;;  %v1115_v62 = vmul.f32 %v9840_v32, %v749_v30  ;;  %v13850_v32 = vld [vmem:[#allocation67_spill] sm:$0xff] }
 0x1a6   :  { %v1180_v17 = vpack.c.bf16 %v1110_v59, %v1105_v57  ;;  %1967 = vmatmul.mubr.bf16.gmra.mrb[24].mxu1 %v1532_v52  ;;  %v750_v53 = vsel %vm708_vm3, %v13776_v44, %v658_v45  ;;  %v660_v10 = vpop.permute.xlu0 %659  ;;  %v1264_v26 = vsel %vm1213_vm4, %v1255_v61, %v1263_v55  ;;  %v1585_v21 = vor.u32 %v1584_v3, %v1581_v56  ;;  %v13777_v57 = vld [vmem:[#allocation26_spill] sm:$0xff]  ;;  %v13778_v59 = vld [vmem:[#allocation31_spill] sm:$0xff] }
 0x1a7   :  { %v1572_v24 = vrot.slane %v1570_v11, 3  ;;  %v1575_v35 = vrot.slane %v1573_v48, 4  ;;  %v1120_v14 = vmul.f32 %v9864_v22, %v750_v53  ;;  %2016 = vmatmul.mubr.bf16.vlgmr.msra.gmra.mrb[16].mxu0 %v1264_v26  ;;  %v10026_v12 = vor.u32 %v9986_v5, %v9980_v0 }
 0x1a8   :  { %v1318_v51 = vshrl.u32 %v1180_v17, 16  ;;  %v1321_v20 = vshll.u32 %v1180_v17, 16  ;;  %v1586_v46 = vsel %vm1213_vm4, %v1540_v42, %v1585_v21  ;;  %2023 = vmatprep.mubr.bf16.mxu0 %v1334_v50  ;;  %v1141_v45 = vmul.f32 %v9693_v39, %v9934_v36 }
 0x1a9   :  { %v1185_v61 = vpack.c.bf16 %v1120_v14, %v1115_v62  ;;  %v751_v19 = vsel %vm708_vm3, %v13777_v57, %v660_v10  ;;  %1974 = vmatprep.mubr.bf16.mxu1 %v1586_v46  ;;  %v662_v8 = vpop.permute.xlu1 %661  ;;  %v1576_v53 = vor.u32 %v1575_v35, %v1572_v24  ;;  %v1417_v30 = vshrl.u32 %v1191_v37, 16  ;;  %v13786_v46 = vld [vmem:[#allocation29_spill] sm:$0xff] }
 0x1aa   :  { %v1320_v56 = vrot.slane %v1318_v51, 3  ;;  %v1323_v3 = vrot.slane %v1321_v20, 4  ;;  %v752_v42 = vsel %vm708_vm3, %v13778_v59, %v662_v8  ;;  %v1420_v50 = vshll.u32 %v1191_v37, 16  ;;  %v664_v48 = vpop.permute.xlu0 %663  ;;  %v13791_v59 = vld [vmem:[#allocation27_spill] sm:$0xff] }
 0x1ab   :  { %v1363_v11 = vshrl.u32 %v1185_v61, 16  ;;  %v1366_v0 = vshll.u32 %v1185_v61, 16  ;;  %v1130_v5 = vmul.f32 %v9887_v49, %v752_v42  ;;  %v13779_v36 = vrot.slane %v9682_v25, 1 }
 0x1ac   :  { %v13780_v52 = vrot.slane %v9614_v47, 1  ;;  %v1125_v44 = vmul.f32 %v9867_v2, %v751_v19  ;;  %v1577_v10 = vsel %vm1213_vm4, %v1531_v54, %v1576_v53  ;;  %v1324_v26 = vor.u32 %v1323_v3, %v1320_v56 }
 0x1ad   :  { %v1196_v21 = vpack.c.bf16 %v1141_v45, %v10001_v7  ;;  %v1365_v37 = vrot.slane %v1363_v11, 3  ;;  %v13782_v24 = vor.u32 %v9380_v34, %v9359_v6  ;;  %v666_v62 = vpop.permute.xlu1 %665  ;;  %v13783_v47 = vrot.slane %v9877_v4, 1  ;;  %v10063_v6 = vld [vmem:[%s13254_s1 + $0x218] sm:$0xff]  ;;  %v13787_v34 = vld [vmem:[#allocation82_spill] sm:$0xff] }
 0x1ae   :  { %v10040_v17 = vsel %vm186_vm1, %v13780_v52, %v13779_v36  ;;  %v13784_v14 = vrot.slane %v9872_v60, 1  ;;  %v1368_v20 = vrot.slane %v1366_v0, 4  ;;  %v1190_v54 = vpack.c.bf16 %v1130_v5, %v1125_v44  ;;  %1975 = vmatmul.mubr.bf16.gmra.mrb[28].mxu1 %v1577_v10  ;;  %v668_v25 = vpop.permute.xlu0 %667  ;;  %v122_v60 = vld [vmem:[%s13254_s1 + $0x248] sm:$0xff]  ;;  %v13796_v44 = vld [vmem:[#allocation75_spill] sm:$0xff]  ;;  %v13797_v10 = vld [vmem:[#allocation76_spill] sm:$0xff] }
 0x1af   :  { %13781 = vst [vmem:[#allocation95_spill] sm:$0xff] %v10040_v17  ;;  %v1298_v35 = vsel %vm1213_vm4, %v13782_v24, %v9779_v13  ;;  %v754_v7 = vsel %vm708_vm3, %v13786_v46, %v666_v62  ;;  %v1325_v45 = vsel %vm1213_vm4, %v1263_v55, %v1324_v26  ;;  %v1561_v61 = vshrl.u32 %v13787_v34, 16 }
 0x1b0   :  { %v10055_v51 = vsel %vm186_vm1, %v13784_v14, %v13783_v47  ;;  %v1419_v57 = vrot.slane %v1417_v30, 3  ;;  %v1422_v19 = vrot.slane %v1420_v50, 4  ;;  %8238 = vmatprep.mubr.msk.bf16.mxu1 %vm708_vm3, %v1298_v35  ;;  %2024 = vmatmul.mubr.bf16.gmra.mrb[20].mxu0 %v1325_v45  ;;  %v1379_v8 = vsel %vm1213_vm4, %v9972_v28, %v10026_v12  ;;  %v13793_v50 = vld [vmem:[#allocation128_spill] sm:$0xff] }
 0x1b1   :  { %13785 = vst [vmem:[#allocation53_spill] sm:$0xff] %v10055_v51  ;;  %v1564_v53 = vshll.u32 %v13787_v34, 16  ;;  %v13788_v55 = vrot.slane %v9725_v31, 1  ;;  %v13789_v56 = vmov %v13779_v36  ;;  %v753_v30 = vsel %vm708_vm3, %v13791_v59, %v664_v48  ;;  %2031 = vmatprep.mubr.bf16.mxu0 %v1379_v8  ;;  %v111_v36 = vld [vmem:[%s13254_s1 + $0x1f0] sm:$0xff]  ;;  %v670_v52 = vpop.permute.xlu1 %669 }
 0x1b2   :  { %v13792_v42 = vmov %v13784_v14  ;;  %v13794_v11 = vrot.slane %v13793_v50, 1  ;;  %v1146_v28 = vmul.f32 %v10040_v17, %v9970_v23  ;;  %v1140_v5 = vmul.f32 %v10055_v51, %v754_v7  ;;  %v13800_v50 = vld [vmem:[#allocation78_spill] sm:$0xff] }
 0x1b3   :  { %v10076_v3 = vsel %vm186_vm1, %v13789_v56, %v13788_v55  ;;  %v13432_v48 = vrot.slane %v10063_v6, 1  ;;  %v1387_v24 = vor.u32 %v13797_v10, %v13796_v44  ;;  %v1462_v35 = vshrl.u32 %v1196_v21, 16  ;;  %v13798_v56 = vld [vmem:[#allocation74_spill] sm:$0xff] }
 0x1b4   :  { %13790 = vst [vmem:[#allocation55_spill] sm:$0xff] %v10076_v3  ;;  %v10085_v0 = vsel %vm186_vm1, %v13794_v11, %v13792_v42  ;;  %v1408_v62 = vshrl.u32 %v1190_v54, 16  ;;  %v1411_v23 = vshll.u32 %v1190_v54, 16  ;;  %v1369_v47 = vor.u32 %v1368_v20, %v1365_v37  ;;  %v13799_v42 = vld [vmem:[#allocation77_spill] sm:$0xff]  ;;  %v13801_v20 = vld [vmem:[#allocation79_spill] sm:$0xff] }
 0x1b5   :  { %13795 = vst [vmem:[#allocation65_spill] sm:$0xff] %v10085_v0  ;;  %v1465_v14 = vshll.u32 %v1196_v21, 16  ;;  %v1151_v46 = vmul.f32 %v10076_v3, %v9963_v1  ;;  %v1135_v7 = vmul.f32 %v10085_v0, %v753_v30  ;;  %v1423_v45 = vor.u32 %v1422_v19, %v1419_v57  ;;  %v700_v37 = vpop.permute.xlu1 %699  ;;  %v13802_v1 = vld [vmem:[#allocation81_spill] sm:$0xff] }
 0x1b6   :  { %v962_v8 = vrot.slane %v111_v36, 1  ;;  %v984_v55 = vrot.slane %v122_v60, 1  ;;  %v1343_v59 = vsel %vm1213_vm4, %v9779_v13, %v13798_v56  ;;  %v1432_v11 = vor.u32 %v13800_v50, %v13799_v42  ;;  %v13804_v60 = vld [vmem:[#allocation35_spill] sm:$0xff] }
 0x1b7   :  { %v1201_v44 = vpack.c.bf16 %v1151_v46, %v1146_v28  ;;  %v1195_v10 = vpack.c.bf16 %v1140_v5, %v1135_v7  ;;  %v1388_v21 = vsel %vm1213_vm4, %v13798_v56, %v1387_v24  ;;  %v10111_v54 = vor.u32 %v13802_v1, %v13801_v20  ;;  %8239 = vmatmul.mubr.msk.bf16.vlgmr.msra.gmra.mrb[32].mxu1 %vm708_vm3, %v1343_v59  ;;  %v126_v28 = vld [vmem:[%s13254_s1 + $0x268] sm:$0xff] }
 0x1b8   :  { %v1410_v57 = vrot.slane %v1408_v62, 3  ;;  %v1413_v19 = vrot.slane %v1411_v23, 4  ;;  %v10116_v30 = vsel %vm186_vm1, %v962_v8, %v13432_v48  ;;  %v1370_v13 = vsel %vm1213_vm4, %v1324_v26, %v1369_v47  ;;  %v698_v62 = vpop.permute.xlu0 %697  ;;  %8242 = vmatprep.mubr.msk.bf16.mxu1 %vm708_vm3, %v1388_v21  ;;  %v13810_v59 = vld [vmem:[#allocation57_spill] sm:$0xff]  ;;  %v13813_v21 = vld [vmem:[#allocation32_spill] sm:$0xff] }
 0x1b9   :  { %13803 = vst [vmem:[#allocation62_spill] sm:$0xff] %v10116_v30  ;;  %v1464_v5 = vrot.slane %v1462_v35, 3  ;;  %v1467_v36 = vrot.slane %v1465_v14, 4  ;;  %v756_v46 = vsel %vm708_vm3, %v13804_v60, %v670_v52  ;;  %2032 = vmatmul.mubr.bf16.gmra.mrb[24].mxu0 %v1370_v13  ;;  %v1424_v23 = vsel %vm1213_vm4, %v10026_v12, %v1423_v45  ;;  %v13809_v14 = vld [vmem:[#allocation36_spill] sm:$0xff] }
 0x1ba   :  { %v13805_v7 = vrot.slane %v9877_v4, 1  ;;  %v13807_v56 = vrot.slane %v9725_v31, 1  ;;  %v762_v52 = vsel %vm708_vm3, %v13809_v14, %v700_v37  ;;  %v13811_v42 = vrot.slane %v13810_v59, 1  ;;  %v121_v4 = vld [vmem:[%s13254_s1 + $0x240] sm:$0xff]  ;;  %2039 = vmatprep.mubr.bf16.mxu0 %v1424_v23 }
 0x1bb   :  { %v1507_v12 = vshrl.u32 %v1201_v44, 16  ;;  %v755_v31 = vsel %vm708_vm3, %v13813_v21, %v668_v25  ;;  %v10150_v20 = vrot.slane %v126_v28, 1  ;;  %v1456_v1 = vshll.u32 %v1195_v10, 16  ;;  %v674_v28 = vpop.permute.xlu1 %673 }
 0x1bc   :  { %v10131_v26 = vsel %vm186_vm1, %v13805_v7, %v962_v8  ;;  %v10136_v35 = vsel %vm186_vm1, %v13807_v56, %v984_v55  ;;  %v10143_v50 = vsel %vm186_vm1, %v984_v55, %v13811_v42  ;;  %v1453_v8 = vshrl.u32 %v1195_v10, 16 }
 0x1bd   :  { %13806 = vst [vmem:[#allocation9_spill] sm:$0xff] %v10131_v26  ;;  %13808 = vst [vmem:[#allocation15_spill] sm:$0xff] %v10136_v35  ;;  %v1150_v37 = vmul.f32 %v10116_v30, %v756_v46  ;;  %v761_v13 = vsel %vm708_vm3, %v13770_v9, %v698_v62  ;;  %v1414_v55 = vor.u32 %v1413_v19, %v1410_v57  ;;  %v1510_v60 = vshll.u32 %v1201_v44, 16  ;;  %v13816_v62 = vld [vmem:[#allocation63_spill] sm:$0xff] }
 0x1be   :  { %13812 = vst [vmem:[#allocation11_spill] sm:$0xff] %v10143_v50  ;;  %13814 = vst [vmem:[#allocation13_spill] sm:$0xff] %v10150_v20  ;;  %v1161_v7 = vmul.f32 %v10143_v50, %v762_v52  ;;  %v982_v56 = vrot.slane %v121_v4, 1  ;;  %v1468_v42 = vor.u32 %v1467_v36, %v1464_v5  ;;  %v1563_v23 = vrot.slane %v1561_v61, 3  ;;  %v672_v61 = vpop.permute.xlu0 %671 }
 0x1bf   :  { %v1566_v48 = vrot.slane %v1564_v53, 4  ;;  %v1145_v25 = vmul.f32 %v10131_v26, %v755_v31  ;;  %v1433_v10 = vsel %vm1213_vm4, %v1387_v24, %v1432_v11  ;;  %v1509_v21 = vrot.slane %v1507_v12, 3  ;;  %v13818_v31 = vld [vmem:[#allocation34_spill] sm:$0xff] }
 0x1c0   :  { %v1156_v46 = vmul.f32 %v10136_v35, %v761_v13  ;;  %v10163_v57 = vsel %vm186_vm1, %v982_v56, %v10150_v20  ;;  %v1478_v44 = vsel %vm1213_vm4, %v1432_v11, %v10111_v54  ;;  %v1455_v19 = vrot.slane %v1453_v8, 3  ;;  %8243 = vmatmul.mubr.msk.bf16.gmra.mrb[36].mxu1 %vm708_vm3, %v1433_v10  ;;  %v13817_v11 = vld [vmem:[#allocation60_spill] sm:$0xff]  ;;  %v13821_v13 = vld [vmem:[#allocation86_spill] sm:$0xff] }
 0x1c1   :  { %13815 = vst [vmem:[#allocation70_spill] sm:$0xff] %v10163_v57  ;;  %v1458_v5 = vrot.slane %v1456_v1, 4  ;;  %v1200_v34 = vpack.c.bf16 %v1150_v37, %v1145_v25  ;;  %v1415_v53 = vsel %vm1213_vm4, %v1369_v47, %v1414_v55  ;;  %v1512_v36 = vrot.slane %v1510_v60, 4  ;;  %8246 = vmatprep.mubr.msk.bf16.mxu1 %vm708_vm3, %v1478_v44  ;;  %v13822_v60 = vld [vmem:[#allocation88_spill] sm:$0xff] }
 0x1c2   :  { %v1206_v24 = vpack.c.bf16 %v1161_v7, %v1156_v46  ;;  %v758_v52 = vsel %vm708_vm3, %v13816_v62, %v674_v28  ;;  %2040 = vmatmul.mubr.bf16.gmra.mrb[28].mxu0 %v1415_v53  ;;  %v1469_v4 = vsel %vm1213_vm4, %v1423_v45, %v1468_v42  ;;  %v1606_v12 = vshrl.u32 %v13817_v11, 16 }
 0x1c3   :  { %2047 = vmatprep.mubr.bf16.mxu0 %v1469_v4  ;;  %v1609_v8 = vshll.u32 %v13817_v11, 16  ;;  %v757_v1 = vsel %vm708_vm3, %v13818_v31, %v672_v61  ;;  %v13819_v47 = vrot.slane %v10063_v6, 1  ;;  %v1522_v7 = vor.u32 %v13822_v60, %v13821_v13  ;;  %v676_v61 = vpop.permute.xlu0 %675  ;;  %v13823_v6 = vld [vmem:[#allocation61_spill] sm:$0xff] }
 0x1c4   :  { %v1567_v25 = vor.u32 %v1566_v48, %v1563_v23  ;;  %v1498_v28 = vshrl.u32 %v1200_v34, 16  ;;  %v1501_v10 = vshll.u32 %v1200_v34, 16  ;;  %v1160_v45 = vmul.f32 %v10163_v57, %v758_v52 }
 0x1c5   :  { %v10180_v37 = vsel %vm186_vm1, %v13819_v47, %v982_v56  ;;  %v1459_v46 = vor.u32 %v1458_v5, %v1455_v19  ;;  %v1552_v44 = vshrl.u32 %v1206_v24, 16  ;;  %v1555_v53 = vshll.u32 %v1206_v24, 16  ;;  %v13825_v24 = vld [vmem:[#allocation56_spill] sm:$0xff] }
 0x1c6   :  { %13820 = vst [vmem:[#allocation18_spill] sm:$0xff] %v10180_v37  ;;  %v1513_v62 = vor.u32 %v1512_v36, %v1509_v21  ;;  %v1155_v4 = vmul.f32 %v10180_v37, %v757_v1  ;;  %v1608_v11 = vrot.slane %v1606_v12, 3  ;;  %v13824_v56 = vrot.slane %v13810_v59, 1 }
 0x1c7   :  { %v1523_v47 = vsel %vm1213_vm4, %v10111_v54, %v1522_v7  ;;  %v1568_v48 = vsel %vm1213_vm4, %v1522_v7, %v1567_v25  ;;  %v1611_v23 = vrot.slane %v1609_v8, 4  ;;  %v1500_v34 = vrot.slane %v1498_v28, 3 }
 0x1c8   :  { %v1166_v31 = vmul.f32 %v13824_v56, %v13823_v6  ;;  %v1503_v52 = vrot.slane %v1501_v10, 4  ;;  %v1205_v19 = vpack.c.bf16 %v1160_v45, %v1155_v4  ;;  %8247 = vmatmul.mubr.msk.bf16.gmra.mrb[40].mxu1 %vm708_vm3, %v1523_v47  ;;  %v1460_v21 = vsel %vm1213_vm4, %v1414_v55, %v1459_v46 }
 0x1c9   :  { %v1554_v5 = vrot.slane %v1552_v44, 3  ;;  %v1557_v36 = vrot.slane %v1555_v53, 4  ;;  %v759_v12 = vsel %vm708_vm3, %v13825_v24, %v676_v61  ;;  %8250 = vmatprep.mubr.msk.bf16.mxu1 %vm708_vm3, %v1568_v48  ;;  %v1514_v54 = vsel %vm1213_vm4, %v1468_v42, %v1513_v62 }
 0x1ca   :  { %2048 = vmatmul.mubr.bf16.gmra.mrb[32].mxu0 %v1460_v21  ;;  %v1211_v59 = vpack.c.bf16 %v1166_v31, %v1166_v31  ;;  %v10198_v8 = vor.u32 %v1611_v23, %v1608_v11  ;;  %v1543_v1 = vshrl.u32 %v1205_v19, 16  ;;  %v1546_v13 = vshll.u32 %v1205_v19, 16 }
 0x1cb   :  { %2055 = vmatprep.mubr.bf16.mxu0 %v1514_v54  ;;  %v1165_v60 = vmul.f32 %v10150_v20, %v759_v12  ;;  %v1504_v7 = vor.u32 %v1503_v52, %v1500_v34  ;;  %v1558_v55 = vor.u32 %v1557_v36, %v1554_v5 }
 0x1cc   :  { %13826 = vst [vmem:[#allocation23_spill] sm:$0xff] %v10198_v8  ;;  %v1597_v28 = vshrl.u32 %v1211_v59, 16  ;;  %v1600_v10 = vshll.u32 %v1211_v59, 16  ;;  %v1613_v45 = vsel %vm1213_vm4, %v1567_v25, %v10198_v8  ;;  %v1545_v44 = vrot.slane %v1543_v1, 3 }
 0x1cd   :  { %v1548_v53 = vrot.slane %v1546_v13, 4  ;;  %v1210_v4 = vpack.c.bf16 %v1165_v60, %v1165_v60  ;;  %v1505_v42 = vsel %vm1213_vm4, %v1459_v46, %v1504_v7  ;;  %v1559_v61 = vsel %vm1213_vm4, %v1513_v62, %v1558_v55 }
 0x1ce   :  { %v1599_v11 = vrot.slane %v1597_v28, 3  ;;  %v1602_v6 = vrot.slane %v1600_v10, 4 }
 0x1cf   :  { %v1588_v56 = vshrl.u32 %v1210_v4, 16  ;;  %v1591_v31 = vshll.u32 %v1210_v4, 16  ;;  %v1549_v47 = vor.u32 %v1548_v53, %v1545_v44 }
 0x1d0   :  { %8251 = vmatmul.mubr.msk.bf16.gmra.mrb[44].mxu1 %vm708_vm3, %v1613_v45  ;;  %v10206_v48 = vor.u32 %v1602_v6, %v1599_v11 }
 0x1d1   :  { %v1590_v23 = vrot.slane %v1588_v56, 3  ;;  %v1593_v25 = vrot.slane %v1591_v31, 4  ;;  %v1550_v34 = vsel %vm1213_vm4, %v1504_v7, %v1549_v47 }
 0x1d2   :  { %2056 = vmatmul.mubr.bf16.gmra.mrb[36].mxu0 %v1505_v42  ;;  %13827 = vst [vmem:[#allocation19_spill] sm:$0xff] %v10206_v48  ;;  %v1604_v52 = vsel %vm1213_vm4, %v1558_v55, %v10206_v48 }
 0x1d3   :  { %2063 = vmatprep.mubr.bf16.mxu0 %v1559_v61  ;;  %v1594_v46 = vor.u32 %v1593_v25, %v1590_v23 }
 0x1d5   :  { %v1595_v62 = vsel %vm1213_vm4, %v1549_v47, %v1594_v46  ;;  %v8433_v47 = vld [vmem:[%s13264_s11 + $0x40] sm:$0xff]  }
 0x1d6   :  { %7775 = vmatprep.subr.bf16.mxu0 %v8433_v47  ;;  %v8440_v47 = vld [vmem:[%s13264_s11 + $0x18] sm:$0xff]  }
 0x1da   :  { %2064 = vmatmul.mubr.bf16.gmra.mrb[40].mxu0 %v1550_v34 }
 0x1db   :  { %2071 = vmatprep.mubr.bf16.mxu0 %v1604_v52 }
 0x1e2   :  { %2072 = vmatmul.mubr.bf16.gmra.mrb[44].mxu0 %v1595_v62  ;;  %v8434_v62 = vld [vmem:[%s13264_s11] sm:$0xff]  }
 0x1e3   :  { %7776 = vmatpush3.bf16.msra.mxu0 %v8434_v62 }
 0x245   :  { %v7651_v19 = vpop.f32.mrb[0].mxu1 }
 0x246   :  { %v7652_v21 = vpop.f32.mrb[1].mxu1 }
 0x247   :  { %v7653_v5 = vadd.f32 %v7652_v21, %v7651_v19  ;;  %v7654_v36 = vpop.f32.mrb[2].mxu1  ;;  %v8435_v19 = vld [vmem:[%s13264_s11 + $0x48] sm:$0xff]  }
 0x248   :  { %v7655_v24 = vpop.f32.mrb[3].mxu1  ;;  %7777 = vmatprep.subr.bf16.mxu0 %v8435_v19 }
 0x249   :  { %v7656_v12 = vadd.f32 %v7655_v24, %v7654_v36 }
 0x24d   :  { %v7657_v54 = vpop.f32.mrb[4].mxu1 }
 0x24e   :  { %v7658_v59 = vpop.f32.mrb[5].mxu1 }
 0x24f   :  { %v10212_v1 = vadd.f32 %v7658_v59, %v7657_v54  ;;  %v7660_v13 = vpop.f32.mrb[6].mxu1  ;;  %v8436_v59 = vld [vmem:[%s13264_s11 + $0x8] sm:$0xff]  }
 0x250   :  { %v7661_v60 = vpop.f32.mrb[7].mxu1  ;;  %7778 = vmatpush3.bf16.msra.mxu0 %v8436_v59 }
 0x251   :  { %v10214_v7 = vadd.f32 %v7661_v60, %v7660_v13 }
 0x255   :  { %v7663_v55 = vpop.f32.mrb[8].mxu1 }
 0x256   :  { %v7664_v28 = vpop.f32.mrb[9].mxu1 }
 0x257   :  { %v10216_v10 = vadd.f32 %v7664_v28, %v7663_v55  ;;  %v7666_v45 = vpop.f32.mrb[10].mxu1  ;;  %v8437_v55 = vld [vmem:[%s13264_s11 + $0x50] sm:$0xff]  }
 0x258   :  { %v7667_v44 = vpop.f32.mrb[11].mxu1  ;;  %7779 = vmatprep.subr.bf16.mxu0 %v8437_v55 }
 0x259   :  { %v10218_v53 = vadd.f32 %v7667_v44, %v7666_v45  ;;  %v8438_v45 = vld [vmem:[%s13264_s11 + $0x10] sm:$0xff]   ;;  %v8439_v44 = vld [vmem:[%s13264_s11 + $0x58] sm:$0xff]  }
 0x25a   :  { %7780 = vmatpush3.bf16.msra.mxu0 %v8438_v45 }
 0x25b   :  { %7781 = vmatprep.subr.bf16.mxu0 %v8439_v44 }
 0x25d   :  { %v7669_v4 = vpop.f32.mrb[12].mxu1 }
 0x25e   :  { %v7670_v42 = vpop.f32.mrb[13].mxu1  ;;  %7782 = vmatpush3.bf16.msra.mxu0 %v8440_v47 }
 0x25f   :  { %v10220_v61 = vadd.f32 %v7670_v42, %v7669_v4  ;;  %v7672_v11 = vpop.f32.mrb[14].mxu1 }
 0x260   :  { %v7673_v6 = vpop.f32.mrb[15].mxu1 }
 0x261   :  { %v10222_v56 = vadd.f32 %v7673_v6, %v7672_v11 }
 0x266   :  { %v7675_v31 = vpop.f32.mrb[16].mxu1 }
 0x267   :  { %v7676_v23 = vpop.f32.mrb[17].mxu1 }
 0x268   :  { %v10227_v25 = vadd.f32 %v7676_v23, %v7675_v31  ;;  %v7678_v34 = vpop.f32.mrb[18].mxu1 }
 0x269   :  { %v7679_v52 = vpop.f32.mrb[19].mxu1 }
 0x26a   :  { %v10229_v46 = vadd.f32 %v7679_v52, %v7678_v34 }
 0x270   :  { %v7681_v21 = vpop.f32.mrb[20].mxu1 }
 0x271   :  { %v7682_v36 = vpop.f32.mrb[21].mxu1 }
 0x272   :  { %v10237_v24 = vadd.f32 %v7682_v36, %v7681_v21  ;;  %v7684_v54 = vpop.f32.mrb[22].mxu1 }
 0x273   :  { %v7685_v13 = vpop.f32.mrb[23].mxu1 }
 0x274   :  { %v10242_v60 = vadd.f32 %v7685_v13, %v7684_v54 }
 0x279   :  { %v7687_v28 = vpop.f32.mrb[24].mxu1 }
 0x27a   :  { %v7688_v4 = vpop.f32.mrb[25].mxu1  ;;  %v7715_v42 = vpop.f32.mrb[16].mxu0 }
 0x27b   :  { %v10253_v11 = vadd.f32 %v7688_v4, %v7687_v28  ;;  %v7690_v6 = vpop.f32.mrb[26].mxu1  ;;  %v7716_v31 = vpop.f32.mrb[17].mxu0 }
 0x27c   :  { %v7691_v23 = vpop.f32.mrb[27].mxu1  ;;  %v7717_v34 = vadd.f32 %v7716_v31, %v7715_v42  ;;  %v7718_v52 = vpop.f32.mrb[18].mxu0 }
 0x27d   :  { %v10258_v62 = vadd.f32 %v7691_v23, %v7690_v6  ;;  %v7719_v19 = vpop.f32.mrb[19].mxu0 }
 0x27e   :  { %v7720_v21 = vadd.f32 %v7719_v19, %v7718_v52  ;;  %v2018_v36 = vadd.f32 %v7717_v34, %v7653_v5 }
 0x280   :  { %v2021_v54 = vadd.f32 %v7720_v21, %v7656_v12  ;;  %v10269_v12 = vld [vmem:[%s13262_s9] ss:$0 sm:$0xff] }
 0x281   :  { %v7693_v59 = vpop.f32.mrb[28].mxu1 }
 0x282   :  { %v7694_v13 = vpop.f32.mrb[29].mxu1 }
 0x283   :  { %v7721_v55 = vpop.f32.mrb[20].mxu0  ;;  %v10260_v28 = vadd.f32 %v7694_v13, %v7693_v59  ;;  %v7696_v45 = vpop.f32.mrb[30].mxu1 }
 0x284   :  { %v7722_v4 = vpop.f32.mrb[21].mxu0  ;;  %v7697_v14 = vpop.f32.mrb[31].mxu1 }
 0x285   :  { %v7723_v9 = vadd.f32 %v7722_v4, %v7721_v55  ;;  %v7724_v48 = vpop.f32.mrb[22].mxu0  ;;  %v10262_v42 = vadd.f32 %v7697_v14, %v7696_v45  ;;  %v10274_v14 = vld [vmem:[%s13263_s10] ss:$0 sm:$0xff] }
 0x286   :  { %v7725_v44 = vpop.f32.mrb[23].mxu0 }
 0x287   :  { %v7726_v6 = vadd.f32 %v7725_v44, %v7724_v48  ;;  %v2026_v31 = vadd.f32 %v7723_v9, %v10212_v1 }
 0x289   :  { %v2029_v5 = vadd.f32 %v7726_v6, %v10214_v7 }
 0x28a   :  { %v8240_v47 = vpop.f32.mrb[32].mxu1 }
 0x28b   :  { %v2123_v23 = vadd.f32 %v8240_v47, %v2026_v31  ;;  %v2114_v34 = vpop.f32.mrb[33].mxu1 }
 0x28c   :  { %v7727_v52 = vpop.f32.mrb[24].mxu0  ;;  %v2115_v19 = vadd.f32 %v2114_v34, %v2018_v36  ;;  %v8241_v48 = vpop.f32.mrb[34].mxu1 }
 0x28d   :  { %v7728_v21 = vpop.f32.mrb[25].mxu0  ;;  %v2186_v9 = vmul.f32 %v10269_v12, %v2123_v23  ;;  %v2126_v1 = vadd.f32 %v8241_v48, %v2029_v5  ;;  %v2117_v7 = vpop.f32.mrb[35].mxu1 }
 0x28e   :  { %v7729_v59 = vadd.f32 %v7728_v21, %v7727_v52  ;;  %v7730_v13 = vpop.f32.mrb[26].mxu0  ;;  %v2184_v55 = vmul.f32 %v10269_v12, %v2115_v19  ;;  %v2118_v45 = vadd.f32 %v2117_v7, %v2021_v54  ;;  %v8441_v54 = vld [vmem:[%s13264_s11 + $0x60] sm:$0xff]  }
 0x28f   :  { %v7731_v4 = vpop.f32.mrb[27].mxu0  ;;  %v2209_v44 = vadd.f32 %v10274_v14, %v2186_v9  ;;  %v2187_v6 = vmul.f32 %v10269_v12, %v2126_v1  ;;  %7783 = vmatprep.subr.bf16.mxu0 %v8441_v54 }
 0x290   :  { %v7732_v31 = vadd.f32 %v7731_v4, %v7730_v13  ;;  %v2034_v47 = vadd.f32 %v7729_v59, %v10216_v10  ;;  %v2207_v36 = vadd.f32 %v10274_v14, %v2184_v55  ;;  %v2185_v34 = vmul.f32 %v10269_v12, %v2118_v45 }
 0x291   :  { %v10283_v23 = vmax.f32 %v2209_v44, 0.0  ;;  %v2210_v19 = vadd.f32 %v10274_v14, %v2187_v6 }
 0x292   :  { %v2037_v5 = vadd.f32 %v7732_v31, %v10218_v53  ;;  %v10289_v52 = vmax.f32 %v2207_v36, 0.0  ;;  %v2208_v48 = vadd.f32 %v10274_v14, %v2185_v34  ;;  %v8442_v36 = vld [vmem:[%s13264_s11 + $0x20] sm:$0xff]  }
 0x293   :  { %v8244_v21 = vpop.f32.mrb[36].mxu1  ;;  %2457 = vrot.lane.b32.xlu1 %v10283_v23, %s8571_s29  ;;  %v10300_v44 = vmax.f32 %v2210_v19, 0.0  ;;  %7784 = vmatpush3.bf16.msra.mxu0 %v8442_v36  ;;  %v8444_v19 = vld [vmem:[%s13264_s11 + $0x28] sm:$0xff]  }
 0x294   :  { %v2130_v10 = vpop.f32.mrb[37].mxu1  ;;  %v10295_v1 = vmax.f32 %v2208_v48, 0.0  ;;  %v10298_v4 = vrot.slane %v10289_v52, 1 }
 0x295   :  { %v7733_v9 = vpop.f32.mrb[28].mxu0  ;;  %v2131_v53 = vadd.f32 %v2130_v10, %v2034_v47  ;;  %v8245_v7 = vpop.f32.mrb[38].mxu1  ;;  %v8443_v47 = vld [vmem:[%s13264_s11 + $0x68] sm:$0xff]  }
 0x296   :  { %v7734_v59 = vpop.f32.mrb[29].mxu0  ;;  %v2133_v13 = vpop.f32.mrb[39].mxu1  ;;  %2455 = vrot.lane.b32.xlu0 %v10295_v1, %s8571_s29  ;;  %7785 = vmatprep.subr.bf16.mxu0 %v8443_v47 }
 0x297   :  { %v7735_v55 = vadd.f32 %v7734_v59, %v7733_v9  ;;  %v7736_v45 = vpop.f32.mrb[30].mxu0  ;;  %v2134_v6 = vadd.f32 %v2133_v13, %v2037_v5  ;;  %2453 = vrot.lane.b32.xlu1 %v10289_v52, %s8571_s29  ;;  %v2188_v5 = vmul.f32 %v10269_v12, %v2131_v53  ;;  %v13828_v9 = vld [vmem:[#allocation5_spill] sm:$0xff]  ;;  %v2332_v53 = vrot.slane %v10300_v44, 1  ;;  %7786 = vmatpush3.bf16.msra.mxu0 %v8444_v19 }
 0x298   :  { %v7737_v31 = vpop.f32.mrb[31].mxu0  ;;  %v2327_v59 = vsel %vm186_vm1, %v13828_v9, %v10298_v4 }
 0x299   :  { %v2042_v34 = vadd.f32 %v7735_v55, %v10220_v61  ;;  %v7738_v54 = vadd.f32 %v7737_v31, %v7736_v45  ;;  %v10322_v61 = vrot.slane %v10295_v1, 1  ;;  %v2211_v36 = vadd.f32 %v10274_v14, %v2188_v5 }
 0x29a   :  { %2356 = vrot.lane.b32.xlu0 %v2327_v59, %s8571_s29  ;;  %v2189_v19 = vmul.f32 %v10269_v12, %v2134_v6 }
 0x29b   :  { %v2139_v48 = vadd.f32 %v8244_v21, %v2042_v34  ;;  %v2045_v10 = vadd.f32 %v7738_v54, %v10222_v56  ;;  %v8248_v13 = vpop.f32.mrb[40].mxu1  ;;  %2459 = vrot.lane.b32.xlu1 %v10300_v44, %s8571_s29  ;;  %v2330_v21 = vrot.slane %v10283_v23, 1 }
 0x29c   :  { %v2146_v31 = vpop.f32.mrb[41].mxu1 }
 0x29d   :  { %v2190_v55 = vmul.f32 %v10269_v12, %v2139_v48  ;;  %v2142_v45 = vadd.f32 %v8245_v7, %v2045_v10  ;;  %v7739_v56 = vpop.f32.mrb[32].mxu0  ;;  %v8249_v34 = vpop.f32.mrb[42].mxu1  ;;  %v10334_v8 = vsel %vm186_vm1, %v10322_v61, %v2330_v21  ;;  %v10340_v20 = vsel %vm186_vm1, %v2330_v21, %v2332_v53 }
 0x29e   :  { %v7740_v54 = vpop.f32.mrb[33].mxu0  ;;  %v2149_v59 = vpop.f32.mrb[43].mxu1  ;;  %13829 = vst [vmem:[#allocation21_spill] sm:$0xff] %v10334_v8  ;;  %2360 = vrot.lane.b32.xlu0 %v10334_v8, %s8571_s29  ;;  %13830 = vst [vmem:[#allocation26_spill] sm:$0xff] %v10340_v20  ;;  %v10354_v21 = vmax.f32 %v2211_v36, 0.0 }
 0x29f   :  { %v2191_v47 = vmul.f32 %v10269_v12, %v2142_v45  ;;  %v7741_v7 = vadd.f32 %v7740_v54, %v7739_v56  ;;  %v7742_v48 = vpop.f32.mrb[34].mxu0  ;;  %v2213_v10 = vadd.f32 %v10274_v14, %v2190_v55  ;;  %2362 = vrot.lane.b32.xlu1 %v10340_v20, %s8571_s29  ;;  %v8445_v55 = vld [vmem:[%s13264_s11 + $0x70] sm:$0xff]  }
 0x2a0   :  { %v7743_v5 = vpop.f32.mrb[35].mxu0  ;;  %v8446_v56 = vld [vmem:[%s13264_s11 + $0x30] sm:$0xff]   ;;  %7787 = vmatprep.subr.bf16.mxu0 %v8445_v55  ;;  %v2334_v26 = vrot.slane %v10354_v21, 1 }
 0x2a1   :  { %v2050_v45 = vadd.f32 %v7741_v7, %v10227_v25  ;;  %v7744_v37 = vadd.f32 %v7743_v5, %v7742_v48  ;;  %v10346_v57 = vmax.f32 %v2213_v10, 0.0  ;;  %v2214_v25 = vadd.f32 %v10274_v14, %v2191_v47  ;;  %7788 = vmatpush3.bf16.msra.mxu0 %v8446_v56 }
 0x2a2   :  { %v10363_v48 = vsel %vm186_vm1, %v10298_v4, %v10322_v61  ;;  %v2212_v10 = vadd.f32 %v10274_v14, %v2189_v19  ;;  %v8448_v19 = vld [vmem:[%s13264_s11 + $0x38] sm:$0xff]   ;;  %v10391_v0 = vsel %vm186_vm1, %v2332_v53, %v2334_v26 }
 0x2a3   :  { %v2147_v54 = vadd.f32 %v2146_v31, %v2050_v45  ;;  %v2053_v6 = vadd.f32 %v7744_v37, %v10229_v46  ;;  %v10358_v7 = vpop.f32.mrb[44].mxu1  ;;  %2465 = vrot.lane.b32.xlu0 %v10346_v57, %s8571_s29  ;;  %2358 = vrot.lane.b32.xlu1 %v10363_v48, %s8571_s29  ;;  %v10372_v50 = vmax.f32 %v2214_v25, 0.0  ;;  %13831 = vst [vmem:[#allocation31_spill] sm:$0xff] %v10391_v0  ;;  %v2338_v51 = vrot.slane %v10346_v57, 1 }
 0x2a4   :  { %v2162_v5 = vpop.f32.mrb[45].mxu1  ;;  %v10383_v56 = vmax.f32 %v2212_v10, 0.0 }
 0x2a5   :  { %v2150_v36 = vadd.f32 %v2149_v59, %v2053_v6  ;;  %v7745_v37 = vpop.f32.mrb[36].mxu0  ;;  %v10370_v46 = vpop.f32.mrb[46].mxu1  ;;  %v8447_v59 = vld [vmem:[%s13264_s11 + $0x78] sm:$0xff]   ;;  %v2419_v3 = vrot.slane %v10372_v50, 2 }
 0x2a6   :  { %v7746_v31 = vpop.f32.mrb[37].mxu0  ;;  %v2165_v47 = vpop.f32.mrb[47].mxu1  ;;  %7789 = vmatprep.subr.bf16.mxu0 %v8447_v59 }
 0x2a7   :  { %v7747_v45 = vadd.f32 %v7746_v31, %v7745_v37  ;;  %v7748_v35 = vpop.f32.mrb[38].mxu0  ;;  %2461 = vrot.lane.b32.xlu0 %v10354_v21, %s8571_s29  ;;  %2467 = vrot.lane.b32.xlu1 %v10372_v50, %s8571_s29  ;;  %v2192_v37 = vmul.f32 %v10269_v12, %v2147_v54 }
 0x2a8   :  { %v7749_v55 = vpop.f32.mrb[39].mxu0  ;;  %7790 = vmatpush3.bf16.msra.mxu0 %v8448_v19 }
 0x2a9   :  { %v2058_v6 = vadd.f32 %v7747_v45, %v10237_v24  ;;  %v7750_v25 = vadd.f32 %v7749_v55, %v7748_v35  ;;  %v2340_v24 = vrot.slane %v10372_v50, 1  ;;  %v2215_v53 = vadd.f32 %v10274_v14, %v2192_v37 }
 0x2ab   :  { %v2155_v31 = vadd.f32 %v8248_v13, %v2058_v6  ;;  %v2061_v30 = vadd.f32 %v7750_v25, %v10242_v60  ;;  %2364 = vrot.lane.b32.xlu0 %v10391_v0, %s8571_s29  ;;  %2463 = vrot.lane.b32.xlu1 %v10383_v56, %s8571_s29  ;;  %v2336_v13 = vrot.slane %v10383_v56, 1  ;;  %v2193_v25 = vmul.f32 %v10269_v12, %v2150_v36  ;;  %v13853_v0 = vld [vmem:[#allocation37_spill] sm:$0xff] }
 0x2ad   :  { %v2194_v10 = vmul.f32 %v10269_v12, %v2155_v31  ;;  %v2158_v35 = vadd.f32 %v8249_v34, %v2061_v30  ;;  %v7751_v54 = vpop.f32.mrb[40].mxu0  ;;  %v10404_v55 = vsel %vm186_vm1, %v2336_v13, %v2338_v51  ;;  %v10408_v30 = vsel %vm186_vm1, %v2338_v51, %v2340_v24  ;;  %v10423_v51 = vld [vmem:[%s13264_s11 + $0x100] sm:$0xff]  }
 0x2ae   :  { %v7752_v60 = vpop.f32.mrb[41].mxu0  ;;  %13832 = vst [vmem:[#allocation29_spill] sm:$0xff] %v10404_v55  ;;  %13833 = vst [vmem:[#allocation82_spill] sm:$0xff] %v10408_v30  ;;  %8254 = vmatprep.subr.bf16.mxu0 %v10423_v51 }
 0x2af   :  { %v2195_v45 = vmul.f32 %v10269_v12, %v2158_v35  ;;  %v7753_v59 = vadd.f32 %v7752_v60, %v7751_v54  ;;  %v7754_v19 = vpop.f32.mrb[42].mxu0  ;;  %v2217_v6 = vadd.f32 %v10274_v14, %v2194_v10  ;;  %2368 = vrot.lane.b32.xlu0 %v10404_v55, %s8571_s29  ;;  %2370 = vrot.lane.b32.xlu1 %v10408_v30, %s8571_s29  ;;  %v10418_v54 = vmax.f32 %v2215_v53, 0.0 }
 0x2b0   :  { %v7755_v34 = vpop.f32.mrb[43].mxu0 }
 0x2b1   :  { %v2066_v37 = vadd.f32 %v7753_v59, %v10253_v11  ;;  %v7756_v31 = vadd.f32 %v7755_v34, %v7754_v19  ;;  %v10416_v35 = vmax.f32 %v2217_v6, 0.0  ;;  %v2218_v36 = vadd.f32 %v10274_v14, %v2195_v45 }
 0x2b2   :  { %v10428_v11 = vsel %vm186_vm1, %v2334_v26, %v2336_v13  ;;  %v2216_v19 = vadd.f32 %v10274_v14, %v2193_v25 }
 0x2b3   :  { %v2163_v10 = vadd.f32 %v2162_v5, %v2066_v37  ;;  %v2069_v60 = vadd.f32 %v7756_v31, %v10258_v62  ;;  %13834 = vst [vmem:[#allocation27_spill] sm:$0xff] %v10428_v11  ;;  %2473 = vrot.lane.b32.xlu0 %v10416_v35, %s8571_s29  ;;  %2366 = vrot.lane.b32.xlu1 %v10428_v11, %s8571_s29  ;;  %v2342_v62 = vrot.slane %v10418_v54, 1  ;;  %v10437_v34 = vmax.f32 %v2218_v36, 0.0  ;;  %v13854_v11 = vld [vmem:[#allocation39_spill] sm:$0xff] }
 0x2b4   :  { %v10444_v37 = vmax.f32 %v2216_v19, 0.0 }
 0x2b5   :  { %v2166_v53 = vadd.f32 %v2165_v47, %v2069_v60  ;;  %v7757_v59 = vpop.f32.mrb[44].mxu0  ;;  %v10447_v25 = vsel %vm186_vm1, %v2340_v24, %v2342_v62  ;;  %v2196_v31 = vmul.f32 %v10269_v12, %v2163_v10 }
 0x2b6   :  { %v7758_v5 = vpop.f32.mrb[45].mxu0  ;;  %13835 = vst [vmem:[#allocation128_spill] sm:$0xff] %v10447_v25  ;;  %v2344_v24 = vrot.slane %v10444_v37, 1 }
 0x2b7   :  { %v7759_v6 = vadd.f32 %v7758_v5, %v7757_v59  ;;  %v7760_v45 = vpop.f32.mrb[46].mxu0  ;;  %2469 = vrot.lane.b32.xlu0 %v10418_v54, %s8571_s29  ;;  %2475 = vrot.lane.b32.xlu1 %v10437_v34, %s8571_s29  ;;  %v2346_v59 = vrot.slane %v10416_v35, 1 }
 0x2b8   :  { %v7761_v26 = vpop.f32.mrb[47].mxu0 }
 0x2b9   :  { %v2074_v13 = vadd.f32 %v7759_v6, %v10260_v28  ;;  %v7762_v47 = vadd.f32 %v7761_v26, %v7760_v45  ;;  %v2348_v28 = vrot.slane %v10437_v34, 1  ;;  %v10464_v10 = vsel %vm186_vm1, %v2344_v24, %v2346_v59  ;;  %v8450_v45 = vld [vmem:[%s13264_s11 + $0xc0] sm:$0xff]  }
 0x2ba   :  { %13836 = vst [vmem:[#allocation75_spill] sm:$0xff] %v10464_v10  ;;  %v2219_v6 = vadd.f32 %v10274_v14, %v2196_v31  ;;  %7839 = vmatprep.subr.bf16.mxu1 %v8450_v45  ;;  %v2197_v31 = vmul.f32 %v10269_v12, %v2166_v53 }
 0x2bb   :  { %v2171_v60 = vadd.f32 %v10358_v7, %v2074_v13  ;;  %v2077_v36 = vadd.f32 %v7762_v47, %v10262_v42  ;;  %2372 = vrot.lane.b32.xlu0 %v10447_v25, %s8571_s29  ;;  %2471 = vrot.lane.b32.xlu1 %v10444_v37, %s8571_s29  ;;  %v10474_v26 = vsel %vm186_vm1, %v2346_v59, %v2348_v28  ;;  %v8452_v59 = vld [vmem:[%s13264_s11 + $0xc8] sm:$0xff]  }
 0x2bc   :  { %13837 = vst [vmem:[#allocation76_spill] sm:$0xff] %v10474_v26 }
 0x2bd   :  { %v2198_v5 = vmul.f32 %v10269_v12, %v2171_v60  ;;  %v2174_v19 = vadd.f32 %v10370_v46, %v2077_v36  ;;  %v8451_v46 = vld [vmem:[%s13264_s11 + $0x80] sm:$0xff]   ;;  %v10484_v60 = vmax.f32 %v2219_v6, 0.0  ;;  %v10487_v36 = vsel %vm186_vm1, %v2342_v62, %v2344_v24  ;;  %v8455_v62 = vld [vmem:[%s13264_s11 + $0xd0] sm:$0xff]  }
 0x2be   :  { %7840 = vmatpush3.bf16.msra.mxu1 %v8451_v46  ;;  %13839 = vst [vmem:[#allocation77_spill] sm:$0xff] %v10487_v36 }
 0x2bf   :  { %v2221_v7 = vadd.f32 %v10274_v14, %v2198_v5  ;;  %v2199_v42 = vmul.f32 %v10269_v12, %v2174_v19  ;;  %2376 = vrot.lane.b32.xlu0 %v10464_v10, %s8571_s29  ;;  %2378 = vrot.lane.b32.xlu1 %v10474_v26, %s8571_s29  ;;  %v8453_v5 = vld [vmem:[%s13264_s11 + $0x88] sm:$0xff]   ;;  %v2220_v12 = vadd.f32 %v10274_v14, %v2197_v31  ;;  %v2350_v53 = vrot.slane %v10484_v60, 1  ;;  %v8456_v19 = vld [vmem:[%s13264_s11 + $0x90] sm:$0xff]  }
 0x2c0   :  { %7841 = vmatprep.subr.bf16.mxu1 %v8452_v59  ;;  %v8459_v31 = vld [vmem:[%s13264_s11 + $0xe0] sm:$0xff]   ;;  %v2429_v26 = vrot.slane %v10484_v60, 2 }
 0x2c1   :  { %v10478_v13 = vmax.f32 %v2221_v7, 0.0  ;;  %v2222_v47 = vadd.f32 %v10274_v14, %v2199_v42  ;;  %v10511_v24 = vmax.f32 %v2220_v12, 0.0  ;;  %v10514_v14 = vsel %vm186_vm1, %v2348_v28, %v2350_v53  ;;  %v8457_v42 = vld [vmem:[%s13264_s11 + $0xd8] sm:$0xff]   ;;  %v8460_v59 = vld [vmem:[%s13264_s11 + $0xa0] sm:$0xff]  }
 0x2c2   :  { %7842 = vmatpush3.bf16.msra.mxu1 %v8453_v5  ;;  %13841 = vst [vmem:[#allocation79_spill] sm:$0xff] %v10514_v14  ;;  %v10519_v7 = vrot.slane %v10295_v1, 2  ;;  %v8458_v28 = vld [vmem:[%s13264_s11 + $0x98] sm:$0xff]  }
 0x2c3   :  { %13838 = vst [vmem:[#allocation74_spill] sm:$0xff] %v10478_v13  ;;  %2481 = vrot.lane.b32.xlu0 %v10478_v13, %s8571_s29  ;;  %2374 = vrot.lane.b32.xlu1 %v10487_v36, %s8571_s29  ;;  %13840 = vst [vmem:[#allocation78_spill] sm:$0xff] %v10511_v24  ;;  %v10533_v6 = vrot.slane %v10478_v13, 1  ;;  %v2352_v46 = vrot.slane %v10511_v24, 1 }
 0x2c4   :  { %7843 = vmatprep.subr.bf16.mxu1 %v8455_v62  ;;  %v2411_v62 = vrot.slane %v10300_v44, 2 }
 0x2c5   :  { %v10553_v5 = vsel %vm186_vm1, %v2352_v46, %v10533_v6  ;;  %v10556_v12 = vsel %vm186_vm1, %v2350_v53, %v2352_v46  ;;  %v8461_v53 = vld [vmem:[%s13264_s11 + $0xe8] sm:$0xff]  }
 0x2c6   :  { %7844 = vmatpush3.bf16.msra.mxu1 %v8456_v19  ;;  %13842 = vst [vmem:[#allocation81_spill] sm:$0xff] %v10553_v5  ;;  %13843 = vst [vmem:[#allocation35_spill] sm:$0xff] %v10556_v12  ;;  %v2409_v19 = vrot.slane %v10283_v23, 2 }
 0x2c7   :  { %2477 = vrot.lane.b32.xlu0 %v10484_v60, %s8571_s29  ;;  %2573 = vrot.lane.b32.xlu1 %v10322_v61, %s8571_s29  ;;  %v10524_v61 = vrot.slane %v10289_v52, 2 }
 0x2c8   :  { %7845 = vmatprep.subr.bf16.mxu1 %v8457_v42  ;;  %v10566_v42 = vsel %vm185_vm0, %v10519_v7, %v2409_v19  ;;  %v10575_v46 = vsel %vm185_vm0, %v2409_v19, %v2411_v62  ;;  %v2413_v19 = vrot.slane %v10354_v21, 2 }
 0x2c9   :  { %v10538_v45 = vsel %vm185_vm0, %v10524_v61, %v10519_v7 }
 0x2ca   :  { %7846 = vmatpush3.bf16.msra.mxu1 %v8458_v28  ;;  %v8462_v28 = vld [vmem:[%s13264_s11 + $0xa8] sm:$0xff]  }
 0x2cb   :  { %2380 = vrot.lane.b32.xlu0 %v10514_v14, %s8571_s29  ;;  %2479 = vrot.lane.b32.xlu1 %v10511_v24, %s8571_s29  ;;  %v2415_v14 = vrot.slane %v10383_v56, 2 }
 0x2cc   :  { %7847 = vmatprep.subr.bf16.mxu1 %v8459_v31  ;;  %v8464_v31 = vld [vmem:[%s13264_s11 + $0xf0] sm:$0xff]  }
 0x2ce   :  { %7848 = vmatpush3.bf16.msra.mxu1 %v8460_v59  ;;  %v10584_v59 = vmax.f32 %v2222_v47, 0.0  ;;  %v8467_v47 = vld [vmem:[%s13264_s11 + $0xb8] sm:$0xff]  }
 0x2cf   :  { %2521 = vrot.lane.b32.xlu0 %v10524_v61, %s8571_s29  ;;  %2523 = vrot.lane.b32.xlu1 %v10538_v45, %s8571_s29 }
 0x2d0   :  { %7849 = vmatprep.subr.bf16.mxu1 %v8461_v53  ;;  %13844 = vst [vmem:[#allocation57_spill] sm:$0xff] %v10584_v59  ;;  %v8466_v53 = vld [vmem:[%s13264_s11 + $0xf8] sm:$0xff]   ;;  %v10653_v2 = vrot.slane %v10584_v59, 1 }
 0x2d2   :  { %7850 = vmatpush3.bf16.msra.mxu1 %v8462_v28  ;;  %v10602_v28 = vsel %vm185_vm0, %v2411_v62, %v2413_v19  ;;  %v2421_v62 = vrot.slane %v10418_v54, 2  ;;  %13845 = vst [vmem:[#allocation32_spill] sm:$0xff] %v10653_v2  ;;  %v2572_v49 = vsel %vm186_vm1, %v10653_v2, %v13828_v9 }
 0x2d3   :  { %2384 = vrot.lane.b32.xlu0 %v10553_v5, %s8571_s29  ;;  %2382 = vrot.lane.b32.xlu1 %v10556_v12, %s8571_s29  ;;  %v8465_v5 = vld [vmem:[%s13264_s11 + $0xb0] sm:$0xff]   ;;  %v10606_v12 = vsel %vm185_vm0, %v2413_v19, %v2415_v14  ;;  %v2423_v19 = vrot.slane %v10444_v37, 2 }
 0x2d4   :  { %7851 = vmatprep.subr.bf16.mxu1 %v8464_v31  ;;  %v2417_v31 = vrot.slane %v10346_v57, 2 }
 0x2d6   :  { %7852 = vmatpush3.bf16.msra.mxu1 %v8465_v5  ;;  %v10614_v5 = vsel %vm185_vm0, %v2415_v14, %v2417_v31  ;;  %v10618_v17 = vsel %vm185_vm0, %v2417_v31, %v2419_v3  ;;  %v10630_v14 = vsel %vm185_vm0, %v2421_v62, %v2423_v19  ;;  %v2427_v31 = vrot.slane %v10437_v34, 2 }
 0x2d7   :  { %2525 = vrot.lane.b32.xlu0 %v10566_v42, %s8571_s29  ;;  %2527 = vrot.lane.b32.xlu1 %v10575_v46, %s8571_s29 }
 0x2d8   :  { %7853 = vmatprep.subr.bf16.mxu1 %v8466_v53  ;;  %v10626_v53 = vsel %vm185_vm0, %v2419_v3, %v2421_v62  ;;  %v2431_v62 = vrot.slane %v10511_v24, 2  ;;  %v10650_v39 = vsel %vm185_vm0, %v2427_v31, %v2429_v26  ;;  %v13871_v24 = vld [vmem:[#allocation45_spill] sm:$0xff] }
 0x2da   :  { %7854 = vmatpush3.bf16.msra.mxu1 %v8467_v47  ;;  %v2425_v47 = vrot.slane %v10416_v35, 2 }
 0x2db   :  { %2483 = vrot.lane.b32.xlu0 %v10584_v59, %s8571_s29  ;;  %2386 = vrot.lane.b32.xlu1 %v10533_v6, %s8571_s29 }
 0x2dc   :  { %v10638_v10 = vsel %vm185_vm0, %v2423_v19, %v2425_v47  ;;  %v10642_v3 = vsel %vm185_vm0, %v2425_v47, %v2427_v31  ;;  %v10656_v19 = vsel %vm185_vm0, %v2429_v26, %v2431_v62  ;;  %v10665_v47 = vsel %vm186_vm1, %v10533_v6, %v10653_v2  ;;  %v13848_v6 = vld [vmem:[#allocation38_spill] sm:$0xff] }
 0x2dd   :  { %13846 = vst [vmem:[#allocation63_spill] sm:$0xff] %v10665_v47  ;;  %v2433_v31 = vrot.slane %v10478_v13, 2  ;;  %v2435_v26 = vrot.slane %v10584_v59, 2  ;;  %v2406_v59 = vsel %vm185_vm0, %v13848_v6, %v10524_v61  ;;  %v2643_v13 = vmul.f32 %v10566_v42, %v13854_v11  ;;  %v13858_v11 = vld [vmem:[#allocation41_spill] sm:$0xff] }
 0x2df   :  { %2529 = vrot.lane.b32.xlu0 %v10602_v28, %s8571_s29  ;;  %2531 = vrot.lane.b32.xlu1 %v10606_v12, %s8571_s29  ;;  %v10676_v36 = vsel %vm185_vm0, %v2431_v62, %v2433_v31  ;;  %v10679_v25 = vsel %vm185_vm0, %v2433_v31, %v2435_v26  ;;  %v10687_v9 = vsel %vm185_vm0, %v2435_v26, %v13848_v6  ;;  %v13851_v26 = vld [vmem:[#allocation72_spill] sm:$0xff] }
 0x2e0   :  { %13847 = vst [vmem:[#allocation60_spill] sm:$0xff] %v10679_v25  ;;  %13849 = vst [vmem:[#allocation34_spill] sm:$0xff] %v10687_v9 }
 0x2e3   :  { %2533 = vrot.lane.b32.xlu0 %v10614_v5, %s8571_s29  ;;  %2535 = vrot.lane.b32.xlu1 %v10618_v17, %s8571_s29 }
 0x2e7   :  { %2537 = vrot.lane.b32.xlu0 %v10626_v53, %s8571_s29  ;;  %2539 = vrot.lane.b32.xlu1 %v10630_v14, %s8571_s29 }
 0x2eb   :  { %2541 = vrot.lane.b32.xlu0 %v10638_v10, %s8571_s29  ;;  %2543 = vrot.lane.b32.xlu1 %v10642_v3, %s8571_s29 }
 0x2ef   :  { %2545 = vrot.lane.b32.xlu0 %v10650_v39, %s8571_s29  ;;  %2547 = vrot.lane.b32.xlu1 %v10656_v19, %s8571_s29 }
 0x2f3   :  { %2575 = vrot.lane.b32.xlu0 %v10665_v47, %s8571_s29  ;;  %2577 = vrot.lane.b32.xlu1 %v2572_v49, %s8571_s29 }
 0x2f7   :  { %2549 = vrot.lane.b32.xlu0 %v10676_v36, %s8571_s29  ;;  %2551 = vrot.lane.b32.xlu1 %v10679_v25, %s8571_s29  ;;  %v13855_v25 = vld [vmem:[#allocation66_spill] sm:$0xff] }
 0x2fb   :  { %2553 = vrot.lane.b32.xlu0 %v10687_v9, %s8571_s29  ;;  %v13852_v9 = vld [vmem:[#allocation68_spill] sm:$0xff] }
 0x305   :  { %v2458_v49 = vpop.permute.xlu1 %2457 }
 0x306   :  { %v2602_v62 = vsel %vm708_vm3, %v10566_v42, %v2458_v49  ;;  %v2638_v49 = vmul.f32 %v10519_v7, %v13853_v0 }
 0x307   :  { %v2650_v22 = vmul.f32 %v2602_v62, %v13850_v32 }
 0x308   :  { %v2456_v2 = vpop.permute.xlu0 %2455 }
 0x309   :  { %v2601_v31 = vsel %vm708_vm3, %v10538_v45, %v2456_v2  ;;  %v2454_v47 = vpop.permute.xlu1 %2453 }
 0x30a   :  { %v2645_v55 = vmul.f32 %v2601_v31, %v13851_v26  ;;  %v2600_v30 = vsel %vm708_vm3, %v2406_v59, %v2454_v47  ;;  %v13856_v31 = vld [vmem:[#allocation71_spill] sm:$0xff] }
 0x30b   :  { %v2640_v43 = vmul.f32 %v2600_v30, %v13852_v9  ;;  %v2721_v30 = vpack.c.bf16 %v2643_v13, %v2638_v49 }
 0x30c   :  { %v2723_v2 = vpack.c.bf16 %v2650_v22, %v2645_v55  ;;  %v2357_v45 = vpop.permute.xlu0 %2356  ;;  %v13857_v22 = vld [vmem:[#allocation64_spill] sm:$0xff] }
 0x30d   :  { %v2718_v27 = vpack.c.bf16 %v2640_v43, %v13855_v25  ;;  %v2584_v61 = vsel %vm708_vm3, 0.0, %v2357_v45  ;;  %v2460_v6 = vpop.permute.xlu1 %2459  ;;  %v2653_v43 = vmul.f32 %v10602_v28, %v13858_v11  ;;  %v2832_v20 = vshll.u32 %v2721_v30, 16  ;;  %v13863_v11 = vld [vmem:[#allocation42_spill] sm:$0xff] }
 0x30e   :  { %v2786_v62 = vshrl.u32 %v2723_v2, 16  ;;  %v2789_v32 = vshll.u32 %v2723_v2, 16  ;;  %v2639_v26 = vmul.f32 %v2584_v61, %v13856_v31  ;;  %v2829_v2 = vshrl.u32 %v2721_v30, 16 }
 0x30f   :  { %v2778_v59 = vshrl.u32 %v2718_v27, 16  ;;  %v2781_v47 = vshll.u32 %v2718_v27, 16 }
 0x310   :  { %v2788_v9 = vrot.slane %v2786_v62, 3  ;;  %v2791_v33 = vrot.slane %v2789_v32, 4  ;;  %v2361_v7 = vpop.permute.xlu0 %2360  ;;  %v2717_v55 = vpack.c.bf16 %v2639_v26, %v13857_v22  ;;  %v13859_v32 = vld [vmem:[#allocation40_spill] sm:$0xff]  ;;  %v10731_v22 = vrot.slane %v2832_v20, 4 }
 0x311   :  { %v2780_v0 = vrot.slane %v2778_v59, 3  ;;  %v2783_v41 = vrot.slane %v2781_v47, 4  ;;  %v2363_v42 = vpop.permute.xlu1 %2362  ;;  %v10716_v27 = vsel %vm708_vm3, %v10295_v1, %v2361_v7  ;;  %v2648_v49 = vmul.f32 %v10575_v46, %v13859_v32  ;;  %v13860_v1 = vld [vmem:[#allocation83_spill] sm:$0xff] }
 0x312   :  { %v10712_v25 = vor.u32 %v2791_v33, %v2788_v9  ;;  %v2761_v62 = vshrl.u32 %v2717_v55, 16  ;;  %v2764_v59 = vshll.u32 %v2717_v55, 16  ;;  %v2649_v9 = vmul.f32 %v10716_v27, %v13860_v1  ;;  %v13861_v47 = vld [vmem:[#allocation87_spill] sm:$0xff] }
 0x313   :  { %v2784_v45 = vor.u32 %v2783_v41, %v2780_v0  ;;  %v2603_v41 = vsel %vm708_vm3, %v10575_v46, %v2460_v6  ;;  %v2726_v0 = vpack.c.bf16 %v2653_v43, %v2648_v49  ;;  %v10729_v7 = vrot.slane %v2829_v2, 3  ;;  %v13864_v6 = vld [vmem:[#allocation69_spill] sm:$0xff] }
 0x314   :  { %v2658_v46 = vmul.f32 %v10606_v12, %v13863_v11  ;;  %v2766_v2 = vrot.slane %v2764_v59, 4  ;;  %v10744_v20 = vsel %vm708_vm3, %v10283_v23, %v2363_v42 }
 0x315   :  { %v2466_v13 = vpop.permute.xlu0 %2465  ;;  %v2359_v61 = vpop.permute.xlu1 %2358  ;;  %v2793_v26 = vsel %vm1213_vm4, %v2784_v45, %v10712_v25  ;;  %v13862_v45 = vld [vmem:[#allocation43_spill] sm:$0xff]  ;;  %v2840_v31 = vshll.u32 %v2726_v0, 16 }
 0x316   :  { %v2585_v33 = vsel %vm708_vm3, %v10289_v52, %v2359_v61  ;;  %3448 = vmatprep.mubr.bf16.mxu0 %v2793_v26  ;;  %v2663_v55 = vmul.f32 %v10614_v5, %v13862_v45  ;;  %v2655_v61 = vmul.f32 %v2603_v41, %v13864_v6  ;;  %v2837_v45 = vshrl.u32 %v2726_v0, 16  ;;  %v13866_v41 = vld [vmem:[#allocation46_spill] sm:$0xff] }
 0x317   :  { %v2644_v30 = vmul.f32 %v2585_v33, %v13861_v47  ;;  %v2763_v33 = vrot.slane %v2761_v62, 3  ;;  %v13865_v47 = vld [vmem:[#allocation90_spill] sm:$0xff]  ;;  %v13867_v62 = vld [vmem:[#allocation85_spill] sm:$0xff] }
 0x318   :  { %v2731_v8 = vpack.c.bf16 %v2663_v55, %v2658_v46  ;;  %v2654_v59 = vmul.f32 %v10744_v20, %v13867_v62  ;;  %v2842_v62 = vrot.slane %v2840_v31, 4 }
 0x319   :  { %v2462_v32 = vpop.permute.xlu0 %2461  ;;  %v2722_v26 = vpack.c.bf16 %v2649_v9, %v2644_v30  ;;  %v10738_v43 = vpop.permute.xlu1 %2467  ;;  %v2673_v9 = vmul.f32 %v10626_v53, %v13866_v41  ;;  %v2606_v30 = vsel %vm708_vm3, %v10614_v5, %v2466_v13  ;;  %v13868_v5 = vld [vmem:[#allocation89_spill] sm:$0xff] }
 0x31a   :  { %v2604_v49 = vsel %vm708_vm3, %v10602_v28, %v2462_v32  ;;  %v2670_v13 = vmul.f32 %v2606_v30, %v13868_v5 }
 0x31b   :  { %v2660_v1 = vmul.f32 %v2604_v49, %v13865_v47  ;;  %v2769_v15 = vshrl.u32 %v2722_v26, 16  ;;  %v2772_v11 = vshll.u32 %v2722_v26, 16  ;;  %v2767_v26 = vor.u32 %v2766_v2, %v2763_v33  ;;  %v13870_v47 = vld [vmem:[#allocation93_spill] sm:$0xff] }
 0x31c   :  { %v8454_v2 = vld [vmem:[%s13264_s11 + $0x108] sm:$0xff]  }
 0x31d   :  { %v2728_v28 = vpack.c.bf16 %v2660_v1, %v2655_v61  ;;  %v2365_v32 = vpop.permute.xlu0 %2364  ;;  %v2771_v23 = vrot.slane %v2769_v15, 3  ;;  %v2774_v42 = vrot.slane %v2772_v11, 4  ;;  %v2464_v6 = vpop.permute.xlu1 %2463  ;;  %v13869_v1 = vld [vmem:[#allocation94_spill] sm:$0xff]  ;;  %v2839_v11 = vrot.slane %v2837_v45, 3 }
 0x31e   :  { %v10755_v0 = vsel %vm708_vm3, %v10300_v44, %v2365_v32  ;;  %v2605_v49 = vsel %vm708_vm3, %v10606_v12, %v2464_v6  ;;  %v2668_v44 = vmul.f32 %v10618_v17, %v13871_v24  ;;  %v2882_v32 = vshrl.u32 %v2731_v8, 16 }
 0x31f   :  { %v2855_v55 = vshrl.u32 %v2728_v28, 16  ;;  %v2858_v46 = vshll.u32 %v2728_v28, 16  ;;  %v2775_v41 = vor.u32 %v2774_v42, %v2771_v23  ;;  %v2665_v61 = vmul.f32 %v2605_v49, %v13869_v1 }
 0x320   :  { %v2659_v15 = vmul.f32 %v10755_v0, %v13870_v47  ;;  %v2885_v23 = vshll.u32 %v2731_v8, 16  ;;  %v2736_v42 = vpack.c.bf16 %v2673_v9, %v2668_v44  ;;  %v10770_v5 = vrot.slane %v2882_v32, 3  ;;  %v8463_v8 = vld [vmem:[%s13264_s11 + $0x110] sm:$0xff]  }
 0x321   :  { %v2369_v33 = vpop.permute.xlu0 %2368  ;;  %v2733_v12 = vpack.c.bf16 %v2670_v13, %v2665_v61  ;;  %v2371_v28 = vpop.permute.xlu1 %2370  ;;  %v2776_v30 = vsel %vm1213_vm4, %v2767_v26, %v2775_v41  ;;  %v2857_v49 = vrot.slane %v2855_v55, 3  ;;  %v2860_v47 = vrot.slane %v2858_v46, 4 }
 0x322   :  { %v2727_v6 = vpack.c.bf16 %v2659_v15, %v2654_v59  ;;  %3449 = vmatmul.mubr.bf16.vlgmr.msra.gmra.mrb[48].mxu0 %v2776_v30  ;;  %v10774_v13 = vsel %vm708_vm3, %v10383_v56, %v2369_v33  ;;  %v10781_v26 = vor.u32 %v2842_v62, %v2839_v11  ;;  %v2887_v44 = vrot.slane %v2885_v23, 4  ;;  %v13873_v62 = vld [vmem:[#allocation101_spill] sm:$0xff] }
 0x323   :  { %v2900_v31 = vshrl.u32 %v2733_v12, 16  ;;  %v2903_v45 = vshll.u32 %v2733_v12, 16  ;;  %8255 = vmatpush3.bf16.msra.mxu0 %v10423_v51  ;;  %v2927_v32 = vshrl.u32 %v2736_v42, 16  ;;  %v2861_v33 = vor.u32 %v2860_v47, %v2857_v49 }
 0x324   :  { %v2846_v1 = vshrl.u32 %v2727_v6, 16  ;;  %v2849_v24 = vshll.u32 %v2727_v6, 16  ;;  %8256 = vmatprep.subr.bf16.mxu0 %v8454_v2  ;;  %v2607_v12 = vsel %vm708_vm3, %v10618_v17, %v10738_v43  ;;  %v13872_v6 = vld [vmem:[#allocation96_spill] sm:$0xff] }
 0x325   :  { %v2474_v59 = vpop.permute.xlu0 %2473  ;;  %v2902_v55 = vrot.slane %v2900_v31, 3  ;;  %v2905_v46 = vrot.slane %v2903_v45, 4  ;;  %v2367_v15 = vpop.permute.xlu1 %2366  ;;  %v2669_v30 = vmul.f32 %v10774_v13, %v13872_v6  ;;  %v2862_v45 = vsel %vm1213_vm4, %v10712_v25, %v2861_v33  ;;  %v8468_v17 = vld [vmem:[%s13264_s11 + $0x118] sm:$0xff]  }
 0x326   :  { %v2848_v51 = vrot.slane %v2846_v1, 3  ;;  %v2851_v61 = vrot.slane %v2849_v24, 4  ;;  %v2589_v56 = vsel %vm708_vm3, %v10354_v21, %v2367_v15  ;;  %v2930_v1 = vshll.u32 %v2736_v42, 16  ;;  %v13874_v24 = vld [vmem:[#allocation49_spill] sm:$0xff]  ;;  %v13875_v43 = vld [vmem:[#allocation48_spill] sm:$0xff]  ;;  %3456 = vmatprep.mubr.bf16.mxu0 %v2862_v45  ;;  %v13877_v15 = vld [vmem:[#allocation102_spill] sm:$0xff] }
 0x327   :  { %v2664_v11 = vmul.f32 %v2589_v56, %v13873_v62  ;;  %8257 = vmatpush3.bf16.msra.mxu0 %v8454_v2  ;;  %v2683_v23 = vmul.f32 %v10638_v10, %v13874_v24  ;;  %v10795_v47 = vor.u32 %v2905_v46, %v2902_v55  ;;  %v2678_v49 = vmul.f32 %v10630_v14, %v13875_v43 }
 0x328   :  { %v2852_v31 = vor.u32 %v2851_v61, %v2848_v51  ;;  %8258 = vmatprep.subr.bf16.mxu0 %v8463_v8  ;;  %v13876_v61 = vld [vmem:[#allocation91_spill] sm:$0xff]  ;;  %v10810_v46 = vsel %vm708_vm3, %v10346_v57, %v2371_v28 }
 0x329   :  { %v2470_v21 = vpop.permute.xlu0 %2469  ;;  %v2732_v51 = vpack.c.bf16 %v2669_v30, %v2664_v11  ;;  %v10802_v2 = vpop.permute.xlu1 %2475  ;;  %v2675_v55 = vmul.f32 %v2607_v12, %v13876_v61  ;;  %v2907_v30 = vsel %vm1213_vm4, %v2861_v33, %v10795_v47  ;;  %v2929_v11 = vrot.slane %v2927_v32, 3  ;;  %v13880_v32 = vld [vmem:[#allocation99_spill] sm:$0xff] }
 0x32a   :  { %v2608_v42 = vsel %vm708_vm3, %v10626_v53, %v2470_v21  ;;  %v2853_v25 = vsel %vm1213_vm4, %v2775_v41, %v2852_v31  ;;  %v2610_v53 = vsel %vm708_vm3, %v10638_v10, %v2474_v59  ;;  %v2932_v41 = vrot.slane %v2930_v1, 4  ;;  %v13878_v21 = vld [vmem:[#allocation92_spill] sm:$0xff] }
 0x32b   :  { %v2680_v9 = vmul.f32 %v2608_v42, %v13877_v15  ;;  %3457 = vmatmul.mubr.bf16.gmra.mrb[52].mxu0 %v2853_v25  ;;  %v2891_v45 = vshrl.u32 %v2732_v51, 16  ;;  %v2894_v62 = vshll.u32 %v2732_v51, 16  ;;  %v10817_v12 = vpack.c.bf16 %v2683_v23, %v2678_v49  ;;  %v13879_v25 = vld [vmem:[#allocation84_spill] sm:$0xff]  ;;  %v13882_v49 = vld [vmem:[#allocation103_spill] sm:$0xff] }
 0x32c   :  { %3464 = vmatprep.mubr.bf16.mxu0 %v2907_v30  ;;  %8259 = vmatpush3.bf16.msra.mxu0 %v8463_v8  ;;  %v2652_v57 = vmul.f32 %v10755_v0, %v13878_v21  ;;  %v2647_v33 = vmul.f32 %v10744_v20, %v13879_v25  ;;  %v2674_v51 = vmul.f32 %v10810_v46, %v13880_v32  ;;  %v13881_v59 = vld [vmem:[#allocation100_spill] sm:$0xff]  ;;  %v13883_v20 = vld [vmem:[#allocation107_spill] sm:$0xff] }
 0x32d   :  { %v2738_v28 = vpack.c.bf16 %v2680_v9, %v2675_v55  ;;  %v2373_v42 = vpop.permute.xlu0 %2372  ;;  %8260 = vmatprep.subr.bf16.mxu0 %v8468_v17  ;;  %v2893_v15 = vrot.slane %v2891_v45, 3  ;;  %v2896_v61 = vrot.slane %v2894_v62, 4  ;;  %v2472_v10 = vpop.permute.xlu1 %2471  ;;  %v2690_v8 = vmul.f32 %v2610_v53, %v13881_v59 }
 0x32e   :  { %v2609_v23 = vsel %vm708_vm3, %v10630_v14, %v2472_v10  ;;  %v10830_v0 = vsel %vm708_vm3, %v10372_v50, %v2373_v42  ;;  %v10836_v62 = vor.u32 %v2887_v44, %v10770_v5  ;;  %v2725_v45 = vpack.c.bf16 %v2652_v57, %v2647_v33  ;;  %v13886_v44 = vld [vmem:[#allocation51_spill] sm:$0xff]  ;;  %v13887_v57 = vld [vmem:[#allocation97_spill] sm:$0xff] }
 0x32f   :  { %v2945_v1 = vshrl.u32 %v2738_v28, 16  ;;  %v2948_v9 = vshll.u32 %v2738_v28, 16  ;;  %v2685_v55 = vmul.f32 %v2609_v23, %v13882_v49  ;;  %v2679_v30 = vmul.f32 %v10830_v0, %v13883_v20  ;;  %v13885_v28 = vld [vmem:[#allocation50_spill] sm:$0xff] }
 0x330   :  { %v2897_v32 = vor.u32 %v2896_v61, %v2893_v15  ;;  %8261 = vmatpush3.bf16.msra.mxu0 %v8468_v17  ;;  %v13884_v14 = vor.u32 %v10731_v22, %v10729_v7  ;;  %v10847_v42 = vmul.f32 %v10642_v3, %v13885_v28  ;;  %v10849_v17 = vor.u32 %v2932_v41, %v2929_v11 }
 0x331   :  { %v2377_v53 = vpop.permute.xlu0 %2376  ;;  %v2743_v10 = vpack.c.bf16 %v2690_v8, %v2685_v55  ;;  %v2737_v23 = vpack.c.bf16 %v2679_v30, %v2674_v51  ;;  %v2379_v61 = vpop.permute.xlu1 %2378  ;;  %v10854_v15 = vmul.f32 %v10650_v39, %v13886_v44  ;;  %v2657_v22 = vmul.f32 %v2589_v56, %v13887_v57 }
 0x332   :  { %v10843_v50 = vsel %vm1213_vm4, %v13884_v14, %v10781_v26  ;;  %v2898_v7 = vsel %vm1213_vm4, %v2852_v31, %v2897_v32  ;;  %v2947_v33 = vrot.slane %v2945_v1, 3  ;;  %v2950_v14 = vrot.slane %v2948_v9, 4 }
 0x333   :  { %v2990_v20 = vshrl.u32 %v2743_v10, 16  ;;  %v2993_v28 = vshll.u32 %v2743_v10, 16  ;;  %3465 = vmatmul.mubr.bf16.gmra.mrb[56].mxu0 %v2898_v7  ;;  %v2820_v8 = vshrl.u32 %v2725_v45, 16  ;;  %v2936_v51 = vshrl.u32 %v2737_v23, 16 }
 0x334   :  { %v2939_v55 = vshll.u32 %v2737_v23, 16  ;;  %v10860_v11 = vsel %vm708_vm3, %v10444_v37, %v2377_v53  ;;  %v2823_v30 = vshll.u32 %v2725_v45, 16  ;;  %v2662_v5 = vmul.f32 %v10774_v13, %v13747_v58  ;;  %v13888_v53 = vld [vmem:[#allocation80_spill] sm:$0xff] }
 0x335   :  { %v2482_v41 = vpop.permute.xlu0 %2481  ;;  %v2992_v56 = vrot.slane %v2990_v20, 3  ;;  %v2995_v57 = vrot.slane %v2993_v28, 4  ;;  %v2375_v31 = vpop.permute.xlu1 %2374  ;;  %v2611_v1 = vsel %vm708_vm3, %v10642_v3, %v10802_v2  ;;  %v2938_v9 = vrot.slane %v2936_v51, 3 }
 0x336   :  { %v2941_v10 = vrot.slane %v2939_v55, 4  ;;  %v10869_v23 = vsel %vm708_vm3, %v10418_v54, %v2375_v31  ;;  %v2730_v37 = vpack.c.bf16 %v2662_v5, %v2657_v22  ;;  %v2689_v45 = vmul.f32 %v10860_v11, %v9622_v18  ;;  %v13889_v55 = vld [vmem:[#allocation104_spill] sm:$0xff] }
 0x337   :  { %v2684_v13 = vmul.f32 %v10869_v23, %v9628_v38  ;;  %v2951_v20 = vor.u32 %v2950_v14, %v2947_v33  ;;  %v2642_v28 = vmul.f32 %v10716_v27, %v13888_v53  ;;  %v10877_v7 = vrot.slane %v2820_v8, 3  ;;  %v13890_v33 = vld [vmem:[#allocation116_spill] sm:$0xff] }
 0x338   :  { %v2942_v2 = vor.u32 %v2941_v10, %v2938_v9  ;;  %v10879_v51 = vor.u32 %v2995_v57, %v2992_v56  ;;  %v2695_v54 = vmul.f32 %v2611_v1, %v13889_v55  ;;  %v2825_v56 = vrot.slane %v2823_v30, 4  ;;  %v13895_v55 = vld [vmem:[#allocation119_spill] sm:$0xff] }
 0x339   :  { %v2478_v3 = vpop.permute.xlu0 %2477  ;;  %v2742_v31 = vpack.c.bf16 %v2689_v45, %v2684_v13  ;;  %v2952_v5 = vsel %vm1213_vm4, %v10795_v47, %v2951_v20  ;;  %v2574_v22 = vpop.permute.xlu1 %2573  ;;  %v2873_v1 = vshrl.u32 %v2730_v37, 16  ;;  %v10894_v47 = vsel %vm708_vm3, %v10416_v35, %v2379_v61  ;;  %v13893_v61 = vld [vmem:[#allocation113_spill] sm:$0xff] }
 0x33a   :  { %v2612_v38 = vsel %vm708_vm3, %v10650_v39, %v2478_v3  ;;  %3472 = vmatprep.mubr.bf16.mxu0 %v2952_v5  ;;  %v2633_v27 = vsel %vm708_vm3, %v10289_v52, %v2574_v22  ;;  %v2943_v8 = vsel %vm1213_vm4, %v2897_v32, %v2942_v2  ;;  %v2997_v57 = vsel %vm1213_vm4, %v2951_v20, %v10879_v51  ;;  %v13891_v52 = vld [vmem:[#allocation73_spill] sm:$0xff] }
 0x33b   :  { %v2700_v14 = vmul.f32 %v2612_v38, %v13890_v33  ;;  %v2981_v9 = vshrl.u32 %v2742_v31, 16  ;;  %v2984_v10 = vshll.u32 %v2742_v31, 16  ;;  %3473 = vmatmul.mubr.bf16.gmra.mrb[60].mxu0 %v2943_v8  ;;  %v2614_v39 = vsel %vm708_vm3, %v10676_v36, %v2482_v41  ;;  %v13892_v3 = vld [vmem:[#allocation105_spill] sm:$0xff] }
 0x33c   :  { %v2637_v45 = vmul.f32 %v2633_v27, %v13891_v52  ;;  %3480 = vmatprep.mubr.bf16.mxu0 %v2997_v57  ;;  %v2876_v13 = vshll.u32 %v2730_v37, 16  ;;  %v2672_v30 = vmul.f32 %v10830_v0, %v13892_v3  ;;  %v2694_v41 = vmul.f32 %v10894_v47, %v13893_v61  ;;  %v13894_v27 = vld [vmem:[#allocation118_spill] sm:$0xff] }
 0x33d   :  { %v2748_v38 = vpack.c.bf16 %v2700_v14, %v2695_v54  ;;  %v2381_v32 = vpop.permute.xlu0 %2380  ;;  %v2983_v20 = vrot.slane %v2981_v9, 3  ;;  %v2986_v5 = vrot.slane %v2984_v10, 4  ;;  %v2480_v31 = vpop.permute.xlu1 %2479  ;;  %v2710_v54 = vmul.f32 %v2614_v39, %v13761_v63 }
 0x33e   :  { %v2720_v22 = vpack.c.bf16 %v2642_v28, %v2637_v45  ;;  %v2613_v35 = vsel %vm708_vm3, %v10656_v19, %v2480_v31  ;;  %v10909_v37 = vsel %vm708_vm3, %v10437_v34, %v2381_v32 }
 0x33f   :  { %v3035_v8 = vshrl.u32 %v2748_v38, 16  ;;  %v3038_v33 = vshll.u32 %v2748_v38, 16  ;;  %v2705_v14 = vmul.f32 %v2613_v35, %v13894_v27  ;;  %v2987_v10 = vor.u32 %v2986_v5, %v2983_v20 }
 0x340   :  { %v2812_v0 = vshrl.u32 %v2720_v22, 16  ;;  %v2815_v57 = vshll.u32 %v2720_v22, 16  ;;  %v2699_v31 = vmul.f32 %v10909_v37, %v13895_v55  ;;  %v13896_v22 = vld [vmem:[#allocation98_spill] sm:$0xff] }
 0x341   :  { %v3037_v9 = vrot.slane %v3035_v8, 3  ;;  %v2522_v28 = vpop.permute.xlu0 %2521  ;;  %v3040_v45 = vrot.slane %v3038_v33, 4  ;;  %v2753_v38 = vpack.c.bf16 %v2710_v54, %v2705_v14  ;;  %v2524_v52 = vpop.permute.xlu1 %2523  ;;  %v2667_v8 = vmul.f32 %v10810_v46, %v13896_v22 }
 0x342   :  { %v2616_v39 = vsel %vm708_vm3, %v10298_v4, %v2522_v28  ;;  %v2814_v61 = vrot.slane %v2812_v0, 3  ;;  %v2817_v35 = vrot.slane %v2815_v57, 4  ;;  %v2617_v34 = vsel %vm708_vm3, %v10363_v48, %v2524_v52 }
 0x343   :  { %v2636_v32 = vmul.f32 %v2616_v39, %v9660_v16  ;;  %v3080_v20 = vshrl.u32 %v2753_v38, 16  ;;  %v3083_v33 = vshll.u32 %v2753_v38, 16  ;;  %v2747_v5 = vpack.c.bf16 %v2699_v31, %v2694_v41 }
 0x344   :  { %v2875_v54 = vrot.slane %v2873_v1, 3  ;;  %v2878_v14 = vrot.slane %v2876_v13, 4  ;;  %v2641_v55 = vmul.f32 %v2617_v34, %v9743_v29  ;;  %v2988_v27 = vsel %vm1213_vm4, %v2942_v2, %v2987_v10 }
 0x345   :  { %v2385_v4 = vpop.permute.xlu0 %2384  ;;  %v2735_v57 = vpack.c.bf16 %v2672_v30, %v2667_v8  ;;  %3481 = vmatmul.mubr.bf16.gmra.mrb[64].mxu0 %v2988_v27  ;;  %v2383_v48 = vpop.permute.xlu1 %2382  ;;  %v3041_v52 = vor.u32 %v3040_v45, %v3037_v9  ;;  %v2818_v28 = vor.u32 %v2817_v35, %v2814_v61  ;;  %v3026_v39 = vshrl.u32 %v2747_v5, 16  ;;  %v13897_v45 = vld [vmem:[#allocation78_spill] sm:$0xff] }
 0x346   :  { %v3029_v16 = vshll.u32 %v2747_v5, 16  ;;  %v2719_v46 = vpack.c.bf16 %v2641_v55, %v2636_v32  ;;  %v10925_v41 = vsel %vm708_vm3, %v10484_v60, %v2383_v48  ;;  %v10929_v1 = vpack.c.bf16 %v10854_v15, %v10847_v42  ;;  %v13899_v32 = vld [vmem:[#allocation123_spill] sm:$0xff]  ;;  %v13901_v5 = vld [vmem:[#allocation124_spill] sm:$0xff]  ;;  %v13902_v48 = vld [vmem:[#allocation110_spill] sm:$0xff] }
 0x347   :  { %v3082_v2 = vrot.slane %v3080_v20, 3  ;;  %v3085_v13 = vrot.slane %v3083_v33, 4  ;;  %v10932_v38 = vor.u32 %v2825_v56, %v10877_v7  ;;  %v3028_v30 = vrot.slane %v3026_v39, 3  ;;  %v13898_v56 = vld [vmem:[#allocation21_spill] sm:$0xff]  ;;  %v13900_v20 = vld [vmem:[#allocation26_spill] sm:$0xff] }
 0x348   :  { %v3031_v27 = vrot.slane %v3029_v16, 4  ;;  %v2704_v61 = vmul.f32 %v10925_v41, %v9763_v40  ;;  %v10936_v55 = vor.u32 %v2878_v14, %v2875_v54  ;;  %v10940_v60 = vsel %vm708_vm3, %v13897_v45, %v2385_v4 }
 0x349   :  { %v2526_v9 = vpop.permute.xlu0 %2525  ;;  %v3042_v42 = vsel %vm1213_vm4, %v10879_v51, %v3041_v52  ;;  %v2827_v15 = vsel %vm1213_vm4, %v2818_v28, %v10932_v38  ;;  %v2528_v7 = vpop.permute.xlu1 %2527  ;;  %v2918_v31 = vshrl.u32 %v2735_v57, 16  ;;  %v2795_v35 = vshrl.u32 %v2719_v46, 16 }
 0x34a   :  { %v2618_v16 = vsel %vm708_vm3, %v13898_v56, %v2526_v9  ;;  %v2798_v34 = vshll.u32 %v2719_v46, 16  ;;  %v2709_v8 = vmul.f32 %v10940_v60, %v13899_v32  ;;  %3488 = vmatprep.mubr.bf16.mxu0 %v3042_v42  ;;  %3545 = vmatprep.mubr.bf16.mxu1 %v2827_v15  ;;  %v2619_v33 = vsel %vm708_vm3, %v13900_v20, %v2528_v7  ;;  %v13903_v9 = vld [vmem:[#allocation125_spill] sm:$0xff]  ;;  %v13904_v56 = vld [vmem:[#allocation108_spill] sm:$0xff]  ;;  %v13906_v20 = vld [vmem:[#allocation74_spill] sm:$0xff] }
 0x34b   :  { %v2646_v51 = vmul.f32 %v2618_v16, %v13901_v5  ;;  %v3032_v54 = vor.u32 %v3031_v27, %v3028_v30  ;;  %v10953_v14 = vor.u32 %v3085_v13, %v3082_v2  ;;  %v2921_v4 = vshll.u32 %v2735_v57, 16  ;;  %v13905_v30 = vld [vmem:[#allocation60_spill] sm:$0xff] }
 0x34c   :  { %v2677_v28 = vmul.f32 %v10869_v23, %v13902_v48  ;;  %v2752_v39 = vpack.c.bf16 %v2709_v8, %v2704_v61  ;;  %v2651_v46 = vmul.f32 %v2619_v33, %v13903_v9  ;;  %v2682_v42 = vmul.f32 %v10860_v11, %v13904_v56  ;;  %v13907_v33 = vld [vmem:[#allocation106_spill] sm:$0xff] }
 0x34d   :  { %v2484_v45 = vpop.permute.xlu0 %2483  ;;  %v3033_v15 = vsel %vm1213_vm4, %v2987_v10, %v3032_v54  ;;  %v3087_v7 = vsel %vm1213_vm4, %v3041_v52, %v10953_v14  ;;  %v2387_v16 = vpop.permute.xlu1 %2386  ;;  %v2797_v57 = vrot.slane %v2795_v35, 3  ;;  %v2800_v13 = vrot.slane %v2798_v34, 4  ;;  %v13908_v34 = vld [vmem:[#allocation120_spill] sm:$0xff] }
 0x34e   :  { %v2615_v2 = vsel %vm708_vm3, %v13905_v30, %v2484_v45  ;;  %v3071_v27 = vshrl.u32 %v2752_v39, 16  ;;  %v3074_v23 = vshll.u32 %v2752_v39, 16  ;;  %3489 = vmatmul.mubr.bf16.gmra.mrb[68].mxu0 %v3033_v15  ;;  %v2920_v61 = vrot.slane %v2918_v31, 3 }
 0x34f   :  { %v2724_v8 = vpack.c.bf16 %v2651_v46, %v2646_v51  ;;  %3496 = vmatprep.mubr.bf16.mxu0 %v3087_v7  ;;  %v2599_v11 = vsel %vm708_vm3, %v13906_v20, %v2387_v16  ;;  %v2715_v10 = vmul.f32 %v2615_v2, %v13907_v33  ;;  %v2923_v0 = vrot.slane %v2921_v4, 4  ;;  %v13909_v51 = vld [vmem:[#allocation27_spill] sm:$0xff] }
 0x350   :  { %v10968_v48 = vpack.c.bf16 %v2682_v42, %v2677_v28  ;;  %v3073_v52 = vrot.slane %v3071_v27, 3  ;;  %v3076_v56 = vrot.slane %v3074_v23, 4  ;;  %v2714_v9 = vmul.f32 %v2599_v11, %v13908_v34  ;;  %v13910_v7 = vld [vmem:[#allocation31_spill] sm:$0xff] }
 0x351   :  { %v2530_v5 = vpop.permute.xlu0 %2529  ;;  %v2803_v45 = vshrl.u32 %v2724_v8, 16  ;;  %v2806_v35 = vshll.u32 %v2724_v8, 16  ;;  %v2758_v39 = vpack.c.bf16 %v2715_v10, %v2715_v10  ;;  %v2532_v15 = vpop.permute.xlu1 %2531  ;;  %v2801_v31 = vor.u32 %v2800_v13, %v2797_v57  ;;  %v13911_v33 = vld [vmem:[#allocation127_spill] sm:$0xff]  ;;  %v13912_v8 = vld [vmem:[#allocation126_spill] sm:$0xff] }
 0x352   :  { %v2621_v46 = vsel %vm708_vm3, %v13909_v51, %v2532_v15  ;;  %v2620_v16 = vsel %vm708_vm3, %v13910_v7, %v2530_v5  ;;  %v3077_v2 = vor.u32 %v3076_v56, %v3073_v52  ;;  %v2757_v42 = vpack.c.bf16 %v2714_v9, %v2714_v9  ;;  %v13913_v56 = vld [vmem:[#allocation82_spill] sm:$0xff]  ;;  %v13914_v52 = vld [vmem:[#allocation29_spill] sm:$0xff] }
 0x353   :  { %v2805_v4 = vrot.slane %v2803_v45, 3  ;;  %v2808_v28 = vrot.slane %v2806_v35, 4  ;;  %v3125_v27 = vshrl.u32 %v2758_v39, 16  ;;  %v3128_v23 = vshll.u32 %v2758_v39, 16 }
 0x354   :  { %v2661_v32 = vmul.f32 %v2621_v46, %v13911_v33  ;;  %v2656_v40 = vmul.f32 %v2620_v16, %v13912_v8  ;;  %v3078_v11 = vsel %vm1213_vm4, %v3032_v54, %v3077_v2  ;;  %v3116_v13 = vshrl.u32 %v2757_v42, 16  ;;  %v13915_v46 = vld [vmem:[#allocation47_spill] sm:$0xff]  ;;  %v13916_v54 = vld [vmem:[#allocation129_spill] sm:$0xff] }
 0x355   :  { %v2534_v10 = vpop.permute.xlu0 %2533  ;;  %v2809_v57 = vor.u32 %v2808_v28, %v2805_v4  ;;  %v3119_v34 = vshll.u32 %v2757_v42, 16  ;;  %v3127_v15 = vrot.slane %v3125_v27, 3  ;;  %v2536_v51 = vpop.permute.xlu1 %2535  ;;  %v3130_v29 = vrot.slane %v3128_v23, 4  ;;  %v14007_v33 = vld [vmem:[#allocation67_spill] sm:$0xff] }
 0x356   :  { %v2729_v5 = vpack.c.bf16 %v2661_v32, %v2656_v40  ;;  %3497 = vmatmul.mubr.bf16.gmra.mrb[72].mxu0 %v3078_v11  ;;  %v2623_v9 = vsel %vm708_vm3, %v13913_v56, %v2536_v51  ;;  %v2622_v45 = vsel %vm708_vm3, %v13914_v52, %v2534_v10  ;;  %v3118_v35 = vrot.slane %v3116_v13, 3  ;;  %v13917_v10 = vld [vmem:[#allocation128_spill] sm:$0xff] }
 0x357   :  { %v3121_v39 = vrot.slane %v3119_v34, 4  ;;  %v2671_v7 = vmul.f32 %v2623_v9, %v13915_v46  ;;  %v2666_v16 = vmul.f32 %v2622_v45, %v13916_v54  ;;  %v2810_v42 = vsel %vm1213_vm4, %v2801_v31, %v2809_v57  ;;  %v13918_v9 = vld [vmem:[#allocation77_spill] sm:$0xff]  ;;  %v13920_v45 = vld [vmem:[#allocation44_spill] sm:$0xff] }
 0x358   :  { %v2864_v4 = vshrl.u32 %v2729_v5, 16  ;;  %v2867_v28 = vshll.u32 %v2729_v5, 16  ;;  %v3131_v23 = vor.u32 %v3130_v29, %v3127_v15  ;;  %3546 = vmatmul.mubr.bf16.vlgmr.msra.gmra.mrb[48].mxu1 %v2810_v42  ;;  %v2880_v32 = vsel %vm1213_vm4, %v10932_v38, %v10936_v55  ;;  %v13919_v15 = vld [vmem:[#allocation130_spill] sm:$0xff] }
 0x359   :  { %v2538_v27 = vpop.permute.xlu0 %2537  ;;  %v2734_v40 = vpack.c.bf16 %v2671_v7, %v2666_v16  ;;  %v2540_v11 = vpop.permute.xlu1 %2539  ;;  %v3122_v13 = vor.u32 %v3121_v39, %v3118_v35  ;;  %3553 = vmatprep.mubr.bf16.mxu1 %v2880_v32  ;;  %v10992_v31 = vor.u32 %v2923_v0, %v2920_v61  ;;  %v2963_v29 = vshrl.u32 %v10968_v48, 16  ;;  %v13922_v61 = vld [vmem:[#allocation52_spill] sm:$0xff] }
 0x35a   :  { %v2624_v34 = vsel %vm708_vm3, %v13917_v10, %v2538_v27  ;;  %v2866_v51 = vrot.slane %v2864_v4, 3  ;;  %v2869_v56 = vrot.slane %v2867_v28, 4  ;;  %v2625_v5 = vsel %vm708_vm3, %v13918_v9, %v2540_v11  ;;  %v13923_v11 = vld [vmem:[#allocation117_spill] sm:$0xff]  ;;  %v13927_v9 = vld [vmem:[#allocation34_spill] sm:$0xff] }
 0x35b   :  { %v2681_v52 = vmul.f32 %v2625_v5, %v13919_v15  ;;  %v2676_v7 = vmul.f32 %v2624_v34, %v13920_v45  ;;  %v3132_v38 = vsel %vm1213_vm4, %v10953_v14, %v3131_v23  ;;  %v2909_v16 = vshrl.u32 %v2734_v40, 16  ;;  %v13928_v5 = vld [vmem:[#allocation112_spill] sm:$0xff] }
 0x35c   :  { %v2912_v42 = vshll.u32 %v2734_v40, 16  ;;  %3504 = vmatprep.mubr.bf16.mxu0 %v3132_v38  ;;  %v3123_v35 = vsel %vm1213_vm4, %v3077_v2, %v3122_v13  ;;  %v2870_v4 = vor.u32 %v2869_v56, %v2866_v51  ;;  %v13921_v28 = vshrl.u32 %v10817_v12, 16  ;;  %v13924_v40 = vld [vmem:[#allocation54_spill] sm:$0xff]  ;;  %v8484_v15 = vld [vmem:[%s13261_s8 + $0x158] sm:$0xff]  }
 0x35d   :  { %v2542_v39 = vpop.permute.xlu0 %2541  ;;  %v2698_v27 = vmul.f32 %v10656_v19, %v13922_v61  ;;  %v2966_v32 = vshll.u32 %v10968_v48, 16  ;;  %v2692_v10 = vmul.f32 %v10909_v37, %v13923_v11  ;;  %v2544_v34 = vpop.permute.xlu1 %2543  ;;  %v3017_v14 = vshrl.u32 %v10929_v1, 16  ;;  %v13925_v51 = vld [vmem:[#allocation58_spill] sm:$0xff]  ;;  %v13926_v19 = vld [vmem:[#allocation59_spill] sm:$0xff] }
 0x35e   :  { %v2974_v0 = vrot.slane %v13921_v28, 3  ;;  %v3020_v23 = vshll.u32 %v10929_v1, 16  ;;  %v2703_v2 = vmul.f32 %v10676_v36, %v13924_v40  ;;  %3505 = vmatmul.mubr.bf16.gmra.mrb[76].mxu0 %v3123_v35  ;;  %v2871_v13 = vsel %vm1213_vm4, %v2809_v57, %v2870_v4  ;;  %v13932_v40 = vld [vmem:[#allocation95_spill] sm:$0xff] }
 0x35f   :  { %v2708_v56 = vmul.f32 %v13905_v30, %v13925_v51  ;;  %v2713_v48 = vmul.f32 %v13927_v9, %v13926_v19  ;;  %v2687_v37 = vmul.f32 %v10894_v47, %v13928_v5  ;;  %v2739_v38 = vpack.c.bf16 %v2681_v52, %v2676_v7  ;;  %8262 = vmatprep.mubr.msk.bf16.mxu0 %vm708_vm3, %v10843_v50  ;;  %v13929_v30 = vld [vmem:[#allocation76_spill] sm:$0xff]  ;;  %v13930_v9 = vld [vmem:[#allocation75_spill] sm:$0xff] }
 0x360   :  { %v2965_v1 = vrot.slane %v2963_v29, 3  ;;  %v2911_v28 = vrot.slane %v2909_v16, 3  ;;  %v2914_v45 = vrot.slane %v2912_v42, 4  ;;  %v2925_v36 = vsel %vm1213_vm4, %v10936_v55, %v10992_v31  ;;  %3554 = vmatmul.mubr.bf16.gmra.mrb[52].mxu1 %v2871_v13  ;;  %v13935_v13 = vld [vmem:[#allocation65_spill] sm:$0xff]  ;;  %v13978_v5 = vld [vmem:[#allocation20_spill] sm:$0xff] }
 0x361   :  { %v2968_v57 = vrot.slane %v2966_v32, 4  ;;  %v2745_v35 = vpack.c.bf16 %v2692_v10, %v2687_v37  ;;  %v2627_v51 = vsel %vm708_vm3, %v13929_v30, %v2544_v34  ;;  %v2626_v19 = vsel %vm708_vm3, %v13930_v9, %v2542_v39  ;;  %v2548_v47 = vpop.permute.xlu1 %2547  ;;  %v2546_v52 = vpop.permute.xlu0 %2545  ;;  %3561 = vmatprep.mubr.bf16.mxu1 %v2925_v36  ;;  %v13933_v32 = vld [vmem:[#allocation55_spill] sm:$0xff]  ;;  %v13934_v30 = vld [vmem:[#allocation53_spill] sm:$0xff] }
 0x362   :  { %v13931_v50 = vshll.u32 %v10817_v12, 16  ;;  %v2751_v7 = vpack.c.bf16 %v2703_v2, %v2698_v27  ;;  %v3019_v16 = vrot.slane %v3017_v14, 3  ;;  %v3022_v42 = vrot.slane %v3020_v23, 4 }
 0x363   :  { %v2697_v55 = vmul.f32 %v10925_v41, %v13932_v40  ;;  %v2702_v10 = vmul.f32 %v10940_v60, %v13933_v32  ;;  %v2954_v34 = vshrl.u32 %v2739_v38, 16  ;;  %v2957_v37 = vshll.u32 %v2739_v38, 16  ;;  %v13967_v32 = vld [vmem:[#allocation16_spill] sm:$0xff] }
 0x364   :  { %v2977_v29 = vrot.slane %v13931_v50, 4  ;;  %v2691_v39 = vmul.f32 %v2627_v51, %v13934_v30  ;;  %v2686_v9 = vmul.f32 %v2626_v19, %v13935_v13  ;;  %v2889_v12 = vsel %vm1213_vm4, %v10781_v26, %v10836_v62 }
 0x365   :  { %v2915_v27 = vor.u32 %v2914_v45, %v2911_v28  ;;  %v2756_v2 = vpack.c.bf16 %v2713_v48, %v2708_v56  ;;  %v3008_v14 = vshrl.u32 %v2745_v35, 16  ;;  %v3011_v23 = vshll.u32 %v2745_v35, 16  ;;  %v2578_v26 = vpop.permute.xlu1 %2577  ;;  %v2576_v45 = vpop.permute.xlu0 %2575  ;;  %v13936_v48 = vld [vmem:[#allocation35_spill] sm:$0xff] }
 0x366   :  { %v2969_v36 = vor.u32 %v2968_v57, %v2965_v1  ;;  %v3062_v50 = vshrl.u32 %v2751_v7, 16  ;;  %8263 = vmatmul.mubr.msk.bf16.vlgmr.msra.gmra.mrb[80].mxu0 %vm708_vm3, %v2889_v12  ;;  %v2934_v41 = vsel %vm1213_vm4, %v10836_v62, %v10849_v17  ;;  %v2978_v60 = vor.u32 %v2977_v29, %v2974_v0  ;;  %v13937_v28 = vld [vmem:[#allocation79_spill] sm:$0xff] }
 0x367   :  { %v11042_v51 = vor.u32 %v3022_v42, %v3019_v16  ;;  %v3065_v19 = vshll.u32 %v2751_v7, 16  ;;  %v2750_v38 = vpack.c.bf16 %v2702_v10, %v2697_v55  ;;  %v2956_v13 = vrot.slane %v2954_v34, 3  ;;  %8266 = vmatprep.mubr.msk.bf16.mxu0 %vm708_vm3, %v2934_v41  ;;  %v13938_v42 = vld [vmem:[#allocation57_spill] sm:$0xff] }
 0x368   :  { %v2959_v30 = vrot.slane %v2957_v37, 4  ;;  %v2744_v56 = vpack.c.bf16 %v2691_v39, %v2686_v9  ;;  %v2629_v1 = vsel %vm708_vm3, %v13936_v48, %v2548_v47  ;;  %v2628_v57 = vsel %vm708_vm3, %v13937_v28, %v2546_v52  ;;  %v13939_v52 = vld [vmem:[#allocation62_spill] sm:$0xff]  ;;  %v13942_v48 = vld [vmem:[#allocation15_spill] sm:$0xff] }
 0x369   :  { %v2916_v62 = vsel %vm1213_vm4, %v2870_v4, %v2915_v27  ;;  %v3107_v0 = vshrl.u32 %v2756_v2, 16  ;;  %v3010_v35 = vrot.slane %v3008_v14, 3  ;;  %v3013_v29 = vrot.slane %v3011_v23, 4  ;;  %v13940_v4 = vld [vmem:[#allocation9_spill] sm:$0xff] }
 0x36a   :  { %3562 = vmatmul.mubr.bf16.gmra.mrb[56].mxu1 %v2916_v62  ;;  %v2970_v7 = vsel %vm1213_vm4, %v10992_v31, %v2969_v36  ;;  %v3110_v16 = vshll.u32 %v2756_v2, 16  ;;  %v2635_v55 = vsel %vm708_vm3, %v13938_v42, %v2578_v26  ;;  %v2634_v10 = vsel %vm708_vm3, %v13906_v20, %v2576_v45  ;;  %v13941_v31 = vld [vmem:[#allocation11_spill] sm:$0xff]  ;;  %v2552_v62 = vpop.permute.xlu1 %2551 }
 0x36b   :  { %3569 = vmatprep.mubr.bf16.mxu1 %v2970_v7  ;;  %v3064_v47 = vrot.slane %v3062_v50, 3  ;;  %v3053_v34 = vshrl.u32 %v2750_v38, 16  ;;  %v2701_v37 = vmul.f32 %v2629_v1, %v13939_v52  ;;  %v2696_v39 = vmul.f32 %v2628_v57, %v13940_v4  ;;  %v2550_v7 = vpop.permute.xlu0 %2549 }
 0x36c   :  { %v3067_v9 = vrot.slane %v3065_v19, 4  ;;  %v3056_v12 = vshll.u32 %v2750_v38, 16  ;;  %v2999_v14 = vshrl.u32 %v2744_v56, 16  ;;  %v3002_v23 = vshll.u32 %v2744_v56, 16 }
 0x36d   :  { %v2960_v41 = vor.u32 %v2959_v30, %v2956_v13  ;;  %v2712_v2 = vmul.f32 %v2635_v55, %v13941_v31  ;;  %v2707_v28 = vmul.f32 %v2634_v10, %v13942_v48  ;;  %v2979_v26 = vsel %vm1213_vm4, %v10849_v17, %v2978_v60 }
 0x36e   :  { %v3014_v20 = vor.u32 %v3013_v29, %v3010_v35  ;;  %v3109_v45 = vrot.slane %v3107_v0, 3  ;;  %v3112_v50 = vrot.slane %v3110_v16, 4  ;;  %8267 = vmatmul.mubr.msk.bf16.gmra.mrb[84].mxu0 %vm708_vm3, %v2979_v26  ;;  %v3024_v19 = vsel %vm1213_vm4, %v2978_v60, %v11042_v51  ;;  %v13943_v0 = vld [vmem:[#allocation63_spill] sm:$0xff]  ;;  %v13944_v16 = vld [vmem:[#allocation81_spill] sm:$0xff] }
 0x36f   :  { %v3055_v38 = vrot.slane %v3053_v34, 3  ;;  %v2749_v56 = vpack.c.bf16 %v2701_v37, %v2696_v39  ;;  %8270 = vmatprep.mubr.msk.bf16.mxu0 %vm708_vm3, %v3024_v19  ;;  %v3068_v30 = vor.u32 %v3067_v9, %v3064_v47  ;;  %v3058_v13 = vrot.slane %v3056_v12, 4  ;;  %v13945_v47 = vld [vmem:[#allocation70_spill] sm:$0xff] }
 0x370   :  { %v3001_v1 = vrot.slane %v2999_v14, 3  ;;  %v3004_v57 = vrot.slane %v3002_v23, 4  ;;  %v2961_v17 = vsel %vm1213_vm4, %v2915_v27, %v2960_v41  ;;  %v2755_v35 = vpack.c.bf16 %v2712_v2, %v2707_v28  ;;  %v13946_v39 = vld [vmem:[#allocation18_spill] sm:$0xff]  ;;  %v2554_v28 = vpop.permute.xlu0 %2553 }
 0x371   :  { %v2631_v29 = vsel %vm708_vm3, %v13943_v0, %v2552_v62  ;;  %v2630_v42 = vsel %vm708_vm3, %v13944_v16, %v2550_v7  ;;  %v3015_v60 = vsel %vm1213_vm4, %v2969_v36, %v3014_v20  ;;  %v3113_v55 = vor.u32 %v3112_v50, %v3109_v45 }
 0x372   :  { %3570 = vmatmul.mubr.bf16.gmra.mrb[60].mxu1 %v2961_v17  ;;  %v3044_v10 = vshrl.u32 %v2749_v56, 16  ;;  %v3047_v34 = vshll.u32 %v2749_v56, 16  ;;  %v2711_v37 = vmul.f32 %v2631_v29, %v13945_v47  ;;  %v2706_v9 = vmul.f32 %v2630_v42, %v13946_v39  ;;  %v13947_v56 = vld [vmem:[#allocation32_spill] sm:$0xff] }
 0x373   :  { %3577 = vmatprep.mubr.bf16.mxu1 %v3015_v60  ;;  %v3005_v12 = vor.u32 %v3004_v57, %v3001_v1  ;;  %v3098_v27 = vshrl.u32 %v2755_v35, 16  ;;  %v3101_v14 = vshll.u32 %v2755_v35, 16  ;;  %v3069_v23 = vsel %vm1213_vm4, %v11042_v51, %v3068_v30  ;;  %v13948_v57 = vld [vmem:[#allocation13_spill] sm:$0xff]  ;;  %v13949_v35 = vld [vmem:[#allocation23_spill] sm:$0xff] }
 0x374   :  { %v3059_v2 = vor.u32 %v3058_v13, %v3055_v38  ;;  %v3114_v36 = vsel %vm1213_vm4, %v3068_v30, %v3113_v55  ;;  %v3046_v26 = vrot.slane %v3044_v10, 3  ;;  %v3049_v45 = vrot.slane %v3047_v34, 4 }
 0x375   :  { %v2754_v50 = vpack.c.bf16 %v2711_v37, %v2706_v9  ;;  %v3006_v62 = vsel %vm1213_vm4, %v2960_v41, %v3005_v12  ;;  %v3100_v7 = vrot.slane %v3098_v27, 3  ;;  %v3103_v19 = vrot.slane %v3101_v14, 4 }
 0x376   :  { %8271 = vmatmul.mubr.msk.bf16.gmra.mrb[88].mxu0 %vm708_vm3, %v3069_v23  ;;  %v2632_v1 = vsel %vm708_vm3, %v13947_v56, %v2554_v28  ;;  %v3060_v51 = vsel %vm1213_vm4, %v3014_v20, %v3059_v2  ;;  %v3050_v17 = vor.u32 %v3049_v45, %v3046_v26  ;;  %v3143_v0 = vsel %vm1213_vm4, %v3113_v55, %v13949_v35  ;;  %v13950_v55 = vld [vmem:[#allocation19_spill] sm:$0xff] }
 0x377   :  { %8274 = vmatprep.mubr.msk.bf16.mxu0 %vm708_vm3, %v3114_v36  ;;  %v3089_v38 = vshrl.u32 %v2754_v50, 16  ;;  %v3092_v13 = vshll.u32 %v2754_v50, 16  ;;  %v2716_v30 = vmul.f32 %v2632_v1, %v13948_v57  ;;  %v3104_v29 = vor.u32 %v3103_v19, %v3100_v7 }
 0x378   :  { %v3051_v60 = vsel %vm1213_vm4, %v3005_v12, %v3050_v17 }
 0x379   :  { %v3091_v41 = vrot.slane %v3089_v38, 3  ;;  %v3094_v16 = vrot.slane %v3092_v13, 4  ;;  %v2759_v42 = vpack.c.bf16 %v2716_v30, %v2716_v30  ;;  %v3105_v20 = vsel %vm1213_vm4, %v3059_v2, %v3104_v29 }
 0x37a   :  { %3578 = vmatmul.mubr.bf16.gmra.mrb[64].mxu1 %v3006_v62  ;;  %v3142_v23 = vsel %vm1213_vm4, %v3104_v29, %v13950_v55 }
 0x37b   :  { %3585 = vmatprep.mubr.bf16.mxu1 %v3060_v51  ;;  %v3134_v10 = vshrl.u32 %v2759_v42, 16  ;;  %v3137_v34 = vshll.u32 %v2759_v42, 16  ;;  %v3095_v37 = vor.u32 %v3094_v16, %v3091_v41 }
 0x37d   :  { %v3136_v9 = vrot.slane %v3134_v10, 3  ;;  %v3139_v27 = vrot.slane %v3137_v34, 4  ;;  %v3096_v14 = vsel %vm1213_vm4, %v3050_v17, %v3095_v37 }
 0x37e   :  { %8275 = vmatmul.mubr.msk.bf16.gmra.mrb[92].mxu0 %vm708_vm3, %v3143_v0 }
 0x37f   :  { %v3140_v28 = vor.u32 %v3139_v27, %v3136_v9  ;;  %v8469_v27 = vld [vmem:[%s13261_s8 + $0x160] sm:$0xff]  }
 0x380   :  { %7915 = vmatprep.subr.bf16.mxu1 %v8469_v27  ;;  %v8474_v27 = vld [vmem:[%s13261_s8 + $0x130] sm:$0xff]  }
 0x381   :  { %v3141_v36 = vsel %vm1213_vm4, %v3095_v37, %v3140_v28 }
 0x382   :  { %3586 = vmatmul.mubr.bf16.gmra.mrb[68].mxu1 %v3051_v60 }
 0x383   :  { %3593 = vmatprep.mubr.bf16.mxu1 %v3105_v20 }
 0x38a   :  { %3594 = vmatmul.mubr.bf16.gmra.mrb[72].mxu1 %v3096_v14 }
 0x38b   :  { %3601 = vmatprep.mubr.bf16.mxu1 %v3142_v23 }
 0x392   :  { %3602 = vmatmul.mubr.bf16.gmra.mrb[76].mxu1 %v3141_v36 }
 0x3f5   :  { %v7791_v12 = vpop.f32.mrb[48].mxu0 }
 0x3f6   :  { %v7792_v26 = vpop.f32.mrb[49].mxu0 }
 0x3f7   :  { %v7793_v2 = vadd.f32 %v7792_v26, %v7791_v12  ;;  %v7794_v45 = vpop.f32.mrb[50].mxu0  ;;  %v8470_v12 = vld [vmem:[%s13261_s8 + $0x120] sm:$0xff]  }
 0x3f8   :  { %v7795_v50 = vpop.f32.mrb[51].mxu0  ;;  %7916 = vmatpush3.bf16.msra.mxu1 %v8470_v12 }
 0x3f9   :  { %v7796_v62 = vadd.f32 %v7795_v50, %v7794_v45  ;;  %v8471_v45 = vld [vmem:[%s13261_s8 + $0x168] sm:$0xff]  }
 0x3fa   :  { %7917 = vmatprep.subr.bf16.mxu1 %v8471_v45  ;;  %v8476_v45 = vld [vmem:[%s13261_s8 + $0x138] sm:$0xff]  }
 0x3fe   :  { %v7797_v7 = vpop.f32.mrb[52].mxu0 }
 0x3ff   :  { %v7798_v19 = vpop.f32.mrb[53].mxu0 }
 0x400   :  { %v11093_v56 = vadd.f32 %v7798_v19, %v7797_v7  ;;  %v7800_v1 = vpop.f32.mrb[54].mxu0 }
 0x401   :  { %v7801_v51 = vpop.f32.mrb[55].mxu0 }
 0x402   :  { %v11095_v38 = vadd.f32 %v7801_v51, %v7800_v1 }
 0x406   :  { %v7803_v13 = vpop.f32.mrb[56].mxu0 }
 0x407   :  { %v7804_v30 = vpop.f32.mrb[57].mxu0 }
 0x408   :  { %v11097_v17 = vadd.f32 %v7804_v30, %v7803_v13  ;;  %v7806_v0 = vpop.f32.mrb[58].mxu0  ;;  %v8472_v13 = vld [vmem:[%s13261_s8 + $0x128] sm:$0xff]  }
 0x409   :  { %v7807_v29 = vpop.f32.mrb[59].mxu0  ;;  %7918 = vmatpush3.bf16.msra.mxu1 %v8472_v13 }
 0x40a   :  { %v11099_v41 = vadd.f32 %v7807_v29, %v7806_v0  ;;  %v8473_v0 = vld [vmem:[%s13261_s8 + $0x170] sm:$0xff]  }
 0x40b   :  { %7919 = vmatprep.subr.bf16.mxu1 %v8473_v0 }
 0x40d   :  { %7920 = vmatpush3.bf16.msra.mxu1 %v8474_v27 }
 0x40e   :  { %v7809_v16 = vpop.f32.mrb[60].mxu0 }
 0x40f   :  { %v7810_v42 = vpop.f32.mrb[61].mxu0 }
 0x410   :  { %v11101_v60 = vadd.f32 %v7810_v42, %v7809_v16  ;;  %v7812_v20 = vpop.f32.mrb[62].mxu0 }
 0x411   :  { %v7813_v10 = vpop.f32.mrb[63].mxu0 }
 0x412   :  { %v11103_v34 = vadd.f32 %v7813_v10, %v7812_v20 }
 0x418   :  { %v7815_v37 = vpop.f32.mrb[64].mxu0 }
 0x419   :  { %v7816_v9 = vpop.f32.mrb[65].mxu0 }
 0x41a   :  { %v11108_v14 = vadd.f32 %v7816_v9, %v7815_v37  ;;  %v7818_v23 = vpop.f32.mrb[66].mxu0 }
 0x41b   :  { %v7819_v28 = vpop.f32.mrb[67].mxu0 }
 0x41c   :  { %v11110_v36 = vadd.f32 %v7819_v28, %v7818_v23  ;;  %v8475_v23 = vld [vmem:[%s13261_s8 + $0x178] sm:$0xff]  }
 0x41d   :  { %7921 = vmatprep.subr.bf16.mxu1 %v8475_v23 }
 0x41e   :  { %7922 = vmatpush3.bf16.msra.mxu1 %v8476_v45  ;;  %v11155_v45 = vld [vmem:[%s13266_s13] ss:$0 sm:$0xff] }
 0x421   :  { %v7821_v26 = vpop.f32.mrb[68].mxu0 }
 0x422   :  { %v7822_v50 = vpop.f32.mrb[69].mxu0 }
 0x423   :  { %v11118_v7 = vadd.f32 %v7822_v50, %v7821_v26  ;;  %v7824_v19 = vpop.f32.mrb[70].mxu0 }
 0x424   :  { %v7825_v1 = vpop.f32.mrb[71].mxu0 }
 0x425   :  { %v11120_v51 = vadd.f32 %v7825_v1, %v7824_v19 }
 0x429   :  { %v7827_v30 = vpop.f32.mrb[72].mxu0 }
 0x42a   :  { %v7828_v29 = vpop.f32.mrb[73].mxu0 }
 0x42b   :  { %v11128_v16 = vadd.f32 %v7828_v29, %v7827_v30  ;;  %v7830_v42 = vpop.f32.mrb[74].mxu0  ;;  %v7855_v10 = vpop.f32.mrb[48].mxu1 }
 0x42c   :  { %v7831_v20 = vpop.f32.mrb[75].mxu0  ;;  %v7856_v9 = vpop.f32.mrb[49].mxu1 }
 0x42d   :  { %v11130_v37 = vadd.f32 %v7831_v20, %v7830_v42  ;;  %v7857_v28 = vadd.f32 %v7856_v9, %v7855_v10  ;;  %v7858_v12 = vpop.f32.mrb[50].mxu1 }
 0x42e   :  { %v7859_v26 = vpop.f32.mrb[51].mxu1 }
 0x42f   :  { %v7860_v50 = vadd.f32 %v7859_v26, %v7858_v12  ;;  %v3548_v19 = vadd.f32 %v7857_v28, %v7793_v2 }
 0x431   :  { %v7833_v1 = vpop.f32.mrb[76].mxu0  ;;  %v3551_v30 = vadd.f32 %v7860_v50, %v7796_v62  ;;  %v11149_v62 = vld [vmem:[%s13265_s12] ss:$0 sm:$0xff] }
 0x432   :  { %v7834_v13 = vpop.f32.mrb[77].mxu0 }
 0x433   :  { %v11141_v0 = vadd.f32 %v7834_v13, %v7833_v1  ;;  %v7836_v29 = vpop.f32.mrb[78].mxu0  ;;  %v7861_v20 = vpop.f32.mrb[52].mxu1 }
 0x434   :  { %v7837_v42 = vpop.f32.mrb[79].mxu0  ;;  %v7862_v9 = vpop.f32.mrb[53].mxu1 }
 0x435   :  { %v11143_v10 = vadd.f32 %v7837_v42, %v7836_v29  ;;  %v7863_v27 = vadd.f32 %v7862_v9, %v7861_v20  ;;  %v7864_v55 = vpop.f32.mrb[54].mxu1 }
 0x436   :  { %v7865_v35 = vpop.f32.mrb[55].mxu1 }
 0x437   :  { %v7866_v57 = vadd.f32 %v7865_v35, %v7864_v55  ;;  %v3556_v12 = vadd.f32 %v7863_v27, %v11093_v56 }
 0x439   :  { %v8264_v2 = vpop.f32.mrb[80].mxu0  ;;  %v3559_v26 = vadd.f32 %v7866_v57, %v11095_v38 }
 0x43a   :  { %v3653_v23 = vadd.f32 %v8264_v2, %v3556_v12  ;;  %v3644_v28 = vpop.f32.mrb[81].mxu0 }
 0x43b   :  { %v3645_v50 = vadd.f32 %v3644_v28, %v3548_v19  ;;  %v8265_v1 = vpop.f32.mrb[82].mxu0  ;;  %v13951_v28 = vld [vmem:[#allocation6_spill] sm:$0xff] }
 0x43c   :  { %v3716_v35 = vmul.f32 %v11149_v62, %v3653_v23  ;;  %v3656_v55 = vadd.f32 %v8265_v1, %v3559_v26  ;;  %v3647_v13 = vpop.f32.mrb[83].mxu0 }
 0x43d   :  { %v7867_v56 = vpop.f32.mrb[56].mxu1  ;;  %v3714_v29 = vmul.f32 %v11149_v62, %v3645_v50  ;;  %v3648_v42 = vadd.f32 %v3647_v13, %v3551_v30  ;;  %v13952_v30 = vld [vmem:[#allocation7_spill] sm:$0xff] }
 0x43e   :  { %v7868_v20 = vpop.f32.mrb[57].mxu1  ;;  %v3739_v9 = vadd.f32 %v11155_v45, %v3716_v35  ;;  %v3717_v57 = vmul.f32 %v11149_v62, %v3656_v55 }
 0x43f   :  { %v7869_v38 = vadd.f32 %v7868_v20, %v7867_v56  ;;  %v7870_v27 = vpop.f32.mrb[58].mxu1  ;;  %v3737_v12 = vadd.f32 %v11155_v45, %v3714_v29  ;;  %v3715_v19 = vmul.f32 %v11149_v62, %v3648_v42  ;;  %v8477_v42 = vld [vmem:[%s13261_s8 + $0x180] sm:$0xff]  }
 0x440   :  { %v7871_v2 = vpop.f32.mrb[59].mxu1  ;;  %v3755_v23 = vadd.f32 %v3739_v9, %v13951_v28  ;;  %v3740_v26 = vadd.f32 %v11155_v45, %v3717_v57  ;;  %v8478_v20 = vld [vmem:[%s13261_s8 + $0x140] sm:$0xff]   ;;  %7923 = vmatprep.subr.bf16.mxu1 %v8477_v42 }
 0x441   :  { %v7872_v1 = vadd.f32 %v7871_v2, %v7870_v27  ;;  %v3564_v50 = vadd.f32 %v7869_v38, %v11097_v17  ;;  %v3753_v13 = vadd.f32 %v3737_v12, %v13952_v30  ;;  %v3738_v35 = vadd.f32 %v11155_v45, %v3715_v19  ;;  %v8268_v39 = vpop.f32.mrb[84].mxu0  ;;  %v13955_v17 = vld [vmem:[#allocation10_spill] sm:$0xff]  ;;  %v13956_v38 = vld [vmem:[#allocation8_spill] sm:$0xff]  ;;  %7924 = vmatpush3.bf16.msra.mxu1 %v8478_v20 }
 0x442   :  { %v11168_v55 = vmax.f32 %v3755_v23, 0.0  ;;  %v3660_v56 = vpop.f32.mrb[85].mxu0  ;;  %v3756_v57 = vadd.f32 %v3740_v26, %v13955_v17 }
 0x443   :  { %v3567_v29 = vadd.f32 %v7872_v1, %v11099_v41  ;;  %v11177_v9 = vmax.f32 %v3753_v13, 0.0  ;;  %v3754_v27 = vadd.f32 %v3738_v35, %v13956_v38  ;;  %v3661_v12 = vadd.f32 %v3660_v56, %v3564_v50  ;;  %v8269_v19 = vpop.f32.mrb[86].mxu0  ;;  %v8479_v56 = vld [vmem:[%s13261_s8 + $0x188] sm:$0xff]  }
 0x444   :  { %13953 = vst [vmem:[#allocation86_spill] sm:$0xff] %v11168_v55  ;;  %v3663_v2 = vpop.f32.mrb[87].mxu0  ;;  %4004 = vrot.lane.b32.xlu1 %v11168_v55, %s8571_s29  ;;  %v11188_v26 = vmax.f32 %v3756_v57, 0.0  ;;  %7925 = vmatprep.subr.bf16.mxu1 %v8479_v56  ;;  %v3877_v56 = vrot.slane %v11168_v55, 1 }
 0x445   :  { %13954 = vst [vmem:[#allocation88_spill] sm:$0xff] %v11177_v9  ;;  %v7873_v41 = vpop.f32.mrb[60].mxu1  ;;  %v11183_v28 = vmax.f32 %v3754_v27, 0.0  ;;  %v3664_v23 = vadd.f32 %v3663_v2, %v3567_v29  ;;  %v11186_v47 = vrot.slane %v11177_v9, 1  ;;  %v3718_v50 = vmul.f32 %v11149_v62, %v3661_v12  ;;  %v8480_v29 = vld [vmem:[%s13261_s8 + $0x148] sm:$0xff]  }
 0x446   :  { %v7874_v1 = vpop.f32.mrb[61].mxu1  ;;  %13959 = vst [vmem:[#allocation96_spill] sm:$0xff] %v11188_v26  ;;  %v13960_v12 = vld [vmem:[#allocation5_spill] sm:$0xff]  ;;  %7926 = vmatpush3.bf16.msra.mxu1 %v8480_v29  ;;  %v13963_v31 = vrot.slane %v11188_v26, 1 }
 0x447   :  { %13957 = vst [vmem:[#allocation61_spill] sm:$0xff] %v11183_v28  ;;  %v7875_v30 = vadd.f32 %v7874_v1, %v7873_v41  ;;  %v7876_v13 = vpop.f32.mrb[62].mxu1  ;;  %13958 = vst [vmem:[#allocation56_spill] sm:$0xff] %v11186_v47  ;;  %4002 = vrot.lane.b32.xlu0 %v11183_v28, %s8571_s29  ;;  %v3874_v2 = vsel %vm186_vm1, %v13960_v12, %v11186_v47  ;;  %v11209_v41 = vrot.slane %v11183_v28, 1 }
 0x448   :  { %v7877_v35 = vpop.f32.mrb[63].mxu1  ;;  %4000 = vrot.lane.b32.xlu1 %v11177_v9, %s8571_s29  ;;  %v3719_v29 = vmul.f32 %v11149_v62, %v3664_v23  ;;  %v11233_v23 = vsel %vm186_vm1, %v3877_v56, %v13963_v31 }
 0x449   :  { %v3572_v42 = vadd.f32 %v7875_v30, %v11101_v60  ;;  %v7878_v20 = vadd.f32 %v7877_v35, %v7876_v13  ;;  %v11202_v17 = vpop.f32.mrb[88].mxu0  ;;  %v3741_v60 = vadd.f32 %v11155_v45, %v3718_v50  ;;  %13964 = vst [vmem:[#allocation84_spill] sm:$0xff] %v11233_v23 }
 0x44a   :  { %v3676_v27 = vpop.f32.mrb[89].mxu0 }
 0x44b   :  { %v3669_v57 = vadd.f32 %v8268_v39, %v3572_v42  ;;  %v3575_v38 = vadd.f32 %v7878_v20, %v11103_v34  ;;  %v11212_v1 = vpop.f32.mrb[90].mxu0  ;;  %3903 = vrot.lane.b32.xlu0 %v3874_v2, %s8571_s29 }
 0x44c   :  { %v3679_v13 = vpop.f32.mrb[91].mxu0  ;;  %4006 = vrot.lane.b32.xlu1 %v11188_v26, %s8571_s29 }
 0x44d   :  { %v3720_v39 = vmul.f32 %v11149_v62, %v3669_v57  ;;  %v3672_v34 = vadd.f32 %v8269_v19, %v3575_v38  ;;  %v7879_v35 = vpop.f32.mrb[64].mxu1  ;;  %v11225_v57 = vsel %vm186_vm1, %v11209_v41, %v3877_v56  ;;  %v13962_v19 = vld [vmem:[#allocation14_spill] sm:$0xff] }
 0x44e   :  { %v7880_v42 = vpop.f32.mrb[65].mxu1  ;;  %13961 = vst [vmem:[#allocation92_spill] sm:$0xff] %v11225_v57  ;;  %v3757_v38 = vadd.f32 %v3741_v60, %v13962_v19  ;;  %v3742_v60 = vadd.f32 %v11155_v45, %v3719_v29  ;;  %v13970_v29 = vld [vmem:[#allocation17_spill] sm:$0xff] }
 0x44f   :  { %v3743_v50 = vadd.f32 %v11155_v45, %v3720_v39  ;;  %v3721_v20 = vmul.f32 %v11149_v62, %v3672_v34  ;;  %v7881_v2 = vadd.f32 %v7880_v42, %v7879_v35  ;;  %v7882_v48 = vpop.f32.mrb[66].mxu1  ;;  %3907 = vrot.lane.b32.xlu0 %v11225_v57, %s8571_s29  ;;  %v13965_v39 = vld [vmem:[#allocation12_spill] sm:$0xff] }
 0x450   :  { %v7883_v30 = vpop.f32.mrb[67].mxu1  ;;  %3909 = vrot.lane.b32.xlu1 %v11233_v23, %s8571_s29 }
 0x451   :  { %v3759_v4 = vadd.f32 %v3743_v50, %v13965_v39  ;;  %v3744_v34 = vadd.f32 %v11155_v45, %v3721_v20  ;;  %v3580_v35 = vadd.f32 %v7881_v2, %v11108_v14  ;;  %v7884_v42 = vadd.f32 %v7883_v30, %v7882_v48  ;;  %v11241_v19 = vpop.f32.mrb[92].mxu0  ;;  %v8481_v14 = vld [vmem:[%s13261_s8 + $0x190] sm:$0xff]  }
 0x452   :  { %v3692_v50 = vpop.f32.mrb[93].mxu0  ;;  %v11252_v48 = vsel %vm186_vm1, %v11186_v47, %v11209_v41  ;;  %v3758_v20 = vadd.f32 %v3742_v60, %v13970_v29  ;;  %7927 = vmatprep.subr.bf16.mxu1 %v8481_v14  ;;  %v14011_v47 = vld [vmem:[#allocation71_spill] sm:$0xff] }
 0x453   :  { %v11243_v52 = vmax.f32 %v3759_v4, 0.0  ;;  %v3760_v40 = vadd.f32 %v3744_v34, %v13967_v32  ;;  %v3677_v31 = vadd.f32 %v3676_v27, %v3580_v35  ;;  %v3583_v56 = vadd.f32 %v7884_v42, %v11110_v36  ;;  %v11247_v39 = vpop.f32.mrb[94].mxu0  ;;  %13968 = vst [vmem:[#allocation78_spill] sm:$0xff] %v11252_v48  ;;  %v8482_v4 = vld [vmem:[%s13261_s8 + $0x150] sm:$0xff]  }
 0x454   :  { %v11260_v32 = vmax.f32 %v3757_v38, 0.0  ;;  %v3695_v36 = vpop.f32.mrb[95].mxu0  ;;  %3905 = vrot.lane.b32.xlu1 %v11252_v48, %s8571_s29  ;;  %7928 = vmatpush3.bf16.msra.mxu1 %v8482_v4  ;;  %v11280_v14 = vmax.f32 %v3758_v20, 0.0 }
 0x455   :  { %13966 = vst [vmem:[#allocation80_spill] sm:$0xff] %v11243_v52  ;;  %v3680_v27 = vadd.f32 %v3679_v13, %v3583_v56  ;;  %4012 = vrot.lane.b32.xlu0 %v11243_v52, %s8571_s29  ;;  %v7885_v30 = vpop.f32.mrb[68].mxu1  ;;  %v11267_v34 = vmax.f32 %v3760_v40, 0.0  ;;  %v3722_v38 = vmul.f32 %v11149_v62, %v3677_v31  ;;  %v8483_v56 = vld [vmem:[%s13261_s8 + $0x198] sm:$0xff]  }
 0x456   :  { %13969 = vst [vmem:[#allocation21_spill] sm:$0xff] %v11260_v32  ;;  %v7886_v2 = vpop.f32.mrb[69].mxu1  ;;  %v3881_v40 = vrot.slane %v11260_v32, 1  ;;  %13972 = vst [vmem:[#allocation60_spill] sm:$0xff] %v11280_v14  ;;  %7929 = vmatprep.subr.bf16.mxu1 %v8483_v56 }
 0x457   :  { %13971 = vst [vmem:[#allocation26_spill] sm:$0xff] %v11267_v34  ;;  %v7887_v35 = vadd.f32 %v7886_v2, %v7885_v30  ;;  %v7888_v42 = vpop.f32.mrb[70].mxu1  ;;  %v3745_v30 = vadd.f32 %v11155_v45, %v3722_v38  ;;  %v3887_v2 = vrot.slane %v11267_v34, 1 }
 0x458   :  { %v7889_v13 = vpop.f32.mrb[71].mxu1  ;;  %4014 = vrot.lane.b32.xlu1 %v11267_v34, %s8571_s29  ;;  %7930 = vmatpush3.bf16.msra.mxu1 %v8484_v15  ;;  %v3723_v15 = vmul.f32 %v11149_v62, %v3680_v27 }
 0x459   :  { %v3588_v60 = vadd.f32 %v7887_v35, %v11118_v7  ;;  %v7890_v29 = vadd.f32 %v7889_v13, %v7888_v42  ;;  %4008 = vrot.lane.b32.xlu0 %v11260_v32, %s8571_s29  ;;  %v3885_v7 = vrot.slane %v11243_v52, 1  ;;  %v13973_v42 = vrot.slane %v11188_v26, 1 }
 0x45a   :  { %v3883_v13 = vrot.slane %v11280_v14, 1 }
 0x45b   :  { %v3685_v31 = vadd.f32 %v11202_v17, %v3588_v60  ;;  %v3591_v4 = vadd.f32 %v7890_v29, %v11120_v51  ;;  %v11296_v17 = vsel %vm186_vm1, %v13973_v42, %v3881_v40  ;;  %v11306_v42 = vsel %vm186_vm1, %v3885_v7, %v3887_v2 }
 0x45c   :  { %4010 = vrot.lane.b32.xlu1 %v11280_v14, %s8571_s29  ;;  %13974 = vst [vmem:[#allocation74_spill] sm:$0xff] %v11296_v17  ;;  %13976 = vst [vmem:[#allocation27_spill] sm:$0xff] %v11306_v42  ;;  %v11309_v27 = vsel %vm186_vm1, %v3883_v13, %v3885_v7 }
 0x45d   :  { %v3724_v35 = vmul.f32 %v11149_v62, %v3685_v31  ;;  %v3688_v20 = vadd.f32 %v11212_v1, %v3591_v4  ;;  %v7891_v51 = vpop.f32.mrb[72].mxu1  ;;  %3911 = vrot.lane.b32.xlu0 %v11296_v17, %s8571_s29  ;;  %v13975_v31 = vld [vmem:[#allocation22_spill] sm:$0xff]  ;;  %13977 = vst [vmem:[#allocation31_spill] sm:$0xff] %v11309_v27 }
 0x45e   :  { %v7892_v38 = vpop.f32.mrb[73].mxu1  ;;  %v3761_v4 = vadd.f32 %v3745_v30, %v13975_v31 }
 0x45f   :  { %v3747_v56 = vadd.f32 %v11155_v45, %v3724_v35  ;;  %v3725_v1 = vmul.f32 %v11149_v62, %v3688_v20  ;;  %v7893_v60 = vadd.f32 %v7892_v38, %v7891_v51  ;;  %v7894_v29 = vpop.f32.mrb[74].mxu1  ;;  %v3746_v20 = vadd.f32 %v11155_v45, %v3723_v15  ;;  %v13980_v51 = vld [vmem:[#allocation24_spill] sm:$0xff] }
 0x460   :  { %v7895_v54 = vpop.f32.mrb[75].mxu1  ;;  %3917 = vrot.lane.b32.xlu1 %v11306_v42, %s8571_s29 }
 0x461   :  { %v3763_v46 = vadd.f32 %v3747_v56, %v13978_v5  ;;  %v3748_v11 = vadd.f32 %v11155_v45, %v3725_v1  ;;  %v3596_v8 = vadd.f32 %v7893_v60, %v11128_v16  ;;  %v7896_v35 = vadd.f32 %v7895_v54, %v7894_v29  ;;  %3915 = vrot.lane.b32.xlu0 %v11309_v27, %s8571_s29 }
 0x462   :  { %v11323_v56 = vmax.f32 %v3761_v4, 0.0  ;;  %v11326_v16 = vsel %vm186_vm1, %v3881_v40, %v3883_v13 }
 0x463   :  { %v11319_v30 = vmax.f32 %v3763_v46, 0.0  ;;  %v3764_v7 = vadd.f32 %v3748_v11, %v13980_v51  ;;  %v3693_v38 = vadd.f32 %v3692_v50, %v3596_v8  ;;  %v3599_v5 = vadd.f32 %v7896_v35, %v11130_v37  ;;  %13982 = vst [vmem:[#allocation128_spill] sm:$0xff] %v11326_v16  ;;  %v11333_v46 = vld [vmem:[%s13261_s8 + $0x220] sm:$0xff]  }
 0x464   :  { %13981 = vst [vmem:[#allocation29_spill] sm:$0xff] %v11323_v56  ;;  %3913 = vrot.lane.b32.xlu1 %v11326_v16, %s8571_s29  ;;  %v13983_v11 = vld [vmem:[#allocation25_spill] sm:$0xff]  ;;  %8278 = vmatprep.subr.bf16.mxu1 %v11333_v46  ;;  %v3889_v1 = vrot.slane %v11323_v56, 1 }
 0x465   :  { %13979 = vst [vmem:[#allocation82_spill] sm:$0xff] %v11319_v30  ;;  %v3696_v54 = vadd.f32 %v3695_v36, %v3599_v5  ;;  %v7897_v15 = vpop.f32.mrb[76].mxu1  ;;  %4020 = vrot.lane.b32.xlu0 %v11319_v30, %s8571_s29  ;;  %v3762_v37 = vadd.f32 %v3746_v20, %v13983_v11  ;;  %v11338_v50 = vmax.f32 %v3764_v7, 0.0  ;;  %v3726_v60 = vmul.f32 %v11149_v62, %v3693_v38 }
 0x466   :  { %v7898_v8 = vpop.f32.mrb[77].mxu1  ;;  %v11353_v51 = vsel %vm186_vm1, %v3887_v2, %v3889_v1 }
 0x467   :  { %13984 = vst [vmem:[#allocation77_spill] sm:$0xff] %v11338_v50  ;;  %v7899_v40 = vadd.f32 %v7898_v8, %v7897_v15  ;;  %v7900_v13 = vpop.f32.mrb[78].mxu1  ;;  %v11348_v4 = vmax.f32 %v3762_v37, 0.0  ;;  %13986 = vst [vmem:[#allocation76_spill] sm:$0xff] %v11353_v51  ;;  %v3895_v7 = vrot.slane %v11338_v50, 1  ;;  %v3893_v15 = vrot.slane %v11319_v30, 1 }
 0x468   :  { %v7901_v36 = vpop.f32.mrb[79].mxu1  ;;  %4022 = vrot.lane.b32.xlu1 %v11338_v50, %s8571_s29 }
 0x469   :  { %v3604_v29 = vadd.f32 %v7899_v40, %v11141_v0  ;;  %v7902_v31 = vadd.f32 %v7901_v36, %v7900_v13  ;;  %4016 = vrot.lane.b32.xlu0 %v11323_v56, %s8571_s29  ;;  %13985 = vst [vmem:[#allocation34_spill] sm:$0xff] %v11348_v4  ;;  %v3749_v0 = vadd.f32 %v11155_v45, %v3726_v60  ;;  %v3891_v8 = vrot.slane %v11348_v4, 1  ;;  %v13989_v40 = vld [vmem:[#allocation28_spill] sm:$0xff] }
 0x46a   :  { %v11369_v11 = vsel %vm186_vm1, %v3893_v15, %v3895_v7  ;;  %v8487_v60 = vld [vmem:[%s13261_s8 + $0x1a0] sm:$0xff]  }
 0x46b   :  { %v3701_v35 = vadd.f32 %v11241_v19, %v3604_v29  ;;  %v3607_v20 = vadd.f32 %v7902_v31, %v11143_v10  ;;  %v3727_v10 = vmul.f32 %v11149_v62, %v3696_v54  ;;  %13987 = vst [vmem:[#allocation75_spill] sm:$0xff] %v11369_v11  ;;  %v11377_v54 = vsel %vm186_vm1, %v3891_v8, %v3893_v15 }
 0x46c   :  { %4018 = vrot.lane.b32.xlu1 %v11348_v4, %s8571_s29  ;;  %13990 = vst [vmem:[#allocation35_spill] sm:$0xff] %v11377_v54 }
 0x46d   :  { %v3728_v38 = vmul.f32 %v11149_v62, %v3701_v35  ;;  %v3704_v5 = vadd.f32 %v11247_v39, %v3607_v20  ;;  %3919 = vrot.lane.b32.xlu0 %v11353_v51, %s8571_s29  ;;  %v13988_v39 = vld [vmem:[#allocation30_spill] sm:$0xff]  ;;  %v3750_v29 = vadd.f32 %v11155_v45, %v3727_v10  ;;  %v11391_v35 = vsel %vm186_vm1, %v3889_v1, %v3891_v8 }
 0x46e   :  { %v3765_v37 = vadd.f32 %v3749_v0, %v13988_v39  ;;  %13992 = vst [vmem:[#allocation57_spill] sm:$0xff] %v11391_v35  ;;  %v8488_v20 = vld [vmem:[%s13261_s8 + $0x1e8] sm:$0xff]   ;;  %v11414_v10 = vrot.slane %v11183_v28, 2  ;;  %v11430_v8 = vrot.slane %v11177_v9, 2 }
 0x46f   :  { %v3751_v19 = vadd.f32 %v11155_v45, %v3728_v38  ;;  %v3729_v2 = vmul.f32 %v11149_v62, %v3704_v5  ;;  %v8486_v62 = vld [vmem:[%s13261_s8 + $0x1e0] sm:$0xff]   ;;  %v8489_v0 = vld [vmem:[%s13261_s8 + $0x1a8] sm:$0xff]  }
 0x470   :  { %3925 = vrot.lane.b32.xlu1 %v11369_v11, %s8571_s29  ;;  %7979 = vmatprep.subr.bf16.mxu0 %v8486_v62  ;;  %v11399_v38 = vmax.f32 %v3765_v37, 0.0  ;;  %v11435_v39 = vsel %vm185_vm0, %v11430_v8, %v11414_v10  ;;  %v8495_v62 = vld [vmem:[%s13261_s8 + $0x200] sm:$0xff]  }
 0x471   :  { %v3767_v13 = vadd.f32 %v3751_v19, %v13989_v40  ;;  %v3752_v36 = vadd.f32 %v11155_v45, %v3729_v2  ;;  %3923 = vrot.lane.b32.xlu0 %v11377_v54, %s8571_s29  ;;  %7980 = vmatpush3.bf16.msra.mxu0 %v8487_v60  ;;  %v13994_v45 = vld [vmem:[#allocation33_spill] sm:$0xff]  ;;  %v8491_v19 = vld [vmem:[%s13261_s8 + $0x1f0] sm:$0xff]   ;;  %v8494_v40 = vld [vmem:[%s13261_s8 + $0x1b8] sm:$0xff]   ;;  %v3972_v54 = vrot.slane %v11319_v30, 2 }
 0x472   :  { %13993 = vst [vmem:[#allocation63_spill] sm:$0xff] %v11399_v38  ;;  %7981 = vmatprep.subr.bf16.mxu0 %v8488_v20  ;;  %v3766_v1 = vadd.f32 %v3750_v29, %v13994_v45  ;;  %v3897_v5 = vrot.slane %v11399_v38, 1  ;;  %v8492_v2 = vld [vmem:[%s13261_s8 + $0x1b0] sm:$0xff]   ;;  %v8496_v60 = vld [vmem:[%s13261_s8 + $0x1c0] sm:$0xff]   ;;  %v3958_v20 = vrot.slane %v11188_v26, 2  ;;  %v3956_v45 = vrot.slane %v11168_v55, 2 }
 0x473   :  { %v11388_v31 = vmax.f32 %v3767_v13, 0.0  ;;  %v3976_v51 = vrot.slane %v11399_v38, 2 }
 0x474   :  { %3921 = vrot.lane.b32.xlu1 %v11391_v35, %s8571_s29  ;;  %v11411_v15 = vmax.f32 %v3766_v1, 0.0  ;;  %v13999_v1 = vld [vmem:[#allocation36_spill] sm:$0xff] }
 0x475   :  { %13991 = vst [vmem:[#allocation79_spill] sm:$0xff] %v11388_v31  ;;  %4028 = vrot.lane.b32.xlu0 %v11388_v31, %s8571_s29  ;;  %7982 = vmatpush3.bf16.msra.mxu0 %v8489_v0  ;;  %v11447_v13 = vrot.slane %v11388_v31, 1  ;;  %v3980_v42 = vrot.slane %v11388_v31, 2 }
 0x476   :  { %13995 = vst [vmem:[#allocation81_spill] sm:$0xff] %v11411_v15  ;;  %7983 = vmatprep.subr.bf16.mxu0 %v8491_v19  ;;  %v3899_v37 = vrot.slane %v11411_v15, 1  ;;  %v3768_v19 = vadd.f32 %v3752_v36, %v13999_v1  ;;  %v8500_v36 = vld [vmem:[%s13261_s8 + $0x210] sm:$0xff]   ;;  %v8502_v1 = vld [vmem:[%s13261_s8 + $0x218] sm:$0xff]  }
 0x478   :  { %4120 = vrot.lane.b32.xlu1 %v11209_v41, %s8571_s29  ;;  %v11425_v41 = vsel %vm186_vm1, %v3895_v7, %v3897_v5  ;;  %v8493_v7 = vld [vmem:[%s13261_s8 + $0x1f8] sm:$0xff]   ;;  %v11458_v29 = vsel %vm186_vm1, %v3897_v5, %v3899_v37  ;;  %v11465_v0 = vsel %vm186_vm1, %v3899_v37, %v11447_v13  ;;  %v11472_v5 = vsel %vm185_vm0, %v3956_v45, %v3958_v20  ;;  %v8498_v37 = vld [vmem:[%s13261_s8 + $0x1c8] sm:$0xff]  }
 0x479   :  { %4024 = vrot.lane.b32.xlu0 %v11399_v38, %s8571_s29  ;;  %13996 = vst [vmem:[#allocation32_spill] sm:$0xff] %v11425_v41  ;;  %7984 = vmatpush3.bf16.msra.mxu0 %v8492_v2  ;;  %13997 = vst [vmem:[#allocation6_spill] sm:$0xff] %v11458_v29  ;;  %v8497_v2 = vld [vmem:[%s13261_s8 + $0x208] sm:$0xff]  }
 0x47a   :  { %7985 = vmatprep.subr.bf16.mxu0 %v8493_v7  ;;  %13998 = vst [vmem:[#allocation7_spill] sm:$0xff] %v11465_v0  ;;  %v11484_v7 = vsel %vm185_vm0, %v11414_v10, %v3956_v45  ;;  %v3960_v45 = vrot.slane %v11260_v32, 2 }
 0x47c   :  { %4026 = vrot.lane.b32.xlu1 %v11411_v15, %s8571_s29 }
 0x47d   :  { %3927 = vrot.lane.b32.xlu0 %v11425_v41, %s8571_s29  ;;  %7986 = vmatpush3.bf16.msra.mxu0 %v8494_v40  ;;  %v8501_v40 = vld [vmem:[%s13261_s8 + $0x1d0] sm:$0xff]   ;;  %v3970_v41 = vrot.slane %v11348_v4, 2 }
 0x47e   :  { %7987 = vmatprep.subr.bf16.mxu0 %v8495_v62  ;;  %v11494_v62 = vmax.f32 %v3768_v19, 0.0  ;;  %v8503_v19 = vld [vmem:[%s13261_s8 + $0x1d8] sm:$0xff]  }
 0x47f   :  { %v11551_v11 = vsel %vm185_vm0, %v3970_v41, %v3972_v54 }
 0x480   :  { %4070 = vrot.lane.b32.xlu1 %v11435_v39, %s8571_s29  ;;  %14000 = vst [vmem:[#allocation10_spill] sm:$0xff] %v11494_v62 }
 0x481   :  { %4068 = vrot.lane.b32.xlu0 %v11430_v8, %s8571_s29  ;;  %7988 = vmatpush3.bf16.msra.mxu0 %v8496_v60  ;;  %v3962_v60 = vrot.slane %v11280_v14, 2 }
 0x482   :  { %7989 = vmatprep.subr.bf16.mxu0 %v8497_v2 }
 0x483   :  { %v11509_v2 = vsel %vm185_vm0, %v3960_v45, %v3962_v60 }
 0x484   :  { %3929 = vrot.lane.b32.xlu1 %v11458_v29, %s8571_s29 }
 0x485   :  { %3931 = vrot.lane.b32.xlu0 %v11465_v0, %s8571_s29  ;;  %7990 = vmatpush3.bf16.msra.mxu0 %v8498_v37  ;;  %v3966_v37 = vrot.slane %v11267_v34, 2  ;;  %v3964_v0 = vrot.slane %v11243_v52, 2 }
 0x486   :  { %7991 = vmatprep.subr.bf16.mxu0 %v8500_v36  ;;  %v11515_v36 = vsel %vm185_vm0, %v3958_v20, %v3960_v45  ;;  %v3968_v20 = vrot.slane %v11323_v56, 2 }
 0x488   :  { %4074 = vrot.lane.b32.xlu1 %v11472_v5, %s8571_s29  ;;  %v11533_v45 = vsel %vm185_vm0, %v3968_v20, %v3970_v41  ;;  %v11539_v29 = vsel %vm185_vm0, %v3966_v37, %v3968_v20  ;;  %v11560_v20 = vrot.slane %v11494_v62, 1  ;;  %v3982_v41 = vrot.slane %v11494_v62, 2 }
 0x489   :  { %4072 = vrot.lane.b32.xlu0 %v11484_v7, %s8571_s29  ;;  %7992 = vmatpush3.bf16.msra.mxu0 %v8501_v40  ;;  %v11521_v40 = vsel %vm185_vm0, %v3964_v0, %v3966_v37 }
 0x48a   :  { %7993 = vmatprep.subr.bf16.mxu0 %v8502_v1  ;;  %v11527_v1 = vsel %vm185_vm0, %v3962_v60, %v3964_v0  ;;  %v3978_v60 = vrot.slane %v11411_v15, 2  ;;  %14002 = vst [vmem:[#allocation14_spill] sm:$0xff] %v11560_v20  ;;  %v11577_v27 = vsel %vm186_vm1, %v11447_v13, %v11560_v20 }
 0x48b   :  { %14003 = vst [vmem:[#allocation12_spill] sm:$0xff] %v11577_v27 }
 0x48c   :  { %3933 = vrot.lane.b32.xlu1 %v11447_v13, %s8571_s29  ;;  %v11557_v37 = vsel %vm185_vm0, %v3976_v51, %v3978_v60 }
 0x48d   :  { %4030 = vrot.lane.b32.xlu0 %v11494_v62, %s8571_s29  ;;  %7994 = vmatpush3.bf16.msra.mxu0 %v8503_v19  ;;  %v3974_v19 = vrot.slane %v11338_v50, 2  ;;  %14001 = vst [vmem:[#allocation8_spill] sm:$0xff] %v11557_v37 }
 0x48f   :  { %v11545_v0 = vsel %vm185_vm0, %v3972_v54, %v3974_v19  ;;  %v11565_v35 = vsel %vm185_vm0, %v3974_v19, %v3976_v51  ;;  %v4119_v54 = vsel %vm186_vm1, %v11560_v20, %v13960_v12  ;;  %v11583_v51 = vsel %vm185_vm0, %v3980_v42, %v3982_v41 }
 0x490   :  { %4078 = vrot.lane.b32.xlu1 %v11509_v2, %s8571_s29  ;;  %14004 = vst [vmem:[#allocation16_spill] sm:$0xff] %v11583_v51  ;;  %v11588_v19 = vsel %vm185_vm0, %v3978_v60, %v3980_v42 }
 0x491   :  { %4076 = vrot.lane.b32.xlu0 %v11515_v36, %s8571_s29 }
 0x494   :  { %4082 = vrot.lane.b32.xlu1 %v11521_v40, %s8571_s29 }
 0x495   :  { %4080 = vrot.lane.b32.xlu0 %v11527_v1, %s8571_s29 }
 0x498   :  { %4086 = vrot.lane.b32.xlu1 %v11533_v45, %s8571_s29 }
 0x499   :  { %4084 = vrot.lane.b32.xlu0 %v11539_v29, %s8571_s29 }
 0x49c   :  { %4090 = vrot.lane.b32.xlu1 %v11545_v0, %s8571_s29 }
 0x49d   :  { %4088 = vrot.lane.b32.xlu0 %v11551_v11, %s8571_s29 }
 0x4a0   :  { %4094 = vrot.lane.b32.xlu1 %v11557_v37, %s8571_s29 }
 0x4a1   :  { %4092 = vrot.lane.b32.xlu0 %v11565_v35, %s8571_s29 }
 0x4a4   :  { %4124 = vrot.lane.b32.xlu1 %v4119_v54, %s8571_s29  ;;  %v14005_v54 = vld [vmem:[#allocation38_spill] sm:$0xff] }
 0x4a5   :  { %4122 = vrot.lane.b32.xlu0 %v11577_v27, %s8571_s29  ;;  %v11594_v13 = vsel %vm185_vm0, %v3982_v41, %v14005_v54  ;;  %v3953_v42 = vsel %vm185_vm0, %v14005_v54, %v11430_v8  ;;  %v14008_v41 = vld [vmem:[#allocation72_spill] sm:$0xff]  ;;  %v14012_v54 = vld [vmem:[#allocation41_spill] sm:$0xff] }
 0x4a6   :  { %14006 = vst [vmem:[#allocation17_spill] sm:$0xff] %v11594_v13 }
 0x4a8   :  { %4098 = vrot.lane.b32.xlu1 %v11583_v51, %s8571_s29 }
 0x4a9   :  { %4096 = vrot.lane.b32.xlu0 %v11588_v19, %s8571_s29 }
 0x4ad   :  { %4100 = vrot.lane.b32.xlu0 %v11594_v13, %s8571_s29  ;;  %v14009_v13 = vld [vmem:[#allocation68_spill] sm:$0xff] }
 0x4b6   :  { %v4005_v12 = vpop.permute.xlu1 %4004 }
 0x4b7   :  { %v4149_v20 = vsel %vm708_vm3, %v11484_v7, %v4005_v12  ;;  %v14010_v12 = vld [vmem:[#allocation66_spill] sm:$0xff] }
 0x4b8   :  { %v4197_v17 = vmul.f32 %v4149_v20, %v14007_v33  ;;  %v4200_v20 = vmul.f32 %v11515_v36, %v14012_v54 }
 0x4b9   :  { %v4003_v27 = vpop.permute.xlu0 %4002 }
 0x4ba   :  { %v4148_v62 = vsel %vm708_vm3, %v11435_v39, %v4003_v27  ;;  %v4001_v60 = vpop.permute.xlu1 %4000 }
 0x4bb   :  { %v4192_v16 = vmul.f32 %v4148_v62, %v14008_v41  ;;  %v4147_v51 = vsel %vm708_vm3, %v3953_v42, %v4001_v60 }
 0x4bc   :  { %v4187_v31 = vmul.f32 %v4147_v51, %v14009_v13  ;;  %v14013_v51 = vld [vmem:[#allocation40_spill] sm:$0xff] }
 0x4bd   :  { %v4270_v57 = vpack.c.bf16 %v4197_v17, %v4192_v16  ;;  %v3904_v23 = vpop.permute.xlu0 %3903  ;;  %v4195_v17 = vmul.f32 %v11472_v5, %v14013_v51 }
 0x4be   :  { %v4265_v15 = vpack.c.bf16 %v4187_v31, %v14010_v12  ;;  %v4131_v38 = vsel %vm708_vm3, 0.0, %v3904_v23  ;;  %v4007_v27 = vpop.permute.xlu1 %4006  ;;  %v14014_v23 = vld [vmem:[#allocation37_spill] sm:$0xff] }
 0x4bf   :  { %v4333_v39 = vshrl.u32 %v4270_v57, 16  ;;  %v4336_v61 = vshll.u32 %v4270_v57, 16  ;;  %v4186_v8 = vmul.f32 %v4131_v38, %v14011_v47  ;;  %v4185_v13 = vmul.f32 %v11414_v10, %v14014_v23  ;;  %v14015_v57 = vld [vmem:[#allocation39_spill] sm:$0xff]  ;;  %v14016_v47 = vld [vmem:[#allocation64_spill] sm:$0xff] }
 0x4c0   :  { %v4325_v33 = vshrl.u32 %v4265_v15, 16  ;;  %v4328_v62 = vshll.u32 %v4265_v15, 16  ;;  %v4190_v38 = vmul.f32 %v11484_v7, %v14015_v57  ;;  %v4273_v54 = vpack.c.bf16 %v4200_v20, %v4195_v17 }
 0x4c1   :  { %v4335_v41 = vrot.slane %v4333_v39, 3  ;;  %v4338_v42 = vrot.slane %v4336_v61, 4  ;;  %v3908_v60 = vpop.permute.xlu0 %3907  ;;  %v4264_v48 = vpack.c.bf16 %v4186_v8, %v14016_v47  ;;  %v14017_v39 = vld [vmem:[#allocation43_spill] sm:$0xff] }
 0x4c2   :  { %v4327_v16 = vrot.slane %v4325_v33, 3  ;;  %v4330_v31 = vrot.slane %v4328_v62, 4  ;;  %v3910_v12 = vpop.permute.xlu1 %3909  ;;  %v11625_v61 = vsel %vm708_vm3, %v11183_v28, %v3908_v60  ;;  %v4210_v33 = vmul.f32 %v11527_v1, %v14017_v39  ;;  %v14019_v60 = vld [vmem:[#allocation83_spill] sm:$0xff] }
 0x4c3   :  { %v11621_v15 = vor.u32 %v4338_v42, %v4335_v41  ;;  %v4268_v23 = vpack.c.bf16 %v4190_v38, %v4185_v13  ;;  %v4308_v7 = vshrl.u32 %v4264_v48, 16  ;;  %v4311_v57 = vshll.u32 %v4264_v48, 16  ;;  %v14018_v41 = vld [vmem:[#allocation42_spill] sm:$0xff] }
 0x4c4   :  { %v4331_v50 = vor.u32 %v4330_v31, %v4327_v16  ;;  %v4205_v20 = vmul.f32 %v11509_v2, %v14018_v41  ;;  %v4384_v42 = vshrl.u32 %v4273_v54, 16  ;;  %v4196_v17 = vmul.f32 %v11625_v61, %v14019_v60  ;;  %v14020_v16 = vld [vmem:[#allocation87_spill] sm:$0xff] }
 0x4c5   :  { %v4387_v28 = vshll.u32 %v4273_v54, 16  ;;  %v4376_v38 = vshrl.u32 %v4268_v23, 16  ;;  %v4313_v39 = vrot.slane %v4311_v57, 4 }
 0x4c6   :  { %v3906_v62 = vpop.permute.xlu1 %3905  ;;  %v4340_v10 = vsel %vm1213_vm4, %v4331_v50, %v11621_v15  ;;  %v4278_v47 = vpack.c.bf16 %v4210_v33, %v4205_v20  ;;  %v4150_v50 = vsel %vm708_vm3, %v11472_v5, %v4007_v27  ;;  %v4386_v37 = vrot.slane %v4384_v42, 3  ;;  %v14022_v5 = vld [vmem:[#allocation90_spill] sm:$0xff] }
 0x4c7   :  { %v4013_v51 = vpop.permute.xlu0 %4012  ;;  %v4132_v8 = vsel %vm708_vm3, %v11177_v9, %v3906_v62  ;;  %4995 = vmatprep.mubr.bf16.mxu1 %v4340_v10  ;;  %v4379_v62 = vshll.u32 %v4268_v23, 16  ;;  %v4310_v10 = vrot.slane %v4308_v7, 3  ;;  %v4389_v20 = vrot.slane %v4387_v28, 4  ;;  %v14024_v28 = vld [vmem:[#allocation94_spill] sm:$0xff] }
 0x4c8   :  { %v4191_v31 = vmul.f32 %v4132_v8, %v14020_v16  ;;  %v14021_v8 = vld [vmem:[#allocation69_spill] sm:$0xff]  ;;  %v4153_v33 = vsel %vm708_vm3, %v11527_v1, %v4013_v51  ;;  %v11650_v23 = vsel %vm708_vm3, %v11168_v55, %v3910_v12 }
 0x4c9   :  { %v4202_v54 = vmul.f32 %v4150_v50, %v14021_v8  ;;  %v4314_v16 = vor.u32 %v4313_v39, %v4310_v10  ;;  %v14023_v1 = vld [vmem:[#allocation89_spill] sm:$0xff] }
 0x4ca   :  { %v4269_v13 = vpack.c.bf16 %v4196_v17, %v4191_v31  ;;  %v11640_v48 = vpop.permute.xlu1 %4014  ;;  %v4429_v17 = vshrl.u32 %v4278_v47, 16  ;;  %v4217_v51 = vmul.f32 %v4153_v33, %v14023_v1  ;;  %v14025_v55 = vld [vmem:[#allocation85_spill] sm:$0xff]  ;;  %v11672_v1 = vor.u32 %v4389_v20, %v4386_v37 }
 0x4cb   :  { %v4009_v63 = vpop.permute.xlu0 %4008  ;;  %v14026_v39 = vld [vmem:[#allocation93_spill] sm:$0xff] }
 0x4cc   :  { %v4316_v41 = vshrl.u32 %v4269_v13, 16  ;;  %v4319_v30 = vshll.u32 %v4269_v13, 16  ;;  %v4151_v60 = vsel %vm708_vm3, %v11515_v36, %v4009_v63  ;;  %v4432_v13 = vshll.u32 %v4278_v47, 16 }
 0x4cd   :  { %v4207_v27 = vmul.f32 %v4151_v60, %v14022_v5 }
 0x4ce   :  { %v4318_v57 = vrot.slane %v4316_v41, 3  ;;  %v4321_v7 = vrot.slane %v4319_v30, 4  ;;  %v4011_v31 = vpop.permute.xlu1 %4010  ;;  %v4201_v30 = vmul.f32 %v11650_v23, %v14025_v55  ;;  %v4434_v5 = vrot.slane %v4432_v13, 4 }
 0x4cf   :  { %v4275_v63 = vpack.c.bf16 %v4207_v27, %v4202_v54  ;;  %v4152_v36 = vsel %vm708_vm3, %v11509_v2, %v4011_v31  ;;  %v3912_v42 = vpop.permute.xlu0 %3911  ;;  %v8490_v2 = vld [vmem:[%s13261_s8 + $0x228] sm:$0xff]   ;;  %v4378_v31 = vrot.slane %v4376_v38, 3  ;;  %v8499_v38 = vld [vmem:[%s13261_s8 + $0x230] sm:$0xff]  }
 0x4d0   :  { %v11654_v50 = vor.u32 %v4321_v7, %v4318_v57  ;;  %v4212_v60 = vmul.f32 %v4152_v36, %v14024_v28  ;;  %v4135_v12 = vsel %vm708_vm3, %v11188_v26, %v3912_v42  ;;  %v14027_v54 = vld [vmem:[#allocation46_spill] sm:$0xff]  ;;  %v14028_v36 = vld [vmem:[#allocation45_spill] sm:$0xff]  ;;  %v4381_v28 = vrot.slane %v4379_v62, 4 }
 0x4d1   :  { %v4402_v41 = vshrl.u32 %v4275_v63, 16  ;;  %v4405_v47 = vshll.u32 %v4275_v63, 16  ;;  %v4206_v10 = vmul.f32 %v4135_v12, %v14026_v39  ;;  %v4220_v27 = vmul.f32 %v11539_v29, %v14027_v54 }
 0x4d2   :  { %v4280_v33 = vpack.c.bf16 %v4217_v51, %v4212_v60  ;;  %v3918_v57 = vpop.permute.xlu1 %3917  ;;  %v4323_v7 = vsel %vm1213_vm4, %v4314_v16, %v11654_v50  ;;  %v4215_v42 = vmul.f32 %v11521_v40, %v14028_v36  ;;  %v4431_v39 = vrot.slane %v4429_v17, 3 }
 0x4d3   :  { %v4274_v26 = vpack.c.bf16 %v4206_v10, %v4201_v30  ;;  %v3916_v63 = vpop.permute.xlu0 %3915  ;;  %4996 = vmatmul.mubr.bf16.vlgmr.msra.gmra.mrb[80].mxu1 %v4323_v7  ;;  %v4404_v51 = vrot.slane %v4402_v41, 3  ;;  %v4407_v60 = vrot.slane %v4405_v47, 4 }
 0x4d4   :  { %v4447_v55 = vshrl.u32 %v4280_v33, 16  ;;  %v4450_v8 = vshll.u32 %v4280_v33, 16  ;;  %8279 = vmatpush3.bf16.msra.mxu1 %v11333_v46  ;;  %v4283_v30 = vpack.c.bf16 %v4220_v27, %v4215_v42  ;;  %v11680_v37 = vsel %vm708_vm3, %v11280_v14, %v3916_v63  ;;  %v14029_v27 = vld [vmem:[#allocation101_spill] sm:$0xff] }
 0x4d5   :  { %v4393_v54 = vshrl.u32 %v4274_v26, 16  ;;  %v4396_v16 = vshll.u32 %v4274_v26, 16  ;;  %8280 = vmatprep.subr.bf16.mxu1 %v8490_v2  ;;  %v4230_v46 = vmul.f32 %v11551_v11, %v13874_v24  ;;  %v4382_v26 = vor.u32 %v4381_v28, %v4378_v31 }
 0x4d6   :  { %v4449_v10 = vrot.slane %v4447_v55, 3  ;;  %v4452_v62 = vrot.slane %v4450_v8, 4  ;;  %v3914_v20 = vpop.permute.xlu1 %3913  ;;  %v11684_v47 = vor.u32 %v4434_v5, %v4431_v39  ;;  %v4225_v33 = vmul.f32 %v11533_v45, %v13875_v43 }
 0x4d7   :  { %v4395_v17 = vrot.slane %v4393_v54, 3  ;;  %v4398_v13 = vrot.slane %v4396_v16, 4  ;;  %v4021_v41 = vpop.permute.xlu0 %4020  ;;  %v4136_v55 = vsel %vm708_vm3, %v11260_v32, %v3914_v20  ;;  %v4216_v8 = vmul.f32 %v11680_v37, %v13872_v6 }
 0x4d8   :  { %8281 = vmatpush3.bf16.msra.mxu1 %v8490_v2  ;;  %v4211_v7 = vmul.f32 %v4136_v55, %v14029_v27  ;;  %v4408_v42 = vor.u32 %v4407_v60, %v4404_v51  ;;  %v11695_v54 = vsel %vm1213_vm4, %v4382_v26, %v11672_v1  ;;  %v4474_v5 = vshrl.u32 %v4283_v30, 16  ;;  %v8504_v26 = vld [vmem:[%s13261_s8 + $0x238] sm:$0xff]  }
 0x4d9   :  { %8282 = vmatprep.subr.bf16.mxu1 %v8499_v38  ;;  %v4154_v28 = vsel %vm708_vm3, %v11521_v40, %v11640_v48  ;;  %v4399_v31 = vor.u32 %v4398_v13, %v4395_v17  ;;  %v11702_v2 = vor.u32 %v4452_v62, %v4449_v10  ;;  %v4477_v63 = vshll.u32 %v4283_v30, 16  ;;  %v14030_v10 = vld [vmem:[#allocation91_spill] sm:$0xff]  ;;  %v14031_v13 = vld [vmem:[#allocation102_spill] sm:$0xff] }
 0x4da   :  { %v11700_v39 = vpop.permute.xlu1 %4022  ;;  %v11704_v16 = vpack.c.bf16 %v4230_v46, %v4225_v33  ;;  %v4279_v20 = vpack.c.bf16 %v4216_v8, %v4211_v7  ;;  %v4409_v51 = vsel %vm1213_vm4, %v11621_v15, %v4408_v42  ;;  %v4199_v14 = vmul.f32 %v4135_v12, %v13878_v21 }
 0x4db   :  { %v4017_v60 = vpop.permute.xlu0 %4016  ;;  %5003 = vmatprep.mubr.bf16.mxu1 %v4409_v51  ;;  %v4400_v48 = vsel %vm1213_vm4, %v11654_v50, %v4399_v31  ;;  %v4454_v30 = vsel %vm1213_vm4, %v4408_v42, %v11702_v2  ;;  %v4194_v15 = vmul.f32 %v11650_v23, %v13879_v25  ;;  %v4222_v62 = vmul.f32 %v4154_v28, %v14030_v10 }
 0x4dc   :  { %v4155_v40 = vsel %vm708_vm3, %v11539_v29, %v4017_v60  ;;  %v4438_v46 = vshrl.u32 %v4279_v20, 16  ;;  %v4441_v17 = vshll.u32 %v4279_v20, 16  ;;  %5004 = vmatmul.mubr.bf16.gmra.mrb[84].mxu1 %v4400_v48  ;;  %v4138_v12 = vsel %vm708_vm3, %v11243_v52, %v3918_v57  ;;  %v14033_v48 = vld [vmem:[#allocation107_spill] sm:$0xff] }
 0x4dd   :  { %v4157_v29 = vsel %vm708_vm3, %v11551_v11, %v4021_v41  ;;  %v4227_v33 = vmul.f32 %v4155_v40, %v14031_v13  ;;  %5011 = vmatprep.mubr.bf16.mxu1 %v4454_v30  ;;  %8283 = vmatpush3.bf16.msra.mxu1 %v8499_v38  ;;  %v4476_v8 = vrot.slane %v4474_v5, 3  ;;  %v4519_v7 = vshrl.u32 %v11704_v16, 16  ;;  %v14032_v41 = vld [vmem:[#allocation99_spill] sm:$0xff] }
 0x4de   :  { %v4019_v50 = vpop.permute.xlu1 %4018  ;;  %v4440_v23 = vrot.slane %v4438_v46, 3  ;;  %v4443_v42 = vrot.slane %v4441_v17, 4  ;;  %8284 = vmatprep.subr.bf16.mxu1 %v8504_v26  ;;  %v4479_v20 = vrot.slane %v4477_v63, 4  ;;  %v4272_v51 = vpack.c.bf16 %v4199_v14, %v4194_v15  ;;  %v14034_v46 = vld [vmem:[#allocation50_spill] sm:$0xff] }
 0x4df   :  { %v3920_v28 = vpop.permute.xlu0 %3919  ;;  %v4285_v60 = vpack.c.bf16 %v4227_v33, %v4222_v62  ;;  %v4156_v57 = vsel %vm708_vm3, %v11533_v45, %v4019_v50  ;;  %v4221_v40 = vmul.f32 %v4138_v12, %v14032_v41  ;;  %v4237_v38 = vmul.f32 %v4157_v29, %v13881_v59 }
 0x4e0   :  { %v4139_v11 = vsel %vm708_vm3, %v11267_v34, %v3920_v28  ;;  %v4232_v5 = vmul.f32 %v4156_v57, %v13882_v49  ;;  %v11737_v17 = vmul.f32 %v11545_v0, %v14034_v46  ;;  %v4444_v45 = vor.u32 %v4443_v42, %v4440_v23  ;;  %v14035_v34 = vld [vmem:[#allocation97_spill] sm:$0xff]  ;;  %v14069_v49 = vld [vmem:[#allocation126_spill] sm:$0xff] }
 0x4e1   :  { %v4226_v30 = vmul.f32 %v4139_v11, %v14033_v48  ;;  %v4492_v14 = vshrl.u32 %v4285_v60, 16  ;;  %v4495_v63 = vshll.u32 %v4285_v60, 16  ;;  %8285 = vmatpush3.bf16.msra.mxu1 %v8504_v26  ;;  %v11742_v29 = vor.u32 %v4479_v20, %v4476_v8  ;;  %v14054_v48 = vld [vmem:[#allocation81_spill] sm:$0xff] }
 0x4e2   :  { %v11739_v15 = vpop.permute.xlu1 %3925  ;;  %v4290_v33 = vpack.c.bf16 %v4237_v38, %v4232_v5  ;;  %v11746_v57 = vmul.f32 %v11565_v35, %v13886_v44  ;;  %v4367_v32 = vshrl.u32 %v4272_v51, 16  ;;  %v4204_v52 = vmul.f32 %v4136_v55, %v14035_v34 }
 0x4e3   :  { %v4284_v50 = vpack.c.bf16 %v4226_v30, %v4221_v40  ;;  %v3924_v28 = vpop.permute.xlu0 %3923  ;;  %v11749_v46 = vrot.slane %v4519_v7, 3  ;;  %v4494_v60 = vrot.slane %v4492_v14, 3  ;;  %v4497_v24 = vrot.slane %v4495_v63, 4 }
 0x4e4   :  { %v4537_v23 = vshrl.u32 %v4290_v33, 16  ;;  %v4540_v26 = vshll.u32 %v4290_v33, 16  ;;  %v4370_v42 = vshll.u32 %v4272_v51, 16  ;;  %v4445_v40 = vsel %vm1213_vm4, %v4399_v31, %v4444_v45 }
 0x4e5   :  { %v4483_v62 = vshrl.u32 %v4284_v50, 16  ;;  %v4486_v38 = vshll.u32 %v4284_v50, 16  ;;  %v4209_v20 = vmul.f32 %v11680_v37, %v13747_v58  ;;  %v11756_v55 = vsel %vm708_vm3, %v11348_v4, %v3924_v28  ;;  %5012 = vmatmul.mubr.bf16.gmra.mrb[88].mxu1 %v4445_v40 }
 0x4e6   :  { %v3922_v8 = vpop.permute.xlu1 %3921  ;;  %v4539_v5 = vrot.slane %v4537_v23, 3  ;;  %v4542_v30 = vrot.slane %v4540_v26, 4  ;;  %v4189_v14 = vmul.f32 %v11625_v61, %v13888_v53  ;;  %v4214_v51 = vmul.f32 %v4138_v12, %v13896_v22  ;;  %v14036_v26 = vld [vmem:[#allocation111_spill] sm:$0xff] }
 0x4e7   :  { %v4029_v7 = vpop.permute.xlu0 %4028  ;;  %v4485_v63 = vrot.slane %v4483_v62, 3  ;;  %v4488_v33 = vrot.slane %v4486_v38, 4  ;;  %v11761_v31 = vpack.c.bf16 %v4209_v20, %v4204_v52  ;;  %v11765_v37 = vsel %vm708_vm3, %v11323_v56, %v3922_v8  ;;  %v14037_v20 = vld [vmem:[#allocation73_spill] sm:$0xff] }
 0x4e8   :  { %v4498_v50 = vor.u32 %v4497_v24, %v4494_v60  ;;  %v11767_v23 = vor.u32 %v4542_v30, %v4539_v5  ;;  %v4158_v28 = vsel %vm708_vm3, %v11545_v0, %v11700_v39  ;;  %v4236_v61 = vmul.f32 %v11756_v55, %v9622_v18  ;;  %v14046_v18 = vld [vmem:[#allocation119_spill] sm:$0xff] }
 0x4e9   :  { %v4231_v12 = vmul.f32 %v11765_v37, %v14036_v26  ;;  %v4489_v52 = vor.u32 %v4488_v33, %v4485_v63  ;;  %v11776_v38 = vrot.slane %v4367_v32, 3  ;;  %v4372_v40 = vrot.slane %v4370_v42, 4  ;;  %v14038_v63 = vld [vmem:[#allocation104_spill] sm:$0xff] }
 0x4ea   :  { %v4121_v62 = vpop.permute.xlu1 %4120  ;;  %v4499_v24 = vsel %vm1213_vm4, %v11702_v2, %v4498_v50  ;;  %v4219_v0 = vmul.f32 %v4139_v11, %v13892_v3  ;;  %v4242_v32 = vmul.f32 %v4158_v28, %v14038_v63  ;;  %v14039_v33 = vld [vmem:[#allocation116_spill] sm:$0xff]  ;;  %v4544_v2 = vsel %vm1213_vm4, %v4498_v50, %v11767_v23  ;;  %v14041_v50 = vld [vmem:[#allocation82_spill] sm:$0xff] }
 0x4eb   :  { %v4180_v60 = vsel %vm708_vm3, %v11177_v9, %v4121_v62  ;;  %v4025_v8 = vpop.permute.xlu0 %4024  ;;  %v4289_v39 = vpack.c.bf16 %v4236_v61, %v4231_v12  ;;  %5019 = vmatprep.mubr.bf16.mxu1 %v4499_v24  ;;  %v4490_v4 = vsel %vm1213_vm4, %v4444_v45, %v4489_v52  ;;  %v4420_v62 = vshrl.u32 %v11761_v31, 16  ;;  %v14040_v28 = vld [vmem:[#allocation8_spill] sm:$0xff] }
 0x4ec   :  { %v4184_v5 = vmul.f32 %v4180_v60, %v14037_v20  ;;  %v4159_v30 = vsel %vm708_vm3, %v11565_v35, %v4025_v8  ;;  %v4423_v11 = vshll.u32 %v11761_v31, 16  ;;  %v4161_v60 = vsel %vm708_vm3, %v11588_v19, %v4029_v7 }
 0x4ed   :  { %v4247_v42 = vmul.f32 %v4159_v30, %v14039_v33  ;;  %v4528_v61 = vshrl.u32 %v4289_v39, 16  ;;  %v4531_v12 = vshll.u32 %v4289_v39, 16  ;;  %5020 = vmatmul.mubr.bf16.gmra.mrb[92].mxu1 %v4490_v4  ;;  %v11797_v56 = vpack.c.bf16 %v4219_v0, %v4214_v51 }
 0x4ee   :  { %v4027_v24 = vpop.permute.xlu1 %4026  ;;  %v4267_v35 = vpack.c.bf16 %v4189_v14, %v4184_v5  ;;  %v11802_v9 = vsel %vm708_vm3, %v14041_v50, %v11739_v15  ;;  %5027 = vmatprep.mubr.bf16.mxu1 %v4544_v2  ;;  %v14042_v5 = vld [vmem:[#allocation114_spill] sm:$0xff]  ;;  %v14045_v15 = vld [vmem:[#allocation113_spill] sm:$0xff] }
 0x4ef   :  { %v4295_v8 = vpack.c.bf16 %v4247_v42, %v4242_v32  ;;  %v4160_v30 = vsel %vm708_vm3, %v14040_v28, %v4027_v24  ;;  %v3928_v45 = vpop.permute.xlu0 %3927  ;;  %v4530_v31 = vrot.slane %v4528_v61, 3  ;;  %v4533_v39 = vrot.slane %v4531_v12, 4  ;;  %v14043_v32 = vld [vmem:[#allocation118_spill] sm:$0xff]  ;;  %v14044_v24 = vld [vmem:[#allocation77_spill] sm:$0xff] }
 0x4f0   :  { %v4359_v44 = vshrl.u32 %v4267_v35, 16  ;;  %v4362_v33 = vshll.u32 %v4267_v35, 16  ;;  %v4257_v4 = vmul.f32 %v4161_v60, %v14042_v5  ;;  %v4252_v42 = vmul.f32 %v4160_v30, %v14043_v32  ;;  %v14047_v30 = vld [vmem:[#allocation78_spill] sm:$0xff]  ;;  %v14049_v5 = vld [vmem:[#allocation56_spill] sm:$0xff] }
 0x4f1   :  { %v4582_v7 = vshrl.u32 %v4295_v8, 16  ;;  %v4585_v14 = vshll.u32 %v4295_v8, 16  ;;  %v11808_v51 = vsel %vm708_vm3, %v14044_v24, %v3928_v45  ;;  %v11810_v63 = vor.u32 %v4533_v39, %v4530_v31  ;;  %v14048_v45 = vld [vmem:[#allocation121_spill] sm:$0xff] }
 0x4f2   :  { %v4071_v0 = vpop.permute.xlu1 %4070  ;;  %v4241_v61 = vmul.f32 %v11802_v9, %v14045_v15  ;;  %v4361_v12 = vrot.slane %v4359_v44, 3  ;;  %v4364_v26 = vrot.slane %v4362_v33, 4  ;;  %v4300_v8 = vpack.c.bf16 %v4257_v4, %v4252_v42  ;;  %v14051_v15 = vld [vmem:[#allocation115_spill] sm:$0xff] }
 0x4f3   :  { %v4584_v2 = vrot.slane %v4582_v7, 3  ;;  %v4587_v50 = vrot.slane %v4585_v14, 4  ;;  %v4069_v35 = vpop.permute.xlu0 %4068  ;;  %v4246_v60 = vmul.f32 %v11808_v51, %v14046_v18  ;;  %v4164_v32 = vsel %vm708_vm3, %v14047_v30, %v4071_v0  ;;  %v14050_v7 = vld [vmem:[#allocation52_spill] sm:$0xff]  ;;  %v14052_v0 = vld [vmem:[#allocation63_spill] sm:$0xff] }
 0x4f4   :  { %v4188_v24 = vmul.f32 %v4164_v32, %v14048_v45  ;;  %v4163_v31 = vsel %vm708_vm3, %v14049_v5, %v4069_v35  ;;  %v4535_v39 = vsel %vm1213_vm4, %v4489_v52, %v11810_v63  ;;  %v11825_v14 = vmul.f32 %v14040_v28, %v14050_v7 }
 0x4f5   :  { %v4588_v44 = vor.u32 %v4587_v50, %v4584_v2  ;;  %v4627_v33 = vshrl.u32 %v4300_v8, 16  ;;  %v4630_v4 = vshll.u32 %v4300_v8, 16  ;;  %v4294_v42 = vpack.c.bf16 %v4246_v60, %v4241_v61  ;;  %5028 = vmatmul.mubr.bf16.gmra.mrb[96].mxu1 %v4535_v39 }
 0x4f6   :  { %v3930_v18 = vpop.permute.xlu1 %3929  ;;  %v4183_v43 = vmul.f32 %v4163_v31, %v14051_v15  ;;  %v4373_v50 = vor.u32 %v4372_v40, %v11776_v38  ;;  %v4422_v2 = vrot.slane %v4420_v62, 3  ;;  %v4425_v28 = vrot.slane %v4423_v11, 4 }
 0x4f7   :  { %v11830_v32 = vsel %vm708_vm3, %v14052_v0, %v3930_v18  ;;  %v3932_v5 = vpop.permute.xlu0 %3931  ;;  %v4589_v52 = vsel %vm1213_vm4, %v11767_v23, %v4588_v44  ;;  %v4465_v35 = vshrl.u32 %v11797_v56, 16  ;;  %v4365_v61 = vor.u32 %v4364_v26, %v4361_v12  ;;  %v14053_v0 = vld [vmem:[#allocation122_spill] sm:$0xff] }
 0x4f8   :  { %5035 = vmatprep.mubr.bf16.mxu1 %v4589_v52  ;;  %v4468_v8 = vshll.u32 %v11797_v56, 16  ;;  %v4573_v60 = vshrl.u32 %v4294_v42, 16  ;;  %v4576_v30 = vshll.u32 %v4294_v42, 16  ;;  %v4266_v31 = vpack.c.bf16 %v4188_v24, %v4183_v43  ;;  %v14055_v43 = vld [vmem:[#allocation123_spill] sm:$0xff] }
 0x4f9   :  { %v4629_v39 = vrot.slane %v4627_v33, 3  ;;  %v4632_v18 = vrot.slane %v4630_v4, 4  ;;  %v4251_v7 = vmul.f32 %v11830_v32, %v14053_v0  ;;  %v11841_v23 = vsel %vm708_vm3, %v14054_v48, %v3932_v5  ;;  %v14056_v33 = vld [vmem:[#allocation84_spill] sm:$0xff]  ;;  %v14057_v5 = vld [vmem:[#allocation125_spill] sm:$0xff] }
 0x4fa   :  { %v4075_v38 = vpop.permute.xlu1 %4074  ;;  %v4575_v40 = vrot.slane %v4573_v60, 3  ;;  %v4578_v62 = vrot.slane %v4576_v30, 4  ;;  %v4342_v11 = vshrl.u32 %v4266_v31, 16  ;;  %v4345_v52 = vshll.u32 %v4266_v31, 16  ;;  %v14058_v30 = vld [vmem:[#allocation92_spill] sm:$0xff] }
 0x4fb   :  { %v4073_v26 = vpop.permute.xlu0 %4072  ;;  %v11845_v56 = vpack.c.bf16 %v11746_v57, %v11737_v17  ;;  %v4256_v24 = vmul.f32 %v11841_v23, %v14055_v43  ;;  %v4374_v12 = vsel %vm1213_vm4, %v4365_v61, %v4373_v50  ;;  %v4166_v4 = vsel %vm708_vm3, %v14056_v33, %v4075_v38  ;;  %v14059_v57 = vld [vmem:[#allocation124_spill] sm:$0xff] }
 0x4fc   :  { %v4344_v42 = vrot.slane %v4342_v11, 3  ;;  %5092 = vmatprep.mubr.bf16.mxu0 %v4374_v12  ;;  %v4198_v60 = vmul.f32 %v4166_v4, %v14057_v5  ;;  %v4165_v31 = vsel %vm708_vm3, %v14058_v30, %v4073_v26  ;;  %v11855_v48 = vor.u32 %v4425_v28, %v4422_v2  ;;  %v14060_v11 = vld [vmem:[#allocation79_spill] sm:$0xff]  ;;  %v14061_v4 = vld [vmem:[#allocation108_spill] sm:$0xff]  ;;  %v14062_v28 = vld [vmem:[#allocation110_spill] sm:$0xff] }
 0x4fd   :  { %v4347_v0 = vrot.slane %v4345_v52, 4  ;;  %v4299_v17 = vpack.c.bf16 %v4256_v24, %v4251_v7  ;;  %v4193_v3 = vmul.f32 %v4165_v31, %v14059_v57  ;;  %v4579_v41 = vor.u32 %v4578_v62, %v4575_v40 }
 0x4fe   :  { %v3934_v43 = vpop.permute.xlu1 %3933  ;;  %v11858_v22 = vrot.slane %v4465_v35, 3  ;;  %v11860_v61 = vrot.slane %v4468_v8, 4  ;;  %v11862_v38 = vor.u32 %v4632_v18, %v4629_v39  ;;  %v4229_v2 = vmul.f32 %v11756_v55, %v14061_v4  ;;  %v14063_v39 = vld [vmem:[#allocation120_spill] sm:$0xff] }
 0x4ff   :  { %v4146_v12 = vsel %vm708_vm3, %v14060_v11, %v3934_v43  ;;  %v4031_v33 = vpop.permute.xlu0 %4030  ;;  %v4224_v7 = vmul.f32 %v11765_v37, %v14062_v28  ;;  %v4618_v52 = vshrl.u32 %v4299_v17, 16  ;;  %v4621_v26 = vshll.u32 %v4299_v17, 16  ;;  %v14065_v28 = vld [vmem:[#allocation106_spill] sm:$0xff]  ;;  %v14066_v4 = vld [vmem:[#allocation128_spill] sm:$0xff] }
 0x500   :  { %v4271_v40 = vpack.c.bf16 %v4198_v60, %v4193_v3  ;;  %v4580_v35 = vsel %vm1213_vm4, %v11810_v63, %v4579_v41  ;;  %v4634_v8 = vsel %vm1213_vm4, %v4588_v44, %v11862_v38  ;;  %v4261_v18 = vmul.f32 %v4146_v12, %v14063_v39  ;;  %v14064_v60 = vld [vmem:[#allocation16_spill] sm:$0xff] }
 0x501   :  { %v4348_v62 = vor.u32 %v4347_v0, %v4344_v42  ;;  %v4620_v43 = vrot.slane %v4618_v52, 3  ;;  %v4623_v24 = vrot.slane %v4621_v26, 4  ;;  %5036 = vmatmul.mubr.bf16.gmra.mrb[100].mxu1 %v4580_v35  ;;  %v4427_v55 = vsel %vm1213_vm4, %v4373_v50, %v11855_v48  ;;  %v14067_v42 = vld [vmem:[#allocation74_spill] sm:$0xff] }
 0x502   :  { %v4079_v30 = vpop.permute.xlu1 %4078  ;;  %v4350_v37 = vshrl.u32 %v4271_v40, 16  ;;  %v4353_v31 = vshll.u32 %v4271_v40, 16  ;;  %5043 = vmatprep.mubr.bf16.mxu1 %v4634_v8  ;;  %v4304_v3 = vpack.c.bf16 %v4261_v18, %v4261_v18  ;;  %v4162_v63 = vsel %vm708_vm3, %v14064_v60, %v4031_v33  ;;  %v14068_v8 = vld [vmem:[#allocation127_spill] sm:$0xff] }
 0x503   :  { %v4077_v17 = vpop.permute.xlu0 %4076  ;;  %v4262_v44 = vmul.f32 %v4162_v63, %v14065_v28  ;;  %v4168_v0 = vsel %vm708_vm3, %v14066_v4, %v4079_v30  ;;  %v4624_v52 = vor.u32 %v4623_v24, %v4620_v43  ;;  %v14070_v4 = vld [vmem:[#allocation27_spill] sm:$0xff]  ;;  %v4287_v43 = vpack.c.bf16 %v4229_v2, %v4224_v7  ;;  %v14074_v2 = vld [vmem:[#allocation112_spill] sm:$0xff]  ;;  %v14075_v7 = vld [vmem:[#allocation129_spill] sm:$0xff] }
 0x504   :  { %v4167_v12 = vsel %vm708_vm3, %v14067_v42, %v4077_v17  ;;  %v4352_v26 = vrot.slane %v4350_v37, 3  ;;  %v4355_v35 = vrot.slane %v4353_v31, 4  ;;  %v4663_v50 = vshrl.u32 %v4304_v3, 16 }
 0x505   :  { %v4666_v39 = vshll.u32 %v4304_v3, 16  ;;  %v4305_v40 = vpack.c.bf16 %v4262_v44, %v4262_v44  ;;  %v4208_v18 = vmul.f32 %v4168_v0, %v14068_v8  ;;  %v4203_v59 = vmul.f32 %v4167_v12, %v14069_v49  ;;  %v14071_v3 = vld [vmem:[#allocation117_spill] sm:$0xff]  ;;  %v14072_v0 = vld [vmem:[#allocation47_spill] sm:$0xff] }
 0x506   :  { %v4625_v33 = vsel %vm1213_vm4, %v4579_v41, %v4624_v52  ;;  %v4083_v27 = vpop.permute.xlu1 %4082  ;;  %v4356_v63 = vor.u32 %v4355_v35, %v4352_v26  ;;  %v4665_v28 = vrot.slane %v4663_v50, 3  ;;  %v4239_v44 = vmul.f32 %v11808_v51, %v14071_v3  ;;  %v14073_v12 = vld [vmem:[#allocation31_spill] sm:$0xff]  ;;  %v14076_v51 = vld [vmem:[#allocation57_spill] sm:$0xff] }
 0x507   :  { %v4668_v34 = vrot.slane %v4666_v39, 4  ;;  %v4170_v30 = vsel %vm708_vm3, %v14070_v4, %v4083_v27  ;;  %v4081_v17 = vpop.permute.xlu0 %4080  ;;  %v4672_v24 = vshrl.u32 %v4305_v40, 16  ;;  %v4675_v37 = vshll.u32 %v4305_v40, 16 }
 0x508   :  { %v4276_v31 = vpack.c.bf16 %v4208_v18, %v4203_v59  ;;  %v4218_v42 = vmul.f32 %v4170_v30, %v14072_v0  ;;  %v4169_v41 = vsel %vm708_vm3, %v14073_v12, %v4081_v17  ;;  %v4357_v26 = vsel %vm1213_vm4, %v4348_v62, %v4356_v63  ;;  %v14078_v12 = vld [vmem:[#allocation76_spill] sm:$0xff] }
 0x509   :  { %v4674_v35 = vrot.slane %v4672_v24, 3  ;;  %v4677_v39 = vrot.slane %v4675_v37, 4  ;;  %5044 = vmatmul.mubr.bf16.gmra.mrb[104].mxu1 %v4625_v33  ;;  %5093 = vmatmul.mubr.bf16.vlgmr.msra.gmra.mrb[96].mxu0 %v4357_v26  ;;  %v4234_v59 = vmul.f32 %v11802_v9, %v14074_v2  ;;  %v4213_v40 = vmul.f32 %v4169_v41, %v14075_v7  ;;  %v14077_v24 = vld [vmem:[#allocation130_spill] sm:$0xff]  ;;  %v14079_v26 = vld [vmem:[#allocation44_spill] sm:$0xff] }
 0x50a   :  { %v4411_v50 = vshrl.u32 %v4276_v31, 16  ;;  %v4414_v49 = vshll.u32 %v4276_v31, 16  ;;  %v4087_v27 = vpop.permute.xlu1 %4086  ;;  %5100 = vmatprep.mubr.bf16.mxu0 %v4427_v55  ;;  %v4669_v30 = vor.u32 %v4668_v34, %v4665_v28  ;;  %v11906_v9 = vor.u32 %v11860_v61, %v11858_v22  ;;  %v14080_v61 = vld [vmem:[#allocation54_spill] sm:$0xff] }
 0x50b   :  { %v4172_v18 = vsel %vm708_vm3, %v14076_v51, %v4087_v27  ;;  %v4085_v4 = vpop.permute.xlu0 %4084  ;;  %v4281_v31 = vpack.c.bf16 %v4218_v42, %v4213_v40  ;;  %v4678_v3 = vor.u32 %v4677_v39, %v4674_v35  ;;  %v4510_v55 = vshrl.u32 %v4287_v43, 16 }
 0x50c   :  { %v4413_v17 = vrot.slane %v4411_v50, 3  ;;  %v4416_v62 = vrot.slane %v4414_v49, 4  ;;  %v4228_v37 = vmul.f32 %v4172_v18, %v14077_v24  ;;  %v4171_v33 = vsel %vm708_vm3, %v14078_v12, %v4085_v4  ;;  %v14081_v4 = vld [vmem:[#allocation75_spill] sm:$0xff] }
 0x50d   :  { %v4223_v0 = vmul.f32 %v4171_v33, %v14079_v26  ;;  %v4513_v41 = vshll.u32 %v4287_v43, 16  ;;  %v4292_v27 = vpack.c.bf16 %v4239_v44, %v4234_v59  ;;  %v4456_v28 = vshrl.u32 %v4281_v31, 16 }
 0x50e   :  { %v4091_v51 = vpop.permute.xlu1 %4090  ;;  %v4417_v34 = vor.u32 %v4416_v62, %v4413_v17  ;;  %v4459_v49 = vshll.u32 %v4281_v31, 16  ;;  %v4679_v50 = vsel %vm1213_vm4, %v11862_v38, %v4678_v3  ;;  %v4670_v18 = vsel %vm1213_vm4, %v4624_v52, %v4669_v30  ;;  %v14083_v17 = vld [vmem:[#allocation58_spill] sm:$0xff]  ;;  %v14084_v62 = vld [vmem:[#allocation59_spill] sm:$0xff] }
 0x50f   :  { %v4089_v42 = vpop.permute.xlu0 %4088  ;;  %v4564_v40 = vshrl.u32 %v11845_v56, 16  ;;  %v4567_v35 = vshll.u32 %v11845_v56, 16  ;;  %v4286_v39 = vpack.c.bf16 %v4228_v37, %v4223_v0  ;;  %5051 = vmatprep.mubr.bf16.mxu1 %v4679_v50  ;;  %v4250_v43 = vmul.f32 %v11588_v19, %v14080_v61  ;;  %v14082_v56 = vld [vmem:[#allocation35_spill] sm:$0xff]  ;;  %v14085_v37 = vld [vmem:[#allocation17_spill] sm:$0xff] }
 0x510   :  { %v4418_v22 = vsel %vm1213_vm4, %v4356_v63, %v4417_v34  ;;  %v4458_v44 = vrot.slane %v4456_v28, 3  ;;  %v4461_v59 = vrot.slane %v4459_v49, 4  ;;  %v4472_v38 = vsel %vm1213_vm4, %v11855_v48, %v11906_v9 }
 0x511   :  { %v4512_v3 = vrot.slane %v4510_v55, 3  ;;  %v4515_v52 = vrot.slane %v4513_v41, 4  ;;  %5052 = vmatmul.mubr.bf16.gmra.mrb[108].mxu1 %v4670_v18  ;;  %v4174_v30 = vsel %vm708_vm3, %v14081_v4, %v4091_v51  ;;  %v4173_v0 = vsel %vm708_vm3, %v14082_v56, %v4089_v42  ;;  %5101 = vmatmul.mubr.bf16.gmra.mrb[100].mxu0 %v4418_v22  ;;  %v14086_v55 = vld [vmem:[#allocation95_spill] sm:$0xff]  ;;  %v14088_v18 = vld [vmem:[#allocation53_spill] sm:$0xff] }
 0x512   :  { %v4095_v63 = vpop.permute.xlu1 %4094  ;;  %v4255_v19 = vmul.f32 %v14064_v60, %v14083_v17  ;;  %v4260_v12 = vmul.f32 %v14085_v37, %v14084_v62  ;;  %v4555_v33 = vshrl.u32 %v4292_v27, 16  ;;  %v4558_v31 = vshll.u32 %v4292_v27, 16  ;;  %8286 = vmatprep.mubr.msk.bf16.mxu1 %vm708_vm3, %v11695_v54  ;;  %5108 = vmatprep.mubr.bf16.mxu0 %v4472_v38  ;;  %v14087_v51 = vld [vmem:[#allocation55_spill] sm:$0xff]  ;;  %v14089_v42 = vld [vmem:[#allocation65_spill] sm:$0xff] }
 0x513   :  { %v4093_v48 = vpop.permute.xlu0 %4092  ;;  %v4244_v41 = vmul.f32 %v11830_v32, %v14086_v55  ;;  %v4249_v28 = vmul.f32 %v11841_v23, %v14087_v51  ;;  %v4501_v49 = vshrl.u32 %v4286_v39, 16  ;;  %v4504_v50 = vshll.u32 %v4286_v39, 16 }
 0x514   :  { %v4238_v60 = vmul.f32 %v4174_v30, %v14088_v18  ;;  %v4233_v22 = vmul.f32 %v4173_v0, %v14089_v42  ;;  %v4462_v4 = vor.u32 %v4461_v59, %v4458_v44  ;;  %v14090_v27 = vshll.u32 %v11704_v16, 16 }
 0x515   :  { %v4298_v54 = vpack.c.bf16 %v4250_v43, %v11825_v14  ;;  %v4516_v38 = vor.u32 %v4515_v52, %v4512_v3  ;;  %v4566_v37 = vrot.slane %v4564_v40, 3  ;;  %v4569_v62 = vrot.slane %v4567_v35, 4  ;;  %v14091_v43 = vld [vmem:[#allocation6_spill] sm:$0xff]  ;;  %v14092_v35 = vld [vmem:[#allocation32_spill] sm:$0xff] }
 0x516   :  { %v4524_v56 = vrot.slane %v14090_v27, 4  ;;  %v4303_v17 = vpack.c.bf16 %v4260_v12, %v4255_v19  ;;  %v4557_v32 = vrot.slane %v4555_v33, 3  ;;  %v4436_v23 = vsel %vm1213_vm4, %v11672_v1, %v11684_v47  ;;  %v4125_v0 = vpop.permute.xlu1 %4124 }
 0x517   :  { %v4481_v39 = vsel %vm1213_vm4, %v11684_v47, %v11742_v29  ;;  %v4560_v30 = vrot.slane %v4558_v31, 4  ;;  %v4297_v44 = vpack.c.bf16 %v4249_v28, %v4244_v41  ;;  %v4503_v59 = vrot.slane %v4501_v49, 3  ;;  %v4123_v27 = vpop.permute.xlu0 %4122  ;;  %v14094_v49 = vld [vmem:[#allocation62_spill] sm:$0xff] }
 0x518   :  { %v4506_v16 = vrot.slane %v4504_v50, 4  ;;  %v4291_v14 = vpack.c.bf16 %v4238_v60, %v4233_v22  ;;  %v4176_v40 = vsel %vm708_vm3, %v14091_v43, %v4095_v63  ;;  %v4175_v3 = vsel %vm708_vm3, %v14092_v35, %v4093_v48  ;;  %v14093_v63 = vld [vmem:[#allocation10_spill] sm:$0xff]  ;;  %v14095_v60 = vld [vmem:[#allocation9_spill] sm:$0xff] }
 0x519   :  { %v4463_v52 = vsel %vm1213_vm4, %v4417_v34, %v4462_v4  ;;  %v4609_v1 = vshrl.u32 %v4298_v54, 16  ;;  %8287 = vmatmul.mubr.msk.bf16.vlgmr.msra.gmra.mrb[112].mxu1 %vm708_vm3, %v4436_v23  ;;  %v4517_v47 = vsel %vm1213_vm4, %v11906_v9, %v4516_v38  ;;  %v4525_v19 = vor.u32 %v4524_v56, %v11749_v46 }
 0x51a   :  { %5109 = vmatmul.mubr.bf16.gmra.mrb[104].mxu0 %v4463_v52  ;;  %v4570_v12 = vor.u32 %v4569_v62, %v4566_v37  ;;  %v4612_v33 = vshll.u32 %v4298_v54, 16  ;;  %v4654_v31 = vshrl.u32 %v4303_v17, 16  ;;  %8290 = vmatprep.mubr.msk.bf16.mxu1 %vm708_vm3, %v4481_v39  ;;  %v4182_v41 = vsel %vm708_vm3, %v14093_v63, %v4125_v0  ;;  %v14096_v37 = vld [vmem:[#allocation11_spill] sm:$0xff]  ;;  %v4099_v0 = vpop.permute.xlu1 %4098 }
 0x51b   :  { %v4181_v34 = vsel %vm708_vm3, %v14060_v11, %v4123_v27  ;;  %5116 = vmatprep.mubr.bf16.mxu0 %v4517_v47  ;;  %v4657_v48 = vshll.u32 %v4303_v17, 16  ;;  %v4600_v28 = vshrl.u32 %v4297_v44, 16  ;;  %v4248_v50 = vmul.f32 %v4176_v40, %v14094_v49  ;;  %v14097_v39 = vld [vmem:[#allocation15_spill] sm:$0xff]  ;;  %v4097_v35 = vpop.permute.xlu0 %4096 }
 0x51c   :  { %v4243_v9 = vmul.f32 %v4175_v3, %v14095_v60  ;;  %v4546_v22 = vshrl.u32 %v4291_v14, 16  ;;  %v4549_v46 = vshll.u32 %v4291_v14, 16  ;;  %v4507_v62 = vor.u32 %v4506_v16, %v4503_v59 }
 0x51d   :  { %v4561_v56 = vor.u32 %v4560_v30, %v4557_v32  ;;  %v4603_v54 = vshll.u32 %v4297_v44, 16  ;;  %v4259_v23 = vmul.f32 %v4182_v41, %v14096_v37  ;;  %v4254_v43 = vmul.f32 %v4181_v34, %v14097_v39  ;;  %v14098_v34 = vld [vmem:[#allocation12_spill] sm:$0xff] }
 0x51e   :  { %v4526_v27 = vsel %vm1213_vm4, %v11742_v29, %v4525_v19  ;;  %v4571_v17 = vsel %vm1213_vm4, %v4525_v19, %v4570_v12  ;;  %v4611_v52 = vrot.slane %v4609_v1, 3  ;;  %v4614_v40 = vrot.slane %v4612_v33, 4  ;;  %v14099_v29 = vld [vmem:[#allocation7_spill] sm:$0xff] }
 0x51f   :  { %v4656_v47 = vrot.slane %v4654_v31, 3  ;;  %v4659_v3 = vrot.slane %v4657_v48, 4  ;;  %v4602_v63 = vrot.slane %v4600_v28, 3  ;;  %v4296_v14 = vpack.c.bf16 %v4248_v50, %v4243_v9  ;;  %v14100_v48 = vld [vmem:[#allocation70_spill] sm:$0xff] }
 0x520   :  { %v4548_v59 = vrot.slane %v4546_v22, 3  ;;  %v4551_v32 = vrot.slane %v4549_v46, 4  ;;  %v4508_v30 = vsel %vm1213_vm4, %v4462_v4, %v4507_v62  ;;  %v4562_v44 = vsel %vm1213_vm4, %v4516_v38, %v4561_v56  ;;  %v14101_v28 = vld [vmem:[#allocation18_spill] sm:$0xff] }
 0x521   :  { %v4605_v16 = vrot.slane %v4603_v54, 4  ;;  %v4302_v41 = vpack.c.bf16 %v4259_v23, %v4254_v43  ;;  %v4178_v11 = vsel %vm708_vm3, %v14098_v34, %v4099_v0  ;;  %v4177_v19 = vsel %vm708_vm3, %v14099_v29, %v4097_v35  ;;  %8291 = vmatmul.mubr.msk.bf16.gmra.mrb[116].mxu1 %vm708_vm3, %v4526_v27  ;;  %v4101_v23 = vpop.permute.xlu0 %4100 }
 0x522   :  { %5117 = vmatmul.mubr.bf16.gmra.mrb[108].mxu0 %v4508_v30  ;;  %8294 = vmatprep.mubr.msk.bf16.mxu1 %vm708_vm3, %v4571_v17  ;;  %v4591_v1 = vshrl.u32 %v4296_v14, 16  ;;  %v4615_v33 = vor.u32 %v4614_v40, %v4611_v52  ;;  %v4660_v31 = vor.u32 %v4659_v3, %v4656_v47  ;;  %v4594_v4 = vshll.u32 %v4296_v14, 16  ;;  %v14102_v3 = vld [vmem:[#allocation14_spill] sm:$0xff] }
 0x523   :  { %5124 = vmatprep.mubr.bf16.mxu0 %v4562_v44  ;;  %v4258_v38 = vmul.f32 %v4178_v11, %v14100_v48  ;;  %v4253_v50 = vmul.f32 %v4177_v19, %v14101_v28  ;;  %v4552_v9 = vor.u32 %v4551_v32, %v4548_v59  ;;  %v4645_v22 = vshrl.u32 %v4302_v41, 16  ;;  %v14103_v59 = vld [vmem:[#allocation13_spill] sm:$0xff] }
 0x524   :  { %v4648_v46 = vshll.u32 %v4302_v41, 16  ;;  %v4606_v54 = vor.u32 %v4605_v16, %v4602_v63  ;;  %v4616_v43 = vsel %vm1213_vm4, %v4570_v12, %v4615_v33  ;;  %v4661_v0 = vsel %vm1213_vm4, %v4615_v33, %v4660_v31  ;;  %v8516_v28 = vld [vmem:[%s13264_s11 + $0x1e8] sm:$0xff]  }
 0x525   :  { %v4593_v35 = vrot.slane %v4591_v1, 3  ;;  %v4596_v27 = vrot.slane %v4594_v4, 4  ;;  %v4301_v17 = vpack.c.bf16 %v4258_v38, %v4253_v50  ;;  %v4553_v52 = vsel %vm1213_vm4, %v4507_v62, %v4552_v9  ;;  %v14104_v62 = vld [vmem:[#allocation23_spill] sm:$0xff] }
 0x526   :  { %v4647_v40 = vrot.slane %v4645_v22, 3  ;;  %v4650_v47 = vrot.slane %v4648_v46, 4  ;;  %v4179_v11 = vsel %vm708_vm3, %v14102_v3, %v4101_v23  ;;  %v4607_v63 = vsel %vm1213_vm4, %v4561_v56, %v4606_v54 }
 0x527   :  { %v4636_v12 = vshrl.u32 %v4301_v17, 16  ;;  %v4639_v14 = vshll.u32 %v4301_v17, 16  ;;  %v4263_v32 = vmul.f32 %v4179_v11, %v14103_v59  ;;  %v4597_v30 = vor.u32 %v4596_v27, %v4593_v35 }
 0x528   :  { %v4651_v44 = vor.u32 %v4650_v47, %v4647_v40  ;;  %v4690_v16 = vsel %vm1213_vm4, %v4660_v31, %v14104_v62  ;;  %v14105_v31 = vld [vmem:[#allocation19_spill] sm:$0xff] }
 0x529   :  { %8295 = vmatmul.mubr.msk.bf16.gmra.mrb[120].mxu1 %vm708_vm3, %v4616_v43  ;;  %v4638_v41 = vrot.slane %v4636_v12, 3  ;;  %v4641_v34 = vrot.slane %v4639_v14, 4  ;;  %v4306_v29 = vpack.c.bf16 %v4263_v32, %v4263_v32  ;;  %v4598_v19 = vsel %vm1213_vm4, %v4552_v9, %v4597_v30 }
 0x52a   :  { %5125 = vmatmul.mubr.bf16.gmra.mrb[112].mxu0 %v4553_v52  ;;  %8298 = vmatprep.mubr.msk.bf16.mxu1 %vm708_vm3, %v4661_v0  ;;  %v4652_v56 = vsel %vm1213_vm4, %v4606_v54, %v4651_v44  ;;  %v4689_v46 = vsel %vm1213_vm4, %v4651_v44, %v14105_v31 }
 0x52b   :  { %5132 = vmatprep.mubr.bf16.mxu0 %v4607_v63  ;;  %v4681_v1 = vshrl.u32 %v4306_v29, 16  ;;  %v4684_v33 = vshll.u32 %v4306_v29, 16  ;;  %v4642_v4 = vor.u32 %v4641_v34, %v4638_v41 }
 0x52d   :  { %v4683_v38 = vrot.slane %v4681_v1, 3  ;;  %v4686_v50 = vrot.slane %v4684_v33, 4  ;;  %v4643_v22 = vsel %vm1213_vm4, %v4597_v30, %v4642_v4 }
 0x52f   :  { %v4687_v23 = vor.u32 %v4686_v50, %v4683_v38 }
 0x531   :  { %8299 = vmatmul.mubr.msk.bf16.gmra.mrb[124].mxu1 %vm708_vm3, %v4690_v16  ;;  %v4688_v9 = vsel %vm1213_vm4, %v4642_v4, %v4687_v23 }
 0x532   :  { %5133 = vmatmul.mubr.bf16.gmra.mrb[116].mxu0 %v4598_v19 }
 0x533   :  { %5140 = vmatprep.mubr.bf16.mxu0 %v4652_v56 }
 0x53a   :  { %5141 = vmatmul.mubr.bf16.gmra.mrb[120].mxu0 %v4643_v22 }
 0x53b   :  { %5148 = vmatprep.mubr.bf16.mxu0 %v4689_v46 }
 0x542   :  { %5149 = vmatmul.mubr.bf16.gmra.mrb[124].mxu0 %v4688_v9 }
 0x5a6   :  { %v7931_v43 = vpop.f32.mrb[80].mxu1 }
 0x5a7   :  { %v7932_v0 = vpop.f32.mrb[81].mxu1 }
 0x5a8   :  { %v7933_v54 = vadd.f32 %v7932_v0, %v7931_v43  ;;  %v7934_v35 = vpop.f32.mrb[82].mxu1  ;;  %v8505_v43 = vld [vmem:[%s13264_s11 + $0x160] sm:$0xff]  }
 0x5a9   :  { %v7935_v27 = vpop.f32.mrb[83].mxu1  ;;  %8055 = vmatprep.subr.bf16.mxu0 %v8505_v43 }
 0x5aa   :  { %v7936_v17 = vadd.f32 %v7935_v27, %v7934_v35 }
 0x5af   :  { %v7937_v52 = vpop.f32.mrb[84].mxu1 }
 0x5b0   :  { %v7938_v40 = vpop.f32.mrb[85].mxu1 }
 0x5b1   :  { %v7939_v47 = vadd.f32 %v7938_v40, %v7937_v52  ;;  %v7940_v3 = vpop.f32.mrb[86].mxu1  ;;  %v8506_v40 = vld [vmem:[%s13264_s11 + $0x120] sm:$0xff]  }
 0x5b2   :  { %v7941_v11 = vpop.f32.mrb[87].mxu1  ;;  %8056 = vmatpush3.bf16.msra.mxu0 %v8506_v40 }
 0x5b3   :  { %v7942_v63 = vadd.f32 %v7941_v11, %v7940_v3 }
 0x5b8   :  { %v7943_v12 = vpop.f32.mrb[88].mxu1 }
 0x5b9   :  { %v7944_v14 = vpop.f32.mrb[89].mxu1 }
 0x5ba   :  { %v11993_v32 = vadd.f32 %v7944_v14, %v7943_v12  ;;  %v7946_v30 = vpop.f32.mrb[90].mxu1  ;;  %v8507_v12 = vld [vmem:[%s13264_s11 + $0x168] sm:$0xff]  }
 0x5bb   :  { %v7947_v44 = vpop.f32.mrb[91].mxu1  ;;  %v8508_v14 = vld [vmem:[%s13264_s11 + $0x128] sm:$0xff]   ;;  %8057 = vmatprep.subr.bf16.mxu0 %v8507_v12 }
 0x5bc   :  { %v11995_v16 = vadd.f32 %v7947_v44, %v7946_v30  ;;  %8058 = vmatpush3.bf16.msra.mxu0 %v8508_v14 }
 0x5c0   :  { %v7949_v41 = vpop.f32.mrb[92].mxu1 }
 0x5c1   :  { %v7950_v34 = vpop.f32.mrb[93].mxu1 }
 0x5c2   :  { %v11997_v29 = vadd.f32 %v7950_v34, %v7949_v41  ;;  %v7952_v19 = vpop.f32.mrb[94].mxu1 }
 0x5c3   :  { %v7953_v56 = vpop.f32.mrb[95].mxu1 }
 0x5c4   :  { %v11999_v1 = vadd.f32 %v7953_v56, %v7952_v19 }
 0x5c8   :  { %v7955_v33 = vpop.f32.mrb[96].mxu1 }
 0x5c9   :  { %v7956_v4 = vpop.f32.mrb[97].mxu1 }
 0x5ca   :  { %v12001_v38 = vadd.f32 %v7956_v4, %v7955_v33  ;;  %v7958_v50 = vpop.f32.mrb[98].mxu1 }
 0x5cb   :  { %v7959_v22 = vpop.f32.mrb[99].mxu1 }
 0x5cc   :  { %v12003_v46 = vadd.f32 %v7959_v22, %v7958_v50 }
 0x5d4   :  { %v7961_v23 = vpop.f32.mrb[100].mxu1 }
 0x5d5   :  { %v7962_v9 = vpop.f32.mrb[101].mxu1 }
 0x5d6   :  { %v12008_v0 = vadd.f32 %v7962_v9, %v7961_v23  ;;  %v7964_v35 = vpop.f32.mrb[102].mxu1 }
 0x5d7   :  { %v7965_v27 = vpop.f32.mrb[103].mxu1 }
 0x5d8   :  { %v12010_v52 = vadd.f32 %v7965_v27, %v7964_v35 }
 0x5dc   :  { %v7967_v3 = vpop.f32.mrb[104].mxu1  ;;  %v7995_v11 = vpop.f32.mrb[96].mxu0 }
 0x5dd   :  { %v7968_v30 = vpop.f32.mrb[105].mxu1  ;;  %v7996_v44 = vpop.f32.mrb[97].mxu0 }
 0x5de   :  { %v12021_v41 = vadd.f32 %v7968_v30, %v7967_v3  ;;  %v7970_v34 = vpop.f32.mrb[106].mxu1  ;;  %v7997_v19 = vadd.f32 %v7996_v44, %v7995_v11  ;;  %v7998_v56 = vpop.f32.mrb[98].mxu0 }
 0x5df   :  { %v7971_v33 = vpop.f32.mrb[107].mxu1  ;;  %v7999_v4 = vpop.f32.mrb[99].mxu0 }
 0x5e0   :  { %v12023_v50 = vadd.f32 %v7971_v33, %v7970_v34  ;;  %v8000_v22 = vadd.f32 %v7999_v4, %v7998_v56  ;;  %v5095_v23 = vadd.f32 %v7997_v19, %v7933_v54  ;;  %v8509_v54 = vld [vmem:[%s13264_s11 + $0x170] sm:$0xff]   ;;  %v12038_v56 = vld [vmem:[%s13262_s9 + $0x1] ss:$0 sm:$0xff] }
 0x5e1   :  { %8059 = vmatprep.subr.bf16.mxu0 %v8509_v54 }
 0x5e2   :  { %v5098_v9 = vadd.f32 %v8000_v22, %v7936_v17  ;;  %v8510_v17 = vld [vmem:[%s13264_s11 + $0x130] sm:$0xff]   ;;  %v12043_v22 = vld [vmem:[%s13263_s10 + $0x1] ss:$0 sm:$0xff] }
 0x5e3   :  { %8060 = vmatpush3.bf16.msra.mxu0 %v8510_v17 }
 0x5e4   :  { %v7973_v43 = vpop.f32.mrb[108].mxu1  ;;  %v8001_v35 = vpop.f32.mrb[100].mxu0 }
 0x5e5   :  { %v7974_v27 = vpop.f32.mrb[109].mxu1  ;;  %v8002_v40 = vpop.f32.mrb[101].mxu0 }
 0x5e6   :  { %v12025_v62 = vadd.f32 %v7974_v27, %v7973_v43  ;;  %v7976_v3 = vpop.f32.mrb[110].mxu1  ;;  %v8003_v30 = vadd.f32 %v8002_v40, %v8001_v35  ;;  %v8004_v31 = vpop.f32.mrb[102].mxu0 }
 0x5e7   :  { %v7977_v11 = vpop.f32.mrb[111].mxu1  ;;  %v8005_v44 = vpop.f32.mrb[103].mxu0 }
 0x5e8   :  { %v12027_v12 = vadd.f32 %v7977_v11, %v7976_v3  ;;  %v8006_v59 = vadd.f32 %v8005_v44, %v8004_v31  ;;  %v5103_v14 = vadd.f32 %v8003_v30, %v7939_v47 }
 0x5ea   :  { %v5106_v34 = vadd.f32 %v8006_v59, %v7942_v63 }
 0x5ec   :  { %v8288_v19 = vpop.f32.mrb[112].mxu1 }
 0x5ed   :  { %v8007_v33 = vpop.f32.mrb[104].mxu0  ;;  %v5200_v31 = vadd.f32 %v8288_v19, %v5103_v14  ;;  %v5191_v47 = vpop.f32.mrb[113].mxu1 }
 0x5ee   :  { %v8008_v4 = vpop.f32.mrb[105].mxu0  ;;  %v5192_v43 = vadd.f32 %v5191_v47, %v5095_v23  ;;  %v8289_v35 = vpop.f32.mrb[114].mxu1 }
 0x5ef   :  { %v8009_v59 = vadd.f32 %v8008_v4, %v8007_v33  ;;  %v8010_v63 = vpop.f32.mrb[106].mxu0  ;;  %v5264_v27 = vmul.f32 %v12038_v56, %v5200_v31  ;;  %v5203_v40 = vadd.f32 %v8289_v35, %v5106_v34  ;;  %v5194_v3 = vpop.f32.mrb[115].mxu1  ;;  %v8511_v34 = vld [vmem:[%s13264_s11 + $0x178] sm:$0xff]  }
 0x5f0   :  { %v8011_v30 = vpop.f32.mrb[107].mxu0  ;;  %v5262_v11 = vmul.f32 %v12038_v56, %v5192_v43  ;;  %v5195_v44 = vadd.f32 %v5194_v3, %v5098_v9  ;;  %8061 = vmatprep.subr.bf16.mxu0 %v8511_v34 }
 0x5f1   :  { %v8012_v14 = vadd.f32 %v8011_v30, %v8010_v63  ;;  %v5111_v54 = vadd.f32 %v8009_v59, %v11993_v32  ;;  %v5288_v17 = vadd.f32 %v12043_v22, %v5264_v27  ;;  %v5265_v19 = vmul.f32 %v12038_v56, %v5203_v40  ;;  %v8512_v32 = vld [vmem:[%s13264_s11 + $0x138] sm:$0xff]  }
 0x5f2   :  { %v5286_v23 = vadd.f32 %v12043_v22, %v5262_v11  ;;  %v5263_v33 = vmul.f32 %v12038_v56, %v5195_v44  ;;  %8062 = vmatpush3.bf16.msra.mxu0 %v8512_v32 }
 0x5f3   :  { %v5114_v47 = vadd.f32 %v8012_v14, %v11995_v16  ;;  %v12053_v31 = vmax.f32 %v5288_v17, 0.0  ;;  %v5289_v9 = vadd.f32 %v12043_v22, %v5265_v19 }
 0x5f4   :  { %v5287_v4 = vadd.f32 %v12043_v22, %v5263_v33  ;;  %v8292_v43 = vpop.f32.mrb[116].mxu1  ;;  %v12065_v63 = vmax.f32 %v5286_v23, 0.0 }
 0x5f5   :  { %v8013_v35 = vpop.f32.mrb[108].mxu0  ;;  %v5207_v59 = vpop.f32.mrb[117].mxu1  ;;  %5537 = vrot.lane.b32.xlu1 %v12053_v31, %s8571_s29  ;;  %v12069_v17 = vmax.f32 %v5289_v9, 0.0 }
 0x5f6   :  { %v8014_v16 = vpop.f32.mrb[109].mxu0  ;;  %v12067_v27 = vmax.f32 %v5287_v4, 0.0  ;;  %v5208_v40 = vadd.f32 %v5207_v59, %v5111_v54  ;;  %v8293_v3 = vpop.f32.mrb[118].mxu1  ;;  %v12080_v32 = vrot.slane %v12065_v63, 2  ;;  %v12083_v9 = vrot.slane %v12065_v63, 1 }
 0x5f7   :  { %v8015_v30 = vadd.f32 %v8014_v16, %v8013_v35  ;;  %v8016_v11 = vpop.f32.mrb[110].mxu0  ;;  %v5210_v44 = vpop.f32.mrb[119].mxu1  ;;  %v14107_v48 = vrot.slane %v12069_v17, 1 }
 0x5f8   :  { %v8017_v14 = vpop.f32.mrb[111].mxu0  ;;  %v12071_v19 = vadd.f32 %v5210_v44, %v5114_v47  ;;  %5535 = vrot.lane.b32.xlu0 %v12067_v27, %s8571_s29  ;;  %v5408_v35 = vrot.slane %v12067_v27, 1  ;;  %v12137_v37 = vrot.slane %v12067_v27, 2 }
 0x5f9   :  { %v5119_v33 = vadd.f32 %v8015_v30, %v11997_v29  ;;  %v8018_v23 = vadd.f32 %v8017_v14, %v8016_v11  ;;  %5533 = vrot.lane.b32.xlu1 %v12065_v63, %s8571_s29  ;;  %v5410_v11 = vrot.slane %v12053_v31, 1 }
 0x5fb   :  { %v5216_v54 = vadd.f32 %v8292_v43, %v5119_v33  ;;  %v5122_v34 = vadd.f32 %v8018_v23, %v11999_v1  ;;  %v8513_v1 = vld [vmem:[%s13264_s11 + $0x1e0] sm:$0xff]  }
 0x5fc   :  { %v12087_v4 = vpop.f32.mrb[120].mxu1  ;;  %5601 = vrot.lane.b32.xlu0 %v12080_v32, %s8571_s29  ;;  %v8514_v43 = vld [vmem:[%s13264_s11 + $0x1a0] sm:$0xff]   ;;  %8119 = vmatprep.subr.bf16.mxu1 %v8513_v1 }
 0x5fd   :  { %v12085_v47 = vadd.f32 %v8293_v3, %v5122_v34  ;;  %v8019_v29 = vpop.f32.mrb[112].mxu0  ;;  %v5223_v59 = vpop.f32.mrb[121].mxu1  ;;  %5539 = vrot.lane.b32.xlu1 %v12069_v17, %s8571_s29  ;;  %v14106_v33 = vld [vmem:[#allocation5_spill] sm:$0xff]  ;;  %8120 = vmatpush3.bf16.msra.mxu1 %v8514_v43 }
 0x5fe   :  { %v8020_v16 = vpop.f32.mrb[113].mxu0  ;;  %v12100_v3 = vpop.f32.mrb[122].mxu1  ;;  %v5407_v23 = vsel %vm186_vm1, %v14106_v33, %v12083_v9  ;;  %v8515_v1 = vld [vmem:[%s13264_s11 + $0x180] sm:$0xff]   ;;  %8121 = vmatprep.subr.bf16.mxu1 %v8516_v28 }
 0x5ff   :  { %v8021_v30 = vadd.f32 %v8020_v16, %v8019_v29  ;;  %v8022_v44 = vpop.f32.mrb[114].mxu0  ;;  %v5226_v14 = vpop.f32.mrb[123].mxu1  ;;  %v12112_v29 = vsel %vm186_vm1, %v5410_v11, %v14107_v48  ;;  %v8517_v43 = vld [vmem:[%s13264_s11 + $0x140] sm:$0xff]   ;;  %v8518_v48 = vld [vmem:[%s13264_s11 + $0x1a8] sm:$0xff]   ;;  %8063 = vmatprep.subr.bf16.mxu0 %v8515_v1 }
 0x600   :  { %v8023_v34 = vpop.f32.mrb[115].mxu0  ;;  %5436 = vrot.lane.b32.xlu0 %v5407_v23, %s8571_s29  ;;  %v5266_v23 = vmul.f32 %v12038_v56, %v5208_v40  ;;  %8064 = vmatpush3.bf16.msra.mxu0 %v8517_v43  ;;  %v5489_v40 = vrot.slane %v12053_v31, 2 }
 0x601   :  { %v5127_v61 = vadd.f32 %v8021_v30, %v12001_v38  ;;  %v8024_v16 = vadd.f32 %v8023_v34, %v8022_v44  ;;  %5442 = vrot.lane.b32.xlu1 %v12112_v29, %s8571_s29  ;;  %v5268_v38 = vmul.f32 %v12038_v56, %v5216_v54  ;;  %v12134_v34 = vsel %vm186_vm1, %v5408_v35, %v5410_v11  ;;  %v8520_v11 = vld [vmem:[%s13264_s11 + $0x1b0] sm:$0xff]  }
 0x602   :  { %8122 = vmatpush3.bf16.msra.mxu1 %v8518_v48  ;;  %v5290_v48 = vadd.f32 %v12043_v22, %v5266_v23  ;;  %v12164_v28 = vsel %vm185_vm0, %v12137_v37, %v5489_v40  ;;  %v5267_v23 = vmul.f32 %v12038_v56, %v12071_v19 }
 0x603   :  { %v12129_v30 = vadd.f32 %v5223_v59, %v5127_v61  ;;  %v5130_v44 = vadd.f32 %v8024_v16, %v12003_v46  ;;  %v8519_v59 = vld [vmem:[%s13264_s11 + $0x1f0] sm:$0xff]   ;;  %v5292_v43 = vadd.f32 %v12043_v22, %v5268_v38 }
 0x604   :  { %v12141_v49 = vpop.f32.mrb[124].mxu1  ;;  %5440 = vrot.lane.b32.xlu0 %v12134_v34, %s8571_s29  ;;  %8123 = vmatprep.subr.bf16.mxu1 %v8519_v59  ;;  %v8521_v59 = vld [vmem:[%s13264_s11 + $0x188] sm:$0xff]  }
 0x605   :  { %v12139_v39 = vadd.f32 %v5226_v14, %v5130_v44  ;;  %v8025_v61 = vpop.f32.mrb[116].mxu0  ;;  %v12146_v46 = vpop.f32.mrb[125].mxu1  ;;  %5653 = vrot.lane.b32.xlu1 %v5408_v35, %s8571_s29  ;;  %v12189_v19 = vmax.f32 %v5292_v43, 0.0  ;;  %8065 = vmatprep.subr.bf16.mxu0 %v8521_v59  ;;  %v8526_v43 = vld [vmem:[%s13264_s11 + $0x200] sm:$0xff]   ;;  %v8529_v59 = vld [vmem:[%s13264_s11 + $0x198] sm:$0xff]  }
 0x606   :  { %v8026_v54 = vpop.f32.mrb[117].mxu0  ;;  %v12156_v14 = vpop.f32.mrb[126].mxu1  ;;  %8124 = vmatpush3.bf16.msra.mxu1 %v8520_v11 }
 0x607   :  { %v8027_v16 = vadd.f32 %v8026_v54, %v8025_v61  ;;  %v8028_v1 = vpop.f32.mrb[118].mxu0  ;;  %v12160_v44 = vpop.f32.mrb[127].mxu1  ;;  %v14108_v61 = vrot.slane %v12069_v17, 2 }
 0x608   :  { %v8029_v60 = vpop.f32.mrb[119].mxu0  ;;  %5605 = vrot.lane.b32.xlu0 %v12164_v28, %s8571_s29 }
 0x609   :  { %v5135_v18 = vadd.f32 %v8027_v16, %v12008_v0  ;;  %v12172_v54 = vsel %vm185_vm0, %v5489_v40, %v14108_v61  ;;  %v8030_v38 = vadd.f32 %v8029_v60, %v8028_v1  ;;  %v8522_v0 = vld [vmem:[%s13264_s11 + $0x1f8] sm:$0xff]   ;;  %v8523_v40 = vld [vmem:[%s13264_s11 + $0x148] sm:$0xff]   ;;  %v12194_v1 = vmax.f32 %v5290_v48, 0.0 }
 0x60a   :  { %5607 = vrot.lane.b32.xlu1 %v12172_v54, %s8571_s29  ;;  %v8524_v16 = vld [vmem:[%s13264_s11 + $0x1b8] sm:$0xff]   ;;  %v5269_v61 = vmul.f32 %v12038_v56, %v12085_v47  ;;  %8125 = vmatprep.subr.bf16.mxu1 %v8522_v0 }
 0x60b   :  { %v5232_v60 = vadd.f32 %v12087_v4, %v5135_v18  ;;  %v5138_v11 = vadd.f32 %v8030_v38, %v12010_v52  ;;  %v12205_v18 = vsel %vm186_vm1, %v12083_v9, %v5408_v35  ;;  %8066 = vmatpush3.bf16.msra.mxu0 %v8523_v40  ;;  %v5291_v4 = vadd.f32 %v12043_v22, %v5267_v23  ;;  %v8527_v38 = vld [vmem:[%s13264_s11 + $0x150] sm:$0xff]   ;;  %v8528_v23 = vld [vmem:[%s13264_s11 + $0x1c0] sm:$0xff]  }
 0x60c   :  { %5545 = vrot.lane.b32.xlu0 %v12189_v19, %s8571_s29  ;;  %8126 = vmatpush3.bf16.msra.mxu1 %v8524_v16  ;;  %v13566_v40 = vrot.slane %v12194_v1, 1  ;;  %v8530_v16 = vld [vmem:[%s13264_s11 + $0x208] sm:$0xff]  }
 0x60d   :  { %v12199_v42 = vadd.f32 %v12100_v3, %v5138_v11  ;;  %v8031_v52 = vpop.f32.mrb[120].mxu0  ;;  %v8525_v3 = vld [vmem:[%s13264_s11 + $0x190] sm:$0xff]   ;;  %v5293_v11 = vadd.f32 %v12043_v22, %v5269_v61  ;;  %8127 = vmatprep.subr.bf16.mxu1 %v8526_v43  ;;  %v8531_v61 = vld [vmem:[%s13264_s11 + $0x158] sm:$0xff]   ;;  %v5272_v43 = vmul.f32 %v12038_v56, %v5232_v60 }
 0x60e   :  { %5438 = vrot.lane.b32.xlu1 %v12205_v18, %s8571_s29  ;;  %v8032_v47 = vpop.f32.mrb[121].mxu0  ;;  %8067 = vmatprep.subr.bf16.mxu0 %v8525_v3  ;;  %v12241_v3 = vmax.f32 %v5291_v4, 0.0  ;;  %v14109_v4 = vrot.slane %v12069_v17, 1 }
 0x60f   :  { %v8033_v48 = vadd.f32 %v8032_v47, %v8031_v52  ;;  %v8034_v35 = vpop.f32.mrb[122].mxu0  ;;  %v12236_v47 = vsel %vm185_vm0, %v12080_v32, %v12137_v37  ;;  %8068 = vmatpush3.bf16.msra.mxu0 %v8527_v38 }
 0x610   :  { %v8035_v0 = vpop.f32.mrb[123].mxu0  ;;  %5541 = vrot.lane.b32.xlu0 %v12194_v1, %s8571_s29  ;;  %8128 = vmatpush3.bf16.msra.mxu1 %v8528_v23  ;;  %v12256_v38 = vsel %vm186_vm1, %v14109_v4, %v13566_v40  ;;  %v12258_v23 = vmax.f32 %v5293_v11, 0.0  ;;  %v8533_v11 = vld [vmem:[%s13264_s11 + $0x210] sm:$0xff]   ;;  %v5273_v40 = vmul.f32 %v12038_v56, %v12199_v42 }
 0x611   :  { %v5143_v52 = vadd.f32 %v8033_v48, %v12021_v41  ;;  %v8036_v24 = vadd.f32 %v8035_v0, %v8034_v35  ;;  %v8532_v41 = vld [vmem:[%s13264_s11 + $0x1c8] sm:$0xff]   ;;  %8069 = vmatprep.subr.bf16.mxu0 %v8529_v59  ;;  %8129 = vmatprep.subr.bf16.mxu1 %v8530_v16  ;;  %14110 = vst [vmem:[#allocation22_spill] sm:$0xff] %v12256_v38  ;;  %v5418_v0 = vrot.slane %v12189_v19, 1 }
 0x612   :  { %5603 = vrot.lane.b32.xlu1 %v12236_v47, %s8571_s29 }
 0x613   :  { %v5240_v48 = vadd.f32 %v12146_v46, %v5143_v52  ;;  %v5146_v35 = vadd.f32 %v8036_v24, %v12023_v50  ;;  %8070 = vmatpush3.bf16.msra.mxu0 %v8531_v61  ;;  %v5270_v50 = vmul.f32 %v12038_v56, %v12129_v30  ;;  %v5416_v46 = vrot.slane %v12241_v3, 1 }
 0x614   :  { %5444 = vrot.lane.b32.xlu0 %v12256_v38, %s8571_s29  ;;  %8130 = vmatpush3.bf16.msra.mxu1 %v8532_v41  ;;  %v5296_v30 = vadd.f32 %v12043_v22, %v5272_v43  ;;  %v8535_v41 = vld [vmem:[%s13264_s11 + $0x218] sm:$0xff]  }
 0x615   :  { %v5274_v26 = vmul.f32 %v12038_v56, %v5240_v48  ;;  %v5243_v60 = vadd.f32 %v12160_v44, %v5146_v35  ;;  %v8037_v24 = vpop.f32.mrb[124].mxu0  ;;  %v8534_v44 = vld [vmem:[%s13264_s11 + $0x1d0] sm:$0xff]   ;;  %v12283_v35 = vsel %vm186_vm1, %v5416_v46, %v5418_v0  ;;  %8131 = vmatprep.subr.bf16.mxu1 %v8533_v11  ;;  %v8536_v11 = vld [vmem:[%s13264_s11 + $0x1d8] sm:$0xff]  }
 0x616   :  { %5547 = vrot.lane.b32.xlu1 %v12258_v23, %s8571_s29  ;;  %v8038_v59 = vpop.f32.mrb[125].mxu0  ;;  %14111 = vst [vmem:[#allocation20_spill] sm:$0xff] %v12283_v35 }
 0x617   :  { %v5275_v16 = vmul.f32 %v12038_v56, %v5243_v60  ;;  %v8039_v52 = vadd.f32 %v8038_v59, %v8037_v24  ;;  %v8040_v61 = vpop.f32.mrb[126].mxu0  ;;  %v5298_v48 = vadd.f32 %v12043_v22, %v5274_v26  ;;  %v5420_v59 = vrot.slane %v12258_v23, 1 }
 0x618   :  { %v8041_v4 = vpop.f32.mrb[127].mxu0  ;;  %5448 = vrot.lane.b32.xlu0 %v12283_v35, %s8571_s29  ;;  %v5294_v26 = vadd.f32 %v12043_v22, %v5270_v50  ;;  %8132 = vmatpush3.bf16.msra.mxu1 %v8534_v44 }
 0x619   :  { %v5151_v60 = vadd.f32 %v8039_v52, %v12025_v62  ;;  %v8042_v24 = vadd.f32 %v8041_v4, %v8040_v61  ;;  %v5299_v43 = vadd.f32 %v12043_v22, %v5275_v16  ;;  %v12300_v61 = vmax.f32 %v5296_v30, 0.0  ;;  %8133 = vmatprep.subr.bf16.mxu1 %v8535_v41  ;;  %v12328_v41 = vld [vmem:[%s13264_s11 + $0x220] sm:$0xff]  }
 0x61a   :  { %5543 = vrot.lane.b32.xlu1 %v12241_v3, %s8571_s29  ;;  %v5271_v16 = vmul.f32 %v12038_v56, %v12139_v39  ;;  %v12308_v44 = vsel %vm186_vm1, %v5418_v0, %v5420_v59  ;;  %8302 = vmatprep.subr.bf16.mxu0 %v12328_v41 }
 0x61b   :  { %v5248_v62 = vadd.f32 %v12141_v49, %v5151_v60  ;;  %v5154_v52 = vadd.f32 %v8042_v24, %v12027_v12  ;;  %14112 = vst [vmem:[#allocation24_spill] sm:$0xff] %v12300_v61  ;;  %14113 = vst [vmem:[#allocation25_spill] sm:$0xff] %v12308_v44  ;;  %v12313_v49 = vmax.f32 %v5294_v26, 0.0  ;;  %v5297_v12 = vadd.f32 %v12043_v22, %v5273_v40 }
 0x61c   :  { %5553 = vrot.lane.b32.xlu0 %v12300_v61, %s8571_s29  ;;  %8134 = vmatpush3.bf16.msra.mxu1 %v8536_v11  ;;  %v5295_v39 = vadd.f32 %v12043_v22, %v5271_v16  ;;  %v5493_v24 = vrot.slane %v12194_v1, 2 }
 0x61d   :  { %v5251_v50 = vadd.f32 %v12156_v14, %v5154_v52  ;;  %v14114_v14 = vrot.slane %v12194_v1, 1  ;;  %v12332_v40 = vmax.f32 %v5297_v12, 0.0  ;;  %v5422_v60 = vrot.slane %v12313_v49, 1 }
 0x61e   :  { %5450 = vrot.lane.b32.xlu1 %v12308_v44, %s8571_s29  ;;  %v12335_v4 = vmax.f32 %v5295_v39, 0.0  ;;  %v5276_v26 = vmul.f32 %v12038_v56, %v5248_v62 }
 0x61f   :  { %v5277_v42 = vmul.f32 %v12038_v56, %v5251_v50  ;;  %v12322_v0 = vsel %vm186_vm1, %v14114_v14, %v5416_v46  ;;  %14115 = vst [vmem:[#allocation30_spill] sm:$0xff] %v12332_v40  ;;  %v5495_v46 = vrot.slane %v12241_v3, 2  ;;  %v12346_v11 = vsel %vm186_vm1, %v5420_v59, %v5422_v60 }
 0x620   :  { %5549 = vrot.lane.b32.xlu0 %v12313_v49, %s8571_s29  ;;  %14116 = vst [vmem:[#allocation28_spill] sm:$0xff] %v12346_v11  ;;  %v5428_v52 = vrot.slane %v12332_v40, 1  ;;  %v5426_v50 = vrot.slane %v12300_v61, 1  ;;  %v5300_v56 = vadd.f32 %v12043_v22, %v5276_v26  ;;  %v14122_v14 = vrot.slane %v12069_v17, 2 }
 0x621   :  { %v5301_v30 = vadd.f32 %v12043_v22, %v5277_v42  ;;  %v12352_v16 = vsel %vm185_vm0, %v5493_v24, %v5495_v46  ;;  %v5424_v42 = vrot.slane %v12335_v4, 1  ;;  %v12376_v22 = vmax.f32 %v5298_v48, 0.0 }
 0x622   :  { %5446 = vrot.lane.b32.xlu1 %v12322_v0, %s8571_s29  ;;  %v12360_v59 = vsel %vm186_vm1, %v5426_v50, %v5428_v52  ;;  %v12369_v12 = vmax.f32 %v5300_v56, 0.0  ;;  %v12383_v26 = vsel %vm185_vm0, %v14122_v14, %v5493_v24  ;;  %v5499_v56 = vrot.slane %v12258_v23, 2 }
 0x623   :  { %14117 = vst [vmem:[#allocation33_spill] sm:$0xff] %v12360_v59  ;;  %v12365_v62 = vsel %vm186_vm1, %v5424_v42, %v5426_v50  ;;  %v12372_v39 = vsel %vm186_vm1, %v5422_v60, %v5424_v42  ;;  %14121 = vst [vmem:[#allocation102_spill] sm:$0xff] %v12376_v22  ;;  %v5497_v50 = vrot.slane %v12189_v19, 2  ;;  %v5430_v60 = vrot.slane %v12376_v22, 1 }
 0x624   :  { %5555 = vrot.lane.b32.xlu0 %v12332_v40, %s8571_s29  ;;  %14118 = vst [vmem:[#allocation36_spill] sm:$0xff] %v12365_v62  ;;  %14119 = vst [vmem:[#allocation45_spill] sm:$0xff] %v12369_v12  ;;  %v12394_v42 = vmax.f32 %v5299_v43, 0.0  ;;  %v5434_v43 = vrot.slane %v12369_v12, 1 }
 0x625   :  { %14120 = vst [vmem:[#allocation91_spill] sm:$0xff] %v12372_v39  ;;  %v12392_v48 = vsel %vm185_vm0, %v5495_v46, %v5497_v50  ;;  %v12399_v24 = vsel %vm186_vm1, %v5428_v52, %v5430_v60  ;;  %v12408_v46 = vsel %vm185_vm0, %v5497_v50, %v5499_v56  ;;  %v5501_v50 = vrot.slane %v12313_v49, 2 }
 0x626   :  { %5551 = vrot.lane.b32.xlu1 %v12335_v4, %s8571_s29  ;;  %14123 = vst [vmem:[#allocation73_spill] sm:$0xff] %v12394_v42  ;;  %14124 = vst [vmem:[#allocation8_spill] sm:$0xff] %v12399_v24  ;;  %v5432_v14 = vrot.slane %v12394_v42, 1 }
 0x628   :  { %5452 = vrot.lane.b32.xlu0 %v12346_v11, %s8571_s29  ;;  %v12414_v52 = vsel %vm186_vm1, %v5430_v60, %v5432_v14  ;;  %v12431_v60 = vsel %vm185_vm0, %v5499_v56, %v5501_v50  ;;  %v5511_v11 = vrot.slane %v12394_v42, 2 }
 0x629   :  { %14125 = vst [vmem:[#allocation78_spill] sm:$0xff] %v12414_v52 }
 0x62a   :  { %5611 = vrot.lane.b32.xlu1 %v12352_v16, %s8571_s29 }
 0x62c   :  { %5458 = vrot.lane.b32.xlu0 %v12360_v59, %s8571_s29  ;;  %v12423_v59 = vmax.f32 %v5301_v30, 0.0 }
 0x62e   :  { %5456 = vrot.lane.b32.xlu1 %v12365_v62, %s8571_s29  ;;  %14127 = vst [vmem:[#allocation56_spill] sm:$0xff] %v12423_v59  ;;  %v5503_v62 = vrot.slane %v12335_v4, 2  ;;  %v12458_v51 = vrot.slane %v12423_v59, 1  ;;  %v5515_v55 = vrot.slane %v12423_v59, 2 }
 0x630   :  { %5454 = vrot.lane.b32.xlu0 %v12372_v39, %s8571_s29  ;;  %v12437_v30 = vsel %vm185_vm0, %v5501_v50, %v5503_v62  ;;  %v5509_v39 = vrot.slane %v12376_v22, 2  ;;  %14129 = vst [vmem:[#allocation84_spill] sm:$0xff] %v12458_v51 }
 0x632   :  { %5561 = vrot.lane.b32.xlu1 %v12369_v12, %s8571_s29 }
 0x634   :  { %5609 = vrot.lane.b32.xlu0 %v12383_v26, %s8571_s29 }
 0x636   :  { %5557 = vrot.lane.b32.xlu1 %v12376_v22, %s8571_s29 }
 0x638   :  { %5613 = vrot.lane.b32.xlu0 %v12392_v48, %s8571_s29 }
 0x63a   :  { %5460 = vrot.lane.b32.xlu1 %v12399_v24, %s8571_s29  ;;  %v12419_v24 = vsel %vm186_vm1, %v5432_v14, %v5434_v43  ;;  %v5505_v14 = vrot.slane %v12300_v61, 2 }
 0x63b   :  { %14126 = vst [vmem:[#allocation121_spill] sm:$0xff] %v12419_v24 }
 0x63c   :  { %5559 = vrot.lane.b32.xlu0 %v12394_v42, %s8571_s29  ;;  %v5513_v42 = vrot.slane %v12369_v12, 2 }
 0x63e   :  { %5615 = vrot.lane.b32.xlu1 %v12408_v46, %s8571_s29 }
 0x640   :  { %5462 = vrot.lane.b32.xlu0 %v12414_v52, %s8571_s29  ;;  %v12443_v52 = vsel %vm185_vm0, %v5503_v62, %v5505_v14  ;;  %v12463_v62 = vsel %vm185_vm0, %v5509_v39, %v5511_v11 }
 0x641   :  { %14130 = vst [vmem:[#allocation125_spill] sm:$0xff] %v12463_v62 }
 0x642   :  { %5464 = vrot.lane.b32.xlu1 %v12419_v24, %s8571_s29  ;;  %v5507_v24 = vrot.slane %v12332_v40, 2 }
 0x644   :  { %5563 = vrot.lane.b32.xlu0 %v12423_v59, %s8571_s29  ;;  %v12449_v56 = vsel %vm185_vm0, %v5505_v14, %v5507_v24  ;;  %v12455_v50 = vsel %vm185_vm0, %v5507_v24, %v5509_v39  ;;  %v12469_v14 = vsel %vm186_vm1, %v5434_v43, %v12458_v51  ;;  %v5652_v24 = vsel %vm186_vm1, %v12458_v51, %v14106_v33 }
 0x645   :  { %14128 = vst [vmem:[#allocation115_spill] sm:$0xff] %v12455_v50  ;;  %14131 = vst [vmem:[#allocation92_spill] sm:$0xff] %v12469_v14  ;;  %v12480_v39 = vsel %vm185_vm0, %v5511_v11, %v5513_v42 }
 0x646   :  { %5466 = vrot.lane.b32.xlu1 %v5434_v43, %s8571_s29  ;;  %14132 = vst [vmem:[#allocation124_spill] sm:$0xff] %v12480_v39  ;;  %v12485_v43 = vsel %vm185_vm0, %v5513_v42, %v5515_v55 }
 0x647   :  { %14133 = vst [vmem:[#allocation16_spill] sm:$0xff] %v12485_v43 }
 0x648   :  { %5617 = vrot.lane.b32.xlu0 %v12431_v60, %s8571_s29 }
 0x64a   :  { %5619 = vrot.lane.b32.xlu1 %v12437_v30, %s8571_s29 }
 0x64c   :  { %5621 = vrot.lane.b32.xlu0 %v12443_v52, %s8571_s29 }
 0x64e   :  { %5623 = vrot.lane.b32.xlu1 %v12449_v56, %s8571_s29 }
 0x650   :  { %5625 = vrot.lane.b32.xlu0 %v12455_v50, %s8571_s29 }
 0x652   :  { %5627 = vrot.lane.b32.xlu1 %v12463_v62, %s8571_s29 }
 0x654   :  { %5655 = vrot.lane.b32.xlu0 %v12469_v14, %s8571_s29  ;;  %v14134_v14 = vld [vmem:[#allocation38_spill] sm:$0xff] }
 0x655   :  { %v12491_v12 = vsel %vm185_vm0, %v5515_v55, %v14134_v14  ;;  %v5486_v42 = vsel %vm185_vm0, %v14134_v14, %v12080_v32  ;;  %v14137_v55 = vld [vmem:[#allocation72_spill] sm:$0xff] }
 0x656   :  { %5657 = vrot.lane.b32.xlu1 %v5652_v24, %s8571_s29  ;;  %14135 = vst [vmem:[#allocation128_spill] sm:$0xff] %v12491_v12 }
 0x658   :  { %5629 = vrot.lane.b32.xlu0 %v12480_v39, %s8571_s29 }
 0x65a   :  { %5631 = vrot.lane.b32.xlu1 %v12485_v43, %s8571_s29  ;;  %v14136_v43 = vld [vmem:[#allocation67_spill] sm:$0xff] }
 0x65c   :  { %5633 = vrot.lane.b32.xlu0 %v12491_v12, %s8571_s29  ;;  %v14138_v12 = vld [vmem:[#allocation68_spill] sm:$0xff] }
 0x667   :  { %v5538_v33 = vpop.permute.xlu1 %5537 }
 0x668   :  { %v5682_v11 = vsel %vm708_vm3, %v12164_v28, %v5538_v33  ;;  %v14139_v33 = vld [vmem:[#allocation66_spill] sm:$0xff] }
 0x669   :  { %v5730_v22 = vmul.f32 %v5682_v11, %v14136_v43 }
 0x66a   :  { %v5536_v24 = vpop.permute.xlu0 %5535 }
 0x66b   :  { %v5681_v51 = vsel %vm708_vm3, %v12236_v47, %v5536_v24  ;;  %v5534_v59 = vpop.permute.xlu1 %5533 }
 0x66c   :  { %v5725_v7 = vmul.f32 %v5681_v51, %v14137_v55  ;;  %v5680_v2 = vsel %vm708_vm3, %v5486_v42, %v5534_v59  ;;  %v14140_v59 = vld [vmem:[#allocation37_spill] sm:$0xff] }
 0x66d   :  { %v5720_v44 = vmul.f32 %v5680_v2, %v14138_v12  ;;  %v5718_v2 = vmul.f32 %v12137_v37, %v14140_v59  ;;  %v14143_v42 = vld [vmem:[#allocation41_spill] sm:$0xff] }
 0x66e   :  { %v5803_v62 = vpack.c.bf16 %v5730_v22, %v5725_v7  ;;  %v5602_v35 = vpop.permute.xlu0 %5601  ;;  %v14141_v7 = vld [vmem:[#allocation71_spill] sm:$0xff] }
 0x66f   :  { %v5798_v40 = vpack.c.bf16 %v5720_v44, %v14139_v33  ;;  %v5540_v39 = vpop.permute.xlu1 %5539  ;;  %v14142_v44 = vld [vmem:[#allocation39_spill] sm:$0xff] }
 0x670   :  { %v5866_v50 = vshrl.u32 %v5803_v62, 16  ;;  %v5869_v47 = vshll.u32 %v5803_v62, 16  ;;  %v5723_v62 = vmul.f32 %v12164_v28, %v14142_v44 }
 0x671   :  { %v5858_v24 = vshrl.u32 %v5798_v40, 16  ;;  %v5861_v38 = vshll.u32 %v5798_v40, 16  ;;  %v5733_v40 = vmul.f32 %v12383_v26, %v14143_v42 }
 0x672   :  { %v5868_v61 = vrot.slane %v5866_v50, 3  ;;  %v5871_v32 = vrot.slane %v5869_v47, 4  ;;  %v5437_v14 = vpop.permute.xlu0 %5436  ;;  %v14144_v50 = vld [vmem:[#allocation43_spill] sm:$0xff]  ;;  %v14145_v47 = vld [vmem:[#allocation40_spill] sm:$0xff] }
 0x673   :  { %v5860_v8 = vrot.slane %v5858_v24, 3  ;;  %v5863_v43 = vrot.slane %v5861_v38, 4  ;;  %v5664_v51 = vsel %vm708_vm3, 0.0, %v5437_v14  ;;  %v5443_v11 = vpop.permute.xlu1 %5442  ;;  %v5743_v55 = vmul.f32 %v12392_v48, %v14144_v50  ;;  %v14146_v14 = vld [vmem:[#allocation42_spill] sm:$0xff] }
 0x674   :  { %v5719_v12 = vmul.f32 %v5664_v51, %v14141_v7  ;;  %v12511_v22 = vor.u32 %v5871_v32, %v5868_v61  ;;  %v5728_v24 = vmul.f32 %v12172_v54, %v14145_v47  ;;  %v5738_v37 = vmul.f32 %v12352_v16, %v14146_v14  ;;  %v14147_v51 = vld [vmem:[#allocation64_spill] sm:$0xff] }
 0x675   :  { %v5864_v38 = vor.u32 %v5863_v43, %v5860_v8  ;;  %v12528_v7 = vpack.c.bf16 %v5723_v62, %v5718_v2 }
 0x676   :  { %v5441_v33 = vpop.permute.xlu0 %5440  ;;  %v5797_v59 = vpack.c.bf16 %v5719_v12, %v14147_v51  ;;  %v12530_v8 = vpack.c.bf16 %v5733_v40, %v5728_v24  ;;  %v12532_v43 = vpack.c.bf16 %v5743_v55, %v5738_v37  ;;  %v5683_v51 = vsel %vm708_vm3, %v12172_v54, %v5540_v39 }
 0x677   :  { %v5666_v61 = vsel %vm708_vm3, %v12067_v27, %v5441_v33  ;;  %v5654_v32 = vpop.permute.xlu1 %5653  ;;  %v5873_v28 = vsel %vm1213_vm4, %v5864_v38, %v12511_v22  ;;  %v5909_v62 = vshrl.u32 %v12528_v7, 16  ;;  %v5912_v40 = vshll.u32 %v12528_v7, 16 }
 0x678   :  { %6528 = vmatprep.mubr.bf16.mxu0 %v5873_v28  ;;  %v5713_v44 = vsel %vm708_vm3, %v12065_v63, %v5654_v32  ;;  %v5722_v42 = vmul.f32 %v5666_v61, %v13888_v53  ;;  %v5841_v12 = vshrl.u32 %v5797_v59, 16  ;;  %v5844_v47 = vshll.u32 %v5797_v59, 16 }
 0x679   :  { %v5717_v27 = vmul.f32 %v5713_v44, %v14037_v20  ;;  %v5962_v53 = vshrl.u32 %v12532_v43, 16  ;;  %v5965_v32 = vshll.u32 %v12532_v43, 16  ;;  %v5696_v28 = vsel %vm708_vm3, %v12083_v9, %v5602_v35 }
 0x67a   :  { %v5606_v50 = vpop.permute.xlu0 %5605  ;;  %v12558_v44 = vrot.slane %v5841_v12, 3  ;;  %v12570_v35 = vrot.slane %v5909_v62, 3  ;;  %v5716_v54 = vmul.f32 %v5696_v28, %v14051_v15  ;;  %v14151_v62 = vld [vmem:[#allocation85_spill] sm:$0xff] }
 0x67b   :  { %v5698_v38 = vsel %vm708_vm3, %v12134_v34, %v5606_v50  ;;  %v5800_v24 = vpack.c.bf16 %v5722_v42, %v5717_v27  ;;  %v12560_v42 = vrot.slane %v5844_v47, 4  ;;  %v12566_v27 = vrot.slane %v5962_v53, 3 }
 0x67c   :  { %v5608_v33 = vpop.permute.xlu1 %5607  ;;  %v5726_v14 = vmul.f32 %v5698_v38, %v14059_v57  ;;  %v14149_v38 = vld [vmem:[#allocation87_spill] sm:$0xff] }
 0x67d   :  { %v5699_v2 = vsel %vm708_vm3, %v12112_v29, %v5608_v33  ;;  %v12552_v29 = vmul.f32 %v12408_v46, %v14028_v36  ;;  %v14148_v36 = vld [vmem:[#allocation83_spill] sm:$0xff]  ;;  %v5892_v39 = vshrl.u32 %v5800_v24, 16  ;;  %v5895_v33 = vshll.u32 %v5800_v24, 16 }
 0x67e   :  { %v5731_v34 = vmul.f32 %v5699_v2, %v14057_v5  ;;  %v5546_v37 = vpop.permute.xlu0 %5545  ;;  %v5667_v5 = vsel %vm708_vm3, %v12053_v31, %v5443_v11  ;;  %v5729_v50 = vmul.f32 %v5666_v61, %v14148_v36  ;;  %v14150_v2 = vld [vmem:[#allocation69_spill] sm:$0xff]  ;;  %v5847_v61 = vor.u32 %v12560_v42, %v12558_v44 }
 0x67f   :  { %v5735_v20 = vmul.f32 %v5683_v51, %v14150_v2  ;;  %v5727_v31 = vmul.f32 %v5667_v5, %v13879_v25  ;;  %v12586_v51 = vrot.slane %v5892_v39, 3  ;;  %v14153_v2 = vld [vmem:[#allocation93_spill] sm:$0xff] }
 0x680   :  { %v5439_v59 = vpop.permute.xlu1 %5438  ;;  %v5804_v12 = vpack.c.bf16 %v5731_v34, %v5726_v14  ;;  %v5686_v14 = vsel %vm708_vm3, %v12392_v48, %v5546_v37 }
 0x681   :  { %v5665_v57 = vsel %vm708_vm3, %v12065_v63, %v5439_v59  ;;  %v5734_v59 = vmul.f32 %v5667_v5, %v14151_v62 }
 0x682   :  { %v5724_v9 = vmul.f32 %v5665_v57, %v14149_v38  ;;  %v5542_v47 = vpop.permute.xlu0 %5541  ;;  %v14152_v57 = vld [vmem:[#allocation90_spill] sm:$0xff]  ;;  %v5883_v36 = vshrl.u32 %v5804_v12, 16  ;;  %v5886_v39 = vshll.u32 %v5804_v12, 16 }
 0x683   :  { %v5684_v63 = vsel %vm708_vm3, %v12383_v26, %v5542_v47  ;;  %v12588_v26 = vrot.slane %v5895_v33, 4 }
 0x684   :  { %v5802_v11 = vpack.c.bf16 %v5729_v50, %v5724_v9  ;;  %v5604_v53 = vpop.permute.xlu1 %5603  ;;  %v5740_v15 = vmul.f32 %v5684_v63, %v14152_v57 }
 0x685   :  { %v5697_v24 = vsel %vm708_vm3, %v12205_v18, %v5604_v53 }
 0x686   :  { %v5849_v34 = vshrl.u32 %v5802_v11, 16  ;;  %v5852_v25 = vshll.u32 %v5802_v11, 16  ;;  %v5721_v28 = vmul.f32 %v5697_v24, %v14048_v45  ;;  %v5808_v44 = vpack.c.bf16 %v5740_v15, %v5735_v20  ;;  %v5445_v42 = vpop.permute.xlu0 %5444  ;;  %v14154_v11 = vld [vmem:[#allocation89_spill] sm:$0xff] }
 0x687   :  { %v5668_v18 = vsel %vm708_vm3, %v12069_v17, %v5445_v42  ;;  %v5750_v33 = vmul.f32 %v5686_v14, %v14154_v11  ;;  %v5885_v20 = vrot.slane %v5883_v36, 3 }
 0x688   :  { %v5851_v5 = vrot.slane %v5849_v34, 3  ;;  %v5854_v50 = vrot.slane %v5852_v25, 4  ;;  %v5799_v38 = vpack.c.bf16 %v5721_v28, %v5716_v54  ;;  %v5548_v9 = vpop.permute.xlu1 %5547  ;;  %v5935_v47 = vshrl.u32 %v5808_v44, 16 }
 0x689   :  { %v5938_v48 = vshll.u32 %v5808_v44, 16  ;;  %v5732_v37 = vmul.f32 %v5668_v18, %v13878_v21  ;;  %v5739_v45 = vmul.f32 %v5668_v18, %v14153_v2  ;;  %v5888_v18 = vrot.slane %v5886_v39, 4 }
 0x68a   :  { %v5875_v63 = vshrl.u32 %v5799_v38, 16  ;;  %v5878_v53 = vshll.u32 %v5799_v38, 16  ;;  %v5855_v62 = vor.u32 %v5854_v50, %v5851_v5  ;;  %v5449_v54 = vpop.permute.xlu0 %5448  ;;  %v5937_v24 = vrot.slane %v5935_v47, 3  ;;  %v8538_v47 = vld [vmem:[%s13264_s11 + $0x228] sm:$0xff]  }
 0x68b   :  { %v5805_v57 = vpack.c.bf16 %v5732_v37, %v5727_v31  ;;  %v5807_v15 = vpack.c.bf16 %v5739_v45, %v5734_v59  ;;  %v5940_v34 = vrot.slane %v5938_v48, 4  ;;  %v5687_v12 = vsel %vm708_vm3, %v12408_v46, %v5548_v9  ;;  %v14155_v37 = vld [vmem:[#allocation94_spill] sm:$0xff] }
 0x68c   :  { %v5877_v17 = vrot.slane %v5875_v63, 3  ;;  %v5880_v25 = vrot.slane %v5878_v53, 4  ;;  %v5544_v28 = vpop.permute.xlu1 %5543  ;;  %v5670_v14 = vsel %vm708_vm3, %v12241_v3, %v5449_v54  ;;  %v5856_v46 = vsel %vm1213_vm4, %v5847_v61, %v5855_v62  ;;  %v14156_v3 = vld [vmem:[#allocation46_spill] sm:$0xff] }
 0x68d   :  { %v5900_v44 = vshrl.u32 %v5805_v57, 16  ;;  %v5903_v42 = vshll.u32 %v5805_v57, 16  ;;  %v5926_v21 = vshrl.u32 %v5807_v15, 16  ;;  %v5929_v55 = vshll.u32 %v5807_v15, 16  ;;  %6529 = vmatmul.mubr.bf16.vlgmr.msra.gmra.mrb[128].mxu0 %v5856_v46 }
 0x68e   :  { %v5685_v31 = vsel %vm708_vm3, %v12352_v16, %v5544_v28  ;;  %v5554_v38 = vpop.permute.xlu0 %5553  ;;  %v5881_v48 = vor.u32 %v5880_v25, %v5877_v17  ;;  %v5941_v45 = vor.u32 %v5940_v34, %v5937_v24  ;;  %v5753_v39 = vmul.f32 %v12431_v60, %v14156_v3  ;;  %8303 = vmatpush3.bf16.msra.mxu0 %v12328_v41 }
 0x68f   :  { %v5902_v59 = vrot.slane %v5900_v44, 3  ;;  %v5905_v36 = vrot.slane %v5903_v42, 4  ;;  %v5928_v5 = vrot.slane %v5926_v21, 3  ;;  %v5931_v50 = vrot.slane %v5929_v55, 4  ;;  %8304 = vmatprep.subr.bf16.mxu0 %v8538_v47  ;;  %v14158_v44 = vld [vmem:[#allocation101_spill] sm:$0xff] }
 0x690   :  { %v5745_v2 = vmul.f32 %v5685_v31, %v14155_v37  ;;  %v5451_v9 = vpop.permute.xlu1 %5450  ;;  %v5898_v16 = vor.u32 %v12588_v26, %v12586_v51  ;;  %v12614_v63 = vor.u32 %v5888_v18, %v5885_v20  ;;  %v5755_v53 = vmul.f32 %v5687_v12, %v14030_v10  ;;  %v8539_v10 = vld [vmem:[%s13264_s11 + $0x230] sm:$0xff]   ;;  %v14160_v31 = vld [vmem:[#allocation100_spill] sm:$0xff] }
 0x691   :  { %v12610_v55 = vor.u32 %v5905_v36, %v5902_v59  ;;  %v12612_v11 = vor.u32 %v5931_v50, %v5928_v5  ;;  %v5942_v61 = vsel %vm1213_vm4, %v12511_v22, %v5941_v45  ;;  %v12622_v15 = vrot.slane %v5965_v32, 4 }
 0x692   :  { %v5813_v57 = vpack.c.bf16 %v5750_v33, %v5745_v2  ;;  %v5742_v51 = vmul.f32 %v5670_v14, %v13747_v58  ;;  %v5749_v26 = vmul.f32 %v5670_v14, %v13872_v6  ;;  %6536 = vmatprep.mubr.bf16.mxu0 %v5942_v61  ;;  %v5550_v54 = vpop.permute.xlu0 %5549  ;;  %v5890_v58 = vsel %vm1213_vm4, %v5881_v48, %v12614_v63 }
 0x693   :  { %v5907_v20 = vsel %vm1213_vm4, %v5898_v16, %v12610_v55  ;;  %v5688_v43 = vsel %vm708_vm3, %v12431_v60, %v5550_v54  ;;  %v5690_v6 = vsel %vm708_vm3, %v12443_v52, %v5554_v38  ;;  %v5933_v34 = vsel %vm1213_vm4, %v5855_v62, %v12612_v11  ;;  %v14157_v60 = vld [vmem:[#allocation97_spill] sm:$0xff]  ;;  %8305 = vmatpush3.bf16.msra.mxu0 %v8538_v47  ;;  %v14161_v16 = vld [vmem:[#allocation103_spill] sm:$0xff] }
 0x694   :  { %v5980_v22 = vshrl.u32 %v5813_v57, 16  ;;  %v5983_v41 = vshll.u32 %v5813_v57, 16  ;;  %v5447_v32 = vpop.permute.xlu1 %5446  ;;  %6625 = vmatprep.mubr.bf16.mxu1 %v5907_v20  ;;  %v5760_v33 = vmul.f32 %v5688_v43, %v14031_v13  ;;  %v12645_v21 = vpack.c.bf16 %v5753_v39, %v12552_v29  ;;  %8306 = vmatprep.subr.bf16.mxu0 %v8539_v10  ;;  %v8540_v13 = vld [vmem:[%s13264_s11 + $0x238] sm:$0xff]   ;;  %v14162_v20 = vld [vmem:[#allocation98_spill] sm:$0xff] }
 0x695   :  { %v5669_v24 = vsel %vm708_vm3, %v12194_v1, %v5447_v32  ;;  %6626 = vmatmul.mubr.bf16.vlgmr.msra.gmra.mrb[128].mxu1 %v5890_v58  ;;  %v12654_v1 = vrot.slane %v5912_v40, 4  ;;  %v14159_v62 = vshrl.u32 %v12530_v8, 16  ;;  %v5770_v59 = vmul.f32 %v5690_v6, %v14160_v31  ;;  %6537 = vmatmul.mubr.bf16.gmra.mrb[132].mxu0 %v5933_v34  ;;  %v14163_v32 = vld [vmem:[#allocation99_spill] sm:$0xff]  ;;  %v14164_v6 = vld [vmem:[#allocation105_spill] sm:$0xff] }
 0x696   :  { %v5982_v17 = vrot.slane %v5980_v22, 3  ;;  %v5985_v25 = vrot.slane %v5983_v41, 4  ;;  %v5737_v28 = vmul.f32 %v5669_v24, %v14157_v60  ;;  %v5744_v42 = vmul.f32 %v5669_v24, %v14158_v44  ;;  %v12647_v12 = vpop.permute.xlu0 %5555 }
 0x697   :  { %v5818_v18 = vpack.c.bf16 %v5760_v33, %v5755_v53  ;;  %v5919_v14 = vrot.slane %v14159_v62, 3  ;;  %v5671_v38 = vsel %vm708_vm3, %v12189_v19, %v5451_v9  ;;  %8307 = vmatpush3.bf16.msra.mxu0 %v8539_v10  ;;  %v14166_v44 = vshll.u32 %v12530_v8, 16 }
 0x698   :  { %v5810_v36 = vpack.c.bf16 %v5742_v51, %v5737_v28  ;;  %v5812_v29 = vpack.c.bf16 %v5749_v26, %v5744_v42  ;;  %v5552_v5 = vpop.permute.xlu1 %5551  ;;  %v5986_v50 = vor.u32 %v5985_v25, %v5982_v17  ;;  %8308 = vmatprep.subr.bf16.mxu0 %v8540_v13  ;;  %v5747_v22 = vmul.f32 %v5671_v38, %v14162_v20 }
 0x699   :  { %v6025_v47 = vshrl.u32 %v5818_v18, 16  ;;  %v6028_v48 = vshll.u32 %v5818_v18, 16  ;;  %v5689_v7 = vsel %vm708_vm3, %v12437_v30, %v5552_v5  ;;  %v5754_v58 = vmul.f32 %v5671_v38, %v14163_v32  ;;  %v14167_v18 = vld [vmem:[#allocation48_spill] sm:$0xff] }
 0x69a   :  { %v5953_v40 = vshrl.u32 %v5810_v36, 16  ;;  %v5956_v37 = vshll.u32 %v5810_v36, 16  ;;  %v5971_v2 = vshrl.u32 %v5812_v29, 16  ;;  %v5974_v46 = vshll.u32 %v5812_v29, 16  ;;  %v5453_v61 = vpop.permute.xlu0 %5452  ;;  %v14174_v32 = vld [vmem:[#allocation24_spill] sm:$0xff] }
 0x69b   :  { %v6027_v3 = vrot.slane %v6025_v47, 3  ;;  %v6030_v39 = vrot.slane %v6028_v48, 4  ;;  %v5765_v53 = vmul.f32 %v5689_v7, %v14161_v16  ;;  %v5987_v57 = vsel %vm1213_vm4, %v5941_v45, %v5986_v50  ;;  %v14165_v45 = vld [vmem:[#allocation107_spill] sm:$0xff]  ;;  %8309 = vmatpush3.bf16.msra.mxu0 %v8540_v13 }
 0x69c   :  { %v5955_v19 = vrot.slane %v5953_v40, 3  ;;  %v5958_v9 = vrot.slane %v5956_v37, 4  ;;  %v5973_v51 = vrot.slane %v5971_v2, 3  ;;  %v5976_v26 = vrot.slane %v5974_v46, 4  ;;  %6544 = vmatprep.mubr.bf16.mxu0 %v5987_v57  ;;  %v5612_v54 = vpop.permute.xlu1 %5611  ;;  %v14168_v2 = vld [vmem:[#allocation49_spill] sm:$0xff] }
 0x69d   :  { %v5823_v41 = vpack.c.bf16 %v5770_v59, %v5765_v53  ;;  %v5672_v10 = vsel %vm708_vm3, %v12258_v23, %v5453_v61  ;;  %v6031_v43 = vor.u32 %v6030_v39, %v6027_v3  ;;  %v5922_v42 = vrot.slane %v14166_v44, 4  ;;  %v14169_v61 = vld [vmem:[#allocation108_spill] sm:$0xff] }
 0x69e   :  { %v5752_v33 = vmul.f32 %v5672_v10, %v14164_v6  ;;  %v5759_v24 = vmul.f32 %v5672_v10, %v14165_v45  ;;  %v5977_v34 = vor.u32 %v5976_v26, %v5973_v51  ;;  %v5459_v60 = vpop.permute.xlu0 %5458  ;;  %v12671_v28 = vor.u32 %v5958_v9, %v5955_v19  ;;  %v14171_v51 = vld [vmem:[#allocation110_spill] sm:$0xff] }
 0x69f   :  { %v6070_v17 = vshrl.u32 %v5823_v41, 16  ;;  %v6073_v25 = vshll.u32 %v5823_v41, 16  ;;  %v5758_v23 = vmul.f32 %v12437_v30, %v14167_v18  ;;  %v6032_v13 = vsel %vm1213_vm4, %v5986_v50, %v6031_v43  ;;  %v14173_v41 = vld [vmem:[#allocation127_spill] sm:$0xff]  ;;  %v14175_v45 = vld [vmem:[#allocation22_spill] sm:$0xff] }
 0x6a0   :  { %v5815_v62 = vpack.c.bf16 %v5752_v33, %v5747_v22  ;;  %v5817_v31 = vpack.c.bf16 %v5759_v24, %v5754_v58  ;;  %v5457_v59 = vpop.permute.xlu1 %5456  ;;  %v5978_v36 = vsel %vm1213_vm4, %v12612_v11, %v5977_v34  ;;  %v5915_v38 = vor.u32 %v12654_v1, %v12570_v35  ;;  %v14225_v1 = vld [vmem:[#allocation54_spill] sm:$0xff] }
 0x6a1   :  { %v6072_v29 = vrot.slane %v6070_v17, 3  ;;  %v6075_v5 = vrot.slane %v6073_v25, 4  ;;  %6545 = vmatmul.mubr.bf16.gmra.mrb[136].mxu0 %v5978_v36  ;;  %v6007_v8 = vshrl.u32 %v12645_v21, 16  ;;  %v6010_v47 = vshll.u32 %v12645_v21, 16 }
 0x6a2   :  { %v6016_v48 = vshrl.u32 %v5817_v31, 16  ;;  %v6019_v30 = vshll.u32 %v5817_v31, 16  ;;  %6552 = vmatprep.mubr.bf16.mxu0 %v6032_v13  ;;  %v5998_v7 = vshrl.u32 %v5815_v62, 16  ;;  %v5674_v40 = vsel %vm708_vm3, %v12335_v4, %v5457_v59  ;;  %v5455_v37 = vpop.permute.xlu0 %5454  ;;  %v14178_v13 = vld [vmem:[#allocation104_spill] sm:$0xff] }
 0x6a3   :  { %v5960_v11 = vsel %vm1213_vm4, %v12610_v55, %v12671_v28  ;;  %v12689_v50 = vor.u32 %v5922_v42, %v5919_v14  ;;  %v5763_v46 = vmul.f32 %v12443_v52, %v14168_v2  ;;  %v5701_v16 = vsel %vm708_vm3, %v12322_v0, %v5612_v54  ;;  %v14170_v14 = vld [vmem:[#allocation109_spill] sm:$0xff]  ;;  %v14172_v52 = vld [vmem:[#allocation111_spill] sm:$0xff]  ;;  %v14176_v42 = vld [vmem:[#allocation126_spill] sm:$0xff] }
 0x6a4   :  { %v6018_v3 = vrot.slane %v6016_v48, 3  ;;  %v6021_v39 = vrot.slane %v6019_v30, 4  ;;  %6633 = vmatprep.mubr.bf16.mxu1 %v5960_v11  ;;  %v5562_v53 = vpop.permute.xlu1 %5561  ;;  %v6001_v57 = vshll.u32 %v5815_v62, 16  ;;  %v5762_v4 = vmul.f32 %v5674_v40, %v14169_v61  ;;  %v14177_v62 = vld [vmem:[#allocation115_spill] sm:$0xff]  ;;  %v14179_v30 = vld [vmem:[#allocation116_spill] sm:$0xff]  ;;  %v14180_v11 = vld [vmem:[#allocation113_spill] sm:$0xff] }
 0x6a5   :  { %v5673_v19 = vsel %vm708_vm3, %v12313_v49, %v5455_v37  ;;  %v12698_v55 = vor.u32 %v6075_v5, %v6072_v29  ;;  %v5769_v9 = vmul.f32 %v5674_v40, %v14170_v14  ;;  %v5691_v0 = vsel %vm708_vm3, %v12449_v56, %v12647_v12  ;;  %v14182_v14 = vld [vmem:[#allocation30_spill] sm:$0xff] }
 0x6a6   :  { %v5757_v26 = vmul.f32 %v5673_v19, %v14171_v51  ;;  %v5764_v20 = vmul.f32 %v5673_v19, %v14172_v52  ;;  %v6022_v22 = vor.u32 %v6021_v39, %v6018_v3  ;;  %v6000_v54 = vrot.slane %v5998_v7, 3  ;;  %v5610_v49 = vpop.permute.xlu0 %5609  ;;  %v14181_v39 = vld [vmem:[#allocation124_spill] sm:$0xff] }
 0x6a7   :  { %v5741_v10 = vmul.f32 %v5701_v16, %v14173_v41  ;;  %v5675_v58 = vsel %vm708_vm3, %v14174_v32, %v5459_v60  ;;  %v5700_v24 = vsel %vm708_vm3, %v14175_v45, %v5610_v49  ;;  %v6003_v44 = vrot.slane %v6001_v57, 4  ;;  %v14184_v32 = vld [vmem:[#allocation119_spill] sm:$0xff] }
 0x6a8   :  { %v5820_v6 = vpack.c.bf16 %v5762_v4, %v5757_v26  ;;  %v5822_v33 = vpack.c.bf16 %v5769_v9, %v5764_v20  ;;  %v5558_v17 = vpop.permute.xlu1 %5557  ;;  %v6023_v25 = vsel %vm1213_vm4, %v5977_v34, %v6022_v22  ;;  %v5736_v18 = vmul.f32 %v5700_v24, %v14176_v42  ;;  %v14186_v24 = vld [vmem:[#allocation114_spill] sm:$0xff] }
 0x6a9   :  { %v5692_v12 = vsel %vm708_vm3, %v14177_v62, %v5558_v17  ;;  %6553 = vmatmul.mubr.bf16.gmra.mrb[140].mxu0 %v6023_v25  ;;  %v6077_v31 = vsel %vm1213_vm4, %v6031_v43, %v12698_v55  ;;  %v12717_v5 = vpack.c.bf16 %v5763_v46, %v5758_v23  ;;  %v5775_v48 = vmul.f32 %v5691_v0, %v14178_v13  ;;  %v14183_v0 = vld [vmem:[#allocation20_spill] sm:$0xff]  ;;  %v14187_v25 = vld [vmem:[#allocation117_spill] sm:$0xff]  ;;  %v14188_v42 = vld [vmem:[#allocation118_spill] sm:$0xff] }
 0x6aa   :  { %v6043_v60 = vshrl.u32 %v5820_v6, 16  ;;  %v6046_v59 = vshll.u32 %v5820_v6, 16  ;;  %v6061_v36 = vshrl.u32 %v5822_v33, 16  ;;  %v6064_v29 = vshll.u32 %v5822_v33, 16  ;;  %6560 = vmatprep.mubr.bf16.mxu0 %v6077_v31  ;;  %v5614_v40 = vpop.permute.xlu0 %5613  ;;  %v14185_v6 = vld [vmem:[#allocation125_spill] sm:$0xff] }
 0x6ab   :  { %v5809_v34 = vpack.c.bf16 %v5741_v10, %v5736_v18  ;;  %v5780_v7 = vmul.f32 %v5692_v12, %v14179_v30  ;;  %v5774_v37 = vmul.f32 %v5675_v58, %v14180_v11  ;;  %v5694_v43 = vsel %vm708_vm3, %v14181_v39, %v5562_v53  ;;  %v14189_v12 = vld [vmem:[#allocation25_spill] sm:$0xff] }
 0x6ac   :  { %v6063_v2 = vrot.slane %v6061_v36, 3  ;;  %v6066_v3 = vrot.slane %v6064_v29, 4  ;;  %v5461_v16 = vpop.permute.xlu1 %5460  ;;  %v12724_v19 = vor.u32 %v6003_v44, %v6000_v54  ;;  %v6045_v23 = vrot.slane %v6043_v60, 3  ;;  %v14190_v29 = vld [vmem:[#allocation47_spill] sm:$0xff]  ;;  %v14192_v30 = vld [vmem:[#allocation129_spill] sm:$0xff] }
 0x6ad   :  { %v5944_v57 = vshrl.u32 %v5809_v34, 16  ;;  %v5947_v61 = vshll.u32 %v5809_v34, 16  ;;  %v5828_v4 = vpack.c.bf16 %v5780_v7, %v5775_v48  ;;  %v6048_v46 = vrot.slane %v6046_v59, 4  ;;  %v14191_v48 = vld [vmem:[#allocation112_spill] sm:$0xff] }
 0x6ae   :  { %v5676_v9 = vsel %vm708_vm3, %v14182_v14, %v5461_v16  ;;  %v12728_v51 = vor.u32 %v6066_v3, %v6063_v2  ;;  %v5702_v41 = vsel %vm708_vm3, %v14183_v0, %v5614_v40  ;;  %v5560_v53 = vpop.permute.xlu0 %5559  ;;  %v5790_v17 = vmul.f32 %v5694_v43, %v14186_v24  ;;  %v14193_v14 = vld [vmem:[#allocation102_spill] sm:$0xff] }
 0x6af   :  { %v5946_v26 = vrot.slane %v5944_v57, 3  ;;  %v6115_v52 = vshrl.u32 %v5828_v4, 16  ;;  %v6118_v20 = vshll.u32 %v5828_v4, 16  ;;  %v5949_v10 = vrot.slane %v5947_v61, 4 }
 0x6b0   :  { %v5779_v49 = vmul.f32 %v5676_v9, %v14184_v32  ;;  %v5693_v54 = vsel %vm708_vm3, %v14185_v6, %v5560_v53  ;;  %v5616_v33 = vpop.permute.xlu1 %5615  ;;  %v6068_v45 = vsel %vm1213_vm4, %v6022_v22, %v12728_v51  ;;  %v5772_v44 = vmul.f32 %v5676_v9, %v14187_v25 }
 0x6b1   :  { %v5785_v18 = vmul.f32 %v5693_v54, %v14188_v42  ;;  %v5703_v31 = vsel %vm708_vm3, %v14189_v12, %v5616_v33  ;;  %6561 = vmatmul.mubr.bf16.gmra.mrb[144].mxu0 %v6068_v45  ;;  %v6117_v60 = vrot.slane %v6115_v52, 3  ;;  %v6120_v59 = vrot.slane %v6118_v20, 4  ;;  %v14194_v54 = vld [vmem:[#allocation95_spill] sm:$0xff] }
 0x6b2   :  { %v5827_v36 = vpack.c.bf16 %v5779_v49, %v5774_v37  ;;  %v5751_v13 = vmul.f32 %v5703_v31, %v14190_v29  ;;  %v5767_v34 = vmul.f32 %v5675_v58, %v14191_v48  ;;  %v5746_v7 = vmul.f32 %v5702_v41, %v14192_v30  ;;  %v5463_v40 = vpop.permute.xlu0 %5462 }
 0x6b3   :  { %v5833_v22 = vpack.c.bf16 %v5790_v17, %v5785_v18  ;;  %v6005_v11 = vsel %vm1213_vm4, %v12671_v28, %v12724_v19  ;;  %v12748_v16 = vor.u32 %v5949_v10, %v5946_v26  ;;  %v12750_v57 = vor.u32 %v6048_v46, %v6045_v23  ;;  %v14195_v10 = vld [vmem:[#allocation122_spill] sm:$0xff]  ;;  %v14196_v46 = vld [vmem:[#allocation73_spill] sm:$0xff]  ;;  %v14198_v18 = vld [vmem:[#allocation123_spill] sm:$0xff] }
 0x6b4   :  { %v6106_v2 = vshrl.u32 %v5827_v36, 16  ;;  %v6109_v3 = vshll.u32 %v5827_v36, 16  ;;  %v5465_v43 = vpop.permute.xlu1 %5464  ;;  %v5814_v4 = vpack.c.bf16 %v5751_v13, %v5746_v7  ;;  %v5677_v58 = vsel %vm708_vm3, %v14193_v14, %v5463_v40  ;;  %v14200_v36 = vld [vmem:[#allocation45_spill] sm:$0xff]  ;;  %v14202_v7 = vld [vmem:[#allocation120_spill] sm:$0xff] }
 0x6b5   :  { %v6160_v37 = vshrl.u32 %v5833_v22, 16  ;;  %v6163_v61 = vshll.u32 %v5833_v22, 16  ;;  %v5825_v9 = vpack.c.bf16 %v5772_v44, %v5767_v34  ;;  %v6121_v0 = vor.u32 %v6120_v59, %v6117_v60  ;;  %v14197_v44 = vld [vmem:[#allocation55_spill] sm:$0xff]  ;;  %v14199_v60 = vld [vmem:[#allocation16_spill] sm:$0xff]  ;;  %v14201_v34 = vld [vmem:[#allocation106_spill] sm:$0xff] }
 0x6b6   :  { %v6108_v52 = vrot.slane %v6106_v2, 3  ;;  %v6111_v20 = vrot.slane %v6109_v3, 4  ;;  %v5989_v28 = vshrl.u32 %v5814_v4, 16  ;;  %v5992_v32 = vshll.u32 %v5814_v4, 16  ;;  %v5564_v49 = vpop.permute.xlu0 %5563 }
 0x6b7   :  { %v6162_v41 = vrot.slane %v6160_v37, 3  ;;  %v6165_v53 = vrot.slane %v6163_v61, 4  ;;  %v5777_v26 = vmul.f32 %v5677_v58, %v14194_v54  ;;  %v5784_v23 = vmul.f32 %v5677_v58, %v14195_v10  ;;  %v14205_v10 = vld [vmem:[#allocation44_spill] sm:$0xff] }
 0x6b8   :  { %v5678_v33 = vsel %vm708_vm3, %v14196_v46, %v5465_v43  ;;  %v5951_v45 = vsel %vm1213_vm4, %v12614_v63, %v12748_v16  ;;  %v5467_v24 = vpop.permute.xlu1 %5466  ;;  %v5991_v17 = vrot.slane %v5989_v28, 3  ;;  %v5994_v25 = vrot.slane %v5992_v32, 4  ;;  %v14204_v28 = vld [vmem:[#allocation91_spill] sm:$0xff] }
 0x6b9   :  { %v5782_v42 = vmul.f32 %v5678_v33, %v14197_v44  ;;  %v5789_v12 = vmul.f32 %v5678_v33, %v14198_v18  ;;  %6634 = vmatmul.mubr.bf16.gmra.mrb[132].mxu1 %v5951_v45  ;;  %v6122_v31 = vsel %vm1213_vm4, %v12698_v55, %v6121_v0  ;;  %v5695_v59 = vsel %vm708_vm3, %v14199_v60, %v5564_v49  ;;  %v14207_v44 = vld [vmem:[#allocation36_spill] sm:$0xff] }
 0x6ba   :  { %6641 = vmatprep.mubr.bf16.mxu1 %v6005_v11  ;;  %v5679_v29 = vsel %vm708_vm3, %v14200_v36, %v5467_v24  ;;  %v6112_v13 = vor.u32 %v6111_v20, %v6108_v52  ;;  %v6088_v63 = vshrl.u32 %v5825_v9, 16  ;;  %6568 = vmatprep.mubr.bf16.mxu0 %v6122_v31  ;;  %v5795_v30 = vmul.f32 %v5695_v59, %v14201_v34  ;;  %v5618_v40 = vpop.permute.xlu0 %5617  ;;  %v14203_v11 = vld [vmem:[#allocation28_spill] sm:$0xff]  ;;  %v14209_v34 = vld [vmem:[#allocation33_spill] sm:$0xff] }
 0x6bb   :  { %v5832_v48 = vpack.c.bf16 %v5789_v12, %v5784_v23  ;;  %v5794_v22 = vmul.f32 %v5679_v29, %v14202_v7  ;;  %v6091_v2 = vshll.u32 %v5825_v9, 16  ;;  %v5704_v3 = vsel %vm708_vm3, %v14203_v11, %v5618_v40 }
 0x6bc   :  { %v6113_v55 = vsel %vm1213_vm4, %v12728_v51, %v6112_v13  ;;  %v5620_v43 = vpop.permute.xlu1 %5619  ;;  %v6050_v37 = vsel %vm1213_vm4, %v12724_v19, %v12750_v57  ;;  %v6166_v14 = vor.u32 %v6165_v53, %v6162_v41  ;;  %v12778_v58 = vor.u32 %v5994_v25, %v5991_v17  ;;  %v14206_v53 = vld [vmem:[#allocation130_spill] sm:$0xff] }
 0x6bd   :  { %v6151_v61 = vshrl.u32 %v5832_v48, 16  ;;  %v6154_v4 = vshll.u32 %v5832_v48, 16  ;;  %6569 = vmatmul.mubr.bf16.gmra.mrb[148].mxu0 %v6113_v55  ;;  %v12780_v52 = vpack.c.bf16 %v5782_v42, %v5777_v26  ;;  %v5838_v9 = vpack.c.bf16 %v5795_v30, %v5795_v30  ;;  %v14211_v55 = vld [vmem:[#allocation8_spill] sm:$0xff] }
 0x6be   :  { %v5837_v20 = vpack.c.bf16 %v5794_v22, %v5794_v22  ;;  %v5705_v51 = vsel %vm708_vm3, %v14204_v28, %v5620_v43  ;;  %v6090_v32 = vrot.slane %v6088_v63, 3  ;;  %v5756_v23 = vmul.f32 %v5704_v3, %v14205_v10  ;;  %v5622_v46 = vpop.permute.xlu0 %5621  ;;  %v14208_v63 = vld [vmem:[#allocation65_spill] sm:$0xff] }
 0x6bf   :  { %v6153_v49 = vrot.slane %v6151_v61, 3  ;;  %v6156_v54 = vrot.slane %v6154_v4, 4  ;;  %v6205_v19 = vshrl.u32 %v5838_v9, 16  ;;  %v6208_v33 = vshll.u32 %v5838_v9, 16  ;;  %v14210_v22 = vld [vmem:[#allocation53_spill] sm:$0xff] }
 0x6c0   :  { %v6196_v45 = vshrl.u32 %v5837_v20, 16  ;;  %v6199_v24 = vshll.u32 %v5837_v20, 16  ;;  %v5624_v41 = vpop.permute.xlu1 %5623  ;;  %v5761_v17 = vmul.f32 %v5705_v51, %v14206_v53  ;;  %v6167_v26 = vsel %vm1213_vm4, %v6121_v0, %v6166_v14  ;;  %v14212_v20 = vld [vmem:[#allocation9_spill] sm:$0xff]  ;;  %v14213_v51 = vld [vmem:[#allocation78_spill] sm:$0xff] }
 0x6c1   :  { %v5996_v25 = vsel %vm1213_vm4, %v12748_v16, %v12778_v58  ;;  %v5706_v42 = vsel %vm708_vm3, %v14207_v44, %v5622_v46  ;;  %v6093_v18 = vrot.slane %v6091_v2, 4  ;;  %v6133_v12 = vshrl.u32 %v12780_v52, 16  ;;  %6576 = vmatprep.mubr.bf16.mxu0 %v6167_v26  ;;  %v14215_v26 = vld [vmem:[#allocation15_spill] sm:$0xff]  ;;  %v14216_v44 = vld [vmem:[#allocation56_spill] sm:$0xff] }
 0x6c2   :  { %v6207_v31 = vrot.slane %v6205_v19, 3  ;;  %v6210_v59 = vrot.slane %v6208_v33, 4  ;;  %6642 = vmatmul.mubr.bf16.gmra.mrb[136].mxu1 %v5996_v25  ;;  %v5819_v29 = vpack.c.bf16 %v5761_v17, %v5756_v23  ;;  %v5766_v48 = vmul.f32 %v5706_v42, %v14208_v63  ;;  %v5626_v7 = vpop.permute.xlu0 %5625  ;;  %v14214_v19 = vld [vmem:[#allocation62_spill] sm:$0xff] }
 0x6c3   :  { %6649 = vmatprep.mubr.bf16.mxu1 %v6050_v37  ;;  %v5707_v0 = vsel %vm708_vm3, %v14209_v34, %v5624_v41  ;;  %v6157_v30 = vor.u32 %v6156_v54, %v6153_v49  ;;  %v6198_v16 = vrot.slane %v6196_v45, 3  ;;  %v5708_v2 = vsel %vm708_vm3, %v14211_v55, %v5626_v7  ;;  %v14219_v34 = vld [vmem:[#allocation11_spill] sm:$0xff] }
 0x6c4   :  { %v5771_v40 = vmul.f32 %v5707_v0, %v14210_v22  ;;  %v5628_v11 = vpop.permute.xlu1 %5627  ;;  %v6211_v3 = vor.u32 %v6210_v59, %v6207_v31  ;;  %v6201_v43 = vrot.slane %v6199_v24, 4  ;;  %v6034_v61 = vshrl.u32 %v5819_v29, 16  ;;  %v14217_v31 = vld [vmem:[#allocation50_spill] sm:$0xff] }
 0x6c5   :  { %v6037_v4 = vshll.u32 %v5819_v29, 16  ;;  %v6158_v37 = vsel %vm1213_vm4, %v6112_v13, %v6157_v30  ;;  %v5776_v28 = vmul.f32 %v5708_v2, %v14212_v20  ;;  %v5709_v49 = vsel %vm708_vm3, %v14213_v51, %v5628_v11  ;;  %v14218_v29 = vld [vmem:[#allocation51_spill] sm:$0xff]  ;;  %v14223_v20 = vld [vmem:[#allocation70_spill] sm:$0xff] }
 0x6c6   :  { %v5824_v9 = vpack.c.bf16 %v5771_v40, %v5766_v48  ;;  %6577 = vmatmul.mubr.bf16.gmra.mrb[152].mxu0 %v6158_v37  ;;  %v6212_v54 = vsel %vm1213_vm4, %v6166_v14, %v6211_v3  ;;  %v6136_v10 = vshll.u32 %v12780_v52, 16  ;;  %v6036_v23 = vrot.slane %v6034_v61, 3  ;;  %v5656_v45 = vpop.permute.xlu0 %5655 }
 0x6c7   :  { %v6039_v46 = vrot.slane %v6037_v4, 4  ;;  %v5781_v33 = vmul.f32 %v5709_v49, %v14214_v19  ;;  %6584 = vmatprep.mubr.bf16.mxu0 %v6212_v54  ;;  %v5714_v13 = vsel %vm708_vm3, %v14200_v36, %v5656_v45  ;;  %v6094_v17 = vor.u32 %v6093_v18, %v6090_v32  ;;  %v14224_v54 = vld [vmem:[#allocation52_spill] sm:$0xff] }
 0x6c8   :  { %v6079_v24 = vshrl.u32 %v5824_v9, 16  ;;  %v6082_v41 = vshll.u32 %v5824_v9, 16  ;;  %v5658_v53 = vpop.permute.xlu1 %5657  ;;  %v5787_v25 = vmul.f32 %v5714_v13, %v14215_v26  ;;  %v6202_v42 = vor.u32 %v6201_v43, %v6198_v16  ;;  %v14222_v9 = vld [vmem:[#allocation18_spill] sm:$0xff] }
 0x6c9   :  { %v5715_v14 = vsel %vm708_vm3, %v14216_v44, %v5658_v53  ;;  %v6040_v52 = vor.u32 %v6039_v46, %v6036_v23  ;;  %v5768_v59 = vmul.f32 %v12449_v56, %v14217_v31  ;;  %v5773_v63 = vmul.f32 %v14177_v62, %v14218_v29  ;;  %v14220_v56 = vld [vmem:[#allocation121_spill] sm:$0xff] }
 0x6ca   :  { %v5829_v48 = vpack.c.bf16 %v5781_v33, %v5776_v28  ;;  %v5792_v0 = vmul.f32 %v5715_v14, %v14219_v34  ;;  %v6135_v7 = vrot.slane %v6133_v12, 3  ;;  %v6081_v36 = vrot.slane %v6079_v24, 3  ;;  %v5630_v18 = vpop.permute.xlu0 %5629  ;;  %v14221_v12 = vld [vmem:[#allocation92_spill] sm:$0xff]  ;;  %v14226_v33 = vld [vmem:[#allocation58_spill] sm:$0xff]  ;;  %v14227_v24 = vld [vmem:[#allocation59_spill] sm:$0xff] }
 0x6cb   :  { %v6084_v22 = vrot.slane %v6082_v41, 4  ;;  %v6041_v32 = vsel %vm1213_vm4, %v12778_v58, %v6040_v52  ;;  %v6138_v40 = vrot.slane %v6136_v10, 4  ;;  %v6095_v16 = vsel %vm1213_vm4, %v12750_v57, %v6094_v17  ;;  %v14228_v41 = vld [vmem:[#allocation128_spill] sm:$0xff] }
 0x6cc   :  { %v5835_v55 = vpack.c.bf16 %v5792_v0, %v5787_v25  ;;  %6650 = vmatmul.mubr.bf16.gmra.mrb[140].mxu1 %v6041_v32  ;;  %v5710_v2 = vsel %vm708_vm3, %v14220_v56, %v5630_v18  ;;  %v5632_v62 = vpop.permute.xlu1 %5631  ;;  %v6203_v11 = vsel %vm1213_vm4, %v6157_v30, %v6202_v42  ;;  %v6009_v58 = vrot.slane %v6007_v8, 3  ;;  %v14229_v14 = vld [vmem:[#allocation84_spill] sm:$0xff] }
 0x6cd   :  { %6657 = vmatprep.mubr.bf16.mxu1 %v6095_v16  ;;  %v5711_v3 = vsel %vm708_vm3, %v14221_v12, %v5632_v62  ;;  %v6012_v43 = vrot.slane %v6010_v47, 4  ;;  %v5968_v61 = vor.u32 %v12622_v15, %v12566_v27  ;;  %v5826_v57 = vpack.c.bf16 %v5773_v63, %v5768_v59 }
 0x6ce   :  { %v6124_v4 = vshrl.u32 %v5829_v48, 16  ;;  %6585 = vmatmul.mubr.bf16.gmra.mrb[156].mxu0 %v6203_v11  ;;  %v5924_v30 = vsel %vm1213_vm4, %v5915_v38, %v12689_v50  ;;  %v6127_v37 = vshll.u32 %v5829_v48, 16  ;;  %v5786_v8 = vmul.f32 %v5710_v2, %v14222_v9  ;;  %v5634_v10 = vpop.permute.xlu0 %5633 }
 0x6cf   :  { %8310 = vmatprep.mubr.msk.bf16.mxu0 %vm708_vm3, %v5924_v30  ;;  %v5791_v21 = vmul.f32 %v5711_v3, %v14223_v20  ;;  %v6085_v47 = vor.u32 %v6084_v22, %v6081_v36  ;;  %v6052_v28 = vshrl.u32 %v12717_v5, 16  ;;  %v6178_v27 = vshrl.u32 %v5835_v55, 16  ;;  %v14230_v36 = vld [vmem:[#allocation13_spill] sm:$0xff] }
 0x6d0   :  { %v6181_v15 = vshll.u32 %v5835_v55, 16  ;;  %v6139_v51 = vor.u32 %v6138_v40, %v6135_v7  ;;  %v6055_v49 = vshll.u32 %v12717_v5, 16  ;;  %v5778_v35 = vmul.f32 %v14185_v6, %v14224_v54 }
 0x6d1   :  { %v5783_v38 = vmul.f32 %v14181_v39, %v14225_v1  ;;  %v6013_v23 = vor.u32 %v6012_v43, %v6009_v58  ;;  %v6097_v46 = vshrl.u32 %v5826_v57, 16  ;;  %v6100_v19 = vshll.u32 %v5826_v57, 16 }
 0x6d2   :  { %v5788_v45 = vmul.f32 %v14199_v60, %v14226_v33  ;;  %v5793_v13 = vmul.f32 %v14228_v41, %v14227_v24  ;;  %v6126_v53 = vrot.slane %v6124_v4, 3  ;;  %v6129_v26 = vrot.slane %v6127_v37, 4 }
 0x6d3   :  { %v5834_v25 = vpack.c.bf16 %v5791_v21, %v5786_v8  ;;  %v6086_v5 = vsel %vm1213_vm4, %v6040_v52, %v6085_v47  ;;  %v6180_v44 = vrot.slane %v6178_v27, 3  ;;  %v6183_v6 = vrot.slane %v6181_v15, 4  ;;  %v14231_v15 = vld [vmem:[#allocation19_spill] sm:$0xff] }
 0x6d4   :  { %v5712_v39 = vsel %vm708_vm3, %v14229_v14, %v5634_v10  ;;  %6658 = vmatmul.mubr.bf16.gmra.mrb[144].mxu1 %v6086_v5  ;;  %v6140_v42 = vsel %vm1213_vm4, %v6094_v17, %v6139_v51  ;;  %v5831_v31 = vpack.c.bf16 %v5783_v38, %v5778_v35  ;;  %v5969_v60 = vsel %vm1213_vm4, %v12689_v50, %v5968_v61  ;;  %v14232_v38 = vld [vmem:[#allocation23_spill] sm:$0xff] }
 0x6d5   :  { %6665 = vmatprep.mubr.bf16.mxu1 %v6140_v42  ;;  %v6054_v59 = vrot.slane %v6052_v28, 3  ;;  %v6057_v29 = vrot.slane %v6055_v49, 4  ;;  %v5836_v63 = vpack.c.bf16 %v5793_v13, %v5788_v45  ;;  %v6014_v52 = vsel %vm1213_vm4, %v5968_v61, %v6013_v23 }
 0x6d6   :  { %8311 = vmatmul.mubr.msk.bf16.vlgmr.msra.gmra.mrb[160].mxu0 %vm708_vm3, %v5969_v60  ;;  %v6099_v48 = vrot.slane %v6097_v46, 3  ;;  %v6102_v34 = vrot.slane %v6100_v19, 4  ;;  %v6169_v0 = vshrl.u32 %v5834_v25, 16  ;;  %v6172_v7 = vshll.u32 %v5834_v25, 16 }
 0x6d7   :  { %v5796_v22 = vmul.f32 %v5712_v39, %v14230_v36  ;;  %8314 = vmatprep.mubr.msk.bf16.mxu0 %vm708_vm3, %v6014_v52  ;;  %v6130_v17 = vor.u32 %v6129_v26, %v6126_v53  ;;  %v6184_v32 = vor.u32 %v6183_v6, %v6180_v44  ;;  %v6142_v18 = vshrl.u32 %v5831_v31, 16 }
 0x6d8   :  { %v6145_v50 = vshll.u32 %v5831_v31, 16  ;;  %v6058_v40 = vor.u32 %v6057_v29, %v6054_v59  ;;  %v6187_v55 = vshrl.u32 %v5836_v63, 16  ;;  %v6190_v16 = vshll.u32 %v5836_v63, 16 }
 0x6d9   :  { %v6103_v56 = vor.u32 %v6102_v34, %v6099_v48  ;;  %v6171_v2 = vrot.slane %v6169_v0, 3  ;;  %v6174_v62 = vrot.slane %v6172_v7, 4  ;;  %v5839_v11 = vpack.c.bf16 %v5796_v22, %v5796_v22 }
 0x6da   :  { %v6131_v12 = vsel %vm1213_vm4, %v6085_v47, %v6130_v17  ;;  %v6185_v3 = vsel %vm1213_vm4, %v6139_v51, %v6184_v32  ;;  %v6059_v58 = vsel %vm1213_vm4, %v6013_v23, %v6058_v40  ;;  %v6144_v43 = vrot.slane %v6142_v18, 3 }
 0x6db   :  { %v6147_v61 = vrot.slane %v6145_v50, 4  ;;  %v6189_v57 = vrot.slane %v6187_v55, 3  ;;  %v6192_v4 = vrot.slane %v6190_v16, 4  ;;  %v6104_v30 = vsel %vm1213_vm4, %v6058_v40, %v6103_v56 }
 0x6dc   :  { %6666 = vmatmul.mubr.bf16.gmra.mrb[148].mxu1 %v6131_v12  ;;  %v6214_v37 = vshrl.u32 %v5839_v11, 16  ;;  %v6217_v9 = vshll.u32 %v5839_v11, 16  ;;  %v6175_v8 = vor.u32 %v6174_v62, %v6171_v2  ;;  %v6222_v51 = vsel %vm1213_vm4, %v6184_v32, %v14231_v15 }
 0x6dd   :  { %6673 = vmatprep.mubr.bf16.mxu1 %v6185_v3  ;;  %v6148_v20 = vor.u32 %v6147_v61, %v6144_v43  ;;  %v6193_v21 = vor.u32 %v6192_v4, %v6189_v57 }
 0x6de   :  { %8315 = vmatmul.mubr.msk.bf16.gmra.mrb[164].mxu0 %vm708_vm3, %v6059_v58  ;;  %v6216_v47 = vrot.slane %v6214_v37, 3  ;;  %v6219_v28 = vrot.slane %v6217_v9, 4  ;;  %v6176_v27 = vsel %vm1213_vm4, %v6130_v17, %v6175_v8 }
 0x6df   :  { %8318 = vmatprep.mubr.msk.bf16.mxu0 %vm708_vm3, %v6104_v30  ;;  %v6149_v49 = vsel %vm1213_vm4, %v6103_v56, %v6148_v20  ;;  %v6194_v54 = vsel %vm1213_vm4, %v6148_v20, %v6193_v21  ;;  %v6223_v10 = vsel %vm1213_vm4, %v6193_v21, %v14232_v38 }
 0x6e0   :  { %v6220_v35 = vor.u32 %v6219_v28, %v6216_v47 }
 0x6e2   :  { %v6221_v1 = vsel %vm1213_vm4, %v6175_v8, %v6220_v35 }
 0x6e4   :  { %6674 = vmatmul.mubr.bf16.gmra.mrb[152].mxu1 %v6176_v27 }
 0x6e5   :  { %6681 = vmatprep.mubr.bf16.mxu1 %v6222_v51 }
 0x6e6   :  { %8319 = vmatmul.mubr.msk.bf16.gmra.mrb[168].mxu0 %vm708_vm3, %v6149_v49 }
 0x6e7   :  { %8322 = vmatprep.mubr.msk.bf16.mxu0 %vm708_vm3, %v6194_v54 }
 0x6ec   :  { %6682 = vmatmul.mubr.bf16.gmra.mrb[156].mxu1 %v6221_v1 }
 0x6ee   :  { %8323 = vmatmul.mubr.msk.bf16.gmra.mrb[172].mxu0 %vm708_vm3, %v6223_v10 }
 0x760   :  { %v8071_v23 = vpop.f32.mrb[128].mxu0 }
 0x761   :  { %v8072_v46 = vpop.f32.mrb[129].mxu0 }
 0x762   :  { %v8073_v19 = vadd.f32 %v8072_v46, %v8071_v23  ;;  %v8074_v33 = vpop.f32.mrb[130].mxu0 }
 0x763   :  { %v8075_v45 = vpop.f32.mrb[131].mxu0 }
 0x764   :  { %v8076_v24 = vadd.f32 %v8075_v45, %v8074_v33 }
 0x768   :  { %v8135_v41 = vpop.f32.mrb[128].mxu1  ;;  %v8077_v5 = vpop.f32.mrb[132].mxu0 }
 0x769   :  { %v8136_v13 = vpop.f32.mrb[129].mxu1  ;;  %v8078_v14 = vpop.f32.mrb[133].mxu0 }
 0x76a   :  { %v8137_v53 = vadd.f32 %v8136_v13, %v8135_v41  ;;  %v8138_v26 = vpop.f32.mrb[130].mxu1  ;;  %v8079_v39 = vadd.f32 %v8078_v14, %v8077_v5  ;;  %v8080_v42 = vpop.f32.mrb[134].mxu0 }
 0x76b   :  { %v8139_v25 = vpop.f32.mrb[131].mxu1  ;;  %v8081_v60 = vpop.f32.mrb[135].mxu0 }
 0x76c   :  { %v8140_v44 = vadd.f32 %v8139_v25, %v8138_v26  ;;  %v12876_v6 = vadd.f32 %v8137_v53, %v8073_v19  ;;  %v8082_v59 = vadd.f32 %v8081_v60, %v8080_v42 }
 0x76e   :  { %v12878_v31 = vadd.f32 %v8140_v44, %v8076_v24 }
 0x774   :  { %v8083_v29 = vpop.f32.mrb[136].mxu0 }
 0x775   :  { %v8084_v63 = vpop.f32.mrb[137].mxu0 }
 0x776   :  { %v8085_v52 = vadd.f32 %v8084_v63, %v8083_v29  ;;  %v8086_v48 = vpop.f32.mrb[138].mxu0  ;;  %v12897_v63 = vld [vmem:[%s13265_s12 + $0x1] ss:$0 sm:$0xff] }
 0x777   :  { %v8087_v34 = vpop.f32.mrb[139].mxu0 }
 0x778   :  { %v8088_v0 = vadd.f32 %v8087_v34, %v8086_v48 }
 0x77c   :  { %v8089_v7 = vpop.f32.mrb[140].mxu0 }
 0x77d   :  { %v8090_v36 = vpop.f32.mrb[141].mxu0 }
 0x77e   :  { %v8091_v22 = vadd.f32 %v8090_v36, %v8089_v7  ;;  %v8092_v17 = vpop.f32.mrb[142].mxu0  ;;  %v12902_v36 = vld [vmem:[%s13266_s13 + $0x1] ss:$0 sm:$0xff] }
 0x77f   :  { %v8093_v32 = vpop.f32.mrb[143].mxu0 }
 0x780   :  { %v8094_v18 = vadd.f32 %v8093_v32, %v8092_v17 }
 0x784   :  { %v8095_v50 = vpop.f32.mrb[144].mxu0 }
 0x785   :  { %v8096_v40 = vpop.f32.mrb[145].mxu0 }
 0x786   :  { %v8097_v55 = vadd.f32 %v8096_v40, %v8095_v50  ;;  %v8098_v16 = vpop.f32.mrb[146].mxu0 }
 0x787   :  { %v8099_v56 = vpop.f32.mrb[147].mxu0 }
 0x788   :  { %v8100_v2 = vadd.f32 %v8099_v56, %v8098_v16 }
 0x78c   :  { %v8141_v62 = vpop.f32.mrb[132].mxu1 }
 0x78d   :  { %v8142_v11 = vpop.f32.mrb[133].mxu1 }
 0x78e   :  { %v8143_v12 = vadd.f32 %v8142_v11, %v8141_v62  ;;  %v8144_v3 = vpop.f32.mrb[134].mxu1 }
 0x78f   :  { %v8145_v58 = vpop.f32.mrb[135].mxu1 }
 0x790   :  { %v8146_v43 = vadd.f32 %v8145_v58, %v8144_v3  ;;  %v8101_v61 = vpop.f32.mrb[148].mxu0  ;;  %v6636_v57 = vadd.f32 %v8143_v12, %v8079_v39 }
 0x791   :  { %v8102_v4 = vpop.f32.mrb[149].mxu0 }
 0x792   :  { %v12880_v30 = vadd.f32 %v8102_v4, %v8101_v61  ;;  %v8104_v37 = vpop.f32.mrb[150].mxu0  ;;  %v6639_v9 = vadd.f32 %v8146_v43, %v8082_v59  ;;  %v14233_v43 = vld [vmem:[#allocation86_spill] sm:$0xff]  ;;  %v14234_v4 = vld [vmem:[#allocation88_spill] sm:$0xff] }
 0x793   :  { %v8105_v8 = vpop.f32.mrb[151].mxu0 }
 0x794   :  { %v12882_v20 = vadd.f32 %v8105_v8, %v8104_v37 }
 0x795   :  { %v8147_v21 = vpop.f32.mrb[136].mxu1 }
 0x796   :  { %v8148_v47 = vpop.f32.mrb[137].mxu1 }
 0x797   :  { %v8149_v28 = vadd.f32 %v8148_v47, %v8147_v21  ;;  %v8150_v27 = vpop.f32.mrb[138].mxu1  ;;  %v14235_v47 = vld [vmem:[#allocation96_spill] sm:$0xff] }
 0x798   :  { %v8151_v15 = vpop.f32.mrb[139].mxu1 }
 0x799   :  { %v8152_v51 = vadd.f32 %v8151_v15, %v8150_v27  ;;  %v8107_v49 = vpop.f32.mrb[152].mxu0  ;;  %v6644_v54 = vadd.f32 %v8149_v28, %v8085_v52 }
 0x79a   :  { %v8108_v35 = vpop.f32.mrb[153].mxu0 }
 0x79b   :  { %v12884_v1 = vadd.f32 %v8108_v35, %v8107_v49  ;;  %v8110_v38 = vpop.f32.mrb[154].mxu0  ;;  %v12886_v10 = vadd.f32 %v8152_v51, %v8088_v0  ;;  %v6867_v49 = vld [vmem:[%s13256_s3] sm:$0xff] }
 0x79c   :  { %v8111_v23 = vpop.f32.mrb[155].mxu0 }
 0x79d   :  { %v12888_v46 = vadd.f32 %v8111_v23, %v8110_v38 }
 0x79f   :  { %v8153_v19 = vpop.f32.mrb[140].mxu1 }
 0x7a0   :  { %v8154_v33 = vpop.f32.mrb[141].mxu1 }
 0x7a1   :  { %v8113_v45 = vpop.f32.mrb[156].mxu0  ;;  %v8155_v24 = vadd.f32 %v8154_v33, %v8153_v19  ;;  %v8156_v41 = vpop.f32.mrb[142].mxu1 }
 0x7a2   :  { %v8114_v13 = vpop.f32.mrb[157].mxu0  ;;  %v8157_v53 = vpop.f32.mrb[143].mxu1 }
 0x7a3   :  { %v12890_v26 = vadd.f32 %v8114_v13, %v8113_v45  ;;  %v8116_v25 = vpop.f32.mrb[158].mxu0  ;;  %v8158_v5 = vadd.f32 %v8157_v53, %v8156_v41  ;;  %v6652_v44 = vadd.f32 %v8155_v24, %v8091_v22  ;;  %v7595_v53 = vld [vmem:[%s13256_s3 + $0x90] sm:$0xff] }
 0x7a4   :  { %v8117_v14 = vpop.f32.mrb[159].mxu0 }
 0x7a5   :  { %v12892_v39 = vadd.f32 %v8117_v14, %v8116_v25  ;;  %v6655_v42 = vadd.f32 %v8158_v5, %v8094_v18 }
 0x7a7   :  { %v8159_v60 = vpop.f32.mrb[144].mxu1 }
 0x7a8   :  { %v8160_v59 = vpop.f32.mrb[145].mxu1 }
 0x7a9   :  { %v8312_v29 = vpop.f32.mrb[160].mxu0  ;;  %v8161_v52 = vadd.f32 %v8160_v59, %v8159_v60  ;;  %v8162_v48 = vpop.f32.mrb[146].mxu1 }
 0x7aa   :  { %v6733_v34 = vadd.f32 %v8312_v29, %v6636_v57  ;;  %v6724_v0 = vpop.f32.mrb[161].mxu0  ;;  %v8163_v7 = vpop.f32.mrb[147].mxu1 }
 0x7ab   :  { %v6725_v22 = vadd.f32 %v6724_v0, %v12876_v6  ;;  %v8313_v17 = vpop.f32.mrb[162].mxu0  ;;  %v8164_v32 = vadd.f32 %v8163_v7, %v8162_v48  ;;  %v6660_v18 = vadd.f32 %v8161_v52, %v8097_v55 }
 0x7ac   :  { %v6797_v50 = vmul.f32 %v12897_v63, %v6733_v34  ;;  %v6736_v40 = vadd.f32 %v8313_v17, %v6639_v9  ;;  %v6727_v16 = vpop.f32.mrb[163].mxu0 }
 0x7ad   :  { %v6795_v56 = vmul.f32 %v12897_v63, %v6725_v22  ;;  %v6728_v62 = vadd.f32 %v6727_v16, %v12878_v31  ;;  %v12908_v11 = vadd.f32 %v8164_v32, %v8100_v2  ;;  %v6869_v31 = vld [vmem:[%s13256_s3 + $0x10] sm:$0xff] }
 0x7ae   :  { %v6821_v12 = vadd.f32 %v12902_v36, %v6797_v50  ;;  %v6798_v3 = vmul.f32 %v12897_v63, %v6736_v40 }
 0x7af   :  { %v6819_v58 = vadd.f32 %v12902_v36, %v6795_v56  ;;  %v8165_v6 = vpop.f32.mrb[148].mxu1  ;;  %v6796_v45 = vmul.f32 %v12897_v63, %v6728_v62 }
 0x7b0   :  { %v6837_v61 = vadd.f32 %v6821_v12, %v14233_v43  ;;  %v6822_v55 = vadd.f32 %v12902_v36, %v6798_v3  ;;  %v8166_v57 = vpop.f32.mrb[149].mxu1 }
 0x7b1   :  { %v6835_v37 = vadd.f32 %v6819_v58, %v14234_v4  ;;  %v8316_v9 = vpop.f32.mrb[164].mxu0  ;;  %v8167_v8 = vadd.f32 %v8166_v57, %v8165_v6  ;;  %v8168_v21 = vpop.f32.mrb[150].mxu1  ;;  %v6820_v29 = vadd.f32 %v12902_v36, %v6796_v45  ;;  %v14236_v58 = vld [vmem:[#allocation61_spill] sm:$0xff]  ;;  %v14238_v45 = vld [vmem:[#allocation26_spill] sm:$0xff] }
 0x7b2   :  { %v6853_v2 = vmax.f32 %v6837_v61, 0.0  ;;  %v6838_v28 = vadd.f32 %v6822_v55, %v14235_v47  ;;  %v6749_v27 = vadd.f32 %v8316_v9, %v6652_v44  ;;  %v6740_v15 = vpop.f32.mrb[165].mxu0  ;;  %v8169_v51 = vpop.f32.mrb[151].mxu1  ;;  %v7593_v4 = vld [vmem:[%s13256_s3 + $0x80] sm:$0xff] }
 0x7b3   :  { %v12923_v35 = vmax.f32 %v6835_v37, 0.0  ;;  %v12925_v38 = vadd.f32 %v6740_v15, %v6644_v54  ;;  %v8317_v23 = vpop.f32.mrb[166].mxu0  ;;  %v8170_v19 = vadd.f32 %v8169_v51, %v8168_v21  ;;  %v6870_v54 = vld [vmem:[%s13256_s3 + $0x18] sm:$0xff]  ;;  %v6668_v14 = vadd.f32 %v8167_v8, %v12880_v30  ;;  %v7611_v30 = vld [vmem:[%s13256_s3 + $0x110] sm:$0xff] }
 0x7b4   :  { %v6854_v33 = vmax.f32 %v6838_v28, 0.0  ;;  %v6752_v24 = vadd.f32 %v8317_v23, %v6655_v42  ;;  %v6743_v41 = vpop.f32.mrb[167].mxu0  ;;  %v6885_v13 = vmul.f32 %v6869_v31, %v6853_v2  ;;  %v6966_v59 = vmul.f32 %v7595_v53, %v6853_v2  ;;  %v7612_v8 = vld [vmem:[%s13256_s3 + $0x118] sm:$0xff]  ;;  %v7594_v53 = vld [vmem:[%s13256_s3 + $0x88] sm:$0xff] }
 0x7b5   :  { %v12932_v25 = vadd.f32 %v6743_v41, %v12886_v10  ;;  %v6883_v5 = vmul.f32 %v6867_v49, %v12923_v35  ;;  %v6801_v10 = vmul.f32 %v12897_v63, %v6749_v27  ;;  %v6671_v48 = vadd.f32 %v8170_v19, %v12882_v20  ;;  %v7596_v20 = vld [vmem:[%s13256_s3 + $0x98] sm:$0xff] }
 0x7b6   :  { %v6905_v44 = vsel %vm708_vm3, %v6885_v13, 0.0  ;;  %v6886_v34 = vmul.f32 %v6870_v54, %v6854_v33  ;;  %v6802_v0 = vmul.f32 %v12897_v63, %v6752_v24  ;;  %v6986_v40 = vsel %vm708_vm3, %v6966_v59, 0.0  ;;  %v14237_v15 = vld [vmem:[#allocation80_spill] sm:$0xff] }
 0x7b7   :  { %6906 = vadd.xlane.f32.xlu0 %v6905_v44  ;;  %v6899_v42 = vsel %vm708_vm3, %v6883_v5, 0.0  ;;  %v8171_v60 = vpop.f32.mrb[152].mxu1  ;;  %v6836_v6 = vadd.f32 %v6820_v29, %v14236_v58  ;;  %v6825_v43 = vadd.f32 %v12902_v36, %v6801_v10  ;;  %v7047_v57 = vmul.f32 %v7611_v30, %v6853_v2  ;;  %v6868_v29 = vld [vmem:[%s13256_s3 + $0x8] sm:$0xff] }
 0x7b8   :  { %6900 = vadd.xlane.f32.xlu1 %v6899_v42  ;;  %v8172_v52 = vpop.f32.mrb[153].mxu1  ;;  %v6908_v12 = vsel %vm708_vm3, %v6886_v34, 0.0  ;;  %v6967_v9 = vmul.f32 %v7596_v20, %v6854_v33  ;;  %v6964_v28 = vmul.f32 %v7593_v4, %v12923_v35  ;;  %v7048_v19 = vmul.f32 %v7612_v8, %v6854_v33 }
 0x7b9   :  { %v8320_v7 = vpop.f32.mrb[168].mxu0  ;;  %v8173_v22 = vadd.f32 %v8172_v52, %v8171_v60  ;;  %v8174_v17 = vpop.f32.mrb[154].mxu1  ;;  %v7067_v21 = vsel %vm708_vm3, %v7047_v57, 0.0  ;;  %v6852_v27 = vmax.f32 %v6836_v6, 0.0  ;;  %v6841_v51 = vadd.f32 %v6825_v43, %v14237_v15  ;;  %v14240_v15 = vld [vmem:[#allocation60_spill] sm:$0xff] }
 0x7ba   :  { %v12948_v32 = vadd.f32 %v8320_v7, %v6668_v14  ;;  %v6756_v50 = vpop.f32.mrb[169].mxu0  ;;  %v8175_v16 = vpop.f32.mrb[155].mxu1  ;;  %v6989_v2 = vsel %vm708_vm3, %v6967_v9, 0.0  ;;  %v6980_v54 = vsel %vm708_vm3, %v6964_v28, 0.0  ;;  %v6799_v42 = vmul.f32 %v12897_v63, %v12925_v38 }
 0x7bb   :  { %v12954_v56 = vadd.f32 %v6756_v50, %v6660_v18  ;;  %6987 = vadd.xlane.f32.xlu0 %v6986_v40  ;;  %v8321_v62 = vpop.f32.mrb[170].mxu0  ;;  %v8176_v3 = vadd.f32 %v8175_v16, %v8174_v17  ;;  %v6826_v18 = vadd.f32 %v12902_v36, %v6802_v0  ;;  %v6676_v31 = vadd.f32 %v8173_v22, %v12884_v1 }
 0x7bc   :  { %v12959_v61 = vadd.f32 %v8321_v62, %v6671_v48  ;;  %v6759_v55 = vpop.f32.mrb[171].mxu0  ;;  %6909 = vadd.xlane.f32.xlu1 %v6908_v12  ;;  %v7070_v59 = vsel %vm708_vm3, %v7048_v19, 0.0  ;;  %v6857_v10 = vmax.f32 %v6841_v51, 0.0  ;;  %v6800_v52 = vmul.f32 %v12897_v63, %v12932_v25  ;;  %v6873_v12 = vld [vmem:[%s13256_s3 + $0x30] sm:$0xff] }
 0x7bd   :  { %v12966_v37 = vadd.f32 %v6759_v55, %v12908_v11  ;;  %v7609_v11 = vld [vmem:[%s13256_s3 + $0x100] sm:$0xff]  ;;  %v6679_v23 = vadd.f32 %v8176_v3, %v12888_v46  ;;  %v6842_v1 = vadd.f32 %v6826_v18, %v14238_v45  ;;  %v6965_v34 = vmul.f32 %v7594_v53, %v6852_v27  ;;  %v7615_v19 = vld [vmem:[%s13256_s3 + $0x130] sm:$0xff]  ;;  %v7616_v45 = vld [vmem:[%s13256_s3 + $0x138] sm:$0xff] }
 0x7be   :  { %v7045_v14 = vmul.f32 %v7609_v11, %v12923_v35  ;;  %v6884_v25 = vmul.f32 %v6868_v29, %v6852_v27  ;;  %v6823_v43 = vadd.f32 %v12902_v36, %v6799_v42  ;;  %v6889_v4 = vmul.f32 %v6873_v12, %v6857_v10  ;;  %v7597_v29 = vld [vmem:[%s13256_s3 + $0xa0] sm:$0xff] }
 0x7bf   :  { %7068 = vadd.xlane.f32.xlu0 %v7067_v21  ;;  %v8177_v47 = vpop.f32.mrb[156].mxu1  ;;  %v6858_v38 = vmax.f32 %v6842_v1, 0.0  ;;  %v6983_v50 = vsel %vm708_vm3, %v6965_v34, 0.0  ;;  %v6824_v18 = vadd.f32 %v12902_v36, %v6800_v52  ;;  %v7599_v21 = vld [vmem:[%s13256_s3 + $0xb0] sm:$0xff] }
 0x7c0   :  { %6990 = vadd.xlane.f32.xlu1 %v6989_v2  ;;  %v8178_v49 = vpop.f32.mrb[157].mxu1  ;;  %v7061_v30 = vsel %vm708_vm3, %v7045_v14, 0.0  ;;  %v6902_v57 = vsel %vm708_vm3, %v6884_v25, 0.0  ;;  %v7600_v2 = vld [vmem:[%s13256_s3 + $0xb8] sm:$0xff]  ;;  %v6917_v11 = vsel %vm708_vm3, %v6889_v4, 0.0  ;;  %v6871_v14 = vld [vmem:[%s13256_s3 + $0x20] sm:$0xff] }
 0x7c1   :  { %v8324_v24 = vpop.f32.mrb[172].mxu0  ;;  %v8179_v41 = vadd.f32 %v8178_v49, %v8177_v47  ;;  %v8180_v13 = vpop.f32.mrb[158].mxu1  ;;  %v14239_v47 = vld [vmem:[#allocation21_spill] sm:$0xff]  ;;  %v6840_v51 = vadd.f32 %v6824_v18, %v14240_v15  ;;  %v14241_v52 = vld [vmem:[#allocation82_spill] sm:$0xff] }
 0x7c2   :  { %v6772_v5 = vpop.f32.mrb[173].mxu0  ;;  %v8181_v44 = vpop.f32.mrb[159].mxu1  ;;  %v6839_v28 = vadd.f32 %v6823_v43, %v14239_v47  ;;  %v8572_v43 = vmov 0.0|0.0  }
 0x7c3   :  { %v6684_v46 = vadd.f32 %v8179_v41, %v12890_v26  ;;  %v6773_v33 = vadd.f32 %v6772_v5, %v6676_v31  ;;  %v8325_v60 = vpop.f32.mrb[174].mxu0  ;;  %6981 = vadd.xlane.f32.xlu0 %v6980_v54  ;;  %v8182_v35 = vadd.f32 %v8181_v44, %v8180_v13  ;;  %v7610_v26 = vld [vmem:[%s13256_s3 + $0x108] sm:$0xff]  ;;  %v7051_v13 = vmul.f32 %v7615_v19, %v6857_v10 }
 0x7c4   :  { %v6775_v48 = vpop.f32.mrb[175].mxu0  ;;  %7071 = vadd.xlane.f32.xlu1 %v7070_v59  ;;  %v7046_v62 = vmul.f32 %v7610_v26, %v6852_v27  ;;  %v6970_v27 = vmul.f32 %v7599_v21, %v6857_v10  ;;  %v6855_v1 = vmax.f32 %v6839_v28, 0.0  ;;  %v6856_v53 = vmax.f32 %v6840_v51, 0.0  ;;  %v7598_v10 = vld [vmem:[%s13256_s3 + $0xa8] sm:$0xff]  ;;  %8361 = vmatprep.subr.bf16.mxu1 %v8572_v43  ;;  %v7619_v51 = vld [vmem:[%s13256_s3 + $0x150] sm:$0xff] }
 0x7c5   :  { %v6781_v0 = vadd.f32 %v8324_v24, %v6684_v46  ;;  %v6807_v7 = vmul.f32 %v12897_v63, %v6773_v33  ;;  %v6776_v22 = vadd.f32 %v6775_v48, %v6679_v23  ;;  %v6687_v17 = vadd.f32 %v8182_v35, %v12892_v39  ;;  %v6874_v39 = vld [vmem:[%s13256_s3 + $0x38] sm:$0xff]  ;;  %v14242_v26 = vld [vmem:[#allocation77_spill] sm:$0xff] }
 0x7c6   :  { %v7064_v9 = vsel %vm708_vm3, %v7046_v62, 0.0  ;;  %v6890_v8 = vmul.f32 %v6874_v39, %v6858_v38  ;;  %v6971_v23 = vmul.f32 %v7600_v2, %v6858_v38  ;;  %v6805_v24 = vmul.f32 %v12897_v63, %v12948_v32  ;;  %v6872_v32 = vld [vmem:[%s13256_s3 + $0x28] sm:$0xff]  ;;  %v6877_v39 = vld [vmem:[%s13256_s3 + $0x50] sm:$0xff] }
 0x7c7   :  { %v6809_v40 = vmul.f32 %v12897_v63, %v6781_v0  ;;  %v13004_v16 = vadd.f32 %v12902_v36, %v6807_v7  ;;  %v6808_v20 = vmul.f32 %v12897_v63, %v6776_v22  ;;  %7062 = vadd.xlane.f32.xlu0 %v7061_v30  ;;  %v6784_v3 = vadd.f32 %v8325_v60, %v6687_v17  ;;  %v7613_v22 = vld [vmem:[%s13256_s3 + $0x120] sm:$0xff]  ;;  %v7614_v17 = vld [vmem:[%s13256_s3 + $0x128] sm:$0xff] }
 0x7c8   :  { %6984 = vadd.xlane.f32.xlu1 %v6983_v50  ;;  %v6920_v49 = vsel %vm708_vm3, %v6890_v8, 0.0  ;;  %v6998_v41 = vsel %vm708_vm3, %v6970_v27, 0.0  ;;  %v6806_v5 = vmul.f32 %v12897_v63, %v12959_v61  ;;  %v7001_v54 = vsel %vm708_vm3, %v6971_v23, 0.0  ;;  %v7604_v8 = vld [vmem:[%s13256_s3 + $0xd8] sm:$0xff]  ;;  %v14243_v21 = vld [vmem:[#allocation29_spill] sm:$0xff] }
 0x7c9   :  { %v13014_v58 = vadd.f32 %v12902_v36, %v6809_v40  ;;  %v13017_v6 = vadd.f32 %v12902_v36, %v6808_v20  ;;  %v6810_v55 = vmul.f32 %v12897_v63, %v6784_v3  ;;  %v7052_v44 = vmul.f32 %v7616_v45, %v6858_v38 }
 0x7ca   :  { %v6829_v42 = vadd.f32 %v12902_v36, %v6805_v24  ;;  %v7079_v46 = vsel %vm708_vm3, %v7051_v13, 0.0  ;;  %v6887_v33 = vmul.f32 %v6871_v14, %v6855_v1  ;;  %v6830_v61 = vadd.f32 %v12902_v36, %v6806_v5  ;;  %v6875_v13 = vld [vmem:[%s13256_s3 + $0x40] sm:$0xff] }
 0x7cb   :  { %6903 = vadd.xlane.f32.xlu0 %v6902_v57  ;;  %v13028_v31 = vadd.f32 %v12902_v36, %v6810_v55  ;;  %v7082_v60 = vsel %vm708_vm3, %v7052_v44, 0.0  ;;  %v6888_v59 = vmul.f32 %v6872_v32, %v6856_v53  ;;  %v6968_v34 = vmul.f32 %v7597_v29, %v6855_v1  ;;  %v7601_v32 = vld [vmem:[%s13256_s3 + $0xc0] sm:$0xff] }
 0x7cc   :  { %7065 = vadd.xlane.f32.xlu1 %v7064_v9  ;;  %v6845_v48 = vadd.f32 %v6829_v42, %v14241_v52  ;;  %v6911_v35 = vsel %vm708_vm3, %v6887_v33, 0.0  ;;  %v6846_v38 = vadd.f32 %v6830_v61, %v14242_v26  ;;  %v6969_v7 = vmul.f32 %v7598_v10, %v6856_v53  ;;  %v7603_v9 = vld [vmem:[%s13256_s3 + $0xd0] sm:$0xff]  ;;  %v7602_v42 = vld [vmem:[%s13256_s3 + $0xc8] sm:$0xff]  ;;  %v7617_v10 = vld [vmem:[%s13256_s3 + $0x140] sm:$0xff] }
 0x7cd   :  { %v6914_v0 = vsel %vm708_vm3, %v6888_v59, 0.0  ;;  %v6803_v30 = vmul.f32 %v12897_v63, %v12954_v56  ;;  %v6992_v25 = vsel %vm708_vm3, %v6968_v34, 0.0  ;;  %v7049_v40 = vmul.f32 %v7613_v22, %v6855_v1  ;;  %v6878_v56 = vld [vmem:[%s13256_s3 + $0x58] sm:$0xff]  ;;  %v14246_v52 = vld [vmem:[#allocation10_spill] sm:$0xff] }
 0x7ce   :  { %v6861_v50 = vmax.f32 %v6845_v48, 0.0  ;;  %v6862_v20 = vmax.f32 %v6846_v38, 0.0  ;;  %v6804_v62 = vmul.f32 %v12897_v63, %v12966_v37  ;;  %v6995_v12 = vsel %vm708_vm3, %v6969_v7, 0.0  ;;  %v14245_v61 = vld [vmem:[#allocation79_spill] sm:$0xff] }
 0x7cf   :  { %6918 = vadd.xlane.f32.xlu0 %v6917_v11  ;;  %v7050_v3 = vmul.f32 %v7614_v17, %v6856_v53  ;;  %v6827_v55 = vadd.f32 %v12902_v36, %v6803_v30  ;;  %v7073_v63 = vsel %vm708_vm3, %v7049_v40, 0.0  ;;  %v14244_v11 = vld [vmem:[#allocation34_spill] sm:$0xff]  ;;  %v6850_v48 = vadd.f32 %v13028_v31, %v14246_v52  ;;  %v6882_v31 = vld [vmem:[%s13256_s3 + $0x78] sm:$0xff]  ;;  %v14248_v40 = vld [vmem:[#allocation81_spill] sm:$0xff] }
 0x7d0   :  { %6921 = vadd.xlane.f32.xlu1 %v6920_v49  ;;  %v6893_v37 = vmul.f32 %v6877_v39, %v6861_v50  ;;  %v6828_v57 = vadd.f32 %v12902_v36, %v6804_v62  ;;  %v6894_v18 = vmul.f32 %v6878_v56, %v6862_v20  ;;  %v6974_v28 = vmul.f32 %v7603_v9, %v6861_v50  ;;  %v7620_v49 = vld [vmem:[%s13256_s3 + $0x158] sm:$0xff]  ;;  %v6876_v53 = vld [vmem:[%s13256_s3 + $0x48] sm:$0xff]  ;;  %v6881_v7 = vld [vmem:[%s13256_s3 + $0x70] sm:$0xff] }
 0x7d1   :  { %v7076_v4 = vsel %vm708_vm3, %v7050_v3, 0.0  ;;  %v6843_v2 = vadd.f32 %v6827_v55, %v14243_v21  ;;  %v6975_v15 = vmul.f32 %v7604_v8, %v6862_v20  ;;  %v7055_v45 = vmul.f32 %v7619_v51, %v6861_v50  ;;  %v14247_v17 = vld [vmem:[#allocation63_spill] sm:$0xff]  ;;  %v7622_v51 = vld [vmem:[%s13256_s3 + $0x168] sm:$0xff] }
 0x7d2   :  { %v6929_v47 = vsel %vm708_vm3, %v6893_v37, 0.0  ;;  %v6844_v36 = vadd.f32 %v6828_v57, %v14244_v11  ;;  %v6932_v27 = vsel %vm708_vm3, %v6894_v18, 0.0  ;;  %v7010_v19 = vsel %vm708_vm3, %v6974_v28, 0.0  ;;  %v7607_v3 = vld [vmem:[%s13256_s3 + $0xf0] sm:$0xff]  ;;  %v7608_v39 = vld [vmem:[%s13256_s3 + $0xf8] sm:$0xff]  ;;  %v6879_v57 = vld [vmem:[%s13256_s3 + $0x60] sm:$0xff] }
 0x7d3   :  { %6999 = vadd.xlane.f32.xlu0 %v6998_v41  ;;  %v6859_v23 = vmax.f32 %v6843_v2, 0.0  ;;  %v7013_v24 = vsel %vm708_vm3, %v6975_v15, 0.0  ;;  %v7056_v41 = vmul.f32 %v7620_v49, %v6862_v20  ;;  %v7091_v5 = vsel %vm708_vm3, %v7055_v45, 0.0  ;;  %v7605_v2 = vld [vmem:[%s13256_s3 + $0xe0] sm:$0xff] }
 0x7d4   :  { %7002 = vadd.xlane.f32.xlu1 %v7001_v54  ;;  %v6860_v1 = vmax.f32 %v6844_v36, 0.0  ;;  %v6866_v22 = vmax.f32 %v6850_v48, 0.0  ;;  %v6847_v30 = vadd.f32 %v13004_v16, %v14247_v17  ;;  %v6848_v20 = vadd.f32 %v13017_v6, %v14248_v40  ;;  %v7621_v15 = vld [vmem:[%s13256_s3 + $0x160] sm:$0xff] }
 0x7d5   :  { %v6891_v54 = vmul.f32 %v6875_v13, %v6859_v23  ;;  %v7094_v44 = vsel %vm708_vm3, %v7056_v41, 0.0  ;;  %v6972_v33 = vmul.f32 %v7601_v32, %v6859_v23  ;;  %v7053_v26 = vmul.f32 %v7617_v10, %v6859_v23 }
 0x7d6   :  { %v6892_v14 = vmul.f32 %v6876_v53, %v6860_v1  ;;  %v6973_v29 = vmul.f32 %v7602_v42, %v6860_v1  ;;  %v6863_v16 = vmax.f32 %v6847_v30, 0.0  ;;  %v6979_v37 = vmul.f32 %v7608_v39, %v6866_v22 }
 0x7d7   :  { %7080 = vadd.xlane.f32.xlu0 %v7079_v46  ;;  %v6923_v46 = vsel %vm708_vm3, %v6891_v54, 0.0  ;;  %v7004_v34 = vsel %vm708_vm3, %v6972_v33, 0.0  ;;  %v7085_v50 = vsel %vm708_vm3, %v7053_v26, 0.0 }
 0x7d8   :  { %7083 = vadd.xlane.f32.xlu1 %v7082_v60  ;;  %v6849_v60 = vadd.f32 %v13014_v58, %v14245_v61  ;;  %v6926_v59 = vsel %vm708_vm3, %v6892_v14, 0.0  ;;  %v7007_v38 = vsel %vm708_vm3, %v6973_v29, 0.0  ;;  %v6895_v9 = vmul.f32 %v6879_v57, %v6863_v16 }
 0x7d9   :  { %v7025_v8 = vsel %vm708_vm3, %v6979_v37, 0.0  ;;  %v6976_v11 = vmul.f32 %v7605_v2, %v6863_v16  ;;  %v7057_v23 = vmul.f32 %v7621_v15, %v6863_v16  ;;  %v14249_v14 = vmov 0.0  }
 0x7da   :  { %v6865_v58 = vmax.f32 %v6849_v60, 0.0  ;;  %v6935_v28 = vsel %vm708_vm3, %v6895_v9, 0.0  ;;  %8358 = vmatprep.mubr.msk.f32.mxu1 %vm8573_vm5, %v14249_v14 }
 0x7db   :  { %6912 = vadd.xlane.f32.xlu0 %v6911_v35  ;;  %v7618_v35 = vld [vmem:[%s13256_s3 + $0x148] sm:$0xff]  ;;  %v7016_v49 = vsel %vm708_vm3, %v6976_v11, 0.0  ;;  %v7097_v41 = vsel %vm708_vm3, %v7057_v23, 0.0 }
 0x7dc   :  { %6915 = vadd.xlane.f32.xlu1 %v6914_v0  ;;  %v7054_v0 = vmul.f32 %v7618_v35, %v6860_v1  ;;  %v6978_v55 = vmul.f32 %v7607_v3, %v6865_v58  ;;  %v7623_v1 = vld [vmem:[%s13256_s3 + $0x170] sm:$0xff] }
 0x7dd   :  { %v7059_v13 = vmul.f32 %v7623_v1, %v6865_v58 }
 0x7de   :  { %v7088_v62 = vsel %vm708_vm3, %v7054_v0, 0.0  ;;  %v7022_v18 = vsel %vm708_vm3, %v6978_v55, 0.0 }
 0x7df   :  { %6993 = vadd.xlane.f32.xlu0 %v6992_v25  ;;  %v6897_v25 = vmul.f32 %v6881_v7, %v6865_v58  ;;  %v7103_v54 = vsel %vm708_vm3, %v7059_v13, 0.0 }
 0x7e0   :  { %6996 = vadd.xlane.f32.xlu1 %v6995_v12  ;;  %v6898_v12 = vmul.f32 %v6882_v31, %v6866_v22 }
 0x7e1   :  { %v6941_v56 = vsel %vm708_vm3, %v6897_v25, 0.0 }
 0x7e2   :  { %v6944_v6 = vsel %vm708_vm3, %v6898_v12, 0.0 }
 0x7e3   :  { %7074 = vadd.xlane.f32.xlu0 %v7073_v63  ;;  %v6864_v63 = vmax.f32 %v6848_v20, 0.0 }
 0x7e4   :  { %7077 = vadd.xlane.f32.xlu1 %v7076_v4  ;;  %v6880_v4 = vld [vmem:[%s13256_s3 + $0x68] sm:$0xff] }
 0x7e5   :  { %v6896_v21 = vmul.f32 %v6880_v4, %v6864_v63  ;;  %v7058_v45 = vmul.f32 %v7622_v51, %v6864_v63 }
 0x7e7   :  { %6930 = vadd.xlane.f32.xlu0 %v6929_v47  ;;  %v7606_v47 = vld [vmem:[%s13256_s3 + $0xe8] sm:$0xff]  ;;  %v6938_v36 = vsel %vm708_vm3, %v6896_v21, 0.0  ;;  %v7100_v53 = vsel %vm708_vm3, %v7058_v45, 0.0 }
 0x7e8   :  { %6933 = vadd.xlane.f32.xlu1 %v6932_v27  ;;  %v6977_v27 = vmul.f32 %v7606_v47, %v6864_v63 }
 0x7eb   :  { %7011 = vadd.xlane.f32.xlu0 %v7010_v19  ;;  %v7019_v19 = vsel %vm708_vm3, %v6977_v27, 0.0 }
 0x7ec   :  { %7014 = vadd.xlane.f32.xlu1 %v7013_v24  ;;  %v7624_v24 = vld [vmem:[%s13256_s3 + $0x178] sm:$0xff] }
 0x7ef   :  { %7092 = vadd.xlane.f32.xlu0 %v7091_v5  ;;  %v7060_v5 = vmul.f32 %v7624_v24, %v6866_v22 }
 0x7f0   :  { %7095 = vadd.xlane.f32.xlu1 %v7094_v44 }
 0x7f1   :  { %v7106_v44 = vsel %vm708_vm3, %v7060_v5, 0.0 }
 0x7f3   :  { %6924 = vadd.xlane.f32.xlu0 %v6923_v46 }
 0x7f4   :  { %6927 = vadd.xlane.f32.xlu1 %v6926_v59 }
 0x7f7   :  { %7005 = vadd.xlane.f32.xlu0 %v7004_v34 }
 0x7f8   :  { %7008 = vadd.xlane.f32.xlu1 %v7007_v38 }
 0x7fb   :  { %7086 = vadd.xlane.f32.xlu0 %v7085_v50 }
 0x7fc   :  { %7089 = vadd.xlane.f32.xlu1 %v7088_v62 }
 0x7ff   :  { %6942 = vadd.xlane.f32.xlu0 %v6941_v56 }
 0x800   :  { %6945 = vadd.xlane.f32.xlu1 %v6944_v6 }
 0x803   :  { %7023 = vadd.xlane.f32.xlu0 %v7022_v18 }
 0x804   :  { %7026 = vadd.xlane.f32.xlu1 %v7025_v8 }
 0x807   :  { %6936 = vadd.xlane.f32.xlu0 %v6935_v28 }
 0x808   :  { %6939 = vadd.xlane.f32.xlu1 %v6938_v36 }
 0x80b   :  { %7017 = vadd.xlane.f32.xlu0 %v7016_v49 }
 0x80c   :  { %7020 = vadd.xlane.f32.xlu1 %v7019_v19 }
 0x80f   :  { %7098 = vadd.xlane.f32.xlu0 %v7097_v41 }
 0x810   :  { %7101 = vadd.xlane.f32.xlu1 %v7100_v53 }
 0x813   :  { %7104 = vadd.xlane.f32.xlu0 %v7103_v54 }
 0x814   :  { %7107 = vadd.xlane.f32.xlu1 %v7106_v44 }
 0x844   :  { %v6907_v32 = vpop.xlane.xlu0 %6906 }
 0x845   :  { %v6901_v42 = vpop.xlane.xlu1 %6900 }
 0x848   :  { %v6988_v46 = vpop.xlane.xlu0 %6987 }
 0x849   :  { %v6910_v33 = vpop.xlane.xlu1 %6909  ;;  %v7112_v17 = vsel %vm7109_vm6, %v6907_v32, %v6988_v46 }
 0x84c   :  { %v7069_v61 = vpop.xlane.xlu0 %7068 }
 0x84d   :  { %v6991_v60 = vpop.xlane.xlu1 %6990  ;;  %v7129_v50 = vsel %vm7126_vm7, %v7112_v17, %v7069_v61 }
 0x84e   :  { %v7113_v0 = vsel %vm7109_vm6, %v6910_v33, %v6991_v60 }
 0x850   :  { %v6982_v59 = vpop.xlane.xlu0 %6981 }
 0x851   :  { %v7072_v29 = vpop.xlane.xlu1 %7071  ;;  %v7110_v35 = vsel %vm7109_vm6, %v6901_v42, %v6982_v59 }
 0x852   :  { %v7130_v22 = vsel %vm7126_vm7, %v7113_v0, %v7072_v29 }
 0x853   :  { %v8365_v25 = vpack.c.bf16 %v7130_v22, %v7129_v50 }
 0x854   :  { %v7063_v10 = vpop.xlane.xlu0 %7062 }
 0x855   :  { %v6985_v52 = vpop.xlane.xlu1 %6984  ;;  %v7127_v58 = vsel %vm7126_vm7, %v7110_v35, %v7063_v10 }
 0x858   :  { %v6904_v48 = vpop.xlane.xlu0 %6903 }
 0x859   :  { %v7111_v34 = vsel %vm7109_vm6, %v6904_v48, %v6985_v52  ;;  %v7066_v26 = vpop.xlane.xlu1 %7065 }
 0x85a   :  { %v7128_v38 = vsel %vm7126_vm7, %v7111_v34, %v7066_v26 }
 0x85b   :  { %v8362_v7 = vpack.c.bf16 %v7128_v38, %v7127_v58 }
 0x85c   :  { %v6919_v31 = vpop.xlane.xlu0 %6918 }
 0x85d   :  { %v6922_v30 = vpop.xlane.xlu1 %6921  ;;  %8363 = vmatpush3.bf16.msra.mxu1 %v8362_v7 }
 0x85e   :  { %8364 = vmatprep.subr.bf16.mxu1 %v8572_v43 }
 0x860   :  { %v7000_v40 = vpop.xlane.xlu0 %6999 }
 0x861   :  { %v7003_v20 = vpop.xlane.xlu1 %7002  ;;  %8366 = vmatpush3.bf16.msra.mxu1 %v8365_v25  ;;  %v7116_v18 = vsel %vm7109_vm6, %v6919_v31, %v7000_v40 }
 0x862   :  { %8367 = vmatprep.subr.bf16.mxu1 %v8572_v43  ;;  %v7117_v9 = vsel %vm7109_vm6, %v6922_v30, %v7003_v20  ;;  %v7143_v20 = vld [vmem:[%s13255_s2] sm:$0x3]  ;;  %s8574_s2 = smov [#allocation2]  }
 0x864   :  { %v7081_v62 = vpop.xlane.xlu0 %7080 }
 0x865   :  { %v7084_v12 = vpop.xlane.xlu1 %7083  ;;  %v7133_v21 = vsel %vm7126_vm7, %v7116_v18, %v7081_v62  ;;  %v7625_v62 = vld [vmem:[%s13257_s4] ss:$0 sm:$0xff]  ;;  %s7242_s4 = sshll.u32 %s8574_s2, 4  ;;  %s7243_s4 = int_to_ptr.vmem [resolvable:$true] %s7242_s4 }
 0x866   :  { %v7134_v2 = vsel %vm7126_vm7, %v7117_v9, %v7084_v12  ;;  %s8545_s30 = scalar_lea.vmem %s7243_s4, 32  ;;  %p8550_p1 = scmp.lt.s32.totalorder %s7243_s4, %s7243_s4 }
 0x867   :  { %v8371_v11 = vpack.c.bf16 %v7134_v2, %v7133_v21  ;;  %p8546_p0 = scmp.ne.s32.totalorder %s7243_s4, %s8545_s30  ;;  %p8551_p2 = scmp.lt.s32.totalorder %s8545_s30, %s8545_s30 }
 0x868   :  { %v6913_v3 = vpop.xlane.xlu0 %6912 }
 0x869   :  { %v6916_v39 = vpop.xlane.xlu1 %6915  ;;  %p8552_p3 = por %p8551_p2, %p8550_p1 }
 0x86b   :  { %p8553_p4 = pnand %p8552_p3, %p8546_p0 }
 0x86c   :  { %v6994_v16 = vpop.xlane.xlu0 %6993 }
 0x86d   :  { %v6997_v56 = vpop.xlane.xlu1 %6996  ;;  %v7114_v55 = vsel %vm7109_vm6, %v6913_v3, %v6994_v16 }
 0x86e   :  { %v7115_v6 = vsel %vm7109_vm6, %v6916_v39, %v6997_v56 }
 0x870   :  { %v7075_v63 = vpop.xlane.xlu0 %7074 }
 0x871   :  { %v7131_v37 = vsel %vm7126_vm7, %v7114_v55, %v7075_v63  ;;  %v7078_v57 = vpop.xlane.xlu1 %7077 }
 0x872   :  { %v7132_v4 = vsel %vm7126_vm7, %v7115_v6, %v7078_v57 }
 0x873   :  { %v8368_v8 = vpack.c.bf16 %v7132_v4, %v7131_v37 }
 0x874   :  { %v6931_v47 = vpop.xlane.xlu0 %6930 }
 0x875   :  { %v6934_v28 = vpop.xlane.xlu1 %6933  ;;  %8369 = vmatpush3.bf16.msra.mxu1 %v8368_v8 }
 0x876   :  { %8370 = vmatprep.subr.bf16.mxu1 %v8572_v43 }
 0x878   :  { %v7012_v36 = vpop.xlane.xlu0 %7011 }
 0x879   :  { %v7015_v27 = vpop.xlane.xlu1 %7014  ;;  %8372 = vmatpush3.bf16.msra.mxu1 %v8371_v11  ;;  %v7120_v54 = vsel %vm7109_vm6, %v6931_v47, %v7012_v36 }
 0x87a   :  { %8373 = vmatprep.subr.bf16.mxu1 %v8572_v43  ;;  %v7121_v44 = vsel %vm7109_vm6, %v6934_v28, %v7015_v27 }
 0x87c   :  { %v7093_v15 = vpop.xlane.xlu0 %7092 }
 0x87d   :  { %v7096_v51 = vpop.xlane.xlu1 %7095  ;;  %v7137_v32 = vsel %vm7126_vm7, %v7120_v54, %v7093_v15 }
 0x87e   :  { %v7138_v42 = vsel %vm7126_vm7, %v7121_v44, %v7096_v51 }
 0x87f   :  { %v8377_v61 = vpack.c.bf16 %v7138_v42, %v7137_v32 }
 0x880   :  { %v6925_v49 = vpop.xlane.xlu0 %6924 }
 0x881   :  { %v6928_v23 = vpop.xlane.xlu1 %6927 }
 0x884   :  { %v7006_v19 = vpop.xlane.xlu0 %7005 }
 0x885   :  { %v7009_v45 = vpop.xlane.xlu1 %7008  ;;  %v7118_v1 = vsel %vm7109_vm6, %v6925_v49, %v7006_v19 }
 0x886   :  { %v7119_v41 = vsel %vm7109_vm6, %v6928_v23, %v7009_v45 }
 0x888   :  { %v7087_v24 = vpop.xlane.xlu0 %7086 }
 0x889   :  { %v7135_v13 = vsel %vm7126_vm7, %v7118_v1, %v7087_v24  ;;  %v7090_v53 = vpop.xlane.xlu1 %7089 }
 0x88a   :  { %v7136_v5 = vsel %vm7126_vm7, %v7119_v41, %v7090_v53 }
 0x88b   :  { %v8374_v14 = vpack.c.bf16 %v7136_v5, %v7135_v13 }
 0x88c   :  { %v6943_v46 = vpop.xlane.xlu0 %6942 }
 0x88d   :  { %v6946_v33 = vpop.xlane.xlu1 %6945  ;;  %8375 = vmatpush3.bf16.msra.mxu1 %v8374_v14 }
 0x88e   :  { %8376 = vmatprep.subr.bf16.mxu1 %v8572_v43 }
 0x890   :  { %v7024_v60 = vpop.xlane.xlu0 %7023 }
 0x891   :  { %v7027_v59 = vpop.xlane.xlu1 %7026  ;;  %8378 = vmatpush3.bf16.msra.mxu1 %v8377_v61  ;;  %v7124_v22 = vsel %vm7109_vm6, %v6943_v46, %v7024_v60 }
 0x892   :  { %8379 = vmatprep.subr.bf16.mxu1 %v8572_v43  ;;  %v7125_v17 = vsel %vm7109_vm6, %v6946_v33, %v7027_v59 }
 0x894   :  { %v6937_v29 = vpop.xlane.xlu0 %6936 }
 0x895   :  { %v6940_v10 = vpop.xlane.xlu1 %6939 }
 0x898   :  { %v7018_v52 = vpop.xlane.xlu0 %7017 }
 0x899   :  { %v7021_v48 = vpop.xlane.xlu1 %7020  ;;  %v7122_v35 = vsel %vm7109_vm6, %v6937_v29, %v7018_v52 }
 0x89a   :  { %v7123_v26 = vsel %vm7109_vm6, %v6940_v10, %v7021_v48 }
 0x89c   :  { %v7099_v34 = vpop.xlane.xlu0 %7098 }
 0x89d   :  { %v7139_v58 = vsel %vm7126_vm7, %v7122_v35, %v7099_v34  ;;  %v7102_v38 = vpop.xlane.xlu1 %7101 }
 0x89e   :  { %v7140_v0 = vsel %vm7126_vm7, %v7123_v26, %v7102_v38 }
 0x89f   :  { %v8380_v7 = vpack.c.bf16 %v7140_v0, %v7139_v58 }
 0x8a0   :  { %v7105_v31 = vpop.xlane.xlu0 %7104 }
 0x8a1   :  { %v7141_v30 = vsel %vm7126_vm7, %v7124_v22, %v7105_v31  ;;  %v7108_v50 = vpop.xlane.xlu1 %7107  ;;  %8381 = vmatpush3.bf16.msra.mxu1 %v8380_v7 }
 0x8a2   :  { %v7142_v25 = vsel %vm7126_vm7, %v7125_v17, %v7108_v50  ;;  %8382 = vmatprep.subr.bf16.mxu1 %v8572_v43 }
 0x8a3   :  { %v8383_v40 = vpack.c.bf16 %v7142_v25, %v7141_v30 }
 0x8a5   :  { %8384 = vmatpush3.bf16.msra.mxu1 %v8383_v40 }
 0x8a8   :  { %8359 = vmatmul.mubr.f32.vlgmr.msra.gmra.mrb[160].mxu1 %v7143_v20 }
 0x97b   :  { %v7217_v12 = vpop.f32.mrb[160].mxu1 }
 0x97c   :  { %v7218_v3 = vadd.f32 %v7625_v62, %v7217_v12  ;;  %v8360_v39 = vpop.f32.mrb[161].mxu1 }
 0x97e   :  { %v7222_v16 = vsel %vm7221_vm8, %v7218_v3, -inf }
 0x97f   :  { %7223 = vmax.xlane.f32.xlu0 %v7222_v16 }
 0xa0c   :  { %v7224_v56 = vpop.xlane.xlu0 %7223 }
 0xa0d   :  { %v7225_v43 = vsub.f32 %v7218_v3, %v7224_v56 }
 0xa0f   :  { %v7226_v55 = vmul.f32 1.442695, %v7225_v43 }
 0xa11   :  { %8541 = vpow2.f32 %v7226_v55 }
 0xa1b   :  { %v8542_v63 = vpop.eup %8541 }
 0xa1c   :  { %v7228_v6 = vsel %vm7221_vm8, %v8542_v63, 0.0 }
 0xa1d   :  { %7229 = vadd.xlane.f32.xlu1 %v7228_v6 }
 0xaaa   :  { %v7230_v37 = vpop.xlane.xlu1 %7229 }
 0xaab   :  { %8543 = vlog2.f32 %v7230_v37 }
 0xab5   :  { %v8544_v57 = vpop.eup %8543 }
 0xab6   :  { %v7232_v4 = vmul.f32 0.6931472, %v8544_v57 }
 0xab8   :  { %v7233_v18 = vadd.f32 %v7232_v4, %v7224_v56 }
 0xaba   :  { %v7234_v9 = vsub.f32 %v7218_v3, %v7233_v18 }
 0xabc   :  { %7235 = vst.msk [vmem:[#allocation2] sm:$0x3] %vm7221_vm8, %v7234_v9 }
 0xabd   :  { %8556 = shalt.err (!%p8553_p4)
}
 0xabe   :  { %s8557_s16 = scalar_lea.hbm %s13267_s14, 32 }
 0xabf   :  { %p8558_p5 = scmp.ne.s32.totalorder %s13267_s14, %s8557_s16  ;;  %p8561_p6 = scmp.lt.u32.totalorder %s8557_s16, %s13267_s14 }
 0xac1   :  { %p8563_p7 = pnand %p8561_p6, %p8558_p5 }
 0xac3   :  { %8566 = shalt.err (!%p8563_p7)
}
 0xac4   :  { %7245 = dma.vmem_to_hbm [thread:$0]  %s7243_s4, 32, %s13267_s14, [#allocation3]  }
 0xac5   :  { %8567 = dma.done.wait [#allocation3], 32  }
 0xac6   :  { %8568 = vsyncadd [#allocation3], 4294967264 }
 0xac7   :  { %7249 = vsyncpa [#allocation3], 1 }

</bundles_post_ra>
